<compile_context>
chip_gen: v7x
topology: tpu7x:2x2x1
jax: 0.10.0
libtpu: 0.0.40
codegen_flags: <defaults>
</compile_context>

<pallas_src>
import numpy as np
import jax
import jax.numpy as jnp
from jax import lax
from jax.experimental import pallas as pl
from jax.experimental.pallas import tpu as pltpu


# Lane-padded widths (multiples of 128 -> unmasked vregs).
_H1_LANES = 256    # conv1 out: lane = j*10 + c   (j<24, c<10)  -> 240 used
_P1_LANES = 128    # pool1 out: lane = w*10 + c   (w<12, c<10)  -> 120 used
_H2_LANES = 256    # conv2 out: lane = j*20 + co  (j<8,  co<20) -> 160 used
_P2_LANES = 128    # pool2 out: lane = w*20 + co  (w<4,  co<20) ->  80 used
_FC1_LANES = 128   # fc1 out: 50 used


# ------------------------------------------------------------------ kernel --
def _discriminator_kernel(x_ref, b1w_ref, b1b_ref, s1_ref,
                          b2w_ref, b2b_ref, s2_ref,
                          fw1_ref, fb1_ref, fw2_ref, fb2_ref, out_ref):
    f32, bf16 = jnp.float32, jnp.bfloat16
    B = x_ref.shape[0]

    x = x_ref[...].astype(f32).reshape(B, 28, 28)          # whole batch tile

    # conv1 (1->10, k=5, VALID): 5 banded K=28 MXU dots over the batched slab.
    h1 = jnp.dot(x[:, 0:24, :].reshape(B * 24, 28).astype(bf16), b1w_ref[0],
                 preferred_element_type=f32)
    for di in range(1, 5):
        h1 = h1 + jnp.dot(x[:, di:di + 24, :].reshape(B * 24, 28).astype(bf16),
                          b1w_ref[di], preferred_element_type=f32)
    h1 = h1 + b1b_ref[...]                                  # (B*24, 256)

    # 2x2 max-pool + relu: rows via sublane-pair max, cols via 0/1 select dots.
    r1 = jnp.max(h1.reshape(B * 12, 2, _H1_LANES), axis=1).astype(bf16)
    p1 = jnp.maximum(jnp.dot(r1, s1_ref[0], preferred_element_type=f32),
                     jnp.dot(r1, s1_ref[1], preferred_element_type=f32))
    p1 = jnp.maximum(p1, 0.0).reshape(B, 12, _P1_LANES)     # (B, 12, 128)

    # conv2 (10->20, k=5): im2col over the 5 row taps (128-aligned lane concat)
    # folded into a single K=640 MXU matmul.
    # TODO(synk): nn.Dropout2d treated as identity (eval-mode semantics).
    cols2 = jnp.concatenate([p1[:, di:di + 8, :] for di in range(5)], axis=-1)
    h2 = jnp.dot(cols2.reshape(B * 8, 5 * _P1_LANES).astype(bf16), b2w_ref[...],
                 preferred_element_type=f32) + b2b_ref[...]  # (B*8, 256)

    # 2x2 max-pool + relu.
    r2 = jnp.max(h2.reshape(B * 4, 2, _H2_LANES), axis=1).astype(bf16)
    p2 = jnp.maximum(jnp.dot(r2, s2_ref[0], preferred_element_type=f32),
                     jnp.dot(r2, s2_ref[1], preferred_element_type=f32))
    p2 = jnp.maximum(p2, 0.0).reshape(B, 4, _P2_LANES)      # (B, 4, 128)

    # fc1 (320 -> 50): flatten (h, w, c) via 128-aligned lane concat; PyTorch's
    # (c, h, w) flatten order is absorbed into the host-side fc1 row reorder.
    flat = jnp.concatenate([p2[:, h, :] for h in range(4)], axis=-1)  # (B, 512)
    z = jnp.dot(flat.astype(bf16), fw1_ref[...],
                preferred_element_type=f32) + fb1_ref[...]
    z = jnp.maximum(z, 0.0)                                 # (B, 128)
    # TODO(synk): F.dropout treated as identity (eval-mode semantics).

    # fc2 (50 -> 1) + sigmoid, emitted lane-dense as a (1, B) row.
    y = jnp.dot(fw2_ref[...], z.T, preferred_element_type=f32) + fb2_ref[...]
    out_ref[0] = pl.reciprocal(1.0 + jnp.exp(-y), approx=True)      # (1, B)


# ----------------------------------------------------------------- wrapper --
def _round_up(v, m):
    return (v + m - 1) // m * m


def discriminator_forward(x, kp, block_b=256):
    n = x.shape[0]
    bb = min(block_b, _round_up(n, 8))          # samples per grid step
    n_pad = _round_up(n, bb)
    num_blocks = n_pad // bb

    xb = x.astype(jnp.bfloat16)                 # bf16 HBM traffic for inputs
    if n_pad != n:
        xb = jnp.pad(xb, ((0, n_pad - n), (0, 0), (0, 0), (0, 0)))

    names = ("B1", "b1", "S1", "B2", "b2", "S2", "FW1", "fb1", "FW2", "fb2")
    weights = [kp[k] for k in names]

    def full_spec(a):
        nd = a.ndim
        return pl.BlockSpec(a.shape, lambda b, _nd=nd: (0,) * _nd)

    out = pl.pallas_call(
        _discriminator_kernel,
        out_shape=jax.ShapeDtypeStruct((num_blocks, 1, bb), jnp.float32),
        grid=(num_blocks,),
        in_specs=[pl.BlockSpec((bb, 1, 28, 28), lambda b: (b, 0, 0, 0))]
                 + [full_spec(w) for w in weights],
        out_specs=pl.BlockSpec((1, 1, bb), lambda b: (b, 0, 0)),
        compiler_params=pltpu.CompilerParams(
            dimension_semantics=("parallel",),          # megacore on v7x
            vmem_limit_bytes=48 * 1024 * 1024),
    )(xb, *weights)
    return out.reshape(n_pad, 1)[:n]


# ----------------------------------------------------- parameter construction
def make_torch_params(key):
    ks = jax.random.split(key, 8)
    return {
        "conv1_w": 0.1 * jax.random.normal(ks[0], (10, 1, 5, 5), jnp.float32),
        "conv1_b": 0.1 * jax.random.normal(ks[1], (10,), jnp.float32),
        "conv2_w": 0.1 * jax.random.normal(ks[2], (20, 10, 5, 5), jnp.float32),
        "conv2_b": 0.1 * jax.random.normal(ks[3], (20,), jnp.float32),
        "fc1_w": 0.1 * jax.random.normal(ks[4], (50, 320), jnp.float32),
        "fc1_b": 0.1 * jax.random.normal(ks[5], (50,), jnp.float32),
        "fc2_w": 0.1 * jax.random.normal(ks[6], (1, 50), jnp.float32),
        "fc2_b": 0.1 * jax.random.normal(ks[7], (1,), jnp.float32),
    }


def make_kernel_params(p):
    w1 = np.asarray(p["conv1_w"], np.float32); b1 = np.asarray(p["conv1_b"], np.float32)
    w2 = np.asarray(p["conv2_w"], np.float32); b2 = np.asarray(p["conv2_b"], np.float32)
    f1w = np.asarray(p["fc1_w"], np.float32);  f1b = np.asarray(p["fc1_b"], np.float32)
    f2w = np.asarray(p["fc2_w"], np.float32);  f2b = np.asarray(p["fc2_b"], np.float32)

    # conv1 banded weights: B1[di, m, j*10+c] = w1[c, 0, di, m-j], 0 <= m-j < 5.
    B1 = np.zeros((5, 28, _H1_LANES), np.float32)
    for di in range(5):
        for j in range(24):
            for dj in range(5):
                B1[di, j + dj, j * 10:(j + 1) * 10] = w1[:, 0, di, dj]
    b1r = np.zeros((1, _H1_LANES), np.float32)
    b1r[0, :240] = np.tile(b1, 24)

    # pool1 column selection (even / odd 10-lane groups), 256 -> 128 lanes.
    S1 = np.zeros((2, _H1_LANES, _P1_LANES), np.float32)
    for t in range(12):
        for c in range(10):
            S1[0, (2 * t) * 10 + c, t * 10 + c] = 1.0
            S1[1, (2 * t + 1) * 10 + c, t * 10 + c] = 1.0

    # conv2 im2col weights: B2[di*128 + t*10+ci, j*20+co] = w2[co, ci, di, t-j].
    B2 = np.zeros((5 * _P1_LANES, _H2_LANES), np.float32)
    for di in range(5):
        for j in range(8):
            for dj in range(5):
                t = j + dj
                for ci in range(10):
                    B2[di * _P1_LANES + t * 10 + ci,
                       j * 20:(j + 1) * 20] = w2[:, ci, di, dj]
    b2r = np.zeros((1, _H2_LANES), np.float32)
    b2r[0, :160] = np.tile(b2, 8)

    # pool2 column selection (even / odd 20-lane groups), 256 -> 128 lanes.
    S2 = np.zeros((2, _H2_LANES, _P2_LANES), np.float32)
    for t in range(4):
        for co in range(20):
            S2[0, (2 * t) * 20 + co, t * 20 + co] = 1.0
            S2[1, (2 * t + 1) * 20 + co, t * 20 + co] = 1.0

    # fc1 weight, rows reordered to the kernel's (h, w, c) flatten order and
    # lane-padded on both sides (512 in, 128 out).
    FW1 = np.zeros((4 * _P2_LANES, _FC1_LANES), np.float32)
    for h in range(4):
        for w in range(4):
            for c in range(20):
                FW1[h * _P2_LANES + w * 20 + c, :50] = f1w[:, c * 16 + h * 4 + w]
    fb1r = np.zeros((1, _FC1_LANES), np.float32)
    fb1r[0, :50] = f1b

    FW2 = np.zeros((1, _FC1_LANES), np.float32)
    FW2[0, :50] = f2w[0, :]
    fb2r = f2b.reshape(1, 1).astype(np.float32)

    bf, f = jnp.bfloat16, jnp.float32
    return {"B1": jnp.asarray(B1, bf), "b1": jnp.asarray(b1r, f),
            "S1": jnp.asarray(S1, bf),
            "B2": jnp.asarray(B2, bf), "b2": jnp.asarray(b2r, f),
            "S2": jnp.asarray(S2, bf),
            "FW1": jnp.asarray(FW1, bf), "fb1": jnp.asarray(fb1r, f),
            "FW2": jnp.asarray(FW2, f), "fb2": jnp.asarray(fb2r, f)}


# --------------------------------------------------------- plain-JAX reference
def reference_forward(x, p):
    hp = lax.Precision.HIGHEST
    y = lax.conv_general_dilated(x, p["conv1_w"], (1, 1), "VALID",
                                 dimension_numbers=("NCHW", "OIHW", "NCHW"),
                                 precision=hp)
    y = y + p["conv1_b"][None, :, None, None]
    n, c, h, w = y.shape
    y = jnp.maximum(y.reshape(n, c, h // 2, 2, w // 2, 2).max(axis=(3, 5)), 0.0)
    y = lax.conv_general_dilated(y, p["conv2_w"], (1, 1), "VALID",
                                 dimension_numbers=("NCHW", "OIHW", "NCHW"),
                                 precision=hp)
    y = y + p["conv2_b"][None, :, None, None]
    n, c, h, w = y.shape
    y = jnp.maximum(y.reshape(n, c, h // 2, 2, w // 2, 2).max(axis=(3, 5)), 0.0)
    y = y.reshape(n, 320)
    y = jnp.maximum(y @ p["fc1_w"].T + p["fc1_b"], 0.0)
    y = y @ p["fc2_w"].T + p["fc2_b"]
    return jax.nn.sigmoid(y)


if __name__ == "__main__":
    key = jax.random.PRNGKey(0)
    p_key, x_key = jax.random.split(key)
    torch_params = make_torch_params(p_key)
    kernel_params = make_kernel_params(torch_params)

    x = jax.random.normal(x_key, (2, 1, 28, 28), jnp.float32)

    y = discriminator_forward(x, kernel_params)
    y = jax.block_until_ready(y)

    y_ref = reference_forward(x, torch_params)
    assert y.shape == (2, 1), y.shape
    if not np.allclose(np.asarray(y), np.asarray(y_ref), atol=3e-2):
        raise AssertionError(f"kernel/reference mismatch:\n{y}\nvs\n{y_ref}")
    print("KERNEL_OK")
</pallas_src>

<mosaic_0001>
module attributes {stable_mosaic.version = 11 : i64} {
  func.func @_discriminator_kernel(%arg0: i32, %arg1: memref<8x1x28x28xbf16, #tpu.memory_space<vmem>>, %arg2: memref<5x28x256xbf16, #tpu.memory_space<vmem>>, %arg3: memref<1x256xf32, #tpu.memory_space<vmem>>, %arg4: memref<2x256x128xbf16, #tpu.memory_space<vmem>>, %arg5: memref<640x256xbf16, #tpu.memory_space<vmem>>, %arg6: memref<1x256xf32, #tpu.memory_space<vmem>>, %arg7: memref<2x256x128xbf16, #tpu.memory_space<vmem>>, %arg8: memref<512x128xbf16, #tpu.memory_space<vmem>>, %arg9: memref<1x128xf32, #tpu.memory_space<vmem>>, %arg10: memref<1x128xf32, #tpu.memory_space<vmem>>, %arg11: memref<1x1xf32, #tpu.memory_space<vmem>>, %arg12: memref<1x1x8xf32, #tpu.memory_space<vmem>>) attributes {dimension_semantics = [#tpu.dimension_semantics<parallel>], iteration_bounds = array<i64: 1>, scalar_prefetch = 0 : i64, scratch_operands = 0 : i64, tpu.core_type = #tpu.core_type<tc>, window_params = [{transform_indices = @transform_0, window_bounds = array<i64: 8, 1, 28, 28>}, {pipeline_mode = #tpu.pipeline_mode<synchronous>, transform_indices = @transform_1, window_bounds = array<i64: 5, 28, 256>}, {pipeline_mode = #tpu.pipeline_mode<synchronous>, transform_indices = @transform_2, window_bounds = array<i64: 1, 256>}, {pipeline_mode = #tpu.pipeline_mode<synchronous>, transform_indices = @transform_3, window_bounds = array<i64: 2, 256, 128>}, {pipeline_mode = #tpu.pipeline_mode<synchronous>, transform_indices = @transform_4, window_bounds = array<i64: 640, 256>}, {pipeline_mode = #tpu.pipeline_mode<synchronous>, transform_indices = @transform_5, window_bounds = array<i64: 1, 256>}, {pipeline_mode = #tpu.pipeline_mode<synchronous>, transform_indices = @transform_6, window_bounds = array<i64: 2, 256, 128>}, {pipeline_mode = #tpu.pipeline_mode<synchronous>, transform_indices = @transform_7, window_bounds = array<i64: 512, 128>}, {pipeline_mode = #tpu.pipeline_mode<synchronous>, transform_indices = @transform_8, window_bounds = array<i64: 1, 128>}, {pipeline_mode = #tpu.pipeline_mode<synchronous>, transform_indices = @transform_9, window_bounds = array<i64: 1, 128>}, {pipeline_mode = #tpu.pipeline_mode<synchronous>, transform_indices = @transform_10, window_bounds = array<i64: 1, 1>}, {transform_indices = @transform_11, window_bounds = array<i64: 1, 1, 8>}]} {
    %c0 = arith.constant 0 : index
    %c0_0 = arith.constant 0 : index
    %c0_1 = arith.constant 0 : index
    %c0_2 = arith.constant 0 : index
    %0 = vector.load %arg1[%c0, %c0_0, %c0_1, %c0_2] : memref<8x1x28x28xbf16, #tpu.memory_space<vmem>>, vector<8x1x28x28xbf16>
    %1 = arith.extf %0 : vector<8x1x28x28xbf16> to vector<8x1x28x28xf32>
    %2 = vector.shape_cast %1 : vector<8x1x28x28xf32> to vector<8x28x28xf32>
    %3 = vector.extract_strided_slice %2 {offsets = [0, 0, 0], sizes = [8, 24, 28], strides = [1, 1, 1]} : vector<8x28x28xf32> to vector<8x24x28xf32>
    %4 = vector.shape_cast %3 : vector<8x24x28xf32> to vector<192x28xf32>
    %5 = arith.truncf %4 : vector<192x28xf32> to vector<192x28xbf16>
    %c0_3 = arith.constant 0 : index
    %c0_4 = arith.constant 0 : index
    %c0_5 = arith.constant 0 : index
    %6 = vector.load %arg2[%c0_3, %c0_4, %c0_5] : memref<5x28x256xbf16, #tpu.memory_space<vmem>>, vector<1x28x256xbf16>
    %7 = vector.shape_cast %6 : vector<1x28x256xbf16> to vector<28x256xbf16>
    %cst = arith.constant dense<0.000000e+00> : vector<192x256xf32>
    %8 = tpu.matmul %5, %7, %cst {dimension_numbers = #tpu.dot_dimension_numbers<[1], [0], [0], [1], [0, 0, 1, 1], [], []>} : vector<192x28xbf16>, vector<28x256xbf16>, vector<192x256xf32> -> vector<192x256xf32>
    %9 = vector.extract_strided_slice %2 {offsets = [0, 1, 0], sizes = [8, 24, 28], strides = [1, 1, 1]} : vector<8x28x28xf32> to vector<8x24x28xf32>
    %10 = vector.shape_cast %9 : vector<8x24x28xf32> to vector<192x28xf32>
    %11 = arith.truncf %10 : vector<192x28xf32> to vector<192x28xbf16>
    %c1 = arith.constant 1 : index
    %c0_6 = arith.constant 0 : index
    %c0_7 = arith.constant 0 : index
    %12 = vector.load %arg2[%c1, %c0_6, %c0_7] : memref<5x28x256xbf16, #tpu.memory_space<vmem>>, vector<1x28x256xbf16>
    %13 = vector.shape_cast %12 : vector<1x28x256xbf16> to vector<28x256xbf16>
    %cst_8 = arith.constant dense<0.000000e+00> : vector<192x256xf32>
    %14 = tpu.matmul %11, %13, %cst_8 {dimension_numbers = #tpu.dot_dimension_numbers<[1], [0], [0], [1], [0, 0, 1, 1], [], []>} : vector<192x28xbf16>, vector<28x256xbf16>, vector<192x256xf32> -> vector<192x256xf32>
    %15 = arith.addf %8, %14 : vector<192x256xf32>
    %16 = vector.extract_strided_slice %2 {offsets = [0, 2, 0], sizes = [8, 24, 28], strides = [1, 1, 1]} : vector<8x28x28xf32> to vector<8x24x28xf32>
    %17 = vector.shape_cast %16 : vector<8x24x28xf32> to vector<192x28xf32>
    %18 = arith.truncf %17 : vector<192x28xf32> to vector<192x28xbf16>
    %c2 = arith.constant 2 : index
    %c0_9 = arith.constant 0 : index
    %c0_10 = arith.constant 0 : index
    %19 = vector.load %arg2[%c2, %c0_9, %c0_10] : memref<5x28x256xbf16, #tpu.memory_space<vmem>>, vector<1x28x256xbf16>
    %20 = vector.shape_cast %19 : vector<1x28x256xbf16> to vector<28x256xbf16>
    %cst_11 = arith.constant dense<0.000000e+00> : vector<192x256xf32>
    %21 = tpu.matmul %18, %20, %cst_11 {dimension_numbers = #tpu.dot_dimension_numbers<[1], [0], [0], [1], [0, 0, 1, 1], [], []>} : vector<192x28xbf16>, vector<28x256xbf16>, vector<192x256xf32> -> vector<192x256xf32>
    %22 = arith.addf %15, %21 : vector<192x256xf32>
    %23 = vector.extract_strided_slice %2 {offsets = [0, 3, 0], sizes = [8, 24, 28], strides = [1, 1, 1]} : vector<8x28x28xf32> to vector<8x24x28xf32>
    %24 = vector.shape_cast %23 : vector<8x24x28xf32> to vector<192x28xf32>
    %25 = arith.truncf %24 : vector<192x28xf32> to vector<192x28xbf16>
    %c3 = arith.constant 3 : index
    %c0_12 = arith.constant 0 : index
    %c0_13 = arith.constant 0 : index
    %26 = vector.load %arg2[%c3, %c0_12, %c0_13] : memref<5x28x256xbf16, #tpu.memory_space<vmem>>, vector<1x28x256xbf16>
    %27 = vector.shape_cast %26 : vector<1x28x256xbf16> to vector<28x256xbf16>
    %cst_14 = arith.constant dense<0.000000e+00> : vector<192x256xf32>
    %28 = tpu.matmul %25, %27, %cst_14 {dimension_numbers = #tpu.dot_dimension_numbers<[1], [0], [0], [1], [0, 0, 1, 1], [], []>} : vector<192x28xbf16>, vector<28x256xbf16>, vector<192x256xf32> -> vector<192x256xf32>
    %29 = arith.addf %22, %28 : vector<192x256xf32>
    %30 = vector.extract_strided_slice %2 {offsets = [0, 4, 0], sizes = [8, 24, 28], strides = [1, 1, 1]} : vector<8x28x28xf32> to vector<8x24x28xf32>
    %31 = vector.shape_cast %30 : vector<8x24x28xf32> to vector<192x28xf32>
    %32 = arith.truncf %31 : vector<192x28xf32> to vector<192x28xbf16>
    %c4 = arith.constant 4 : index
    %c0_15 = arith.constant 0 : index
    %c0_16 = arith.constant 0 : index
    %33 = vector.load %arg2[%c4, %c0_15, %c0_16] : memref<5x28x256xbf16, #tpu.memory_space<vmem>>, vector<1x28x256xbf16>
    %34 = vector.shape_cast %33 : vector<1x28x256xbf16> to vector<28x256xbf16>
    %cst_17 = arith.constant dense<0.000000e+00> : vector<192x256xf32>
    %35 = tpu.matmul %32, %34, %cst_17 {dimension_numbers = #tpu.dot_dimension_numbers<[1], [0], [0], [1], [0, 0, 1, 1], [], []>} : vector<192x28xbf16>, vector<28x256xbf16>, vector<192x256xf32> -> vector<192x256xf32>
    %36 = arith.addf %29, %35 : vector<192x256xf32>
    %c0_18 = arith.constant 0 : index
    %c0_19 = arith.constant 0 : index
    %37 = vector.load %arg3[%c0_18, %c0_19] : memref<1x256xf32, #tpu.memory_space<vmem>>, vector<1x256xf32>
    %38 = vector.broadcast %37 : vector<1x256xf32> to vector<192x256xf32>
    %39 = arith.addf %36, %38 : vector<192x256xf32>
    %40 = vector.shape_cast %39 : vector<192x256xf32> to vector<96x2x256xf32>
    %cst_20 = arith.constant dense<0xFF800000> : vector<96x256xf32>
    %41 = vector.multi_reduction <maximumf>, %40, %cst_20 [1] : vector<96x2x256xf32> to vector<96x256xf32>
    %42 = arith.truncf %41 : vector<96x256xf32> to vector<96x256xbf16>
    %c0_21 = arith.constant 0 : index
    %c0_22 = arith.constant 0 : index
    %c0_23 = arith.constant 0 : index
    %43 = vector.load %arg4[%c0_21, %c0_22, %c0_23] : memref<2x256x128xbf16, #tpu.memory_space<vmem>>, vector<1x256x128xbf16>
    %44 = vector.shape_cast %43 : vector<1x256x128xbf16> to vector<256x128xbf16>
    %cst_24 = arith.constant dense<0.000000e+00> : vector<96x128xf32>
    %45 = tpu.matmul %42, %44, %cst_24 {dimension_numbers = #tpu.dot_dimension_numbers<[1], [0], [0], [1], [0, 0, 1, 1], [], []>} : vector<96x256xbf16>, vector<256x128xbf16>, vector<96x128xf32> -> vector<96x128xf32>
    %c1_25 = arith.constant 1 : index
    %c0_26 = arith.constant 0 : index
    %c0_27 = arith.constant 0 : index
    %46 = vector.load %arg4[%c1_25, %c0_26, %c0_27] : memref<2x256x128xbf16, #tpu.memory_space<vmem>>, vector<1x256x128xbf16>
    %47 = vector.shape_cast %46 : vector<1x256x128xbf16> to vector<256x128xbf16>
    %cst_28 = arith.constant dense<0.000000e+00> : vector<96x128xf32>
    %48 = tpu.matmul %42, %47, %cst_28 {dimension_numbers = #tpu.dot_dimension_numbers<[1], [0], [0], [1], [0, 0, 1, 1], [], []>} : vector<96x256xbf16>, vector<256x128xbf16>, vector<96x128xf32> -> vector<96x128xf32>
    %49 = arith.maximumf %45, %48 : vector<96x128xf32>
    %cst_29 = arith.constant 0.000000e+00 : f32
    %50 = vector.broadcast %cst_29 : f32 to vector<96x128xf32>
    %51 = arith.maximumf %49, %50 : vector<96x128xf32>
    %52 = vector.shape_cast %51 : vector<96x128xf32> to vector<8x12x128xf32>
    %53 = vector.extract_strided_slice %52 {offsets = [0, 0, 0], sizes = [8, 8, 128], strides = [1, 1, 1]} : vector<8x12x128xf32> to vector<8x8x128xf32>
    %54 = vector.extract_strided_slice %52 {offsets = [0, 1, 0], sizes = [8, 8, 128], strides = [1, 1, 1]} : vector<8x12x128xf32> to vector<8x8x128xf32>
    %55 = vector.extract_strided_slice %52 {offsets = [0, 2, 0], sizes = [8, 8, 128], strides = [1, 1, 1]} : vector<8x12x128xf32> to vector<8x8x128xf32>
    %56 = vector.extract_strided_slice %52 {offsets = [0, 3, 0], sizes = [8, 8, 128], strides = [1, 1, 1]} : vector<8x12x128xf32> to vector<8x8x128xf32>
    %57 = vector.extract_strided_slice %52 {offsets = [0, 4, 0], sizes = [8, 8, 128], strides = [1, 1, 1]} : vector<8x12x128xf32> to vector<8x8x128xf32>
    %58 = tpu.concatenate %53, %54, %55, %56, %57 in 2 : vector<8x8x128xf32>, vector<8x8x128xf32>, vector<8x8x128xf32>, vector<8x8x128xf32>, vector<8x8x128xf32> -> vector<8x8x640xf32>
    %59 = vector.shape_cast %58 : vector<8x8x640xf32> to vector<64x640xf32>
    %60 = arith.truncf %59 : vector<64x640xf32> to vector<64x640xbf16>
    %c0_30 = arith.constant 0 : index
    %c0_31 = arith.constant 0 : index
    %61 = vector.load %arg5[%c0_30, %c0_31] : memref<640x256xbf16, #tpu.memory_space<vmem>>, vector<640x256xbf16>
    %cst_32 = arith.constant dense<0.000000e+00> : vector<64x256xf32>
    %62 = tpu.matmul %60, %61, %cst_32 {dimension_numbers = #tpu.dot_dimension_numbers<[1], [0], [0], [1], [0, 0, 1, 1], [], []>} : vector<64x640xbf16>, vector<640x256xbf16>, vector<64x256xf32> -> vector<64x256xf32>
    %c0_33 = arith.constant 0 : index
    %c0_34 = arith.constant 0 : index
    %63 = vector.load %arg6[%c0_33, %c0_34] : memref<1x256xf32, #tpu.memory_space<vmem>>, vector<1x256xf32>
    %64 = vector.broadcast %63 : vector<1x256xf32> to vector<64x256xf32>
    %65 = arith.addf %62, %64 : vector<64x256xf32>
    %66 = vector.shape_cast %65 : vector<64x256xf32> to vector<32x2x256xf32>
    %cst_35 = arith.constant dense<0xFF800000> : vector<32x256xf32>
    %67 = vector.multi_reduction <maximumf>, %66, %cst_35 [1] : vector<32x2x256xf32> to vector<32x256xf32>
    %68 = arith.truncf %67 : vector<32x256xf32> to vector<32x256xbf16>
    %c0_36 = arith.constant 0 : index
    %c0_37 = arith.constant 0 : index
    %c0_38 = arith.constant 0 : index
    %69 = vector.load %arg7[%c0_36, %c0_37, %c0_38] : memref<2x256x128xbf16, #tpu.memory_space<vmem>>, vector<1x256x128xbf16>
    %70 = vector.shape_cast %69 : vector<1x256x128xbf16> to vector<256x128xbf16>
    %cst_39 = arith.constant dense<0.000000e+00> : vector<32x128xf32>
    %71 = tpu.matmul %68, %70, %cst_39 {dimension_numbers = #tpu.dot_dimension_numbers<[1], [0], [0], [1], [0, 0, 1, 1], [], []>} : vector<32x256xbf16>, vector<256x128xbf16>, vector<32x128xf32> -> vector<32x128xf32>
    %c1_40 = arith.constant 1 : index
    %c0_41 = arith.constant 0 : index
    %c0_42 = arith.constant 0 : index
    %72 = vector.load %arg7[%c1_40, %c0_41, %c0_42] : memref<2x256x128xbf16, #tpu.memory_space<vmem>>, vector<1x256x128xbf16>
    %73 = vector.shape_cast %72 : vector<1x256x128xbf16> to vector<256x128xbf16>
    %cst_43 = arith.constant dense<0.000000e+00> : vector<32x128xf32>
    %74 = tpu.matmul %68, %73, %cst_43 {dimension_numbers = #tpu.dot_dimension_numbers<[1], [0], [0], [1], [0, 0, 1, 1], [], []>} : vector<32x256xbf16>, vector<256x128xbf16>, vector<32x128xf32> -> vector<32x128xf32>
    %75 = arith.maximumf %71, %74 : vector<32x128xf32>
    %cst_44 = arith.constant 0.000000e+00 : f32
    %76 = vector.broadcast %cst_44 : f32 to vector<32x128xf32>
    %77 = arith.maximumf %75, %76 : vector<32x128xf32>
    %78 = vector.shape_cast %77 : vector<32x128xf32> to vector<8x4x128xf32>
    %79 = vector.extract_strided_slice %78 {offsets = [0, 0, 0], sizes = [8, 1, 128], strides = [1, 1, 1]} : vector<8x4x128xf32> to vector<8x1x128xf32>
    %80 = vector.shape_cast %79 : vector<8x1x128xf32> to vector<8x128xf32>
    %81 = vector.extract_strided_slice %78 {offsets = [0, 1, 0], sizes = [8, 1, 128], strides = [1, 1, 1]} : vector<8x4x128xf32> to vector<8x1x128xf32>
    %82 = vector.shape_cast %81 : vector<8x1x128xf32> to vector<8x128xf32>
    %83 = vector.extract_strided_slice %78 {offsets = [0, 2, 0], sizes = [8, 1, 128], strides = [1, 1, 1]} : vector<8x4x128xf32> to vector<8x1x128xf32>
    %84 = vector.shape_cast %83 : vector<8x1x128xf32> to vector<8x128xf32>
    %85 = vector.extract_strided_slice %78 {offsets = [0, 3, 0], sizes = [8, 1, 128], strides = [1, 1, 1]} : vector<8x4x128xf32> to vector<8x1x128xf32>
    %86 = vector.shape_cast %85 : vector<8x1x128xf32> to vector<8x128xf32>
    %87 = tpu.concatenate %80, %82, %84, %86 in 1 : vector<8x128xf32>, vector<8x128xf32>, vector<8x128xf32>, vector<8x128xf32> -> vector<8x512xf32>
    %88 = arith.truncf %87 : vector<8x512xf32> to vector<8x512xbf16>
    %c0_45 = arith.constant 0 : index
    %c0_46 = arith.constant 0 : index
    %89 = vector.load %arg8[%c0_45, %c0_46] : memref<512x128xbf16, #tpu.memory_space<vmem>>, vector<512x128xbf16>
    %cst_47 = arith.constant dense<0.000000e+00> : vector<8x128xf32>
    %90 = tpu.matmul %88, %89, %cst_47 {dimension_numbers = #tpu.dot_dimension_numbers<[1], [0], [0], [1], [0, 0, 1, 1], [], []>} : vector<8x512xbf16>, vector<512x128xbf16>, vector<8x128xf32> -> vector<8x128xf32>
    %c0_48 = arith.constant 0 : index
    %c0_49 = arith.constant 0 : index
    %91 = vector.load %arg9[%c0_48, %c0_49] : memref<1x128xf32, #tpu.memory_space<vmem>>, vector<1x128xf32>
    %92 = vector.broadcast %91 : vector<1x128xf32> to vector<8x128xf32>
    %93 = arith.addf %90, %92 : vector<8x128xf32>
    %cst_50 = arith.constant 0.000000e+00 : f32
    %94 = vector.broadcast %cst_50 : f32 to vector<8x128xf32>
    %95 = arith.maximumf %93, %94 : vector<8x128xf32>
    %c0_51 = arith.constant 0 : index
    %c0_52 = arith.constant 0 : index
    %96 = vector.load %arg10[%c0_51, %c0_52] : memref<1x128xf32, #tpu.memory_space<vmem>>, vector<1x128xf32>
    %97 = tpu.transpose %95, [1, 0] : vector<8x128xf32> -> vector<128x8xf32>
    %cst_53 = arith.constant dense<0.000000e+00> : vector<1x8xf32>
    %98 = tpu.matmul %96, %97, %cst_53 {dimension_numbers = #tpu.dot_dimension_numbers<[1], [0], [0], [1], [0, 0, 1, 1], [], []>} : vector<1x128xf32>, vector<128x8xf32>, vector<1x8xf32> -> vector<1x8xf32>
    %c0_54 = arith.constant 0 : index
    %c0_55 = arith.constant 0 : index
    %99 = vector.load %arg11[%c0_54, %c0_55] : memref<1x1xf32, #tpu.memory_space<vmem>>, vector<1x1xf32>
    %100 = vector.broadcast %99 : vector<1x1xf32> to vector<1x8xf32>
    %101 = arith.addf %98, %100 : vector<1x8xf32>
    %cst_56 = arith.constant 0.000000e+00 : f32
    %102 = vector.broadcast %cst_56 : f32 to vector<1x8xf32>
    %103 = arith.subf %102, %101 : vector<1x8xf32>
    %104 = math.exp %103 : vector<1x8xf32>
    %cst_57 = arith.constant 1.000000e+00 : f32
    %105 = vector.broadcast %cst_57 : f32 to vector<1x8xf32>
    %106 = arith.addf %105, %104 : vector<1x8xf32>
    %107 = tpu.reciprocal %106 {approx = true} : vector<1x8xf32> -> vector<1x8xf32>
    %c0_58 = arith.constant 0 : index
    %c0_59 = arith.constant 0 : index
    %c0_60 = arith.constant 0 : index
    %108 = vector.load %arg12[%c0_58, %c0_59, %c0_60] : memref<1x1x8xf32, #tpu.memory_space<vmem>>, vector<1x1x8xf32>
    %109 = vector.shape_cast %108 : vector<1x1x8xf32> to vector<1x8xf32>
    %110 = vector.shape_cast %107 : vector<1x8xf32> to vector<1x1x8xf32>
    tpu.vector_store %arg12[%c0_58, %c0_59, %c0_60], %110 {strides = array<i32>} : memref<1x1x8xf32, #tpu.memory_space<vmem>>, vector<1x1x8xf32>,
    return
  }
  func.func @transform_0(%arg0: i32) -> (i32, i32, i32, i32) {
    %c0_i32 = arith.constant 0 : i32
    %c0_i32_0 = arith.constant 0 : i32
    %c0_i32_1 = arith.constant 0 : i32
    %c0_i32_2 = arith.constant 0 : i32
    return %arg0, %c0_i32, %c0_i32_0, %c0_i32_1 : i32, i32, i32, i32
  }
  func.func @transform_1(%arg0: i32) -> (i32, i32, i32) {
    %c0_i32 = arith.constant 0 : i32
    %c0_i32_0 = arith.constant 0 : i32
    %c0_i32_1 = arith.constant 0 : i32
    %c0_i32_2 = arith.constant 0 : i32
    return %c0_i32, %c0_i32_0, %c0_i32_1 : i32, i32, i32
  }
  func.func @transform_2(%arg0: i32) -> (i32, i32) {
    %c0_i32 = arith.constant 0 : i32
    %c0_i32_0 = arith.constant 0 : i32
    %c0_i32_1 = arith.constant 0 : i32
    return %c0_i32, %c0_i32_0 : i32, i32
  }
  func.func @transform_3(%arg0: i32) -> (i32, i32, i32) {
    %c0_i32 = arith.constant 0 : i32
    %c0_i32_0 = arith.constant 0 : i32
    %c0_i32_1 = arith.constant 0 : i32
    %c0_i32_2 = arith.constant 0 : i32
    return %c0_i32, %c0_i32_0, %c0_i32_1 : i32, i32, i32
  }
  func.func @transform_4(%arg0: i32) -> (i32, i32) {
    %c0_i32 = arith.constant 0 : i32
    %c0_i32_0 = arith.constant 0 : i32
    %c0_i32_1 = arith.constant 0 : i32
    return %c0_i32, %c0_i32_0 : i32, i32
  }
  func.func @transform_5(%arg0: i32) -> (i32, i32) {
    %c0_i32 = arith.constant 0 : i32
    %c0_i32_0 = arith.constant 0 : i32
    %c0_i32_1 = arith.constant 0 : i32
    return %c0_i32, %c0_i32_0 : i32, i32
  }
  func.func @transform_6(%arg0: i32) -> (i32, i32, i32) {
    %c0_i32 = arith.constant 0 : i32
    %c0_i32_0 = arith.constant 0 : i32
    %c0_i32_1 = arith.constant 0 : i32
    %c0_i32_2 = arith.constant 0 : i32
    return %c0_i32, %c0_i32_0, %c0_i32_1 : i32, i32, i32
  }
  func.func @transform_7(%arg0: i32) -> (i32, i32) {
    %c0_i32 = arith.constant 0 : i32
    %c0_i32_0 = arith.constant 0 : i32
    %c0_i32_1 = arith.constant 0 : i32
    return %c0_i32, %c0_i32_0 : i32, i32
  }
  func.func @transform_8(%arg0: i32) -> (i32, i32) {
    %c0_i32 = arith.constant 0 : i32
    %c0_i32_0 = arith.constant 0 : i32
    %c0_i32_1 = arith.constant 0 : i32
    return %c0_i32, %c0_i32_0 : i32, i32
  }
  func.func @transform_9(%arg0: i32) -> (i32, i32) {
    %c0_i32 = arith.constant 0 : i32
    %c0_i32_0 = arith.constant 0 : i32
    %c0_i32_1 = arith.constant 0 : i32
    return %c0_i32, %c0_i32_0 : i32, i32
  }
  func.func @transform_10(%arg0: i32) -> (i32, i32) {
    %c0_i32 = arith.constant 0 : i32
    %c0_i32_0 = arith.constant 0 : i32
    %c0_i32_1 = arith.constant 0 : i32
    return %c0_i32, %c0_i32_0 : i32, i32
  }
  func.func @transform_11(%arg0: i32) -> (i32, i32, i32) {
    %c0_i32 = arith.constant 0 : i32
    %c0_i32_0 = arith.constant 0 : i32
    %c0_i32_1 = arith.constant 0 : i32
    return %arg0, %c0_i32, %c0_i32_0 : i32, i32, i32
  }
}

</mosaic_0001>

<bundles_post_ra>
// kernel: tpu_custom_call.1
= control target key start
LH: loop header
LB: loop body
LE: loop exit
PB: predicated region body
PF: predicated region fallthrough
CT: control target
= control target key end

     0   :  { %s13748_s0 = inlined_call_operand.vmem [shape: bf16[8,1,28,28], index: 0, kind: input, shape index: {}]   ;;  %s13749_s1 = inlined_call_operand.hbm [shape: bf16[5,28,256], index: 1, kind: input, shape index: {}]   ;;  %s13750_s2 = inlined_call_operand.vmem [shape: f32[1,256], index: 2, kind: input, shape index: {}]   ;;  %s13751_s3 = inlined_call_operand.hbm [shape: bf16[2,256,128], index: 3, kind: input, shape index: {}]   ;;  %s13752_s4 = inlined_call_operand.hbm [shape: bf16[640,256], index: 4, kind: input, shape index: {}]   ;;  %s13753_s5 = inlined_call_operand.vmem [shape: f32[1,256], index: 5, kind: input, shape index: {}]   ;;  %s13754_s6 = inlined_call_operand.vmem [shape: bf16[2,256,128], index: 6, kind: input, shape index: {}]   ;;  %s13755_s7 = inlined_call_operand.hbm [shape: bf16[512,128], index: 7, kind: input, shape index: {}]   ;;  %s13756_s8 = inlined_call_operand.vmem [shape: f32[1,128], index: 8, kind: input, shape index: {}]   ;;  %s13757_s9 = inlined_call_operand.vmem [shape: f32[1,128], index: 9, kind: input, shape index: {}]   ;;  %s13758_s10 = inlined_call_operand.<no memory space> [shape: f32[1,1], index: 10, kind: input, shape index: {}]   ;;  %s13759_s11 = inlined_call_operand.hbm [shape: f32[1,1,8], index: 11, kind: output, shape index: {}]  }
   0x1   :  { %v16_v0 = vstv %s13758_s10 }
   0x2   :  { %17 = vst [vmem:[#allocation2] sm:$0x1] %v16_v0 }
   0x3   :  { %18 = vsyncpa [#allocation4], 0 }
   0x4   :  { %19 = vsyncpa [#allocation7], 0 }
   0x5   :  { %20 = vsyncpa [#allocation10], 0 }
   0x6   :  { %21 = vsyncpa [#allocation5], 0  ;;  %s10088_s19 = smov [#allocation6]   ;;  %s9970_s23 = scalar_lea.hbm %s13751_s3, 4096 }
   0x7   :  { %s43_s20 = sshll.u32 %s10088_s19, 4  ;;  %p9971_p0 = scmp.ne.s32.totalorder %s13751_s3, %s9970_s23  ;;  %s44_s20 = int_to_ptr.vmem [resolvable:$true] %s43_s20 }
   0x8   :  { %p9974_p1 = scmp.lt.u32.totalorder %s9970_s23, %s13751_s3 }
   0xa   :  { %p9976_p2 = pnand %p9974_p1, %p9971_p0 }
   0xc   :  { %9979 = shalt.err (!%p9976_p2)
}
   0xd   :  { %s9980_s10 = scalar_lea.vmem %s44_s20, 4096  ;;  %p9985_p4 = scmp.lt.s32.totalorder %s44_s20, %s44_s20 }
   0xe   :  { %p9981_p3 = scmp.ne.s32.totalorder %s44_s20, %s9980_s10  ;;  %p9986_p5 = scmp.lt.s32.totalorder %s9980_s10, %s9980_s10 }
  0x10   :  { %p9987_p6 = por %p9986_p5, %p9985_p4 }
  0x12   :  { %p9988_p7 = pnand %p9987_p6, %p9981_p3 }
  0x14   :  { %9991 = shalt.err (!%p9988_p7)
}
  0x15   :  { %s10089_s28 = smov 64   ;;  %s10090_s29 = smov 4  }
  0x16   :  { %49 = dma.hbm_to_vmem [thread:$0]  %s13751_s3, 4096, %s44_s20, [#allocation7], %s10089_s28, %s10089_s28, %s10090_s29  }
  0x17   :  { %s10091_s13 = smov [#allocation3]   ;;  %s9992_s17 = scalar_lea.hbm %s13749_s1, 2560 }
  0x18   :  { %s29_s14 = sshll.u32 %s10091_s13, 4  ;;  %p9993_p8 = scmp.ne.s32.totalorder %s13749_s1, %s9992_s17  ;;  %s30_s14 = int_to_ptr.vmem [resolvable:$true] %s29_s14 }
  0x19   :  { %p9996_p9 = scmp.lt.u32.totalorder %s9992_s17, %s13749_s1 }
  0x1b   :  { %p9998_p10 = pnand %p9996_p9, %p9993_p8 }
  0x1d   :  { %10001 = shalt.err (!%p9998_p10)
}
  0x1e   :  { %s10002_s23 = scalar_lea.vmem %s30_s14, 2560  ;;  %p10007_p12 = scmp.lt.s32.totalorder %s30_s14, %s30_s14 }
  0x1f   :  { %p10003_p11 = scmp.ne.s32.totalorder %s30_s14, %s10002_s23  ;;  %p10008_p13 = scmp.lt.s32.totalorder %s10002_s23, %s10002_s23 }
  0x21   :  { %p10009_p0 = por %p10008_p13, %p10007_p12 }
  0x23   :  { %p10010_p1 = pnand %p10009_p0, %p10003_p11 }
  0x25   :  { %10013 = shalt.err (!%p10010_p1)
}
  0x26   :  { %s10092_s3 = smov 128   ;;  %s10093_s20 = smov 8  }
  0x27   :  { %35 = dma.hbm_to_vmem [thread:$0]  %s13749_s1, 2560, %s30_s14, [#allocation4], %s10092_s3, %s10092_s3, %s10093_s20  }
  0x28   :  { %s10094_s26 = smov [#allocation8]   ;;  %s10095_s10 = smov [#allocation9]  }
  0x29   :  { %s55_s27 = sshll.u32 %s10094_s26, 4  ;;  %s71_s30 = sshll.u32 %s10095_s10, 4  ;;  %s56_s27 = int_to_ptr.vmem [resolvable:$true] %s55_s27  ;;  %s10191_s30 = int_to_ptr.vmem [resolvable:$true] %s71_s30 }
  0x2a   :  { %s10014_s15 = scalar_lea.hbm %s13752_s4, 10240 }
  0x2b   :  { %p10015_p2 = scmp.ne.s32.totalorder %s13752_s4, %s10014_s15  ;;  %p10018_p3 = scmp.lt.u32.totalorder %s10014_s15, %s13752_s4 }
  0x2d   :  { %p10020_p4 = pnand %p10018_p3, %p10015_p2 }
  0x2f   :  { %10023 = shalt.err (!%p10020_p4)
}
  0x30   :  { %s10024_s1 = scalar_lea.vmem %s56_s27, 10240  ;;  %p10029_p6 = scmp.lt.s32.totalorder %s56_s27, %s56_s27 }
  0x31   :  { %p10025_p5 = scmp.ne.s32.totalorder %s56_s27, %s10024_s1  ;;  %p10030_p7 = scmp.lt.s32.totalorder %s10024_s1, %s10024_s1 }
  0x33   :  { %p10031_p8 = por %p10030_p7, %p10029_p6 }
  0x35   :  { %p10032_p9 = pnand %p10031_p8, %p10025_p5 }
  0x37   :  { %10035 = shalt.err (!%p10032_p9)
}
  0x38   :  { %61 = dma.hbm_to_vmem [thread:$0]  %s13752_s4, 10240, %s56_s27, [#allocation7], %s10092_s3, %s10092_s3, %s10093_s20  }
  0x39   :  { %s10036_s24 = scalar_lea.hbm %s13755_s7, 4096 }
  0x3a   :  { %p10037_p10 = scmp.ne.s32.totalorder %s13755_s7, %s10036_s24  ;;  %p10040_p11 = scmp.lt.u32.totalorder %s10036_s24, %s13755_s7 }
  0x3c   :  { %p10042_p12 = pnand %p10040_p11, %p10037_p10 }
  0x3e   :  { %10045 = shalt.err (!%p10042_p12)
}
  0x3f   :  { %s10046_s13 = scalar_lea.vmem %s10191_s30, 4096  ;;  %p10051_p0 = scmp.lt.s32.totalorder %s10191_s30, %s10191_s30 }
  0x40   :  { %p10047_p13 = scmp.ne.s32.totalorder %s10191_s30, %s10046_s13  ;;  %p10052_p1 = scmp.lt.s32.totalorder %s10046_s13, %s10046_s13 }
  0x42   :  { %p10053_p2 = por %p10052_p1, %p10051_p0 }
  0x44   :  { %p10054_p3 = pnand %p10053_p2, %p10047_p13 }
  0x46   :  { %10057 = shalt.err (!%p10054_p3)
}
  0x47   :  { %77 = dma.hbm_to_vmem [thread:$0]  %s13755_s7, 4096, %s10191_s30, [#allocation10], %s10089_s28, %s10089_s28, %s10090_s29  }
  0x48   :  { %10080 = dma.done.wait [#allocation4], 2560  }
  0x49   :  { %10081 = vsyncadd [#allocation4], 4294964736 }
  0x4a   :  { %10082 = dma.done.wait [#allocation7], 14336  }
  0x4b   :  { %10083 = vsyncadd [#allocation7], 4294952960 }
  0x4c   :  { %10084 = dma.done.wait [#allocation10], 4096  }
  0x4d   :  { %10085 = vsyncadd [#allocation10], 4294963200  ;;  %v13760_v1 = vmov 0   ;;  %v9700_v2 = vld [vmem:[#allocation3 + $0x24] ss:$8 sps:$4 sm:$0xff]   ;;  %vm362_vm0 = vcmask 1045504  }
  0x4e   :  { %401 = vmatprep.mubr.bf16.mxu0 %v13760_v1  ;;  %441 = vmatprep.mubr.bf16.mxu1 %v13760_v1  ;;  %v9702_v3 = vld [vmem:[#allocation3 + $0x20] ss:$8 sps:$4 sm:$0xff]   ;;  %v9703_v4 = vld [vmem:[#allocation3 + $0x34] ss:$8 sps:$4 sm:$0x3f]   ;;  %vm209_vm1 = vcmask 1046528  }
  0x4f   :  { %9699 = vset.pattern.permute.xlu0 %v13760_v1  ;;  %369 = vmatprep.subr.bf16.mxu0 %v9700_v2  ;;  %v9705_v5 = vld [vmem:[#allocation3 + $0x30] ss:$8 sps:$4 sm:$0x3f]   ;;  %v10231_v6 = vld [vmem:[%s13748_s0] sm:$0xff]   ;;  %v10236_v7 = vld [vmem:[%s13748_s0 + $0x8] sm:$0xf] }
  0x50   :  { %9442 = vmatprep.subr.bf16.mxu1 %v9700_v2  ;;  %370 = vmatpush1.bf16.msra.mxu0 %v9702_v3  ;;  %v364_v8 = vsel %vm362_vm0, %v9705_v5, 0  ;;  %v10241_v9 = vunpack.c.l.bf16 %v10231_v6  ;;  %v10244_v10 = vunpack.c.h.bf16 %v10231_v6  ;;  %v10247_v11 = vunpack.c.l.bf16 %v10236_v7  ;;  %v9708_v12 = vld [vmem:[#allocation3 + $0x4] ss:$8 sps:$4 sm:$0xff]   ;;  %v10261_v15 = vld [vmem:[%s13748_s0 + $0x14] sm:$0xff]   ;;  %v9706_v25 = vld [vmem:[#allocation3] ss:$8 sps:$4 sm:$0xff]  }
  0x51   :  { %9444 = vmatpush1.bf16.msra.mxu1 %v9702_v3  ;;  %8941 = vmatprep.subr.msk.bf16.mxu0 %vm362_vm0, %v9703_v4  ;;  %v100_v13 = vld [vmem:[%s13748_s0 + $0xc] sm:$0x3]  ;;  %v10256_v14 = vld [vmem:[%s13748_s0 + $0x10] sm:$0xf]  ;;  %vm325_vm2 = vcmask 228352   ;;  %v10272_v21 = vunpack.c.l.bf16 %v10261_v15  ;;  %v10287_v34 = vunpack.c.h.bf16 %v10261_v15  ;;  %v105_v39 = vld [vmem:[%s13748_s0 + $0x20] sm:$0xff]  }
  0x52   :  { %9443 = vmatprep.subr.msk.bf16.mxu1 %vm362_vm0, %v9703_v4  ;;  %v210_v16 = vrot.slane %v10241_v9, 1  ;;  %v211_v17 = vrot.slane %v10244_v10, 1  ;;  %v213_v18 = vrot.slane %v10247_v11, 1  ;;  %v10266_v19 = vunpack.c.l.bf16 %v100_v13  ;;  %v9709_v22 = vld [vmem:[#allocation3 + $0x14] ss:$8 sps:$4 sm:$0x3f]  }
  0x53   :  { %v10269_v20 = vunpack.c.l.bf16 %v10256_v14  ;;  %v9711_v27 = vld [vmem:[#allocation3 + $0x10] ss:$8 sps:$4 sm:$0x3f]   ;;  %v218_v30 = vrot.slane %v10272_v21, 1  ;;  %v104_v31 = vld [vmem:[%s13748_s0 + $0x1c] sm:$0x3]  ;;  %v10301_v43 = vunpack.c.l.bf16 %v105_v39  ;;  %v10303_v44 = vunpack.c.h.bf16 %v105_v39 }
  0x54   :  { %372 = vmatpush1.bf16.msra.mxu0 %v364_v8  ;;  %v212_v23 = vsel %vm209_vm1, %v210_v16, %v211_v17  ;;  %v214_v24 = vsel %vm209_vm1, %v211_v17, %v213_v18  ;;  %v215_v26 = vrot.slane %v10266_v19, 1  ;;  %v10289_v35 = vunpack.c.l.bf16 %v104_v31  ;;  %v9715_v37 = vld [vmem:[#allocation3 + $0x44] ss:$8 sps:$4 sm:$0xff]   ;;  %v9713_v55 = vld [vmem:[#allocation3 + $0x40] ss:$8 sps:$4 sm:$0xff]   ;;  %v10347_v63 = vld [vmem:[%s13748_s0 + $0x34] sm:$0xff]  }
  0x55   :  { %9445 = vmatpush1.bf16.msra.mxu1 %v364_v8  ;;  %582 = vmatprep.subr.bf16.mxu0 %v9708_v12  ;;  %v290_v28 = vpack.c.bf16 %v214_v24, %v212_v23  ;;  %v217_v29 = vrot.slane %v10269_v20, 1  ;;  %v577_v36 = vsel %vm362_vm0, %v9711_v27, 0  ;;  %v107_v40 = vld [vmem:[%s13748_s0 + $0x28] sm:$0xf]  ;;  %v220_v41 = vrot.slane %v10287_v34, 1  ;;  %v10355_v0 = vld [vmem:[%s13748_s0 + $0x40] sm:$0xff]  }
  0x56   :  { %v216_v32 = vsel %vm209_vm1, %v213_v18, %v215_v26  ;;  %v222_v42 = vrot.slane %v10289_v35, 1  ;;  %v10305_v45 = vunpack.c.l.bf16 %v107_v40  ;;  %v224_v48 = vrot.slane %v10301_v43, 1  ;;  %v9722_v56 = vld [vmem:[#allocation3 + $0x54] ss:$8 sps:$4 sm:$0x3f]  }
  0x57   :  { %8942 = vmatmul.mubr.msk.bf16.vlgmr.msra.gmra.mrb[0].mxu0 %vm325_vm2, %v290_v28  ;;  %v219_v33 = vsel %vm209_vm1, %v217_v29, %v218_v30  ;;  %v221_v46 = vsel %vm209_vm1, %v218_v30, %v220_v41  ;;  %v225_v49 = vrot.slane %v10303_v44, 1  ;;  %v9724_v57 = vld [vmem:[#allocation3 + $0x50] ss:$8 sps:$4 sm:$0x3f]   ;;  %v9732_v58 = vld [vmem:[#allocation3 + $0x64] ss:$8 sps:$4 sm:$0xff]   ;;  %v8926_v60 = vcombine.low %v10236_v7, %v10256_v14 }
  0x58   :  { %583 = vmatpush1.bf16.msra.mxu0 %v9706_v25  ;;  %411 = vmatprep.mubr.bf16.mxu0 %v13760_v1  ;;  %v291_v38 = vpack.c.bf16 %v219_v33, %v216_v32  ;;  %v223_v47 = vsel %vm209_vm1, %v220_v41, %v222_v42  ;;  %v227_v50 = vrot.slane %v10305_v45, 1  ;;  %v887_v59 = vsel %vm362_vm0, %v9724_v57, 0  ;;  %v10338_v61 = vld [vmem:[%s13748_s0 + $0x30] sm:$0xf]  ;;  %v10362_v2 = vld [vmem:[%s13748_s0 + $0x48] sm:$0xf] }
  0x59   :  { %8958 = vmatprep.subr.msk.bf16.mxu0 %vm362_vm0, %v9709_v22  ;;  %v292_v51 = vpack.c.bf16 %v223_v47, %v221_v46  ;;  %v226_v52 = vsel %vm209_vm1, %v224_v48, %v225_v49  ;;  %v8929_v62 = vcombine.low %v107_v40, %v10338_v61  ;;  %v10368_v3 = vld [vmem:[%s13748_s0 + $0x50] sm:$0xf]  ;;  %v10377_v5 = vld [vmem:[%s13748_s0 + $0x54] sm:$0xff]   ;;  %v10390_v7 = vld [vmem:[%s13748_s0 + $0x68] sm:$0xf]  ;;  %v735_v14 = vrot.slane %v10241_v9, 2 }
  0x5a   :  { %v228_v53 = vsel %vm209_vm1, %v225_v49, %v227_v50  ;;  %v8932_v4 = vcombine.low %v10362_v2, %v10368_v3  ;;  %v10398_v8 = vld [vmem:[%s13748_s0 + $0x70] sm:$0xf]  ;;  %v10407_v13 = vld [vmem:[%s13748_s0 + $0x74] sm:$0xff]   ;;  %v738_v16 = vrot.slane %v10247_v11, 2  ;;  %v9730_v23 = vld [vmem:[#allocation3 + $0x60] ss:$8 sps:$4 sm:$0xff]   ;;  %v10439_v48 = vunpack.c.l.bf16 %v10338_v61 }
  0x5b   :  { %v293_v54 = vpack.c.bf16 %v228_v53, %v226_v52  ;;  %v8935_v12 = vcombine.low %v10390_v7, %v10398_v8  ;;  %v740_v24 = vrot.slane %v10266_v19, 2  ;;  %v742_v25 = vrot.slane %v10269_v20, 2  ;;  %v9733_v27 = vld [vmem:[#allocation3 + $0x74] ss:$8 sps:$4 sm:$0x3f]  }
  0x5c   :  { %585 = vmatpush1.bf16.msra.mxu0 %v577_v36  ;;  %v743_v26 = vrot.slane %v10272_v21, 2  ;;  %v9735_v28 = vld [vmem:[#allocation3 + $0x70] ss:$8 sps:$4 sm:$0x3f]   ;;  %v9738_v32 = vld [vmem:[#allocation3 + $0x84] ss:$8 sps:$4 sm:$0xff]   ;;  %v10443_v49 = vunpack.c.l.bf16 %v10347_v63 }
  0x5d   :  { %892 = vmatprep.subr.bf16.mxu0 %v9715_v37  ;;  %v741_v29 = vsel %vm362_vm0, %v738_v16, %v740_v24  ;;  %v1246_v31 = vsel %vm362_vm0, %v9735_v28, 0  ;;  %v745_v36 = vrot.slane %v10287_v34, 2  ;;  %v747_v37 = vrot.slane %v10289_v35, 2  ;;  %v108_v47 = vld [vmem:[%s13748_s0 + $0x2c] sm:$0x3] }
  0x5e   :  { %v744_v30 = vsel %vm362_vm0, %v742_v25, %v743_v26  ;;  %v749_v41 = vrot.slane %v10301_v43, 2  ;;  %v750_v42 = vrot.slane %v10303_v44, 2  ;;  %v752_v46 = vrot.slane %v10305_v45, 2 }
  0x5f   :  { %8943 = vmatmul.mubr.msk.bf16.gmra.mrb[4].mxu0 %vm325_vm2, %v291_v38  ;;  %v816_v33 = vpack.c.bf16 %v744_v30, %v741_v29  ;;  %v746_v38 = vsel %vm362_vm0, %v743_v26, %v745_v36  ;;  %v10448_v53 = vunpack.c.l.bf16 %v108_v47  ;;  %v757_v57 = vrot.slane %v10443_v49, 2 }
  0x60   :  { %421 = vmatprep.mubr.bf16.mxu0 %v13760_v1  ;;  %v753_v52 = vsel %vm362_vm0, %v750_v42, %v752_v46  ;;  %v10491_v26 = vunpack.c.l.bf16 %v10377_v5  ;;  %v10523_v47 = vunpack.c.l.bf16 %v10390_v7  ;;  %v10535_v7 = vunpack.c.l.bf16 %v10398_v8 }
  0x61   :  { %vm1093_vm3 = vcmask 1044480   ;;  %vm1452_vm4 = vcmask 1043456   ;;  %vm3311_vm5 = vcmask 1041408   ;;  %vm5264_vm6 = vcmask 1041409  }
  0x62   :  { %vm5266_vm7 = vcmask 1042434   ;;  %vm5268_vm8 = vcmask 1043459   ;;  %vm5270_vm9 = vcmask 1044484   ;;  %vm5272_vm10 = vcmask 1045509  }
  0x63   :  { %vm5274_vm11 = vcmask 1046534   ;;  %vm5276_vm12 = vcmask 1047559   ;;  %vm10099_vm13 = vmmov 0   ;;  %vm8906_vm14 = vcmask 57344  }
  0x67   :  { %8944 = vmatmul.mubr.msk.bf16.gmra.mrb[8].mxu0 %vm325_vm2, %v292_v51  ;;  %v751_v51 = vsel %vm362_vm0, %v749_v41, %v750_v42 }
  0x68   :  { %431 = vmatprep.mubr.bf16.mxu0 %v13760_v1 }
  0x6f   :  { %8945 = vmatmul.mubr.msk.bf16.gmra.mrb[12].mxu0 %vm325_vm2, %v293_v54  ;;  %v818_v54 = vpack.c.bf16 %v753_v52, %v751_v51 }
  0x70   :  { %614 = vmatprep.mubr.bf16.mxu0 %v13760_v1 }
  0x77   :  { %8959 = vmatmul.mubr.msk.bf16.vlgmr.msra.gmra.mrb[0].mxu0 %vm325_vm2, %v10231_v6  ;;  %v10385_v6 = vld [vmem:[%s13748_s0 + $0x60] sm:$0xff]  }
  0x78   :  { %893 = vmatpush1.bf16.msra.mxu0 %v9713_v55  ;;  %624 = vmatprep.mubr.bf16.mxu0 %v13760_v1  ;;  %v754_v55 = vrot.slane %v10448_v53, 2 }
  0x79   :  { %8975 = vmatprep.subr.msk.bf16.mxu0 %vm362_vm0, %v9722_v56  ;;  %v756_v56 = vrot.slane %v10439_v48, 2 }
  0x7b   :  { %v758_v61 = vsel %vm362_vm0, %v756_v56, %v757_v57 }
  0x7c   :  { %895 = vmatpush1.bf16.msra.mxu0 %v887_v59  ;;  %v10458_v59 = vunpack.c.h.bf16 %v10347_v63 }
  0x7d   :  { %1251 = vmatprep.subr.bf16.mxu0 %v9732_v58  ;;  %v112_v58 = vld [vmem:[%s13748_s0 + $0x3c] sm:$0x3] }
  0x7f   :  { %8960 = vmatmul.mubr.msk.bf16.gmra.mrb[4].mxu0 %vm325_vm2, %v8926_v60  ;;  %v755_v60 = vsel %vm362_vm0, %v752_v46, %v754_v55  ;;  %v10516_v46 = vunpack.c.l.bf16 %v10385_v6 }
  0x80   :  { %634 = vmatprep.mubr.bf16.mxu0 %v13760_v1 }
  0x81   :  { %v777_v55 = vrot.slane %v10516_v46, 2 }
  0x87   :  { %8961 = vmatmul.mubr.msk.bf16.gmra.mrb[8].mxu0 %vm325_vm2, %v10261_v15  ;;  %v736_v15 = vrot.slane %v10244_v10, 2 }
  0x88   :  { %644 = vmatprep.mubr.bf16.mxu0 %v13760_v1 }
  0x89   :  { %v737_v17 = vsel %vm362_vm0, %v735_v14, %v736_v15  ;;  %v739_v18 = vsel %vm362_vm0, %v736_v15, %v738_v16  ;;  %v10468_v15 = vunpack.c.l.bf16 %v10355_v0  ;;  %v10475_v16 = vunpack.c.l.bf16 %v10362_v2 }
  0x8a   :  { %v815_v22 = vpack.c.bf16 %v739_v18, %v737_v17  ;;  %v10487_v2 = vunpack.c.l.bf16 %v10368_v3  ;;  %v771_v3 = vrot.slane %v10491_v26, 2 }
  0x8b   :  { %v766_v25 = vrot.slane %v10475_v16, 2 }
  0x8f   :  { %8962 = vmatmul.mubr.msk.bf16.gmra.mrb[12].mxu0 %vm325_vm2, %v105_v39  ;;  %v748_v39 = vsel %vm362_vm0, %v745_v36, %v747_v37  ;;  %v10506_v36 = vunpack.c.h.bf16 %v10377_v5 }
  0x90   :  { %654 = vmatprep.mubr.bf16.mxu0 %v13760_v1  ;;  %v817_v40 = vpack.c.bf16 %v748_v39, %v746_v38 }
  0x91   :  { %v773_v41 = vrot.slane %v10506_v36, 2 }
  0x93   :  { %v774_v51 = vsel %vm362_vm0, %v771_v3, %v773_v41 }
  0x97   :  { %8963 = vmatmul.mubr.msk.bf16.gmra.mrb[16].mxu0 %vm325_vm2, %v8929_v62  ;;  %v10463_v62 = vunpack.c.l.bf16 %v112_v58  ;;  %v10539_v58 = vunpack.c.l.bf16 %v10407_v13 }
  0x98   :  { %664 = vmatprep.mubr.bf16.mxu0 %v13760_v1 }
  0x99   :  { %v761_v14 = vrot.slane %v10463_v62, 2  ;;  %v785_v8 = vrot.slane %v10539_v58, 2 }
  0x9f   :  { %8964 = vmatmul.mubr.msk.bf16.gmra.mrb[20].mxu0 %vm325_vm2, %v10347_v63  ;;  %v10472_v63 = vunpack.c.h.bf16 %v10355_v0 }
  0xa0   :  { %674 = vmatprep.mubr.bf16.mxu0 %v13760_v1 }
  0xa1   :  { %v764_v24 = vrot.slane %v10472_v63, 2 }
  0xa3   :  { %v767_v28 = vsel %vm362_vm0, %v764_v24, %v766_v25 }
  0xa7   :  { %8965 = vmatmul.mubr.msk.bf16.gmra.mrb[24].mxu0 %vm325_vm2, %v10355_v0  ;;  %v116_v0 = vld [vmem:[%s13748_s0 + $0x4c] sm:$0x3] }
  0xa8   :  { %684 = vmatprep.mubr.bf16.mxu0 %v13760_v1  ;;  %v10496_v29 = vunpack.c.l.bf16 %v116_v0 }
  0xaf   :  { %8966 = vmatmul.mubr.msk.bf16.gmra.mrb[28].mxu0 %vm325_vm2, %v8932_v4  ;;  %v819_v4 = vpack.c.bf16 %v758_v61, %v755_v60 }
  0xb0   :  { %694 = vmatprep.mubr.bf16.mxu0 %v13760_v1 }
  0xb7   :  { %8967 = vmatmul.mubr.msk.bf16.gmra.mrb[32].mxu0 %vm325_vm2, %v10377_v5  ;;  %v10520_v5 = vunpack.c.h.bf16 %v10385_v6 }
  0xb8   :  { %704 = vmatprep.mubr.bf16.mxu0 %v13760_v1 }
  0xb9   :  { %v778_v56 = vrot.slane %v10520_v5, 2 }
  0xbb   :  { %v779_v60 = vsel %vm362_vm0, %v777_v55, %v778_v56 }
  0xbf   :  { %8968 = vmatmul.mubr.msk.bf16.gmra.mrb[36].mxu0 %vm325_vm2, %v10385_v6  ;;  %v124_v6 = vld [vmem:[%s13748_s0 + $0x6c] sm:$0x3] }
  0xc0   :  { %714 = vmatprep.mubr.bf16.mxu0 %v13760_v1 }
  0xc7   :  { %8969 = vmatmul.mubr.msk.bf16.gmra.mrb[40].mxu0 %vm325_vm2, %v8935_v12  ;;  %v759_v12 = vrot.slane %v10458_v59, 2 }
  0xc8   :  { %724 = vmatprep.mubr.bf16.mxu0 %v13760_v1 }
  0xc9   :  { %v760_v17 = vsel %vm362_vm0, %v757_v57, %v759_v12  ;;  %v762_v18 = vsel %vm362_vm0, %v759_v12, %v761_v14  ;;  %v780_v57 = vrot.slane %v10523_v47, 2 }
  0xcb   :  { %v781_v61 = vsel %vm362_vm0, %v778_v56, %v780_v57  ;;  %v9736_v56 = vld [vmem:[#allocation3 + $0x80] ss:$8 sps:$4 sm:$0xff]  }
  0xcc   :  { %v824_v12 = vpack.c.bf16 %v781_v61, %v779_v60  ;;  %v1102_v60 = vrot.slane %v10272_v21, 3  ;;  %v9739_v61 = vld [vmem:[#allocation3 + $0x94] ss:$8 sps:$4 sm:$0x3f]  }
  0xcf   :  { %8970 = vmatmul.mubr.msk.bf16.gmra.mrb[44].mxu0 %vm325_vm2, %v10407_v13 }
  0xd0   :  { %924 = vmatprep.mubr.bf16.mxu0 %v13760_v1 }
  0xd7   :  { %8976 = vmatmul.mubr.msk.bf16.vlgmr.msra.gmra.mrb[0].mxu0 %vm325_vm2, %v815_v22  ;;  %v820_v22 = vpack.c.bf16 %v762_v18, %v760_v17  ;;  %v784_v17 = vrot.slane %v10535_v7, 2  ;;  %v128_v18 = vld [vmem:[%s13748_s0 + $0x7c] sm:$0x3] }
  0xd8   :  { %1252 = vmatpush1.bf16.msra.mxu0 %v9730_v23  ;;  %934 = vmatprep.mubr.bf16.mxu0 %v13760_v1  ;;  %v763_v23 = vrot.slane %v10468_v15, 2 }
  0xd9   :  { %8992 = vmatprep.subr.msk.bf16.mxu0 %vm362_vm0, %v9733_v27 }
  0xda   :  { %v765_v27 = vsel %vm362_vm0, %v763_v23, %v764_v24  ;;  %v786_v24 = vsel %vm362_vm0, %v784_v17, %v785_v8 }
  0xdb   :  { %v821_v30 = vpack.c.bf16 %v767_v28, %v765_v27 }
  0xdc   :  { %1254 = vmatpush1.bf16.msra.mxu0 %v1246_v31  ;;  %v768_v31 = vrot.slane %v10496_v29, 2 }
  0xdd   :  { %1610 = vmatprep.subr.bf16.mxu0 %v9738_v32  ;;  %v770_v32 = vrot.slane %v10487_v2, 2 }
  0xde   :  { %v769_v37 = vsel %vm362_vm0, %v766_v25, %v768_v31  ;;  %v10559_v25 = vunpack.c.l.bf16 %v128_v18 }
  0xdf   :  { %8977 = vmatmul.mubr.msk.bf16.gmra.mrb[4].mxu0 %vm325_vm2, %v816_v33  ;;  %v120_v33 = vld [vmem:[%s13748_s0 + $0x5c] sm:$0x3]  ;;  %v772_v38 = vsel %vm362_vm0, %v770_v32, %v771_v3  ;;  %v1094_v32 = vrot.slane %v10241_v9, 3  ;;  %v1095_v3 = vrot.slane %v10244_v10, 3 }
  0xe0   :  { %944 = vmatprep.mubr.bf16.mxu0 %v13760_v1  ;;  %v10511_v39 = vunpack.c.l.bf16 %v120_v33  ;;  %v789_v28 = vrot.slane %v10559_v25, 2  ;;  %v1097_v33 = vrot.slane %v10247_v11, 3 }
  0xe2   :  { %v775_v42 = vrot.slane %v10511_v39, 2 }
  0xe4   :  { %v776_v52 = vsel %vm362_vm0, %v773_v41, %v775_v42  ;;  %v1096_v41 = vsel %vm1093_vm3, %v1094_v32, %v1095_v3  ;;  %v1098_v42 = vsel %vm1093_vm3, %v1095_v3, %v1097_v33  ;;  %v241_v32 = vrot.slane %v10475_v16, 1 }
  0xe5   :  { %v1174_v55 = vpack.c.bf16 %v1098_v42, %v1096_v41  ;;  %v1108_v42 = vrot.slane %v10301_v43, 3 }
  0xe7   :  { %8978 = vmatmul.mubr.msk.bf16.gmra.mrb[8].mxu0 %vm325_vm2, %v817_v40  ;;  %v822_v40 = vpack.c.bf16 %v772_v38, %v769_v37  ;;  %v229_v37 = vrot.slane %v10448_v53, 1  ;;  %v231_v38 = vrot.slane %v10439_v48, 1 }
  0xe8   :  { %954 = vmatprep.mubr.bf16.mxu0 %v13760_v1 }
  0xef   :  { %8979 = vmatmul.mubr.msk.bf16.gmra.mrb[12].mxu0 %vm325_vm2, %v818_v54  ;;  %v823_v54 = vpack.c.bf16 %v776_v52, %v774_v51  ;;  %v230_v51 = vsel %vm209_vm1, %v227_v50, %v229_v37  ;;  %v234_v50 = vrot.slane %v10458_v59, 1 }
  0xf0   :  { %964 = vmatprep.mubr.bf16.mxu0 %v13760_v1 }
  0xf7   :  { %8980 = vmatmul.mubr.msk.bf16.gmra.mrb[16].mxu0 %vm325_vm2, %v819_v4  ;;  %v10544_v4 = vunpack.c.l.bf16 %v124_v6  ;;  %v1101_v6 = vrot.slane %v10269_v20, 3 }
  0xf8   :  { %974 = vmatprep.mubr.bf16.mxu0 %v13760_v1 }
  0xf9   :  { %v782_v14 = vrot.slane %v10544_v4, 2 }
  0xfb   :  { %v783_v23 = vsel %vm362_vm0, %v780_v57, %v782_v14  ;;  %v1099_v57 = vrot.slane %v10266_v19, 3  ;;  %v236_v14 = vrot.slane %v10463_v62, 1 }
  0xfc   :  { %v825_v0 = vpack.c.bf16 %v786_v24, %v783_v23 }
  0xfd   :  { %v1100_v17 = vsel %vm1093_vm3, %v1097_v33, %v1099_v57  ;;  %v237_v24 = vsel %vm209_vm1, %v234_v50, %v236_v14  ;;  %v1113_v14 = vrot.slane %v10448_v53, 3 }
  0xff   :  { %8981 = vmatmul.mubr.msk.bf16.gmra.mrb[20].mxu0 %vm325_vm2, %v820_v22  ;;  %v10554_v22 = vunpack.c.h.bf16 %v10407_v13 }
 0x100   :  { %984 = vmatprep.mubr.bf16.mxu0 %v13760_v1 }
 0x101   :  { %v787_v27 = vrot.slane %v10554_v22, 2 }
 0x103   :  { %v788_v13 = vsel %vm362_vm0, %v785_v8, %v787_v27  ;;  %v1103_v8 = vsel %vm1093_vm3, %v1101_v6, %v1102_v60 }
 0x107   :  { %8982 = vmatmul.mubr.msk.bf16.gmra.mrb[24].mxu0 %vm325_vm2, %v821_v30  ;;  %v790_v30 = vsel %vm362_vm0, %v787_v27, %v789_v28  ;;  %v1175_v27 = vpack.c.bf16 %v1103_v8, %v1100_v17  ;;  %v1104_v28 = vrot.slane %v10287_v34, 3  ;;  %v1115_v17 = vrot.slane %v10439_v48, 3 }
 0x108   :  { %994 = vmatprep.mubr.bf16.mxu0 %v13760_v1  ;;  %v826_v31 = vpack.c.bf16 %v790_v30, %v788_v13  ;;  %v1106_v13 = vrot.slane %v10289_v35, 3  ;;  %v238_v30 = vrot.slane %v10468_v15, 1  ;;  %v1116_v8 = vrot.slane %v10443_v49, 3 }
 0x109   :  { %v1105_v3 = vsel %vm1093_vm3, %v1102_v60, %v1104_v28 }
 0x10a   :  { %v1107_v33 = vsel %vm1093_vm3, %v1104_v28, %v1106_v13 }
 0x10b   :  { %v1176_v41 = vpack.c.bf16 %v1107_v33, %v1105_v3  ;;  %v252_v3 = vrot.slane %v10516_v46, 1  ;;  %v253_v33 = vrot.slane %v10520_v5, 1 }
 0x10f   :  { %8983 = vmatmul.mubr.msk.bf16.gmra.mrb[28].mxu0 %vm325_vm2, %v822_v40  ;;  %v232_v40 = vrot.slane %v10443_v49, 1 }
 0x110   :  { %1004 = vmatprep.mubr.bf16.mxu0 %v13760_v1 }
 0x111   :  { %v233_v52 = vsel %vm209_vm1, %v231_v38, %v232_v40  ;;  %v235_v23 = vsel %vm209_vm1, %v232_v40, %v234_v50 }
 0x117   :  { %8984 = vmatmul.mubr.msk.bf16.gmra.mrb[32].mxu0 %vm325_vm2, %v823_v54  ;;  %v294_v54 = vpack.c.bf16 %v233_v52, %v230_v51  ;;  %v1109_v51 = vrot.slane %v10303_v44, 3  ;;  %v1111_v52 = vrot.slane %v10305_v45, 3 }
 0x118   :  { %1014 = vmatprep.mubr.bf16.mxu0 %v13760_v1 }
 0x119   :  { %8946 = vmatmul.mubr.msk.bf16.vlgmr.msra.gmra.mrb[0].mxu1 %vm325_vm2, %v294_v54  ;;  %v243_v54 = vrot.slane %v10496_v29, 1  ;;  %v1110_v57 = vsel %vm1093_vm3, %v1108_v42, %v1109_v51  ;;  %v1112_v6 = vsel %vm1093_vm3, %v1109_v51, %v1111_v52 }
 0x11a   :  { %451 = vmatprep.mubr.bf16.mxu1 %v13760_v1  ;;  %v1177_v50 = vpack.c.bf16 %v1112_v6, %v1110_v57  ;;  %v257_v57 = vrot.slane %v10544_v4, 1  ;;  %v259_v6 = vrot.slane %v10535_v7, 1 }
 0x11b   :  { %v244_v60 = vsel %vm209_vm1, %v241_v32, %v243_v54  ;;  %v1122_v54 = vrot.slane %v10468_v15, 3 }
 0x11f   :  { %8985 = vmatmul.mubr.msk.bf16.gmra.mrb[36].mxu0 %vm325_vm2, %v824_v12  ;;  %v9741_v12 = vld [vmem:[#allocation3 + $0x90] ss:$8 sps:$4 sm:$0x3f]  }
 0x120   :  { %1024 = vmatprep.mubr.bf16.mxu0 %v13760_v1  ;;  %v1605_v18 = vsel %vm362_vm0, %v9741_v12, 0 }
 0x127   :  { %8986 = vmatmul.mubr.msk.bf16.gmra.mrb[40].mxu0 %vm325_vm2, %v825_v0  ;;  %v295_v0 = vpack.c.bf16 %v237_v24, %v235_v23  ;;  %v250_v23 = vrot.slane %v10511_v39, 1  ;;  %v1114_v24 = vsel %vm1093_vm3, %v1111_v52, %v1113_v14 }
 0x128   :  { %1034 = vmatprep.mubr.bf16.mxu0 %v13760_v1 }
 0x129   :  { %8947 = vmatmul.mubr.msk.bf16.gmra.mrb[4].mxu1 %vm325_vm2, %v295_v0  ;;  %v1117_v0 = vsel %vm1093_vm3, %v1115_v17, %v1116_v8 }
 0x12a   :  { %461 = vmatprep.mubr.bf16.mxu1 %v13760_v1 }
 0x12f   :  { %8987 = vmatmul.mubr.msk.bf16.gmra.mrb[44].mxu0 %vm325_vm2, %v826_v31  ;;  %v239_v31 = vrot.slane %v10472_v63, 1 }
 0x130   :  { %1283 = vmatprep.mubr.bf16.mxu0 %v13760_v1 }
 0x131   :  { %v240_v37 = vsel %vm209_vm1, %v238_v30, %v239_v31  ;;  %v242_v38 = vsel %vm209_vm1, %v239_v31, %v241_v32  ;;  %v1178_v30 = vpack.c.bf16 %v1117_v0, %v1114_v24  ;;  %v1118_v31 = vrot.slane %v10458_v59, 3 }
 0x132   :  { %v296_v40 = vpack.c.bf16 %v242_v38, %v240_v37  ;;  %v1120_v32 = vrot.slane %v10463_v62, 3  ;;  %v255_v37 = vrot.slane %v10523_v47, 1  ;;  %v1130_v24 = vrot.slane %v10491_v26, 3 }
 0x133   :  { %v1119_v38 = vsel %vm1093_vm3, %v1116_v8, %v1118_v31  ;;  %v262_v0 = vrot.slane %v10554_v22, 1 }
 0x134   :  { %8948 = vmatmul.mubr.msk.bf16.gmra.mrb[8].mxu1 %vm325_vm2, %v296_v40  ;;  %v1121_v40 = vsel %vm1093_vm3, %v1118_v31, %v1120_v32  ;;  %v256_v42 = vsel %vm209_vm1, %v253_v33, %v255_v37 }
 0x135   :  { %471 = vmatprep.mubr.bf16.mxu1 %v13760_v1  ;;  %v1179_v52 = vpack.c.bf16 %v1121_v40, %v1119_v38 }
 0x137   :  { %8993 = vmatmul.mubr.msk.bf16.vlgmr.msra.gmra.mrb[0].mxu0 %vm325_vm2, %v1174_v55  ;;  %v245_v55 = vrot.slane %v10487_v2, 1 }
 0x138   :  { %1611 = vmatpush1.bf16.msra.mxu0 %v9736_v56  ;;  %1293 = vmatprep.mubr.bf16.mxu0 %v13760_v1  ;;  %v246_v56 = vrot.slane %v10491_v26, 1 }
 0x139   :  { %9009 = vmatprep.subr.msk.bf16.mxu0 %vm362_vm0, %v9739_v61 }
 0x13a   :  { %v247_v61 = vsel %vm209_vm1, %v245_v55, %v246_v56  ;;  %v1123_v55 = vrot.slane %v10472_v63, 3 }
 0x13b   :  { %v297_v12 = vpack.c.bf16 %v247_v61, %v244_v60  ;;  %v260_v60 = vrot.slane %v10539_v58, 1 }
 0x13c   :  { %1613 = vmatpush1.bf16.msra.mxu0 %v1605_v18  ;;  %v248_v18 = vrot.slane %v10506_v36, 1  ;;  %v1124_v61 = vsel %vm1093_vm3, %v1122_v54, %v1123_v55 }
 0x13d   :  { %8949 = vmatmul.mubr.msk.bf16.gmra.mrb[12].mxu1 %vm325_vm2, %v297_v12  ;;  %v261_v14 = vsel %vm209_vm1, %v259_v6, %v260_v60  ;;  %v1143_v6 = vrot.slane %v10535_v7, 3 }
 0x13e   :  { %481 = vmatprep.mubr.bf16.mxu1 %v13760_v1  ;;  %v251_v28 = vsel %vm209_vm1, %v248_v18, %v250_v23  ;;  %v1129_v23 = vrot.slane %v10487_v2, 3 }
 0x13f   :  { %8994 = vmatmul.mubr.msk.bf16.gmra.mrb[4].mxu0 %vm325_vm2, %v1175_v27  ;;  %v249_v27 = vsel %vm209_vm1, %v246_v56, %v248_v18  ;;  %v1125_v56 = vrot.slane %v10475_v16, 3  ;;  %v1127_v18 = vrot.slane %v10496_v29, 3 }
 0x140   :  { %1303 = vmatprep.mubr.bf16.mxu0 %v13760_v1  ;;  %v298_v13 = vpack.c.bf16 %v251_v28, %v249_v27  ;;  %v264_v27 = vrot.slane %v10559_v25, 1 }
 0x141   :  { %v1126_v12 = vsel %vm1093_vm3, %v1123_v55, %v1125_v56  ;;  %v1128_v28 = vsel %vm1093_vm3, %v1125_v56, %v1127_v18 }
 0x142   :  { %v1180_v8 = vpack.c.bf16 %v1126_v12, %v1124_v61  ;;  %v265_v31 = vsel %vm209_vm1, %v262_v0, %v264_v27  ;;  %v1456_v27 = vrot.slane %v10247_v11, 4 }
 0x145   :  { %8950 = vmatmul.mubr.msk.bf16.gmra.mrb[16].mxu1 %vm325_vm2, %v298_v13  ;;  %v1131_v13 = vsel %vm1093_vm3, %v1129_v23, %v1130_v24 }
 0x146   :  { %491 = vmatprep.mubr.bf16.mxu1 %v13760_v1 }
 0x147   :  { %8995 = vmatmul.mubr.msk.bf16.gmra.mrb[8].mxu0 %vm325_vm2, %v1176_v41  ;;  %v254_v41 = vsel %vm209_vm1, %v252_v3, %v253_v33  ;;  %v1181_v3 = vpack.c.bf16 %v1131_v13, %v1128_v28  ;;  %v1132_v33 = vrot.slane %v10506_v36, 3 }
 0x148   :  { %1313 = vmatprep.mubr.bf16.mxu0 %v13760_v1  ;;  %v299_v51 = vpack.c.bf16 %v256_v42, %v254_v41  ;;  %v1136_v42 = vrot.slane %v10516_v46, 3 }
 0x149   :  { %v1133_v38 = vsel %vm1093_vm3, %v1130_v24, %v1132_v33  ;;  %v1453_v24 = vrot.slane %v10241_v9, 4  ;;  %v1461_v9 = vrot.slane %v10272_v21, 4 }
 0x14d   :  { %8951 = vmatmul.mubr.msk.bf16.gmra.mrb[20].mxu1 %vm325_vm2, %v299_v51  ;;  %v1137_v51 = vrot.slane %v10520_v5, 3 }
 0x14e   :  { %501 = vmatprep.mubr.bf16.mxu1 %v13760_v1 }
 0x14f   :  { %8996 = vmatmul.mubr.msk.bf16.gmra.mrb[12].mxu0 %vm325_vm2, %v1177_v50  ;;  %v258_v50 = vsel %vm209_vm1, %v255_v37, %v257_v57  ;;  %v1134_v37 = vrot.slane %v10511_v39, 3  ;;  %v1138_v54 = vsel %vm1093_vm3, %v1136_v42, %v1137_v51  ;;  %v1141_v57 = vrot.slane %v10544_v4, 3 }
 0x150   :  { %1323 = vmatprep.mubr.bf16.mxu0 %v13760_v1  ;;  %v300_v17 = vpack.c.bf16 %v261_v14, %v258_v50  ;;  %v1146_v14 = vrot.slane %v10554_v22, 3 }
 0x151   :  { %v1135_v40 = vsel %vm1093_vm3, %v1132_v33, %v1134_v37  ;;  %v1463_v33 = vrot.slane %v10287_v34, 4  ;;  %v1465_v37 = vrot.slane %v10289_v35, 4 }
 0x152   :  { %v1182_v41 = vpack.c.bf16 %v1135_v40, %v1133_v38  ;;  %v1467_v38 = vrot.slane %v10301_v43, 4  ;;  %v1468_v40 = vrot.slane %v10303_v44, 4 }
 0x154   :  { %v1469_v34 = vsel %vm1452_vm4, %v1467_v38, %v1468_v40  ;;  %v9747_v38 = vld [vmem:[#allocation6 + $0x10] sm:$0xff]  }
 0x155   :  { %8952 = vmatmul.mubr.msk.bf16.gmra.mrb[24].mxu1 %vm325_vm2, %v300_v17  ;;  %v1148_v17 = vrot.slane %v10559_v25, 3 }
 0x156   :  { %511 = vmatprep.mubr.bf16.mxu1 %v13760_v1 }
 0x157   :  { %8997 = vmatmul.mubr.msk.bf16.gmra.mrb[16].mxu0 %vm325_vm2, %v1178_v30  ;;  %v263_v30 = vsel %vm209_vm1, %v260_v60, %v262_v0  ;;  %v1144_v60 = vrot.slane %v10539_v58, 3  ;;  %v1149_v18 = vsel %vm1093_vm3, %v1146_v14, %v1148_v17  ;;  %v1454_v0 = vrot.slane %v10244_v10, 4 }
 0x158   :  { %1333 = vmatprep.mubr.bf16.mxu0 %v13760_v1  ;;  %v301_v32 = vpack.c.bf16 %v265_v31, %v263_v30  ;;  %v1458_v31 = vrot.slane %v10266_v19, 4  ;;  %v1464_v19 = vsel %vm1452_vm4, %v1461_v9, %v1463_v33  ;;  %v1491_v17 = vrot.slane %v10506_v36, 4 }
 0x159   :  { %v1145_v12 = vsel %vm1093_vm3, %v1143_v6, %v1144_v60  ;;  %v1455_v28 = vsel %vm1452_vm4, %v1453_v24, %v1454_v0  ;;  %v1457_v13 = vsel %vm1452_vm4, %v1454_v0, %v1456_v27  ;;  %v1482_v6 = vrot.slane %v10472_v63, 4 }
 0x15a   :  { %v1533_v30 = vpack.c.bf16 %v1457_v13, %v1455_v28  ;;  %v1459_v10 = vsel %vm1452_vm4, %v1456_v27, %v1458_v31  ;;  %v1498_v24 = vrot.slane %v10523_v47, 4  ;;  %v1500_v27 = vrot.slane %v10544_v4, 4 }
 0x15b   :  { %v1502_v28 = vrot.slane %v10535_v7, 4  ;;  %v1503_v13 = vrot.slane %v10539_v58, 4  ;;  %v1507_v31 = vrot.slane %v10559_v25, 4 }
 0x15d   :  { %8953 = vmatmul.mubr.msk.bf16.gmra.mrb[28].mxu1 %vm325_vm2, %v301_v32  ;;  %v1460_v32 = vrot.slane %v10269_v20, 4  ;;  %v1466_v20 = vsel %vm1452_vm4, %v1463_v33, %v1465_v37  ;;  %v1811_v33 = vld [vmem:[%s13750_s2] sm:$0x3] }
 0x15e   :  { %v1535_v21 = vpack.c.bf16 %v1466_v20, %v1464_v19  ;;  %v10097_v19 = vmov 1983009808  }
 0x15f   :  { %8998 = vmatmul.mubr.msk.bf16.gmra.mrb[20].mxu0 %vm325_vm2, %v1179_v52  ;;  %v1139_v52 = vrot.slane %v10523_v47, 3  ;;  %v1462_v11 = vsel %vm1452_vm4, %v1460_v32, %v1461_v9  ;;  %v9742_v32 = vld [vmem:[#allocation6 + $0x40] sm:$0xff]   ;;  %v1922_v20 = vunpack.c.l.s4 %v10097_v19 }
 0x160   :  { %1343 = vmatprep.mubr.bf16.mxu0 %v13760_v1  ;;  %v9743_v9 = vld [vmem:[#allocation6] sm:$0xff]   ;;  %9231 = vmatprep.subr.bf16.mxu1 %v9742_v32 }
 0x161   :  { %v1140_v55 = vsel %vm1093_vm3, %v1137_v51, %v1139_v52  ;;  %v1142_v61 = vsel %vm1093_vm3, %v1139_v52, %v1141_v57  ;;  %v1472_v51 = vrot.slane %v10448_v53, 4  ;;  %v1474_v52 = vrot.slane %v10439_v48, 4  ;;  %9232 = vmatpush3.bf16.msra.mxu1 %v9743_v9 }
 0x162   :  { %v1183_v56 = vpack.c.bf16 %v1140_v55, %v1138_v54  ;;  %v1184_v50 = vpack.c.bf16 %v1145_v12, %v1142_v61  ;;  %v1475_v54 = vrot.slane %v10443_v49, 4  ;;  %v1477_v55 = vrot.slane %v10458_v59, 4 }
 0x163   :  { %v1481_v57 = vrot.slane %v10468_v15, 4  ;;  %v1486_v12 = vrot.slane %v10496_v29, 4 }
 0x164   :  { %v1476_v44 = vsel %vm1452_vm4, %v1474_v52, %v1475_v54  ;;  %v1478_v48 = vsel %vm1452_vm4, %v1475_v54, %v1477_v55 }
 0x165   :  { %v1483_v59 = vsel %vm1452_vm4, %v1481_v57, %v1482_v6 }
 0x167   :  { %8999 = vmatmul.mubr.msk.bf16.gmra.mrb[24].mxu0 %vm325_vm2, %v1180_v8  ;;  %v1147_v8 = vsel %vm1093_vm3, %v1144_v60, %v1146_v14  ;;  %v1484_v60 = vrot.slane %v10475_v16, 4  ;;  %v1489_v14 = vrot.slane %v10491_v26, 4 }
 0x168   :  { %1353 = vmatprep.mubr.bf16.mxu0 %v13760_v1  ;;  %v1185_v23 = vpack.c.bf16 %v1149_v18, %v1147_v8  ;;  %v1493_v8 = vrot.slane %v10511_v39, 4  ;;  %v1495_v18 = vrot.slane %v10516_v46, 4  ;;  %v1501_v46 = vsel %vm1452_vm4, %v1498_v24, %v1500_v27 }
 0x169   :  { %v1487_v15 = vsel %vm1452_vm4, %v1484_v60, %v1486_v12 }
 0x16a   :  { %v1494_v26 = vsel %vm1452_vm4, %v1491_v17, %v1493_v8 }
 0x16f   :  { %9000 = vmatmul.mubr.msk.bf16.gmra.mrb[28].mxu0 %vm325_vm2, %v1181_v3  ;;  %v1534_v3 = vpack.c.bf16 %v1462_v11, %v1459_v10  ;;  %v9744_v10 = vld [vmem:[#allocation6 + $0x48] sm:$0xff]  }
 0x170   :  { %1363 = vmatprep.mubr.bf16.mxu0 %v13760_v1  ;;  %v9745_v11 = vld [vmem:[#allocation6 + $0x8] sm:$0xff]   ;;  %9233 = vmatprep.subr.bf16.mxu1 %v9744_v10 }
 0x171   :  { %9234 = vmatpush3.bf16.msra.mxu1 %v9745_v11 }
 0x177   :  { %9001 = vmatmul.mubr.msk.bf16.gmra.mrb[32].mxu0 %vm325_vm2, %v1182_v41  ;;  %v1470_v41 = vrot.slane %v10305_v45, 4 }
 0x178   :  { %1373 = vmatprep.mubr.bf16.mxu0 %v13760_v1 }
 0x179   :  { %v1471_v35 = vsel %vm1452_vm4, %v1468_v40, %v1470_v41  ;;  %v1473_v43 = vsel %vm1452_vm4, %v1470_v41, %v1472_v51 }
 0x17a   :  { %v1536_v42 = vpack.c.bf16 %v1471_v35, %v1469_v34  ;;  %v1537_v45 = vpack.c.bf16 %v1476_v44, %v1473_v43  ;;  %v1923_v34 = vunpack.c.0.s8 %v1922_v20 }
 0x17f   :  { %9002 = vmatmul.mubr.msk.bf16.gmra.mrb[36].mxu0 %vm325_vm2, %v1183_v56  ;;  %v1479_v56 = vrot.slane %v10463_v62, 4  ;;  %v1485_v62 = vsel %vm1452_vm4, %v1482_v6, %v1484_v60 }
 0x180   :  { %1383 = vmatprep.mubr.bf16.mxu0 %v13760_v1  ;;  %v1539_v61 = vpack.c.bf16 %v1485_v62, %v1483_v59 }
 0x181   :  { %v1480_v49 = vsel %vm1452_vm4, %v1477_v55, %v1479_v56 }
 0x182   :  { %v1538_v53 = vpack.c.bf16 %v1480_v49, %v1478_v48 }
 0x187   :  { %9003 = vmatmul.mubr.msk.bf16.gmra.mrb[40].mxu0 %vm325_vm2, %v1184_v50  ;;  %v1488_v50 = vrot.slane %v10487_v2, 4  ;;  %v1492_v2 = vsel %vm1452_vm4, %v1489_v14, %v1491_v17 }
 0x188   :  { %1393 = vmatprep.mubr.bf16.mxu0 %v13760_v1  ;;  %v1541_v29 = vpack.c.bf16 %v1494_v26, %v1492_v2 }
 0x189   :  { %v1490_v63 = vsel %vm1452_vm4, %v1488_v50, %v1489_v14 }
 0x18a   :  { %v1540_v16 = vpack.c.bf16 %v1490_v63, %v1487_v15 }
 0x18f   :  { %9004 = vmatmul.mubr.msk.bf16.gmra.mrb[44].mxu0 %vm325_vm2, %v1185_v23  ;;  %v1496_v23 = vrot.slane %v10520_v5, 4  ;;  %v1504_v5 = vsel %vm1452_vm4, %v1502_v28, %v1503_v13 }
 0x190   :  { %1642 = vmatprep.mubr.bf16.mxu0 %v13760_v1  ;;  %v1543_v47 = vpack.c.bf16 %v1504_v5, %v1501_v46 }
 0x191   :  { %v1497_v36 = vsel %vm1452_vm4, %v1495_v18, %v1496_v23  ;;  %v1499_v39 = vsel %vm1452_vm4, %v1496_v23, %v1498_v24 }
 0x192   :  { %v1542_v0 = vpack.c.bf16 %v1499_v39, %v1497_v36 }
 0x197   :  { %9010 = vmatmul.mubr.msk.bf16.vlgmr.msra.gmra.mrb[0].mxu0 %vm325_vm2, %v1533_v30  ;;  %v1505_v30 = vrot.slane %v10554_v22, 4  ;;  %v1813_v22 = vlaneseq }
 0x198   :  { %1652 = vmatprep.mubr.bf16.mxu0 %v13760_v1 }
 0x199   :  { %v1506_v7 = vsel %vm1452_vm4, %v1503_v13, %v1505_v30  ;;  %v1508_v58 = vsel %vm1452_vm4, %v1505_v30, %v1507_v31  ;;  %v10784_v25 = vshrl.u32 %v1813_v22, 7 }
 0x19a   :  { %v1544_v4 = vpack.c.bf16 %v1508_v58, %v1506_v7 }
 0x19b   :  { %13899 = vst [vmem:[#allocation16_spill] sm:$0xff] %v10784_v25  ;;  %v10793_v37 = vsub.s32 1, %v10784_v25  ;;  %v10804_v54 = vsub.s32 %v1923_v34, %v10784_v25 }
 0x19d   :  { %13901 = vst [vmem:[#allocation18_spill] sm:$0xff] %v10793_v37  ;;  %v10799_v41 = vrot.slane %v1811_v33, %v10793_v37  ;;  %13902 = vst [vmem:[#allocation19_spill] sm:$0xff] %v10804_v54 }
 0x19f   :  { %9011 = vmatmul.mubr.msk.bf16.gmra.mrb[4].mxu0 %vm325_vm2, %v1534_v3  ;;  %v10787_v3 = vsub.s32 0, %v10784_v25 }
 0x1a0   :  { %1662 = vmatprep.mubr.bf16.mxu0 %v13760_v1 }
 0x1a1   :  { %13900 = vst [vmem:[#allocation17_spill] sm:$0xff] %v10787_v3  ;;  %v10796_v40 = vrot.slane %v1811_v33, %v10787_v3 }
 0x1a7   :  { %9012 = vmatmul.mubr.msk.bf16.gmra.mrb[8].mxu0 %vm325_vm2, %v1535_v21  ;;  %v9746_v21 = vld [vmem:[#allocation6 + $0x50] sm:$0xff]  }
 0x1a8   :  { %1672 = vmatprep.mubr.bf16.mxu0 %v13760_v1  ;;  %9235 = vmatprep.subr.bf16.mxu1 %v9746_v21  ;;  %v9748_v21 = vld [vmem:[#allocation6 + $0x58] sm:$0xff]  }
 0x1a9   :  { %9236 = vmatpush3.bf16.msra.mxu1 %v9747_v38 }
 0x1aa   :  { %9237 = vmatprep.subr.bf16.mxu1 %v9748_v21 }
 0x1af   :  { %9013 = vmatmul.mubr.msk.bf16.gmra.mrb[12].mxu0 %vm325_vm2, %v1536_v42 }
 0x1b0   :  { %1682 = vmatprep.mubr.bf16.mxu0 %v13760_v1 }
 0x1b7   :  { %9014 = vmatmul.mubr.msk.bf16.gmra.mrb[16].mxu0 %vm325_vm2, %v1537_v45 }
 0x1b8   :  { %1692 = vmatprep.mubr.bf16.mxu0 %v13760_v1 }
 0x1bf   :  { %9015 = vmatmul.mubr.msk.bf16.gmra.mrb[20].mxu0 %vm325_vm2, %v1538_v53 }
 0x1c0   :  { %1702 = vmatprep.mubr.bf16.mxu0 %v13760_v1 }
 0x1c7   :  { %9016 = vmatmul.mubr.msk.bf16.gmra.mrb[24].mxu0 %vm325_vm2, %v1539_v61 }
 0x1c8   :  { %1712 = vmatprep.mubr.bf16.mxu0 %v13760_v1 }
 0x1cf   :  { %9017 = vmatmul.mubr.msk.bf16.gmra.mrb[28].mxu0 %vm325_vm2, %v1540_v16 }
 0x1d0   :  { %1722 = vmatprep.mubr.bf16.mxu0 %v13760_v1 }
 0x1d7   :  { %9018 = vmatmul.mubr.msk.bf16.gmra.mrb[32].mxu0 %vm325_vm2, %v1541_v29 }
 0x1d8   :  { %1732 = vmatprep.mubr.bf16.mxu0 %v13760_v1 }
 0x1df   :  { %9019 = vmatmul.mubr.msk.bf16.gmra.mrb[36].mxu0 %vm325_vm2, %v1542_v0 }
 0x1e0   :  { %1742 = vmatprep.mubr.bf16.mxu0 %v13760_v1 }
 0x1e7   :  { %9020 = vmatmul.mubr.msk.bf16.gmra.mrb[40].mxu0 %vm325_vm2, %v1543_v47 }
 0x1e8   :  { %1752 = vmatprep.mubr.bf16.mxu0 %v13760_v1 }
 0x1ef   :  { %9021 = vmatmul.mubr.msk.bf16.gmra.mrb[44].mxu0 %vm325_vm2, %v1544_v4 }
 0x26a   :  { %v1644_v35 = vpop.f32.mrb[0].mxu0 }
 0x26b   :  { %v1823_v42 = vadd.f32 %v10796_v40, %v1644_v35  ;;  %v1646_v51 = vpop.f32.mrb[1].mxu0 }
 0x26c   :  { %v1824_v52 = vadd.f32 %v10799_v41, %v1646_v51  ;;  %v1648_v43 = vpop.f32.mrb[2].mxu0 }
 0x26d   :  { %v1825_v44 = vadd.f32 %v10796_v40, %v1648_v43  ;;  %v1650_v45 = vpop.f32.mrb[3].mxu0 }
 0x26e   :  { %v1919_v55 = vcombine.low %v1823_v42, %v1824_v52  ;;  %v1920_v56 = vcombine.high %v1823_v42, %v1824_v52  ;;  %v1826_v48 = vadd.f32 %v10799_v41, %v1650_v45  ;;  %v9749_v52 = vld [vmem:[#allocation6 + $0x18] sm:$0xff]  }
 0x26f   :  { %9238 = vmatpush3.bf16.msra.mxu1 %v9749_v52 }
 0x270   :  { %v1927_v49 = vrot.slane %v1919_v55, %v10804_v54  ;;  %v1934_v53 = vrot.slane %v1920_v56, %v10804_v54  ;;  %v1937_v57 = vcombine.low %v1825_v44, %v1826_v48  ;;  %v1938_v6 = vcombine.high %v1825_v44, %v1826_v48  ;;  %v10847_v48 = vpop.f32.mrb[0].mxu1 }
 0x272   :  { %v1935_v60 = vcombine.high %v1927_v49, %v1927_v49  ;;  %v1936_v59 = vcombine.high %v1934_v53, %v1934_v53  ;;  %v2357_v62 = vrot.slane %v1927_v49, %v10804_v54  ;;  %v2373_v61 = vrot.slane %v1934_v53, %v10804_v54  ;;  %v1654_v12 = vpop.f32.mrb[4].mxu0 }
 0x273   :  { %v10813_v50 = vrot.slane %v1937_v57, %v10804_v54  ;;  %v10816_v14 = vrot.slane %v1938_v6, %v10804_v54  ;;  %v10819_v15 = vadd.f32 %v10796_v40, %v1654_v12  ;;  %v10821_v63 = vpop.f32.mrb[5].mxu0 }
 0x274   :  { %v2358_v16 = vcombine.high %v2357_v62, %v2357_v62  ;;  %v2365_v17 = vrot.slane %v1935_v60, %v10804_v54  ;;  %v2374_v8 = vcombine.high %v2373_v61, %v2373_v61  ;;  %v2381_v2 = vrot.slane %v1936_v59, %v10804_v54  ;;  %v10825_v26 = vpop.f32.mrb[6].mxu0  ;;  %v10851_v59 = vpop.f32.mrb[1].mxu1 }
 0x275   :  { %v3312_v29 = vsel %vm3311_vm5, %v2357_v62, -inf  ;;  %v3340_v18 = vsel %vm3311_vm5, %v2373_v61, -inf  ;;  %v1953_v23 = vcombine.high %v10813_v50, %v10813_v50  ;;  %v1954_v24 = vcombine.high %v10816_v14, %v10816_v14  ;;  %v10833_v36 = vpop.f32.mrb[7].mxu0 }
 0x276   :  { %v2366_v39 = vcombine.high %v2365_v17, %v2365_v17  ;;  %v2382_v0 = vcombine.high %v2381_v2, %v2381_v2  ;;  %v3313_v27 = vrot.slane %v3312_v29, 4  ;;  %v3319_v28 = vsel %vm3311_vm5, %v2358_v16, -inf }
 0x277   :  { %v3320_v13 = vrot.slane %v3319_v28, 4  ;;  %v3326_v46 = vsel %vm3311_vm5, %v2365_v17, -inf  ;;  %v3341_v5 = vrot.slane %v3340_v18, 4  ;;  %v3347_v47 = vsel %vm3311_vm5, %v2374_v8, -inf  ;;  %v10853_v17 = vpop.f32.mrb[2].mxu1 }
 0x278   :  { %v3314_v30 = vmax.f32 %v3312_v29, %v3313_v27  ;;  %v3327_v31 = vrot.slane %v3326_v46, 4  ;;  %v3333_v7 = vsel %vm3311_vm5, %v2366_v39, -inf  ;;  %v3348_v58 = vrot.slane %v3347_v47, 4  ;;  %v10855_v39 = vpop.f32.mrb[3].mxu1 }
 0x279   :  { %v3321_v4 = vmax.f32 %v3319_v28, %v3320_v13  ;;  %v3334_v32 = vrot.slane %v3333_v7, 4  ;;  %v3342_v9 = vmax.f32 %v3340_v18, %v3341_v5  ;;  %v3354_v10 = vsel %vm3311_vm5, %v2381_v2, -inf }
 0x27a   :  { %v3315_v11 = vrot.slane %v3314_v30, 2  ;;  %v3328_v22 = vmax.f32 %v3326_v46, %v3327_v31  ;;  %v3349_v33 = vmax.f32 %v3347_v47, %v3348_v58  ;;  %v3355_v19 = vrot.slane %v3354_v10, 4  ;;  %v10840_v20 = vpop.f32.mrb[8].mxu0 }
 0x27b   :  { %v3322_v38 = vrot.slane %v3321_v4, 2  ;;  %v3335_v34 = vmax.f32 %v3333_v7, %v3334_v32  ;;  %v3343_v35 = vrot.slane %v3342_v9, 2  ;;  %v3361_v42 = vsel %vm3311_vm5, %v2382_v0, -inf  ;;  %v10843_v51 = vpop.f32.mrb[9].mxu0 }
 0x27c   :  { %v3316_v43 = vmax.f32 %v3314_v30, %v3315_v11  ;;  %v3329_v44 = vrot.slane %v3328_v22, 2  ;;  %v3350_v45 = vrot.slane %v3349_v33, 2  ;;  %v3356_v55 = vmax.f32 %v3354_v10, %v3355_v19  ;;  %v10845_v56 = vpop.f32.mrb[10].mxu0 }
 0x27d   :  { %v3323_v49 = vmax.f32 %v3321_v4, %v3322_v38  ;;  %v3336_v53 = vrot.slane %v3335_v34, 2  ;;  %v3344_v57 = vmax.f32 %v3342_v9, %v3343_v35  ;;  %v3362_v6 = vrot.slane %v3361_v42, 4  ;;  %v10849_v60 = vpop.f32.mrb[11].mxu0 }
 0x27e   :  { %v3317_v62 = vrot.slane %v3316_v43, 1  ;;  %v3330_v61 = vmax.f32 %v3328_v22, %v3329_v44  ;;  %v3351_v12 = vmax.f32 %v3349_v33, %v3350_v45  ;;  %v3357_v16 = vrot.slane %v3356_v55, 2 }
 0x27f   :  { %v3324_v8 = vrot.slane %v3323_v49, 1  ;;  %v3337_v2 = vmax.f32 %v3335_v34, %v3336_v53  ;;  %v3345_v29 = vrot.slane %v3344_v57, 1  ;;  %v3363_v18 = vmax.f32 %v3361_v42, %v3362_v6 }
 0x280   :  { %v3318_v0 = vmax.f32 %v3316_v43, %v3317_v62  ;;  %v3331_v27 = vrot.slane %v3330_v61, 1  ;;  %v3352_v28 = vrot.slane %v3351_v12, 1  ;;  %v3358_v13 = vmax.f32 %v3356_v55, %v3357_v16 }
 0x281   :  { %v3325_v46 = vmax.f32 %v3323_v49, %v3324_v8  ;;  %v3338_v5 = vrot.slane %v3337_v2, 1  ;;  %v3346_v47 = vmax.f32 %v3344_v57, %v3345_v29  ;;  %v3364_v30 = vrot.slane %v3363_v18, 2 }
 0x282   :  { %v3332_v31 = vmax.f32 %v3330_v61, %v3331_v27  ;;  %v3353_v7 = vmax.f32 %v3351_v12, %v3352_v28  ;;  %v3359_v58 = vrot.slane %v3358_v13, 1  ;;  %v4656_v4 = vpack.c.bf16 %v3318_v0, %v3318_v0  ;;  %v10857_v32 = vpop.f32.mrb[12].mxu0 }
 0x283   :  { %v3339_v9 = vmax.f32 %v3337_v2, %v3338_v5  ;;  %v3365_v10 = vmax.f32 %v3363_v18, %v3364_v30  ;;  %v4657_v11 = vpack.c.bf16 %v3325_v46, %v3325_v46  ;;  %v4660_v22 = vpack.c.bf16 %v3346_v47, %v3346_v47  ;;  %v10859_v33 = vpop.f32.mrb[13].mxu0 }
 0x284   :  { %v3360_v19 = vmax.f32 %v3358_v13, %v3359_v58  ;;  %v4658_v21 = vpack.c.bf16 %v3332_v31, %v3332_v31  ;;  %v4661_v38 = vpack.c.bf16 %v3353_v7, %v3353_v7  ;;  %v5072_v34 = vunpack.c.l.b16 %v4656_v4  ;;  %v10861_v35 = vpop.f32.mrb[14].mxu0 }
 0x285   :  { %v3366_v42 = vrot.slane %v3365_v10, 1  ;;  %v4659_v52 = vpack.c.bf16 %v3339_v9, %v3339_v9  ;;  %v10863_v43 = vunpack.c.l.b16 %v4657_v11  ;;  %v5076_v44 = vunpack.c.l.b16 %v4660_v22  ;;  %v10865_v45 = vpop.f32.mrb[15].mxu0 }
 0x286   :  { %v4662_v55 = vpack.c.bf16 %v3360_v19, %v3360_v19  ;;  %v5074_v49 = vunpack.c.l.b16 %v4658_v21  ;;  %v10867_v53 = vunpack.c.l.b16 %v4661_v38  ;;  %v2389_v57 = vrot.slane %v10813_v50, %v10804_v54 }
 0x287   :  { %13903 = vst [vmem:[#allocation20_spill] sm:$0xff] %v10863_v43  ;;  %v10871_v6 = vmax.f32 %v3365_v10, %v3366_v42  ;;  %v10873_v62 = vunpack.c.l.b16 %v4659_v52  ;;  %v2397_v61 = vrot.slane %v1953_v23, %v10804_v54  ;;  %v2405_v12 = vrot.slane %v10816_v14, %v10804_v54  ;;  %v9750_v23 = vld [vmem:[#allocation6 + $0x60] sm:$0xff]  }
 0x288   :  { %13904 = vst [vmem:[#allocation21_spill] sm:$0xff] %v10867_v53  ;;  %v5078_v16 = vunpack.c.l.b16 %v4662_v55  ;;  %v5265_v8 = vsel %vm5264_vm6, %v5074_v49, %v5072_v34  ;;  %v2390_v2 = vcombine.high %v2389_v57, %v2389_v57  ;;  %v2413_v29 = vrot.slane %v1954_v24, %v10804_v54  ;;  %v9751_v14 = vld [vmem:[#allocation6 + $0x20] sm:$0xff]   ;;  %9239 = vmatprep.subr.bf16.mxu1 %v9750_v23 }
 0x289   :  { %13905 = vst [vmem:[#allocation22_spill] sm:$0xff] %v10871_v6  ;;  %13906 = vst [vmem:[#allocation23_spill] sm:$0xff] %v10873_v62  ;;  %v5267_v0 = vsel %vm5266_vm7, %v5076_v44, %v5265_v8  ;;  %v2398_v27 = vcombine.high %v2397_v61, %v2397_v61  ;;  %v2406_v50 = vcombine.high %v2405_v12, %v2405_v12  ;;  %v3368_v46 = vsel %vm3311_vm5, %v2389_v57, -inf }
 0x28a   :  { %v10890_v28 = vsel %vm5268_vm8, %v5078_v16, %v5267_v0  ;;  %v2414_v13 = vcombine.high %v2413_v29, %v2413_v29  ;;  %v3375_v5 = vsel %vm3311_vm5, %v2390_v2, -inf  ;;  %v10894_v47 = vpop.f32.mrb[16].mxu0  ;;  %v3369_v24 = vrot.slane %v3368_v46, 4  ;;  %9240 = vmatpush3.bf16.msra.mxu1 %v9751_v14 }
 0x28b   :  { %v3376_v30 = vrot.slane %v3375_v5, 4  ;;  %v3382_v31 = vsel %vm3311_vm5, %v2397_v61, -inf  ;;  %v3389_v7 = vsel %vm3311_vm5, %v2398_v27, -inf  ;;  %v10898_v58 = vpop.f32.mrb[17].mxu0  ;;  %v3396_v10 = vsel %vm3311_vm5, %v2405_v12, -inf }
 0x28c   :  { %v3383_v4 = vrot.slane %v3382_v31, 4  ;;  %v3390_v9 = vrot.slane %v3389_v7, 4  ;;  %v3403_v11 = vsel %vm3311_vm5, %v2406_v50, -inf  ;;  %v10902_v22 = vpop.f32.mrb[18].mxu0  ;;  %v3370_v19 = vmax.f32 %v3368_v46, %v3369_v24 }
 0x28d   :  { %v3377_v21 = vmax.f32 %v3375_v5, %v3376_v30  ;;  %v3397_v38 = vrot.slane %v3396_v10, 4  ;;  %v3404_v34 = vrot.slane %v3403_v11, 4  ;;  %v10904_v42 = vpop.f32.mrb[19].mxu0  ;;  %v3410_v55 = vsel %vm3311_vm5, %v2413_v29, -inf }
 0x28e   :  { %v3384_v52 = vmax.f32 %v3382_v31, %v3383_v4  ;;  %v3391_v44 = vmax.f32 %v3389_v7, %v3390_v9  ;;  %v3417_v49 = vsel %vm3311_vm5, %v2414_v13, -inf  ;;  %v3371_v57 = vrot.slane %v3370_v19, 2 }
 0x28f   :  { %v3378_v61 = vrot.slane %v3377_v21, 2  ;;  %v3398_v12 = vmax.f32 %v3396_v10, %v3397_v38  ;;  %v3405_v16 = vmax.f32 %v3403_v11, %v3404_v34  ;;  %v3411_v0 = vrot.slane %v3410_v55, 4 }
 0x290   :  { %v3385_v8 = vrot.slane %v3384_v52, 2  ;;  %v3392_v2 = vrot.slane %v3391_v44, 2  ;;  %v3418_v27 = vrot.slane %v3417_v49, 4  ;;  %v3372_v50 = vmax.f32 %v3370_v19, %v3371_v57 }
 0x291   :  { %v3379_v23 = vmax.f32 %v3377_v21, %v3378_v61  ;;  %v3399_v46 = vrot.slane %v3398_v12, 2  ;;  %v3406_v5 = vrot.slane %v3405_v16, 2  ;;  %v3412_v30 = vmax.f32 %v3410_v55, %v3411_v0 }
 0x292   :  { %v3386_v14 = vmax.f32 %v3384_v52, %v3385_v8  ;;  %v10908_v24 = vmax.f32 %v3391_v44, %v3392_v2  ;;  %v10910_v29 = vmax.f32 %v3417_v49, %v3418_v27  ;;  %v3373_v13 = vrot.slane %v3372_v50, 1 }
 0x293   :  { %v3380_v31 = vrot.slane %v3379_v23, 1  ;;  %v3400_v7 = vmax.f32 %v3398_v12, %v3399_v46  ;;  %v10912_v4 = vmax.f32 %v3405_v16, %v3406_v5  ;;  %v3413_v10 = vrot.slane %v3412_v30, 2 }
 0x294   :  { %v3387_v9 = vrot.slane %v3386_v14, 1  ;;  %v1828_v11 = vadd.f32 %v10799_v41, %v10821_v63  ;;  %v1829_v19 = vadd.f32 %v10796_v40, %v10825_v26  ;;  %v3374_v21 = vmax.f32 %v3372_v50, %v3373_v13 }
 0x295   :  { %v10918_v38 = vmax.f32 %v3379_v23, %v3380_v31  ;;  %v3401_v34 = vrot.slane %v3400_v7, 1  ;;  %v1830_v52 = vadd.f32 %v10799_v41, %v10833_v36  ;;  %v3414_v55 = vmax.f32 %v3412_v30, %v3413_v10 }
 0x296   :  { %v3388_v44 = vmax.f32 %v3386_v14, %v3387_v9  ;;  %v1955_v49 = vcombine.low %v10819_v15, %v1828_v11  ;;  %v1956_v57 = vcombine.high %v10819_v15, %v1828_v11  ;;  %v4664_v12 = vpack.c.bf16 %v3374_v21, %v3374_v21 }
 0x297   :  { %13907 = vst [vmem:[#allocation24_spill] sm:$0xff] %v10918_v38  ;;  %v3402_v61 = vmax.f32 %v3400_v7, %v3401_v34  ;;  %v1973_v16 = vcombine.low %v1829_v19, %v1830_v52  ;;  %v3415_v26 = vrot.slane %v3414_v55, 1  ;;  %v1974_v50 = vcombine.high %v1829_v19, %v1830_v52 }
 0x298   :  { %v4666_v8 = vpack.c.bf16 %v3388_v44, %v3388_v44  ;;  %v1963_v2 = vrot.slane %v1955_v49, %v10804_v54  ;;  %v1970_v0 = vrot.slane %v1956_v57, %v10804_v54  ;;  %v5080_v36 = vunpack.c.l.b16 %v4664_v12 }
 0x299   :  { %v4668_v27 = vpack.c.bf16 %v3402_v61, %v3402_v61  ;;  %v10929_v23 = vrot.slane %v1973_v16, %v10804_v54  ;;  %v3416_v46 = vmax.f32 %v3414_v55, %v3415_v26  ;;  %v10944_v19 = vrot.slane %v1974_v50, %v10804_v54 }
 0x29a   :  { %v10931_v15 = vunpack.c.l.b16 %v4666_v8  ;;  %v1971_v5 = vcombine.high %v1963_v2, %v1963_v2  ;;  %v1972_v14 = vcombine.high %v1970_v0, %v1970_v0  ;;  %v10937_v13 = vsel %vm5270_vm9, %v5080_v36, %v10890_v28  ;;  %v9752_v36 = vld [vmem:[#allocation6 + $0x68] sm:$0xff]  }
 0x29b   :  { %v10933_v30 = vunpack.c.l.b16 %v4668_v27  ;;  %13910 = vst [vmem:[#allocation27_spill] sm:$0xff] %v10937_v13  ;;  %v2421_v31 = vrot.slane %v1963_v2, %v10804_v54  ;;  %v2437_v7 = vrot.slane %v1970_v0, %v10804_v54  ;;  %v4670_v9 = vpack.c.bf16 %v3416_v46, %v3416_v46  ;;  %9241 = vmatprep.subr.bf16.mxu1 %v9752_v36 }
 0x29c   :  { %13908 = vst [vmem:[#allocation25_spill] sm:$0xff] %v10931_v15  ;;  %v2429_v10 = vrot.slane %v1971_v5, %v10804_v54  ;;  %v2445_v11 = vrot.slane %v1972_v14, %v10804_v54 }
 0x29d   :  { %13909 = vst [vmem:[#allocation26_spill] sm:$0xff] %v10933_v30  ;;  %v2422_v21 = vcombine.high %v2421_v31, %v2421_v31  ;;  %v2438_v34 = vcombine.high %v2437_v7, %v2437_v7  ;;  %v3424_v52 = vsel %vm3311_vm5, %v2421_v31, -inf  ;;  %v3452_v44 = vsel %vm3311_vm5, %v2437_v7, -inf  ;;  %v9753_v31 = vld [vmem:[#allocation6 + $0x28] sm:$0xff]  }
 0x29e   :  { %v10948_v28 = vunpack.c.l.b16 %v4670_v9  ;;  %v2430_v55 = vcombine.high %v2429_v10, %v2429_v10  ;;  %v2446_v49 = vcombine.high %v2445_v11, %v2445_v11  ;;  %v3425_v57 = vrot.slane %v3424_v52, 4  ;;  %9242 = vmatpush3.bf16.msra.mxu1 %v9753_v31 }
 0x29f   :  { %v3431_v61 = vsel %vm3311_vm5, %v2422_v21, -inf  ;;  %v3438_v12 = vsel %vm3311_vm5, %v2429_v10, -inf  ;;  %v3453_v16 = vrot.slane %v3452_v44, 4  ;;  %v3459_v26 = vsel %vm3311_vm5, %v2438_v34, -inf  ;;  %v10955_v10 = vpop.f32.mrb[4].mxu1 }
 0x2a0   :  { %13911 = vst [vmem:[#allocation28_spill] sm:$0xff] %v10948_v28  ;;  %v3426_v8 = vmax.f32 %v3424_v52, %v3425_v57  ;;  %v3432_v2 = vrot.slane %v3431_v61, 4  ;;  %v3439_v0 = vrot.slane %v3438_v12, 4  ;;  %v3445_v27 = vsel %vm3311_vm5, %v2430_v55, -inf  ;;  %v10958_v55 = vpop.f32.mrb[5].mxu1 }
 0x2a1   :  { %v3446_v50 = vrot.slane %v3445_v27, 4  ;;  %v3454_v46 = vmax.f32 %v3452_v44, %v3453_v16  ;;  %v3460_v5 = vrot.slane %v3459_v26, 4  ;;  %v3466_v14 = vsel %vm3311_vm5, %v2445_v11, -inf  ;;  %v10960_v25 = vpop.f32.mrb[6].mxu1 }
 0x2a2   :  { %v3427_v7 = vrot.slane %v3426_v8, 2  ;;  %v3433_v9 = vmax.f32 %v3431_v61, %v3432_v2  ;;  %v3440_v21 = vmax.f32 %v3438_v12, %v3439_v0  ;;  %v3467_v1 = vrot.slane %v3466_v14, 4  ;;  %v10962_v37 = vpop.f32.mrb[7].mxu1 }
 0x2a3   :  { %v3447_v34 = vmax.f32 %v3445_v27, %v3446_v50  ;;  %v3455_v52 = vrot.slane %v3454_v46, 2  ;;  %v3461_v57 = vmax.f32 %v3459_v26, %v3460_v5  ;;  %v3473_v63 = vsel %vm3311_vm5, %v2446_v49, -inf  ;;  %v10964_v27 = vpop.f32.mrb[20].mxu0 }
 0x2a4   :  { %v3428_v44 = vmax.f32 %v3426_v8, %v3427_v7  ;;  %v3434_v16 = vrot.slane %v3433_v9, 2  ;;  %v3441_v18 = vrot.slane %v3440_v21, 2  ;;  %v3468_v11 = vmax.f32 %v3466_v14, %v3467_v1  ;;  %v10966_v5 = vpop.f32.mrb[21].mxu0 }
 0x2a5   :  { %v3448_v61 = vrot.slane %v3447_v34, 2  ;;  %v3456_v12 = vmax.f32 %v3454_v46, %v3455_v52  ;;  %v3462_v2 = vrot.slane %v3461_v57, 2  ;;  %v3474_v0 = vrot.slane %v3473_v63, 4 }
 0x2a6   :  { %v3429_v26 = vrot.slane %v3428_v44, 1  ;;  %v3435_v36 = vmax.f32 %v3433_v9, %v3434_v16  ;;  %v3442_v49 = vmax.f32 %v3440_v21, %v3441_v18  ;;  %v3469_v50 = vrot.slane %v3468_v11, 2  ;;  %v9754_v18 = vld [vmem:[#allocation6 + $0x70] sm:$0xff]  }
 0x2a7   :  { %v3449_v8 = vmax.f32 %v3447_v34, %v3448_v61  ;;  %v3457_v31 = vrot.slane %v3456_v12, 1  ;;  %v3463_v7 = vmax.f32 %v3461_v57, %v3462_v2  ;;  %v3475_v1 = vmax.f32 %v3473_v63, %v3474_v0  ;;  %v9755_v61 = vld [vmem:[#allocation6 + $0x30] sm:$0xff]   ;;  %9243 = vmatprep.subr.bf16.mxu1 %v9754_v18 }
 0x2a8   :  { %v3430_v14 = vmax.f32 %v3428_v44, %v3429_v26  ;;  %v3436_v3 = vrot.slane %v3435_v36, 1  ;;  %v3443_v28 = vrot.slane %v3442_v49, 1  ;;  %v3470_v46 = vmax.f32 %v3468_v11, %v3469_v50  ;;  %v10968_v50 = vpop.f32.mrb[22].mxu0  ;;  %9244 = vmatpush3.bf16.msra.mxu1 %v9755_v61 }
 0x2a9   :  { %v3450_v52 = vrot.slane %v3449_v8, 1  ;;  %v3458_v30 = vmax.f32 %v3456_v12, %v3457_v31  ;;  %v3464_v15 = vrot.slane %v3463_v7, 1  ;;  %v3476_v13 = vrot.slane %v3475_v1, 2 }
 0x2aa   :  { %v3437_v53 = vmax.f32 %v3435_v36, %v3436_v3  ;;  %v3444_v62 = vmax.f32 %v3442_v49, %v3443_v28  ;;  %v3471_v43 = vrot.slane %v3470_v46, 1  ;;  %v4672_v9 = vpack.c.bf16 %v3430_v14, %v3430_v14 }
 0x2ab   :  { %v3451_v21 = vmax.f32 %v3449_v8, %v3450_v52  ;;  %v3465_v16 = vmax.f32 %v3463_v7, %v3464_v15  ;;  %v3477_v38 = vmax.f32 %v3475_v1, %v3476_v13  ;;  %v4676_v34 = vpack.c.bf16 %v3458_v30, %v3458_v30  ;;  %v10974_v30 = vpop.f32.mrb[23].mxu0 }
 0x2ac   :  { %v3472_v57 = vmax.f32 %v3470_v46, %v3471_v43  ;;  %v4673_v63 = vpack.c.bf16 %v3437_v53, %v3437_v53  ;;  %v4674_v44 = vpack.c.bf16 %v3444_v62, %v3444_v62  ;;  %v5088_v2 = vunpack.c.l.b16 %v4672_v9 }
 0x2ad   :  { %v3478_v11 = vrot.slane %v3477_v38, 1  ;;  %v4675_v0 = vpack.c.bf16 %v3451_v21, %v3451_v21  ;;  %v4677_v12 = vpack.c.bf16 %v3465_v16, %v3465_v16  ;;  %v5092_v26 = vunpack.c.l.b16 %v4676_v34 }
 0x2ae   :  { %v4678_v3 = vpack.c.bf16 %v3472_v57, %v3472_v57  ;;  %v10970_v28 = vunpack.c.l.b16 %v4673_v63  ;;  %v5090_v36 = vunpack.c.l.b16 %v4674_v44  ;;  %v1989_v15 = vcombine.high %v10929_v23, %v10929_v23 }
 0x2af   :  { %v10976_v43 = vmax.f32 %v3477_v38, %v3478_v11  ;;  %v10978_v53 = vunpack.c.l.b16 %v4675_v0  ;;  %v10980_v62 = vunpack.c.l.b16 %v4677_v12  ;;  %v1990_v13 = vcombine.high %v10944_v19, %v10944_v19 }
 0x2b0   :  { %13912 = vst [vmem:[#allocation29_spill] sm:$0xff] %v10970_v28  ;;  %v5094_v49 = vunpack.c.l.b16 %v4678_v3  ;;  %v5285_v8 = vsel %vm5264_vm6, %v5090_v36, %v5088_v2  ;;  %v2453_v31 = vrot.slane %v10929_v23, %v10804_v54  ;;  %v2461_v7 = vrot.slane %v1989_v15, %v10804_v54 }
 0x2b1   :  { %13913 = vst [vmem:[#allocation30_spill] sm:$0xff] %v10976_v43  ;;  %13914 = vst [vmem:[#allocation31_spill] sm:$0xff] %v10978_v53  ;;  %v5286_v38 = vsel %vm5266_vm7, %v5092_v26, %v5285_v8  ;;  %v2469_v14 = vrot.slane %v10944_v19, %v10804_v54  ;;  %v2477_v46 = vrot.slane %v1990_v13, %v10804_v54 }
 0x2b2   :  { %13915 = vst [vmem:[#allocation32_spill] sm:$0xff] %v10980_v62  ;;  %v10995_v52 = vsel %vm5268_vm8, %v5094_v49, %v5286_v38  ;;  %v2454_v9 = vcombine.high %v2453_v31, %v2453_v31  ;;  %v2462_v18 = vcombine.high %v2461_v7, %v2461_v7  ;;  %v3480_v21 = vsel %vm3311_vm5, %v2453_v31, -inf }
 0x2b3   :  { %v2470_v23 = vcombine.high %v2469_v14, %v2469_v14  ;;  %v2478_v16 = vcombine.high %v2477_v46, %v2477_v46  ;;  %v3481_v34 = vrot.slane %v3480_v21, 4  ;;  %v3494_v61 = vsel %vm3311_vm5, %v2461_v7, -inf }
 0x2b4   :  { %v3487_v57 = vsel %vm3311_vm5, %v2454_v9, -inf  ;;  %v3495_v63 = vrot.slane %v3494_v61, 4  ;;  %v3501_v44 = vsel %vm3311_vm5, %v2462_v18, -inf  ;;  %v3508_v19 = vsel %vm3311_vm5, %v2469_v14, -inf }
 0x2b5   :  { %v3482_v2 = vmax.f32 %v3480_v21, %v3481_v34  ;;  %v3488_v11 = vrot.slane %v3487_v57, 4  ;;  %v3502_v0 = vrot.slane %v3501_v44, 4  ;;  %v3509_v12 = vrot.slane %v3508_v19, 4 }
 0x2b6   :  { %v3496_v26 = vmax.f32 %v3494_v61, %v3495_v63  ;;  %v3515_v3 = vsel %vm3311_vm5, %v2470_v23, -inf  ;;  %v3522_v36 = vsel %vm3311_vm5, %v2477_v46, -inf  ;;  %v3529_v15 = vsel %vm3311_vm5, %v2478_v16, -inf }
 0x2b7   :  { %v3483_v13 = vrot.slane %v3482_v2, 2  ;;  %v3489_v49 = vmax.f32 %v3487_v57, %v3488_v11  ;;  %v3503_v8 = vmax.f32 %v3501_v44, %v3502_v0  ;;  %v3510_v31 = vmax.f32 %v3508_v19, %v3509_v12 }
 0x2b8   :  { %v3497_v7 = vrot.slane %v3496_v26, 2  ;;  %v3516_v38 = vrot.slane %v3515_v3, 4  ;;  %v3523_v9 = vrot.slane %v3522_v36, 4  ;;  %v3530_v18 = vrot.slane %v3529_v15, 4 }
 0x2b9   :  { %v3484_v14 = vmax.f32 %v3482_v2, %v3483_v13  ;;  %v3490_v21 = vrot.slane %v3489_v49, 2  ;;  %v3504_v34 = vrot.slane %v3503_v8, 2  ;;  %v3511_v1 = vrot.slane %v3510_v31, 2 }
 0x2ba   :  { %v3498_v62 = vmax.f32 %v3496_v26, %v3497_v7  ;;  %v3517_v61 = vmax.f32 %v3515_v3, %v3516_v38  ;;  %v3524_v63 = vmax.f32 %v3522_v36, %v3523_v9  ;;  %v11005_v23 = vmax.f32 %v3529_v15, %v3530_v18 }
 0x2bb   :  { %v3485_v46 = vrot.slane %v3484_v14, 1  ;;  %v3491_v53 = vmax.f32 %v3489_v49, %v3490_v21  ;;  %v11007_v16 = vmax.f32 %v3503_v8, %v3504_v34  ;;  %v3512_v57 = vmax.f32 %v3510_v31, %v3511_v1 }
 0x2bc   :  { %13916 = vst [vmem:[#allocation33_spill] sm:$0xff] %v11005_v23  ;;  %v3499_v44 = vrot.slane %v3498_v62, 1  ;;  %v3518_v19 = vrot.slane %v3517_v61, 2  ;;  %v3525_v11 = vrot.slane %v3524_v63, 2  ;;  %v1831_v0 = vadd.f32 %v10796_v40, %v10840_v20 }
 0x2bd   :  { %13917 = vst [vmem:[#allocation34_spill] sm:$0xff] %v11007_v16  ;;  %v3486_v2 = vmax.f32 %v3484_v14, %v3485_v46  ;;  %v3492_v12 = vrot.slane %v3491_v53, 1  ;;  %v3513_v13 = vrot.slane %v3512_v57, 1  ;;  %v1832_v26 = vadd.f32 %v10799_v41, %v10843_v51 }
 0x2be   :  { %v3500_v3 = vmax.f32 %v3498_v62, %v3499_v44  ;;  %v11013_v36 = vmax.f32 %v3517_v61, %v3518_v19  ;;  %v3526_v15 = vmax.f32 %v3524_v63, %v3525_v11  ;;  %v11017_v49 = vadd.f32 %v10796_v40, %v10845_v56  ;;  %v9756_v44 = vld [vmem:[#allocation6 + $0x78] sm:$0xff]  }
 0x2bf   :  { %v11019_v1 = vmax.f32 %v3491_v53, %v3492_v12  ;;  %v3514_v8 = vmax.f32 %v3512_v57, %v3513_v13  ;;  %v4680_v31 = vpack.c.bf16 %v3486_v2, %v3486_v2  ;;  %v1991_v7 = vcombine.low %v1831_v0, %v1832_v26  ;;  %v9757_v12 = vld [vmem:[#allocation6 + $0x38] sm:$0xff]   ;;  %9245 = vmatprep.subr.bf16.mxu1 %v9756_v44 }
 0x2c0   :  { %13918 = vst [vmem:[#allocation35_spill] sm:$0xff] %v11013_v36  ;;  %v3527_v20 = vrot.slane %v3526_v15, 1  ;;  %v4682_v38 = vpack.c.bf16 %v3500_v3, %v3500_v3  ;;  %v1992_v9 = vcombine.high %v1831_v0, %v1832_v26  ;;  %v11023_v18 = vadd.f32 %v10799_v41, %v10849_v60  ;;  %9246 = vmatpush3.bf16.msra.mxu1 %v9757_v12 }
 0x2c1   :  { %13919 = vst [vmem:[#allocation36_spill] sm:$0xff] %v11019_v1  ;;  %v4684_v62 = vpack.c.bf16 %v3514_v8, %v3514_v8  ;;  %v5096_v14 = vunpack.c.l.b16 %v4680_v31  ;;  %v1999_v56 = vrot.slane %v1991_v7, %v10804_v54 }
 0x2c2   :  { %v3528_v21 = vmax.f32 %v3526_v15, %v3527_v20  ;;  %v11028_v53 = vunpack.c.l.b16 %v4682_v38  ;;  %v2006_v34 = vrot.slane %v1992_v9, %v10804_v54  ;;  %v2009_v61 = vcombine.low %v11017_v49, %v11023_v18  ;;  %v11048_v15 = vpop.f32.mrb[8].mxu1 }
 0x2c3   :  { %v11033_v63 = vunpack.c.l.b16 %v4684_v62  ;;  %v11037_v60 = vsel %vm5270_vm9, %v5096_v14, %v10995_v52  ;;  %v2007_v46 = vcombine.high %v1999_v56, %v1999_v56  ;;  %v2485_v57 = vrot.slane %v1999_v56, %v10804_v54  ;;  %v11053_v38 = vpop.f32.mrb[9].mxu1 }
 0x2c4   :  { %13920 = vst [vmem:[#allocation37_spill] sm:$0xff] %v11028_v53  ;;  %13922 = vst [vmem:[#allocation39_spill] sm:$0xff] %v11037_v60  ;;  %v4686_v19 = vpack.c.bf16 %v3528_v21, %v3528_v21  ;;  %v2008_v11 = vcombine.high %v2006_v34, %v2006_v34  ;;  %v2501_v0 = vrot.slane %v2006_v34, %v10804_v54  ;;  %v11058_v21 = vpop.f32.mrb[10].mxu1 }
 0x2c5   :  { %13921 = vst [vmem:[#allocation38_spill] sm:$0xff] %v11033_v63  ;;  %v2486_v13 = vcombine.high %v2485_v57, %v2485_v57  ;;  %v2493_v26 = vrot.slane %v2007_v46, %v10804_v54  ;;  %v3536_v3 = vsel %vm3311_vm5, %v2485_v57, -inf  ;;  %v11046_v52 = vrot.slane %v2009_v61, %v10804_v54  ;;  %13924 = vst [vmem:[#allocation41_spill] sm:$0xff] %v11053_v38  ;;  %v11060_v44 = vpop.f32.mrb[11].mxu1 }
 0x2c6   :  { %v11050_v8 = vunpack.c.l.b16 %v4686_v19  ;;  %v2502_v31 = vcombine.high %v2501_v0, %v2501_v0  ;;  %v2509_v7 = vrot.slane %v2008_v11, %v10804_v54  ;;  %v3537_v20 = vrot.slane %v3536_v3, 4  ;;  %13925 = vst [vmem:[#allocation42_spill] sm:$0xff] %v11058_v21  ;;  %13926 = vst [vmem:[#allocation43_spill] sm:$0xff] %v11060_v44  ;;  %v11062_v19 = vpop.f32.mrb[24].mxu0 }
 0x2c7   :  { %v2494_v9 = vcombine.high %v2493_v26, %v2493_v26  ;;  %v3543_v62 = vsel %vm3311_vm5, %v2486_v13, -inf  ;;  %v3550_v14 = vsel %vm3311_vm5, %v2493_v26, -inf  ;;  %v3564_v56 = vsel %vm3311_vm5, %v2501_v0, -inf }
 0x2c8   :  { %13923 = vst [vmem:[#allocation40_spill] sm:$0xff] %v11050_v8  ;;  %v2510_v34 = vcombine.high %v2509_v7, %v2509_v7  ;;  %v3538_v61 = vmax.f32 %v3536_v3, %v3537_v20  ;;  %v3544_v46 = vrot.slane %v3543_v62, 4  ;;  %v3551_v57 = vrot.slane %v3550_v14, 4 }
 0x2c9   :  { %v3557_v11 = vsel %vm3311_vm5, %v2494_v9, -inf  ;;  %v3565_v12 = vrot.slane %v3564_v56, 4  ;;  %v3571_v51 = vsel %vm3311_vm5, %v2502_v31, -inf  ;;  %v3578_v13 = vsel %vm3311_vm5, %v2509_v7, -inf }
 0x2ca   :  { %v3539_v26 = vrot.slane %v3538_v61, 2  ;;  %v3545_v2 = vmax.f32 %v3543_v62, %v3544_v46  ;;  %v3552_v0 = vmax.f32 %v3550_v14, %v3551_v57  ;;  %v3558_v8 = vrot.slane %v3557_v11, 4 }
 0x2cb   :  { %v3566_v21 = vmax.f32 %v3564_v56, %v3565_v12  ;;  %v3572_v63 = vrot.slane %v3571_v51, 4  ;;  %v3579_v3 = vrot.slane %v3578_v13, 4  ;;  %v3585_v20 = vsel %vm3311_vm5, %v2510_v34, -inf }
 0x2cc   :  { %v3540_v53 = vmax.f32 %v3538_v61, %v3539_v26  ;;  %v3546_v44 = vrot.slane %v3545_v2, 2  ;;  %v3553_v60 = vrot.slane %v3552_v0, 2  ;;  %v3559_v38 = vmax.f32 %v3557_v11, %v3558_v8 }
 0x2cd   :  { %v3567_v28 = vrot.slane %v3566_v21, 2  ;;  %v3573_v9 = vmax.f32 %v3571_v51, %v3572_v63  ;;  %v3580_v1 = vmax.f32 %v3578_v13, %v3579_v3  ;;  %v3586_v43 = vrot.slane %v3585_v20, 4 }
 0x2ce   :  { %v3541_v31 = vrot.slane %v3540_v53, 1  ;;  %v3547_v6 = vmax.f32 %v3545_v2, %v3546_v44  ;;  %v3554_v7 = vmax.f32 %v3552_v0, %v3553_v60  ;;  %v3560_v23 = vrot.slane %v3559_v38, 2 }
 0x2cf   :  { %v3568_v62 = vmax.f32 %v3566_v21, %v3567_v28  ;;  %v3574_v14 = vrot.slane %v3573_v9, 2  ;;  %v3581_v46 = vrot.slane %v3580_v1, 2  ;;  %v3587_v56 = vmax.f32 %v3585_v20, %v3586_v43 }
 0x2d0   :  { %v3542_v57 = vmax.f32 %v3540_v53, %v3541_v31  ;;  %v3548_v12 = vrot.slane %v3547_v6, 1  ;;  %v3555_v36 = vrot.slane %v3554_v7, 1  ;;  %v3561_v34 = vmax.f32 %v3559_v38, %v3560_v23 }
 0x2d1   :  { %v3569_v61 = vrot.slane %v3568_v62, 1  ;;  %v3575_v26 = vmax.f32 %v3573_v9, %v3574_v14  ;;  %v3582_v16 = vmax.f32 %v3580_v1, %v3581_v46  ;;  %v3588_v8 = vrot.slane %v3587_v56, 2 }
 0x2d2   :  { %v3549_v11 = vmax.f32 %v3547_v6, %v3548_v12  ;;  %v3556_v51 = vmax.f32 %v3554_v7, %v3555_v36  ;;  %v3562_v63 = vrot.slane %v3561_v34, 1  ;;  %v4688_v13 = vpack.c.bf16 %v3542_v57, %v3542_v57 }
 0x2d3   :  { %v3570_v3 = vmax.f32 %v3568_v62, %v3569_v61  ;;  %v3576_v2 = vrot.slane %v3575_v26, 1  ;;  %v3583_v60 = vrot.slane %v3582_v16, 1  ;;  %v3589_v44 = vmax.f32 %v3587_v56, %v3588_v8 }
 0x2d4   :  { %v3563_v28 = vmax.f32 %v3561_v34, %v3562_v63  ;;  %v4689_v21 = vpack.c.bf16 %v3549_v11, %v3549_v11  ;;  %v4690_v0 = vpack.c.bf16 %v3556_v51, %v3556_v51  ;;  %v11068_v43 = vunpack.c.l.b16 %v4688_v13 }
 0x2d5   :  { %v3577_v53 = vmax.f32 %v3575_v26, %v3576_v2  ;;  %v3584_v20 = vmax.f32 %v3582_v16, %v3583_v60  ;;  %v3590_v23 = vrot.slane %v3589_v44, 1  ;;  %v4692_v38 = vpack.c.bf16 %v3570_v3, %v3570_v3 }
 0x2d6   :  { %13927 = vst [vmem:[#allocation44_spill] sm:$0xff] %v11068_v43  ;;  %v4691_v9 = vpack.c.bf16 %v3563_v28, %v3563_v28  ;;  %v11070_v1 = vunpack.c.l.b16 %v4689_v21  ;;  %v11072_v6 = vunpack.c.l.b16 %v4690_v0  ;;  %v13930_v36 = vcombine.high %v11017_v49, %v11023_v18 }
 0x2d7   :  { %v11078_v7 = vmax.f32 %v3589_v44, %v3590_v23  ;;  %v4693_v62 = vpack.c.bf16 %v3577_v53, %v3577_v53  ;;  %v4694_v14 = vpack.c.bf16 %v3584_v20, %v3584_v20  ;;  %v11080_v46 = vunpack.c.l.b16 %v4692_v38 }
 0x2d8   :  { %13928 = vst [vmem:[#allocation45_spill] sm:$0xff] %v11070_v1  ;;  %13929 = vst [vmem:[#allocation46_spill] sm:$0xff] %v11072_v6  ;;  %v2024_v31 = vrot.slane %v13930_v36, %v10804_v54  ;;  %v11082_v56 = vunpack.c.l.b16 %v4691_v9  ;;  %v2025_v16 = vcombine.high %v11046_v52, %v11046_v52  ;;  %v2517_v12 = vrot.slane %v11046_v52, %v10804_v54 }
 0x2d9   :  { %13931 = vst [vmem:[#allocation47_spill] sm:$0xff] %v11078_v7  ;;  %13932 = vst [vmem:[#allocation48_spill] sm:$0xff] %v11080_v46  ;;  %v11090_v49 = vunpack.c.l.b16 %v4693_v62  ;;  %v11092_v18 = vunpack.c.l.b16 %v4694_v14  ;;  %v1835_v3 = vadd.f32 %v10796_v40, %v10857_v32 }
 0x2da   :  { %13933 = vst [vmem:[#allocation49_spill] sm:$0xff] %v11082_v56  ;;  %v2026_v57 = vcombine.high %v2024_v31, %v2024_v31  ;;  %v2533_v61 = vrot.slane %v2024_v31, %v10804_v54  ;;  %v2518_v26 = vcombine.high %v2517_v12, %v2517_v12  ;;  %v2525_v8 = vrot.slane %v2025_v16, %v10804_v54 }
 0x2db   :  { %13934 = vst [vmem:[#allocation50_spill] sm:$0xff] %v11090_v49  ;;  %13935 = vst [vmem:[#allocation51_spill] sm:$0xff] %v11092_v18  ;;  %v3592_v51 = vsel %vm3311_vm5, %v2517_v12, -inf }
 0x2dc   :  { %v2541_v11 = vrot.slane %v2026_v57, %v10804_v54  ;;  %v2534_v63 = vcombine.high %v2533_v61, %v2533_v61  ;;  %v3593_v13 = vrot.slane %v3592_v51, 4  ;;  %v3620_v52 = vsel %vm3311_vm5, %v2533_v61, -inf }
 0x2dd   :  { %v2526_v2 = vcombine.high %v2525_v8, %v2525_v8  ;;  %v3599_v44 = vsel %vm3311_vm5, %v2518_v26, -inf  ;;  %v3606_v28 = vsel %vm3311_vm5, %v2525_v8, -inf  ;;  %v3621_v20 = vrot.slane %v3620_v52, 4 }
 0x2de   :  { %v2542_v60 = vcombine.high %v2541_v11, %v2541_v11  ;;  %v3594_v21 = vmax.f32 %v3592_v51, %v3593_v13  ;;  %v3600_v0 = vrot.slane %v3599_v44, 4  ;;  %v3607_v53 = vrot.slane %v3606_v28, 4 }
 0x2df   :  { %v3613_v23 = vsel %vm3311_vm5, %v2526_v2, -inf  ;;  %v3627_v38 = vsel %vm3311_vm5, %v2534_v63, -inf  ;;  %v3634_v9 = vsel %vm3311_vm5, %v2541_v11, -inf  ;;  %v3622_v16 = vmax.f32 %v3620_v52, %v3621_v20 }
 0x2e0   :  { %v3641_v36 = vsel %vm3311_vm5, %v2542_v60, -inf  ;;  %v3595_v31 = vrot.slane %v3594_v21, 2  ;;  %v3601_v32 = vmax.f32 %v3599_v44, %v3600_v0  ;;  %v3608_v62 = vmax.f32 %v3606_v28, %v3607_v53  ;;  %v11118_v53 = vpop.f32.mrb[25].mxu0 }
 0x2e1   :  { %v3614_v14 = vrot.slane %v3613_v23, 4  ;;  %v3628_v57 = vrot.slane %v3627_v38, 4  ;;  %v3635_v12 = vrot.slane %v3634_v9, 4  ;;  %v3642_v61 = vrot.slane %v3641_v36, 4 }
 0x2e2   :  { %v3596_v26 = vmax.f32 %v3594_v21, %v3595_v31  ;;  %v3602_v8 = vrot.slane %v3601_v32, 2  ;;  %v3609_v51 = vrot.slane %v3608_v62, 2  ;;  %v3623_v34 = vrot.slane %v3622_v16, 2 }
 0x2e3   :  { %v3615_v13 = vmax.f32 %v3613_v23, %v3614_v14  ;;  %v3629_v2 = vmax.f32 %v3627_v38, %v3628_v57  ;;  %v11107_v18 = vmax.f32 %v3634_v9, %v3635_v12  ;;  %v11109_v63 = vmax.f32 %v3641_v36, %v3642_v61 }
 0x2e4   :  { %v3597_v11 = vrot.slane %v3596_v26, 1  ;;  %v3603_v60 = vmax.f32 %v3601_v32, %v3602_v8  ;;  %v11111_v46 = vmax.f32 %v3608_v62, %v3609_v51  ;;  %v11113_v28 = vmax.f32 %v3622_v16, %v3623_v34 }
 0x2e5   :  { %13936 = vst [vmem:[#allocation52_spill] sm:$0xff] %v11107_v18  ;;  %13937 = vst [vmem:[#allocation53_spill] sm:$0xff] %v11109_v63  ;;  %v3616_v44 = vrot.slane %v3615_v13, 2  ;;  %v3630_v52 = vrot.slane %v3629_v2, 2  ;;  %v1836_v21 = vadd.f32 %v10799_v41, %v10859_v33  ;;  %v1837_v33 = vadd.f32 %v10796_v40, %v10861_v35 }
 0x2e6   :  { %13938 = vst [vmem:[#allocation54_spill] sm:$0xff] %v11111_v46  ;;  %13939 = vst [vmem:[#allocation55_spill] sm:$0xff] %v11113_v28  ;;  %v3598_v20 = vmax.f32 %v3596_v26, %v3597_v11  ;;  %v3604_v23 = vrot.slane %v3603_v60, 1  ;;  %v1838_v16 = vadd.f32 %v10799_v41, %v10865_v45  ;;  %v9446_v61 = vadd.f32 %v10894_v47, %v10847_v48 }
 0x2e7   :  { %v11121_v9 = vmax.f32 %v3615_v13, %v3616_v44  ;;  %v11124_v31 = vmax.f32 %v3629_v2, %v3630_v52  ;;  %v2027_v34 = vcombine.low %v1835_v3, %v1836_v21  ;;  %v2028_v32 = vcombine.high %v1835_v3, %v1836_v21 }
 0x2e8   :  { %v11126_v62 = vmax.f32 %v3603_v60, %v3604_v23  ;;  %v4696_v14 = vpack.c.bf16 %v3598_v20, %v3598_v20  ;;  %v9447_v26 = vadd.f32 %v10898_v58, %v10851_v59  ;;  %v2045_v51 = vcombine.low %v1837_v33, %v1838_v16 }
 0x2e9   :  { %v2035_v57 = vrot.slane %v2027_v34, %v10804_v54  ;;  %v2042_v12 = vrot.slane %v2028_v32, %v10804_v54  ;;  %v2046_v35 = vcombine.high %v1837_v33, %v1838_v16  ;;  %v11151_v59 = vadd.f32 %v9446_v61, %v10796_v40 }
 0x2ea   :  { %13940 = vst [vmem:[#allocation56_spill] sm:$0xff] %v11126_v62  ;;  %v11140_v8 = vunpack.c.l.b16 %v4696_v14  ;;  %v11145_v60 = vrot.slane %v2045_v51, %v10804_v54  ;;  %v11154_v47 = vadd.f32 %v9447_v26, %v10799_v41 }
 0x2eb   :  { %v2043_v13 = vcombine.high %v2035_v57, %v2035_v57  ;;  %v2044_v2 = vcombine.high %v2042_v12, %v2042_v12  ;;  %v2549_v45 = vrot.slane %v2035_v57, %v10804_v54  ;;  %v2565_v11 = vrot.slane %v2042_v12, %v10804_v54  ;;  %v11165_v12 = vpop.f32.mrb[26].mxu0 }
 0x2ec   :  { %13941 = vst [vmem:[#allocation57_spill] sm:$0xff] %v11140_v8  ;;  %v11148_v48 = vrot.slane %v2046_v35, %v10804_v54 }
 0x2ed   :  { %v2550_v58 = vcombine.high %v2549_v45, %v2549_v45  ;;  %v2557_v44 = vrot.slane %v2043_v13, %v10804_v54  ;;  %v2566_v52 = vcombine.high %v2565_v11, %v2565_v11  ;;  %v2573_v21 = vrot.slane %v2044_v2, %v10804_v54  ;;  %v11169_v13 = vpop.f32.mrb[27].mxu0 }
 0x2ee   :  { %v3648_v20 = vsel %vm3311_vm5, %v2549_v45, -inf  ;;  %v3676_v23 = vsel %vm3311_vm5, %v2565_v11, -inf }
 0x2ef   :  { %v2558_v14 = vcombine.high %v2557_v44, %v2557_v44  ;;  %v2574_v33 = vcombine.high %v2573_v21, %v2573_v21  ;;  %v3649_v16 = vrot.slane %v3648_v20, 4  ;;  %v3655_v57 = vsel %vm3311_vm5, %v2550_v58, -inf }
 0x2f0   :  { %v3656_v61 = vrot.slane %v3655_v57, 4  ;;  %v3662_v26 = vsel %vm3311_vm5, %v2557_v44, -inf  ;;  %v3677_v51 = vrot.slane %v3676_v23, 4  ;;  %v3683_v35 = vsel %vm3311_vm5, %v2566_v52, -inf }
 0x2f1   :  { %v3650_v2 = vmax.f32 %v3648_v20, %v3649_v16  ;;  %v3663_v45 = vrot.slane %v3662_v26, 4  ;;  %v3669_v11 = vsel %vm3311_vm5, %v2558_v14, -inf  ;;  %v3684_v0 = vrot.slane %v3683_v35, 4 }
 0x2f2   :  { %v3657_v36 = vmax.f32 %v3655_v57, %v3656_v61  ;;  %v3670_v38 = vrot.slane %v3669_v11, 4  ;;  %v3678_v3 = vmax.f32 %v3676_v23, %v3677_v51  ;;  %v3690_v58 = vsel %vm3311_vm5, %v2573_v21, -inf }
 0x2f3   :  { %v3651_v32 = vrot.slane %v3650_v2, 2  ;;  %v3664_v34 = vmax.f32 %v3662_v26, %v3663_v45  ;;  %v3685_v8 = vmax.f32 %v3683_v35, %v3684_v0  ;;  %v3691_v6 = vrot.slane %v3690_v58, 4  ;;  %v11174_v26 = vpop.f32.mrb[12].mxu1 }
 0x2f4   :  { %v3658_v44 = vrot.slane %v3657_v36, 2  ;;  %v3671_v43 = vmax.f32 %v3669_v11, %v3670_v38  ;;  %v3679_v18 = vrot.slane %v3678_v3, 2  ;;  %v3697_v52 = vsel %vm3311_vm5, %v2574_v33, -inf  ;;  %v11176_v11 = vpop.f32.mrb[13].mxu1 }
 0x2f5   :  { %v3652_v28 = vmax.f32 %v3650_v2, %v3651_v32  ;;  %v3665_v20 = vrot.slane %v3664_v34, 2  ;;  %v3686_v16 = vrot.slane %v3685_v8, 2  ;;  %v3692_v46 = vmax.f32 %v3690_v58, %v3691_v6 }
 0x2f6   :  { %v3659_v14 = vmax.f32 %v3657_v36, %v3658_v44  ;;  %v3672_v49 = vrot.slane %v3671_v43, 2  ;;  %v3680_v57 = vmax.f32 %v3678_v3, %v3679_v18  ;;  %v3698_v61 = vrot.slane %v3697_v52, 4  ;;  %v11178_v36 = vpop.f32.mrb[14].mxu1  ;;  %v11182_v44 = vpop.f32.mrb[28].mxu0 }
 0x2f7   :  { %v3653_v23 = vrot.slane %v3652_v28, 1  ;;  %v3666_v51 = vmax.f32 %v3664_v34, %v3665_v20  ;;  %v3687_v21 = vmax.f32 %v3685_v8, %v3686_v16  ;;  %v3693_v56 = vrot.slane %v3692_v46, 2  ;;  %v11180_v8 = vpop.f32.mrb[15].mxu1  ;;  %v11184_v16 = vpop.f32.mrb[29].mxu0 }
 0x2f8   :  { %v3660_v0 = vrot.slane %v3659_v14, 1  ;;  %v3673_v35 = vmax.f32 %v3671_v43, %v3672_v49  ;;  %v3681_v38 = vrot.slane %v3680_v57, 1  ;;  %v3699_v45 = vmax.f32 %v3697_v52, %v3698_v61 }
 0x2f9   :  { %v3654_v32 = vmax.f32 %v3652_v28, %v3653_v23  ;;  %v3667_v33 = vrot.slane %v3666_v51, 1  ;;  %v3688_v2 = vrot.slane %v3687_v21, 1  ;;  %v3694_v6 = vmax.f32 %v3692_v46, %v3693_v56 }
 0x2fa   :  { %v3661_v18 = vmax.f32 %v3659_v14, %v3660_v0  ;;  %v3674_v3 = vrot.slane %v3673_v35, 1  ;;  %v3682_v58 = vmax.f32 %v3680_v57, %v3681_v38  ;;  %v3700_v34 = vrot.slane %v3699_v45, 2 }
 0x2fb   :  { %v3668_v20 = vmax.f32 %v3666_v51, %v3667_v33  ;;  %v3689_v43 = vmax.f32 %v3687_v21, %v3688_v2  ;;  %v3695_v49 = vrot.slane %v3694_v6, 1  ;;  %v4704_v52 = vpack.c.bf16 %v3654_v32, %v3654_v32 }
 0x2fc   :  { %v3675_v28 = vmax.f32 %v3673_v35, %v3674_v3  ;;  %v3701_v61 = vmax.f32 %v3699_v45, %v3700_v34  ;;  %v4705_v23 = vpack.c.bf16 %v3661_v18, %v3661_v18  ;;  %v4708_v46 = vpack.c.bf16 %v3682_v58, %v3682_v58 }
 0x2fd   :  { %v3696_v56 = vmax.f32 %v3694_v6, %v3695_v49  ;;  %v4706_v1 = vpack.c.bf16 %v3668_v20, %v3668_v20  ;;  %v4709_v14 = vpack.c.bf16 %v3689_v43, %v3689_v43  ;;  %v11186_v0 = vunpack.c.l.b16 %v4704_v52 }
 0x2fe   :  { %v3702_v57 = vrot.slane %v3701_v61, 1  ;;  %v4707_v38 = vpack.c.bf16 %v3675_v28, %v3675_v28  ;;  %v11188_v62 = vunpack.c.l.b16 %v4705_v23  ;;  %v11190_v7 = vunpack.c.l.b16 %v4708_v46 }
 0x2ff   :  { %13942 = vst [vmem:[#allocation58_spill] sm:$0xff] %v11186_v0  ;;  %v4710_v51 = vpack.c.bf16 %v3696_v56, %v3696_v56  ;;  %v11192_v21 = vunpack.c.l.b16 %v4706_v1  ;;  %v11194_v32 = vunpack.c.l.b16 %v4709_v14  ;;  %v2581_v35 = vrot.slane %v11145_v60, %v10804_v54 }
 0x300   :  { %13943 = vst [vmem:[#allocation59_spill] sm:$0xff] %v11188_v62  ;;  %13944 = vst [vmem:[#allocation60_spill] sm:$0xff] %v11190_v7  ;;  %v11198_v45 = vmax.f32 %v3701_v61, %v3702_v57  ;;  %v11200_v33 = vunpack.c.l.b16 %v4707_v38  ;;  %v13949_v2 = vcombine.high %v11145_v60, %v11145_v60  ;;  %v2597_v18 = vrot.slane %v11148_v48, %v10804_v54 }
 0x301   :  { %13945 = vst [vmem:[#allocation61_spill] sm:$0xff] %v11192_v21  ;;  %13946 = vst [vmem:[#allocation62_spill] sm:$0xff] %v11194_v32  ;;  %v11208_v3 = vunpack.c.l.b16 %v4710_v51  ;;  %v2582_v1 = vcombine.high %v2581_v35, %v2581_v35  ;;  %v13951_v58 = vcombine.high %v11148_v48, %v11148_v48  ;;  %v3704_v20 = vsel %vm3311_vm5, %v2581_v35, -inf }
 0x302   :  { %13947 = vst [vmem:[#allocation63_spill] sm:$0xff] %v11198_v45  ;;  %13948 = vst [vmem:[#allocation64_spill] sm:$0xff] %v11200_v33  ;;  %v2589_v6 = vrot.slane %v13949_v2, %v10804_v54  ;;  %v2598_v52 = vcombine.high %v2597_v18, %v2597_v18  ;;  %v3705_v60 = vrot.slane %v3704_v20, 4  ;;  %v3732_v46 = vsel %vm3311_vm5, %v2597_v18, -inf }
 0x303   :  { %13950 = vst [vmem:[#allocation65_spill] sm:$0xff] %v11208_v3  ;;  %v2605_v34 = vrot.slane %v13951_v58, %v10804_v54  ;;  %v3711_v61 = vsel %vm3311_vm5, %v2582_v1, -inf  ;;  %v3733_v51 = vrot.slane %v3732_v46, 4  ;;  %v11223_v58 = vpop.f32.mrb[30].mxu0 }
 0x304   :  { %v2590_v49 = vcombine.high %v2589_v6, %v2589_v6  ;;  %v3718_v23 = vsel %vm3311_vm5, %v2589_v6, -inf  ;;  %v3706_v56 = vmax.f32 %v3704_v20, %v3705_v60  ;;  %v3712_v14 = vrot.slane %v3711_v61, 4  ;;  %v11225_v6 = vpop.f32.mrb[31].mxu0 }
 0x305   :  { %v2606_v28 = vcombine.high %v2605_v34, %v2605_v34  ;;  %v3719_v57 = vrot.slane %v3718_v23, 4  ;;  %v3739_v35 = vsel %vm3311_vm5, %v2598_v52, -inf  ;;  %v3746_v2 = vsel %vm3311_vm5, %v2605_v34, -inf }
 0x306   :  { %v3725_v48 = vsel %vm3311_vm5, %v2590_v49, -inf  ;;  %v3707_v43 = vrot.slane %v3706_v56, 2  ;;  %v3713_v3 = vmax.f32 %v3711_v61, %v3712_v14  ;;  %v3740_v7 = vrot.slane %v3739_v35, 4 }
 0x307   :  { %v3726_v38 = vrot.slane %v3725_v48, 4  ;;  %v3720_v1 = vmax.f32 %v3718_v23, %v3719_v57  ;;  %v3734_v20 = vmax.f32 %v3732_v46, %v3733_v51  ;;  %v3747_v60 = vrot.slane %v3746_v2, 4  ;;  %v11292_v51 = vpop.f32.mrb[16].mxu1 }
 0x308   :  { %v3753_v21 = vsel %vm3311_vm5, %v2606_v28, -inf  ;;  %v3708_v49 = vmax.f32 %v3706_v56, %v3707_v43  ;;  %v3714_v0 = vrot.slane %v3713_v3, 2  ;;  %v3741_v33 = vmax.f32 %v3739_v35, %v3740_v7 }
 0x309   :  { %v3727_v18 = vmax.f32 %v3725_v48, %v3726_v38  ;;  %v3721_v32 = vrot.slane %v3720_v1, 2  ;;  %v3735_v62 = vrot.slane %v3734_v20, 2  ;;  %v11228_v34 = vmax.f32 %v3746_v2, %v3747_v60 }
 0x30a   :  { %v3754_v45 = vrot.slane %v3753_v21, 4  ;;  %v3709_v63 = vrot.slane %v3708_v49, 1  ;;  %v3715_v61 = vmax.f32 %v3713_v3, %v3714_v0  ;;  %v3742_v14 = vrot.slane %v3741_v33, 2 }
 0x30b   :  { %v3728_v52 = vrot.slane %v3727_v18, 2  ;;  %13952 = vst [vmem:[#allocation66_spill] sm:$0xff] %v11228_v34  ;;  %v11230_v23 = vmax.f32 %v3720_v1, %v3721_v32  ;;  %v11234_v46 = vmax.f32 %v3734_v20, %v3735_v62  ;;  %v2063_v0 = vcombine.low %v11151_v59, %v11154_v47 }
 0x30c   :  { %v11237_v43 = vmax.f32 %v3753_v21, %v3754_v45  ;;  %v3710_v56 = vmax.f32 %v3708_v49, %v3709_v63  ;;  %v3716_v7 = vrot.slane %v3715_v61, 1  ;;  %v11240_v38 = vmax.f32 %v3741_v33, %v3742_v14 }
 0x30d   :  { %13953 = vst [vmem:[#allocation67_spill] sm:$0xff] %v11230_v23  ;;  %v11232_v57 = vmax.f32 %v3727_v18, %v3728_v52  ;;  %13954 = vst [vmem:[#allocation68_spill] sm:$0xff] %v11234_v46  ;;  %v2064_v32 = vcombine.high %v11151_v59, %v11154_v47  ;;  %v9448_v62 = vadd.f32 %v10902_v22, %v10853_v17 }
 0x30e   :  { %13955 = vst [vmem:[#allocation69_spill] sm:$0xff] %v11237_v43  ;;  %13956 = vst [vmem:[#allocation70_spill] sm:$0xff] %v11240_v38  ;;  %v11249_v3 = vmax.f32 %v3715_v61, %v3716_v7  ;;  %v4712_v21 = vpack.c.bf16 %v3710_v56, %v3710_v56  ;;  %v9449_v63 = vadd.f32 %v10904_v42, %v10855_v39 }
 0x30f   :  { %v9450_v45 = vadd.f32 %v10964_v27, %v10955_v10  ;;  %v2071_v33 = vrot.slane %v2063_v0, %v10804_v54  ;;  %v2078_v35 = vrot.slane %v2064_v32, %v10804_v54  ;;  %v1841_v2 = vadd.f32 %v9448_v62, %v10796_v40 }
 0x310   :  { %13957 = vst [vmem:[#allocation71_spill] sm:$0xff] %v11249_v3  ;;  %v9451_v59 = vadd.f32 %v10966_v5, %v10958_v55  ;;  %v11262_v22 = vunpack.c.l.b16 %v4712_v21  ;;  %v1842_v47 = vadd.f32 %v9449_v63, %v10799_v41  ;;  %v11275_v5 = vadd.f32 %v10968_v50, %v10960_v25 }
 0x311   :  { %v11266_v39 = vadd.f32 %v9450_v45, %v10796_v40  ;;  %v2079_v42 = vcombine.high %v2071_v33, %v2071_v33  ;;  %v2080_v10 = vcombine.high %v2078_v35, %v2078_v35  ;;  %v2613_v27 = vrot.slane %v2071_v33, %v10804_v54 }
 0x312   :  { %13958 = vst [vmem:[#allocation72_spill] sm:$0xff] %v11262_v22  ;;  %v2629_v1 = vrot.slane %v2078_v35, %v10804_v54  ;;  %v2081_v18 = vcombine.low %v1841_v2, %v1842_v47  ;;  %v2082_v20 = vcombine.high %v1841_v2, %v1842_v47  ;;  %v11271_v55 = vadd.f32 %v9451_v59, %v10799_v41 }
 0x313   :  { %v2614_v60 = vcombine.high %v2613_v27, %v2613_v27  ;;  %v2621_v49 = vrot.slane %v2079_v42, %v10804_v54  ;;  %v2637_v61 = vrot.slane %v2080_v10, %v10804_v54  ;;  %v3760_v14 = vsel %vm3311_vm5, %v2613_v27, -inf }
 0x314   :  { %v2630_v52 = vcombine.high %v2629_v1, %v2629_v1  ;;  %v3788_v56 = vsel %vm3311_vm5, %v2629_v1, -inf  ;;  %v11282_v7 = vrot.slane %v2081_v18, %v10804_v54  ;;  %v11285_v0 = vrot.slane %v2082_v20, %v10804_v54 }
 0x315   :  { %v2622_v32 = vcombine.high %v2621_v49, %v2621_v49  ;;  %v2638_v62 = vcombine.high %v2637_v61, %v2637_v61  ;;  %v3761_v25 = vrot.slane %v3760_v14, 4  ;;  %v3767_v50 = vsel %vm3311_vm5, %v2614_v60, -inf }
 0x316   :  { %v3768_v21 = vrot.slane %v3767_v50, 4  ;;  %v3774_v63 = vsel %vm3311_vm5, %v2621_v49, -inf  ;;  %v3789_v45 = vrot.slane %v3788_v56, 4  ;;  %v3795_v33 = vsel %vm3311_vm5, %v2630_v52, -inf }
 0x317   :  { %v3762_v35 = vmax.f32 %v3760_v14, %v3761_v25  ;;  %v3775_v2 = vrot.slane %v3774_v63, 4  ;;  %v3781_v59 = vsel %vm3311_vm5, %v2622_v32, -inf  ;;  %v3796_v47 = vrot.slane %v3795_v33, 4  ;;  %v11295_v14 = vpop.f32.mrb[17].mxu1 }
 0x318   :  { %v3769_v42 = vmax.f32 %v3767_v50, %v3768_v21  ;;  %v3782_v10 = vrot.slane %v3781_v59, 4  ;;  %v3790_v27 = vmax.f32 %v3788_v56, %v3789_v45  ;;  %v3802_v1 = vsel %vm3311_vm5, %v2637_v61, -inf  ;;  %13959 = vst [vmem:[#allocation73_spill] sm:$0xff] %v11295_v14  ;;  %v11297_v56 = vpop.f32.mrb[18].mxu1 }
 0x319   :  { %v3763_v18 = vrot.slane %v3762_v35, 2  ;;  %v3776_v20 = vmax.f32 %v3774_v63, %v3775_v2  ;;  %v3797_v28 = vmax.f32 %v3795_v33, %v3796_v47  ;;  %v3803_v60 = vrot.slane %v3802_v1, 4  ;;  %13960 = vst [vmem:[#allocation74_spill] sm:$0xff] %v11297_v56  ;;  %v11299_v2 = vpop.f32.mrb[19].mxu1  ;;  %v11301_v47 = vpop.f32.mrb[32].mxu0 }
 0x31a   :  { %v3770_v49 = vrot.slane %v3769_v42, 2  ;;  %v3783_v48 = vmax.f32 %v3781_v59, %v3782_v10  ;;  %v3791_v17 = vrot.slane %v3790_v27, 2  ;;  %v3809_v52 = vsel %vm3311_vm5, %v2638_v62, -inf  ;;  %13961 = vst [vmem:[#allocation75_spill] sm:$0xff] %v11299_v2 }
 0x31b   :  { %v3764_v32 = vmax.f32 %v3762_v35, %v3763_v18  ;;  %v3777_v25 = vrot.slane %v3776_v20, 2  ;;  %v3798_v50 = vrot.slane %v3797_v28, 2  ;;  %v3804_v21 = vmax.f32 %v3802_v1, %v3803_v60 }
 0x31c   :  { %v3771_v61 = vmax.f32 %v3769_v42, %v3770_v49  ;;  %v3784_v45 = vrot.slane %v3783_v48, 2  ;;  %v3792_v63 = vmax.f32 %v3790_v27, %v3791_v17  ;;  %v3810_v33 = vrot.slane %v3809_v52, 4 }
 0x31d   :  { %v3765_v59 = vrot.slane %v3764_v32, 1  ;;  %v3778_v10 = vmax.f32 %v3776_v20, %v3777_v25  ;;  %v3799_v22 = vmax.f32 %v3797_v28, %v3798_v50  ;;  %v3805_v62 = vrot.slane %v3804_v21, 2 }
 0x31e   :  { %v3772_v34 = vrot.slane %v3771_v61, 1  ;;  %v3785_v46 = vmax.f32 %v3783_v48, %v3784_v45  ;;  %v3793_v35 = vrot.slane %v3792_v63, 1  ;;  %v3811_v18 = vmax.f32 %v3809_v52, %v3810_v33 }
 0x31f   :  { %v3766_v23 = vmax.f32 %v3764_v32, %v3765_v59  ;;  %v3779_v1 = vrot.slane %v3778_v10, 1  ;;  %v3800_v60 = vrot.slane %v3799_v22, 1  ;;  %v3806_v56 = vmax.f32 %v3804_v21, %v3805_v62 }
 0x320   :  { %v3773_v42 = vmax.f32 %v3771_v61, %v3772_v34  ;;  %v3786_v49 = vrot.slane %v3785_v46, 1  ;;  %v3794_v17 = vmax.f32 %v3792_v63, %v3793_v35  ;;  %v3812_v27 = vrot.slane %v3811_v18, 2 }
 0x321   :  { %v3780_v14 = vmax.f32 %v3778_v10, %v3779_v1  ;;  %v3801_v2 = vmax.f32 %v3799_v22, %v3800_v60  ;;  %v3807_v3 = vrot.slane %v3806_v56, 1  ;;  %v4720_v43 = vpack.c.bf16 %v3766_v23, %v3766_v23 }
 0x322   :  { %v3787_v38 = vmax.f32 %v3785_v46, %v3786_v49  ;;  %v11303_v20 = vmax.f32 %v3811_v18, %v3812_v27  ;;  %v4721_v28 = vpack.c.bf16 %v3773_v42, %v3773_v42  ;;  %v4724_v25 = vpack.c.bf16 %v3794_v17, %v3794_v17 }
 0x323   :  { %v11305_v48 = vmax.f32 %v3806_v56, %v3807_v3  ;;  %v4722_v52 = vpack.c.bf16 %v3780_v14, %v3780_v14  ;;  %v4725_v32 = vpack.c.bf16 %v3801_v2, %v3801_v2  ;;  %v11307_v50 = vunpack.c.l.b16 %v4720_v43 }
 0x324   :  { %v4723_v21 = vpack.c.bf16 %v3787_v38, %v3787_v38  ;;  %v11310_v61 = vunpack.c.l.b16 %v4721_v28  ;;  %v11312_v45 = vunpack.c.l.b16 %v4724_v25  ;;  %v2097_v3 = vcombine.high %v11282_v7, %v11282_v7 }
 0x325   :  { %13962 = vst [vmem:[#allocation76_spill] sm:$0xff] %v11305_v48  ;;  %13963 = vst [vmem:[#allocation77_spill] sm:$0xff] %v11307_v50  ;;  %v11316_v46 = vunpack.c.l.b16 %v4722_v52  ;;  %v11318_v22 = vunpack.c.l.b16 %v4725_v32  ;;  %v2098_v43 = vcombine.high %v11285_v0, %v11285_v0  ;;  %v2645_v38 = vrot.slane %v11282_v7, %v10804_v54 }
 0x326   :  { %13964 = vst [vmem:[#allocation78_spill] sm:$0xff] %v11310_v61  ;;  %13965 = vst [vmem:[#allocation79_spill] sm:$0xff] %v11312_v45  ;;  %v11322_v14 = vunpack.c.l.b16 %v4723_v21  ;;  %v2661_v56 = vrot.slane %v11285_v0, %v10804_v54  ;;  %v2653_v63 = vrot.slane %v2097_v3, %v10804_v54  ;;  %v2099_v33 = vcombine.low %v11266_v39, %v11271_v55 }
 0x327   :  { %13966 = vst [vmem:[#allocation80_spill] sm:$0xff] %v11316_v46  ;;  %13967 = vst [vmem:[#allocation81_spill] sm:$0xff] %v11318_v22  ;;  %v2100_v2 = vcombine.high %v11266_v39, %v11271_v55  ;;  %v11337_v59 = vadd.f32 %v11275_v5, %v10796_v40  ;;  %v2646_v10 = vcombine.high %v2645_v38, %v2645_v38  ;;  %v3816_v7 = vsel %vm3311_vm5, %v2645_v38, -inf }
 0x328   :  { %13968 = vst [vmem:[#allocation82_spill] sm:$0xff] %v11322_v14  ;;  %v2662_v62 = vcombine.high %v2661_v56, %v2661_v56  ;;  %v2669_v35 = vrot.slane %v2098_v43, %v10804_v54  ;;  %v2654_v18 = vcombine.high %v2653_v63, %v2653_v63  ;;  %v3817_v0 = vrot.slane %v3816_v7, 4 }
 0x329   :  { %v3830_v1 = vsel %vm3311_vm5, %v2653_v63, -inf  ;;  %v3844_v60 = vsel %vm3311_vm5, %v2661_v56, -inf  ;;  %v3823_v49 = vsel %vm3311_vm5, %v2646_v10, -inf }
 0x32a   :  { %v2670_v42 = vcombine.high %v2669_v35, %v2669_v35  ;;  %v3831_v39 = vrot.slane %v3830_v1, 4  ;;  %v3845_v55 = vrot.slane %v3844_v60, 4  ;;  %v3818_v17 = vmax.f32 %v3816_v7, %v3817_v0 }
 0x32b   :  { %v3824_v5 = vrot.slane %v3823_v49, 4  ;;  %v3837_v27 = vsel %vm3311_vm5, %v2654_v18, -inf  ;;  %v3851_v28 = vsel %vm3311_vm5, %v2662_v62, -inf  ;;  %v3858_v38 = vsel %vm3311_vm5, %v2669_v35, -inf }
 0x32c   :  { %v3832_v25 = vmax.f32 %v3830_v1, %v3831_v39  ;;  %v3838_v52 = vrot.slane %v3837_v27, 4  ;;  %v3846_v32 = vmax.f32 %v3844_v60, %v3845_v55  ;;  %v3852_v21 = vrot.slane %v3851_v28, 4 }
 0x32d   :  { %v3819_v3 = vrot.slane %v3818_v17, 2  ;;  %v3825_v43 = vmax.f32 %v3823_v49, %v3824_v5  ;;  %v11348_v56 = vsel %vm3311_vm5, %v2670_v42, -inf  ;;  %v3859_v62 = vrot.slane %v3858_v38, 4 }
 0x32e   :  { %13969 = vst [vmem:[#allocation83_spill] sm:$0xff] %v11348_v56  ;;  %v3833_v63 = vrot.slane %v3832_v25, 2  ;;  %v11350_v10 = vmax.f32 %v3837_v27, %v3838_v52  ;;  %v3847_v7 = vrot.slane %v3846_v32, 2  ;;  %v11352_v0 = vmax.f32 %v3851_v28, %v3852_v21  ;;  %v11394_v21 = vpop.f32.mrb[33].mxu0 }
 0x32f   :  { %v3820_v18 = vmax.f32 %v3818_v17, %v3819_v3  ;;  %v3826_v23 = vrot.slane %v3825_v43, 2  ;;  %v11363_v5 = vmax.f32 %v3858_v38, %v3859_v62  ;;  %v2107_v27 = vrot.slane %v2099_v33, %v10804_v54 }
 0x330   :  { %v11355_v60 = vmax.f32 %v3832_v25, %v3833_v63  ;;  %v11358_v39 = vmax.f32 %v3846_v32, %v3847_v7  ;;  %v2114_v17 = vrot.slane %v2100_v2, %v10804_v54  ;;  %v9453_v28 = vadd.f32 %v10974_v30, %v10962_v37 }
 0x331   :  { %v3821_v42 = vrot.slane %v3820_v18, 1  ;;  %v11361_v55 = vmax.f32 %v3825_v43, %v3826_v23  ;;  %13972 = vst [vmem:[#allocation86_spill] sm:$0xff] %v11363_v5  ;;  %v9454_v25 = vadd.f32 %v11062_v19, %v11048_v15  ;;  %v2115_v23 = vcombine.high %v2107_v27, %v2107_v27 }
 0x332   :  { %13970 = vst [vmem:[#allocation84_spill] sm:$0xff] %v11355_v60  ;;  %13971 = vst [vmem:[#allocation85_spill] sm:$0xff] %v11358_v39  ;;  %v2677_v3 = vrot.slane %v2107_v27, %v10804_v54  ;;  %v2116_v43 = vcombine.high %v2114_v17, %v2114_v17  ;;  %v2693_v33 = vrot.slane %v2114_v17, %v10804_v54 }
 0x333   :  { %v11372_v32 = vmax.f32 %v3820_v18, %v3821_v42  ;;  %v11378_v2 = vadd.f32 %v9453_v28, %v10799_v41  ;;  %v11381_v37 = vadd.f32 %v9454_v25, %v10796_v40  ;;  %v2685_v19 = vrot.slane %v2115_v23, %v10804_v54 }
 0x334   :  { %v2678_v15 = vcombine.high %v2677_v3, %v2677_v3  ;;  %v3872_v38 = vsel %vm3311_vm5, %v2677_v3, -inf  ;;  %v2694_v63 = vcombine.high %v2693_v33, %v2693_v33  ;;  %v2701_v7 = vrot.slane %v2116_v43, %v10804_v54 }
 0x335   :  { %13973 = vst [vmem:[#allocation87_spill] sm:$0xff] %v11372_v32  ;;  %v3873_v18 = vrot.slane %v3872_v38, 4  ;;  %v3900_v62 = vsel %vm3311_vm5, %v2693_v33, -inf  ;;  %v2686_v42 = vcombine.high %v2685_v19, %v2685_v19  ;;  %v3886_v17 = vsel %vm3311_vm5, %v2685_v19, -inf }
 0x336   :  { %v3879_v27 = vsel %vm3311_vm5, %v2678_v15, -inf  ;;  %v3901_v28 = vrot.slane %v3900_v62, 4  ;;  %v2702_v25 = vcombine.high %v2701_v7, %v2701_v7  ;;  %v3887_v35 = vrot.slane %v3886_v17, 4 }
 0x337   :  { %v3874_v1 = vmax.f32 %v3872_v38, %v3873_v18  ;;  %v3880_v30 = vrot.slane %v3879_v27, 4  ;;  %v3893_v23 = vsel %vm3311_vm5, %v2686_v42, -inf  ;;  %v3907_v3 = vsel %vm3311_vm5, %v2694_v63, -inf }
 0x338   :  { %v3902_v49 = vmax.f32 %v3900_v62, %v3901_v28  ;;  %v3914_v43 = vsel %vm3311_vm5, %v2701_v7, -inf  ;;  %v3888_v52 = vmax.f32 %v3886_v17, %v3887_v35  ;;  %v3894_v15 = vrot.slane %v3893_v23, 4 }
 0x339   :  { %v3875_v33 = vrot.slane %v3874_v1, 2  ;;  %v3881_v34 = vmax.f32 %v3879_v27, %v3880_v30  ;;  %v3908_v19 = vrot.slane %v3907_v3, 4  ;;  %v3915_v46 = vrot.slane %v3914_v43, 4 }
 0x33a   :  { %v3903_v45 = vrot.slane %v3902_v49, 2  ;;  %v3921_v38 = vsel %vm3311_vm5, %v2702_v25, -inf  ;;  %v3889_v32 = vrot.slane %v3888_v52, 2  ;;  %v3895_v42 = vmax.f32 %v3893_v23, %v3894_v15 }
 0x33b   :  { %v3876_v18 = vmax.f32 %v3874_v1, %v3875_v33  ;;  %v3882_v50 = vrot.slane %v3881_v34, 2  ;;  %v3909_v28 = vmax.f32 %v3907_v3, %v3908_v19  ;;  %v3916_v63 = vmax.f32 %v3914_v43, %v3915_v46 }
 0x33c   :  { %v3904_v62 = vmax.f32 %v3902_v49, %v3903_v45  ;;  %v3922_v48 = vrot.slane %v3921_v38, 4  ;;  %v3890_v39 = vmax.f32 %v3888_v52, %v3889_v32  ;;  %v3896_v60 = vrot.slane %v3895_v42, 2 }
 0x33d   :  { %v3877_v7 = vrot.slane %v3876_v18, 1  ;;  %v3883_v5 = vmax.f32 %v3881_v34, %v3882_v50  ;;  %v3910_v35 = vrot.slane %v3909_v28, 2  ;;  %v3917_v27 = vrot.slane %v3916_v63, 2 }
 0x33e   :  { %v3905_v30 = vrot.slane %v3904_v62, 1  ;;  %v3923_v17 = vmax.f32 %v3921_v38, %v3922_v48  ;;  %v3891_v61 = vrot.slane %v3890_v39, 1  ;;  %v3897_v25 = vmax.f32 %v3895_v42, %v3896_v60 }
 0x33f   :  { %v3878_v22 = vmax.f32 %v3876_v18, %v3877_v7  ;;  %v3884_v14 = vrot.slane %v3883_v5, 1  ;;  %v3911_v33 = vmax.f32 %v3909_v28, %v3910_v35  ;;  %v3918_v56 = vmax.f32 %v3916_v63, %v3917_v27 }
 0x340   :  { %v3906_v1 = vmax.f32 %v3904_v62, %v3905_v30  ;;  %v3924_v23 = vrot.slane %v3923_v17, 2  ;;  %v3892_v49 = vmax.f32 %v3890_v39, %v3891_v61  ;;  %v3898_v46 = vrot.slane %v3897_v25, 1 }
 0x341   :  { %v3885_v45 = vmax.f32 %v3883_v5, %v3884_v14  ;;  %v4736_v3 = vpack.c.bf16 %v3878_v22, %v3878_v22  ;;  %v3912_v43 = vrot.slane %v3911_v33, 1  ;;  %v3919_v50 = vrot.slane %v3918_v56, 1 }
 0x342   :  { %v11397_v34 = vmax.f32 %v3923_v17, %v3924_v23  ;;  %v4740_v52 = vpack.c.bf16 %v3906_v1, %v3906_v1  ;;  %v3899_v32 = vmax.f32 %v3897_v25, %v3898_v46  ;;  %v4738_v48 = vpack.c.bf16 %v3892_v49, %v3892_v49  ;;  %v13982_v1 = vld [vmem:[#allocation34_spill] sm:$0xff] }
 0x343   :  { %v4737_v15 = vpack.c.bf16 %v3885_v45, %v3885_v45  ;;  %v11399_v19 = vunpack.c.l.b16 %v4736_v3  ;;  %v3913_v38 = vmax.f32 %v3911_v33, %v3912_v43  ;;  %v11401_v60 = vmax.f32 %v3918_v56, %v3919_v50 }
 0x344   :  { %v11404_v42 = vunpack.c.l.b16 %v4740_v52  ;;  %v4739_v61 = vpack.c.bf16 %v3899_v32, %v3899_v32  ;;  %v11408_v22 = vunpack.c.l.b16 %v4738_v48  ;;  %v2117_v39 = vcombine.low %v11337_v59, %v11378_v2 }
 0x345   :  { %13974 = vst [vmem:[#allocation88_spill] sm:$0xff] %v11399_v19  ;;  %13975 = vst [vmem:[#allocation89_spill] sm:$0xff] %v11401_v60  ;;  %v11406_v14 = vunpack.c.l.b16 %v4737_v15  ;;  %v4741_v5 = vpack.c.bf16 %v3913_v38, %v3913_v38  ;;  %v2118_v56 = vcombine.high %v11337_v59, %v11378_v2  ;;  %v13979_v28 = vrot.slane %v10908_v24, 1  ;;  %v13983_v59 = vld [vmem:[#allocation35_spill] sm:$0xff] }
 0x346   :  { %13976 = vst [vmem:[#allocation90_spill] sm:$0xff] %v11404_v42  ;;  %13978 = vst [vmem:[#allocation92_spill] sm:$0xff] %v11408_v22  ;;  %v11421_v7 = vunpack.c.l.b16 %v4739_v61  ;;  %v2125_v30 = vrot.slane %v2117_v39, %v10804_v54  ;;  %v3408_v35 = vrot.slane %v10912_v4, 1  ;;  %v3420_v27 = vrot.slane %v10910_v29, 2 }
 0x347   :  { %13977 = vst [vmem:[#allocation91_spill] sm:$0xff] %v11406_v14  ;;  %v11419_v63 = vmax.f32 %v10908_v24, %v13979_v28  ;;  %v11426_v17 = vunpack.c.l.b16 %v4741_v5  ;;  %v2132_v25 = vrot.slane %v2118_v56, %v10804_v54  ;;  %v3506_v33 = vrot.slane %v13982_v1, 1 }
 0x348   :  { %13980 = vst [vmem:[#allocation93_spill] sm:$0xff] %v11421_v7  ;;  %v3520_v2 = vrot.slane %v13983_v59, 1  ;;  %v2133_v23 = vcombine.high %v2125_v30, %v2125_v30  ;;  %v2709_v24 = vrot.slane %v2125_v30, %v10804_v54  ;;  %v3409_v45 = vmax.f32 %v10912_v4, %v3408_v35 }
 0x349   :  { %13981 = vst [vmem:[#allocation94_spill] sm:$0xff] %v11426_v17  ;;  %v3421_v49 = vmax.f32 %v10910_v29, %v3420_v27  ;;  %v2134_v46 = vcombine.high %v2132_v25, %v2132_v25  ;;  %v2725_v3 = vrot.slane %v2132_v25, %v10804_v54  ;;  %v11436_v43 = vmax.f32 %v13982_v1, %v3506_v33 }
 0x34a   :  { %v11439_v50 = vmax.f32 %v13983_v59, %v3520_v2  ;;  %v2710_v52 = vcombine.high %v2709_v24, %v2709_v24  ;;  %v2717_v32 = vrot.slane %v2133_v23, %v10804_v54  ;;  %v3928_v15 = vsel %vm3311_vm5, %v2709_v24, -inf }
 0x34b   :  { %v3422_v48 = vrot.slane %v3421_v49, 1  ;;  %v2726_v38 = vcombine.high %v2725_v3, %v2725_v3  ;;  %v2733_v4 = vrot.slane %v2134_v46, %v10804_v54  ;;  %v3929_v61 = vrot.slane %v3928_v15, 4 }
 0x34c   :  { %v3956_v29 = vsel %vm3311_vm5, %v2725_v3, -inf  ;;  %v2718_v39 = vcombine.high %v2717_v32, %v2717_v32  ;;  %v3935_v5 = vsel %vm3311_vm5, %v2710_v52, -inf  ;;  %v3942_v56 = vsel %vm3311_vm5, %v2717_v32, -inf }
 0x34d   :  { %v3957_v28 = vrot.slane %v3956_v29, 4  ;;  %v2734_v30 = vcombine.high %v2733_v4, %v2733_v4  ;;  %v3930_v35 = vmax.f32 %v3928_v15, %v3929_v61  ;;  %v3936_v27 = vrot.slane %v3935_v5, 4 }
 0x34e   :  { %v3943_v25 = vrot.slane %v3942_v56, 4  ;;  %v3949_v1 = vsel %vm3311_vm5, %v2718_v39, -inf  ;;  %v3963_v59 = vsel %vm3311_vm5, %v2726_v38, -inf  ;;  %v3970_v2 = vsel %vm3311_vm5, %v2733_v4, -inf }
 0x34f   :  { %v3958_v33 = vmax.f32 %v3956_v29, %v3957_v28  ;;  %v3931_v23 = vrot.slane %v3930_v35, 2  ;;  %v3937_v24 = vmax.f32 %v3935_v5, %v3936_v27  ;;  %v3950_v3 = vrot.slane %v3949_v1, 4 }
 0x350   :  { %v3944_v46 = vmax.f32 %v3942_v56, %v3943_v25  ;;  %v3964_v52 = vrot.slane %v3963_v59, 4  ;;  %v3971_v18 = vrot.slane %v3970_v2, 4  ;;  %v11451_v32 = vsel %vm3311_vm5, %v2734_v30, -inf  ;;  %v13991_v25 = vld [vmem:[#allocation33_spill] sm:$0xff] }
 0x351   :  { %v3959_v62 = vrot.slane %v3958_v33, 2  ;;  %13984 = vst [vmem:[#allocation34_spill] sm:$0xff] %v11451_v32  ;;  %v3932_v15 = vmax.f32 %v3930_v35, %v3931_v23  ;;  %v3938_v61 = vrot.slane %v3937_v24, 2  ;;  %v11453_v22 = vmax.f32 %v3949_v1, %v3950_v3  ;;  %v11482_v3 = vpop.f32.mrb[34].mxu0 }
 0x352   :  { %v3945_v42 = vrot.slane %v3944_v46, 2  ;;  %v11457_v38 = vmax.f32 %v3963_v59, %v3964_v52  ;;  %v11459_v4 = vmax.f32 %v3970_v2, %v3971_v18  ;;  %v3423_v27 = vmax.f32 %v3421_v49, %v3422_v48  ;;  %v13993_v49 = vld [vmem:[#allocation22_spill] sm:$0xff]  ;;  %v13995_v52 = vld [vmem:[#allocation24_spill] sm:$0xff]  ;;  %v14003_v18 = vld [vmem:[#allocation29_spill] sm:$0xff] }
 0x353   :  { %13985 = vst [vmem:[#allocation35_spill] sm:$0xff] %v11453_v22  ;;  %v11455_v29 = vmax.f32 %v3958_v33, %v3959_v62  ;;  %v3933_v5 = vrot.slane %v3932_v15, 1  ;;  %v11462_v56 = vmax.f32 %v3937_v24, %v3938_v61  ;;  %v3532_v1 = vrot.slane %v13991_v25, 2 }
 0x354   :  { %13987 = vst [vmem:[#allocation96_spill] sm:$0xff] %v11457_v38  ;;  %13988 = vst [vmem:[#allocation97_spill] sm:$0xff] %v11459_v4  ;;  %v11464_v28 = vmax.f32 %v3944_v46, %v3945_v42  ;;  %v4667_v62 = vpack.c.bf16 %v11419_v63, %v11419_v63  ;;  %v4669_v59 = vpack.c.bf16 %v3409_v45, %v3409_v45  ;;  %v14010_v4 = vld [vmem:[#allocation26_spill] sm:$0xff] }
 0x355   :  { %13986 = vst [vmem:[#allocation95_spill] sm:$0xff] %v11455_v29  ;;  %13989 = vst [vmem:[#allocation98_spill] sm:$0xff] %v11462_v56  ;;  %v11471_v33 = vmax.f32 %v3932_v15, %v3933_v5  ;;  %v4683_v2 = vpack.c.bf16 %v11436_v43, %v11436_v43  ;;  %v3533_v42 = vmax.f32 %v13991_v25, %v3532_v1  ;;  %v11489_v5 = vpop.f32.mrb[35].mxu0 }
 0x356   :  { %13990 = vst [vmem:[#allocation99_spill] sm:$0xff] %v11464_v28  ;;  %v4671_v23 = vpack.c.bf16 %v3423_v27, %v3423_v27  ;;  %v4685_v24 = vpack.c.bf16 %v11439_v50, %v11439_v50  ;;  %v13994_v48 = vpack.c.bf16 %v13993_v49, %v13993_v49  ;;  %v13996_v45 = vpack.c.bf16 %v13995_v52, %v13995_v52  ;;  %v13997_v50 = vld [vmem:[#allocation30_spill] sm:$0xff] }
 0x357   :  { %13992 = vst [vmem:[#allocation33_spill] sm:$0xff] %v11471_v33  ;;  %v5083_v43 = vunpack.c.l.b16 %v4667_v62  ;;  %v5085_v61 = vunpack.c.l.b16 %v4669_v59  ;;  %v3534_v27 = vrot.slane %v3533_v42, 1  ;;  %v13998_v1 = vpack.c.bf16 %v13997_v50, %v13997_v50  ;;  %v14001_v62 = vld [vmem:[#allocation20_spill] sm:$0xff]  ;;  %v14002_v59 = vld [vmem:[#allocation23_spill] sm:$0xff]  ;;  %v14005_v50 = vld [vmem:[#allocation21_spill] sm:$0xff] }
 0x358   :  { %v5079_v46 = vunpack.c.l.b16 %v13994_v48  ;;  %v5081_v15 = vunpack.c.l.b16 %v13996_v45  ;;  %v5087_v25 = vunpack.c.l.b16 %v4671_v23  ;;  %v13999_v48 = vld [vmem:[#allocation36_spill] sm:$0xff]  ;;  %v5099_v30 = vunpack.c.l.b16 %v4683_v2  ;;  %v14004_v23 = vld [vmem:[#allocation31_spill] sm:$0xff]  ;;  %v14007_v2 = vld [vmem:[#allocation41_spill] sm:$0xff] }
 0x359   :  { %v5095_v49 = vunpack.c.l.b16 %v13998_v1  ;;  %v14000_v39 = vpack.c.bf16 %v13999_v48, %v13999_v48  ;;  %v5101_v63 = vunpack.c.l.b16 %v4685_v24  ;;  %v3535_v52 = vmax.f32 %v3533_v42, %v3534_v27  ;;  %v14006_v33 = vld [vmem:[#allocation32_spill] sm:$0xff]  ;;  %v14008_v48 = vld [vmem:[#allocation27_spill] sm:$0xff]  ;;  %v14009_v42 = vld [vmem:[#allocation25_spill] sm:$0xff] }
 0x35a   :  { %v5278_v45 = vsel %vm5264_vm6, %v14002_v59, %v14001_v62  ;;  %v5292_v19 = vsel %vm5264_vm6, %v14004_v23, %v14003_v18  ;;  %v9455_v24 = vadd.f32 %v11118_v53, %v14007_v2  ;;  %v5273_v27 = vsel %vm5272_vm10, %v14009_v42, %v14008_v48  ;;  %v14014_v48 = vld [vmem:[#allocation38_spill] sm:$0xff] }
 0x35b   :  { %v5097_v35 = vunpack.c.l.b16 %v14000_v39  ;;  %v5279_v1 = vsel %vm5266_vm7, %v14005_v50, %v5278_v45  ;;  %v5293_v39 = vsel %vm5266_vm7, %v14006_v33, %v5292_v19  ;;  %v4687_v60 = vpack.c.bf16 %v3535_v52, %v3535_v52  ;;  %v14011_v33 = vld [vmem:[#allocation28_spill] sm:$0xff] }
 0x35c   :  { %v5280_v62 = vsel %vm5268_vm8, %v5079_v46, %v5279_v1  ;;  %v5294_v59 = vsel %vm5268_vm8, %v5095_v49, %v5293_v39  ;;  %v5275_v18 = vsel %vm5274_vm11, %v14010_v4, %v5273_v27  ;;  %v1848_v19 = vadd.f32 %v9455_v24, %v10799_v41  ;;  %v14012_v46 = vld [vmem:[#allocation39_spill] sm:$0xff]  ;;  %v14013_v1 = vld [vmem:[#allocation37_spill] sm:$0xff] }
 0x35d   :  { %v5281_v45 = vsel %vm5270_vm9, %v5081_v15, %v5280_v62  ;;  %v5295_v23 = vsel %vm5270_vm9, %v5097_v35, %v5294_v59  ;;  %v5277_v53 = vsel %vm5276_vm12, %v14011_v33, %v5275_v18  ;;  %v5103_v50 = vunpack.c.l.b16 %v4687_v60  ;;  %v14017_v62 = vld [vmem:[#allocation40_spill] sm:$0xff]  ;;  %v14019_v18 = vld [vmem:[#allocation43_spill] sm:$0xff] }
 0x35e   :  { %v5282_v2 = vsel %vm5272_vm10, %v5083_v43, %v5281_v45  ;;  %v5296_v52 = vsel %vm5272_vm10, %v5099_v30, %v5295_v23  ;;  %v5289_v49 = vsel %vm5272_vm10, %v14013_v1, %v14012_v46  ;;  %v2135_v35 = vcombine.low %v11381_v37, %v1848_v19  ;;  %v14015_v30 = vld [vmem:[#allocation42_spill] sm:$0xff] }
 0x35f   :  { %v5283_v4 = vsel %vm5274_vm11, %v5085_v61, %v5282_v2  ;;  %v5297_v15 = vsel %vm5274_vm11, %v5101_v63, %v5296_v52  ;;  %v2136_v39 = vcombine.high %v11381_v37, %v1848_v19  ;;  %v5290_v43 = vsel %vm5274_vm11, %v14014_v48, %v5289_v49  ;;  %v11571_v49 = vpop.f32.mrb[20].mxu1 }
 0x360   :  { %v5284_v24 = vsel %vm5276_vm12, %v5087_v25, %v5283_v4  ;;  %v5298_v60 = vsel %vm5276_vm12, %v5103_v50, %v5297_v15  ;;  %v9456_v42 = vadd.f32 %v11165_v12, %v14015_v30  ;;  %v2143_v61 = vrot.slane %v2135_v35, %v10804_v54 }
 0x361   :  { %v11536_v27 = vpack.c.b16 %v5298_v60, %v5284_v24  ;;  %v2150_v63 = vrot.slane %v2136_v39, %v10804_v54  ;;  %v5291_v59 = vsel %vm5276_vm12, %v14017_v62, %v5290_v43  ;;  %v9457_v45 = vadd.f32 %v11169_v13, %v14019_v18 }
 0x362   :  { %v11542_v37 = vpack.c.b16 %v5291_v59, %v5277_v53  ;;  %v11545_v25 = vadd.f32 %v9456_v42, %v10796_v40  ;;  %v9458_v12 = vadd.f32 %v11182_v44, %v11174_v26  ;;  %v2151_v23 = vcombine.high %v2143_v61, %v2143_v61 }
 0x363   :  { %14016 = vst [vmem:[#allocation22_spill] sm:$0xff] %v11536_v27  ;;  %5591 = vmatprep.mubr.bf16.mxu1 %v11536_v27  ;;  %v2152_v19 = vcombine.high %v2150_v63, %v2150_v63  ;;  %v2741_v33 = vrot.slane %v2143_v61, %v10804_v54  ;;  %v2757_v50 = vrot.slane %v2150_v63, %v10804_v54 }
 0x364   :  { %14018 = vst [vmem:[#allocation24_spill] sm:$0xff] %v11542_v37  ;;  %5592 = vmatmul.mubr.bf16.vlgmr.msra.gmra.mrb[32].mxu1 %v11542_v37  ;;  %v11556_v53 = vadd.f32 %v9457_v45, %v10799_v41  ;;  %v11559_v2 = vadd.f32 %v9458_v12, %v10796_v40  ;;  %v11563_v13 = vadd.f32 %v11184_v16, %v11176_v11 }
 0x365   :  { %v11567_v26 = vadd.f32 %v11223_v58, %v11178_v36  ;;  %v2742_v44 = vcombine.high %v2741_v33, %v2741_v33  ;;  %v2749_v52 = vrot.slane %v2151_v23, %v10804_v54  ;;  %v2758_v46 = vcombine.high %v2757_v50, %v2757_v50  ;;  %v11579_v36 = vpop.f32.mrb[21].mxu1  ;;  %v11581_v58 = vpop.f32.mrb[36].mxu0 }
 0x366   :  { %v2765_v1 = vrot.slane %v2152_v19, %v10804_v54  ;;  %v3984_v4 = vsel %vm3311_vm5, %v2741_v33, -inf  ;;  %v4012_v15 = vsel %vm3311_vm5, %v2757_v50, -inf  ;;  %v11584_v48 = vpop.f32.mrb[22].mxu1  ;;  %v11586_v43 = vpop.f32.mrb[37].mxu0 }
 0x367   :  { %v2750_v35 = vcombine.high %v2749_v52, %v2749_v52  ;;  %v3985_v24 = vrot.slane %v3984_v4, 4  ;;  %v3991_v60 = vsel %vm3311_vm5, %v2742_v44, -inf  ;;  %v3998_v42 = vsel %vm3311_vm5, %v2749_v52, -inf  ;;  %v11590_v62 = vpop.f32.mrb[23].mxu1  ;;  %v11594_v44 = vpop.f32.mrb[38].mxu0 }
 0x368   :  { %v2766_v39 = vcombine.high %v2765_v1, %v2765_v1  ;;  %v3992_v30 = vrot.slane %v3991_v60, 4  ;;  %v4013_v61 = vrot.slane %v4012_v15, 4  ;;  %v4019_v63 = vsel %vm3311_vm5, %v2758_v46, -inf  ;;  %v11596_v27 = vpop.f32.mrb[39].mxu0 }
 0x369   :  { %v3986_v59 = vmax.f32 %v3984_v4, %v3985_v24  ;;  %v3999_v18 = vrot.slane %v3998_v42, 4  ;;  %v4005_v45 = vsel %vm3311_vm5, %v2750_v35, -inf  ;;  %v4020_v12 = vrot.slane %v4019_v63, 4 }
 0x36a   :  { %v3993_v23 = vmax.f32 %v3991_v60, %v3992_v30  ;;  %v4006_v19 = vrot.slane %v4005_v45, 4  ;;  %v4014_v33 = vmax.f32 %v4012_v15, %v4013_v61  ;;  %v4026_v50 = vsel %vm3311_vm5, %v2765_v1, -inf }
 0x36b   :  { %v3987_v16 = vrot.slane %v3986_v59, 2  ;;  %v4000_v11 = vmax.f32 %v3998_v42, %v3999_v18  ;;  %v4021_v52 = vmax.f32 %v4019_v63, %v4020_v12  ;;  %v4027_v37 = vrot.slane %v4026_v50, 4 }
 0x36c   :  { %v3994_v46 = vrot.slane %v3993_v23, 2  ;;  %v4007_v29 = vmax.f32 %v4005_v45, %v4006_v19  ;;  %v4015_v4 = vrot.slane %v4014_v33, 2  ;;  %v4033_v24 = vsel %vm3311_vm5, %v2766_v39, -inf }
 0x36d   :  { %v3988_v35 = vmax.f32 %v3986_v59, %v3987_v16  ;;  %v4001_v28 = vrot.slane %v4000_v11, 2  ;;  %v4022_v60 = vrot.slane %v4021_v52, 2  ;;  %v4028_v30 = vmax.f32 %v4026_v50, %v4027_v37 }
 0x36e   :  { %v3995_v15 = vmax.f32 %v3993_v23, %v3994_v46  ;;  %v4008_v61 = vrot.slane %v4007_v29, 2  ;;  %v4016_v1 = vmax.f32 %v4014_v33, %v4015_v4  ;;  %v4034_v17 = vrot.slane %v4033_v24, 4 }
 0x36f   :  { %v3989_v7 = vrot.slane %v3988_v35, 1  ;;  %v4002_v14 = vmax.f32 %v4000_v11, %v4001_v28  ;;  %v4023_v42 = vmax.f32 %v4021_v52, %v4022_v60  ;;  %v4029_v63 = vrot.slane %v4028_v30, 2 }
 0x370   :  { %v3996_v18 = vrot.slane %v3995_v15, 1  ;;  %v4009_v12 = vmax.f32 %v4007_v29, %v4008_v61  ;;  %v4017_v32 = vrot.slane %v4016_v1, 1  ;;  %v4035_v38 = vmax.f32 %v4033_v24, %v4034_v17  ;;  %v11620_v61 = vpop.f32.mrb[24].mxu1 }
 0x371   :  { %v3990_v45 = vmax.f32 %v3988_v35, %v3989_v7  ;;  %v4003_v19 = vrot.slane %v4002_v14, 1  ;;  %v4024_v22 = vrot.slane %v4023_v42, 1  ;;  %v4030_v39 = vmax.f32 %v4028_v30, %v4029_v63 }
 0x372   :  { %v3997_v16 = vmax.f32 %v3995_v15, %v3996_v18  ;;  %v4010_v59 = vrot.slane %v4009_v12, 1  ;;  %v4018_v56 = vmax.f32 %v4016_v1, %v4017_v32  ;;  %v4036_v37 = vrot.slane %v4035_v38, 2 }
 0x373   :  { %v4004_v23 = vmax.f32 %v4002_v14, %v4003_v19  ;;  %v4025_v50 = vmax.f32 %v4023_v42, %v4024_v22  ;;  %v4031_v33 = vrot.slane %v4030_v39, 1  ;;  %v4752_v46 = vpack.c.bf16 %v3990_v45, %v3990_v45  ;;  %v11634_v45 = vpop.f32.mrb[25].mxu1 }
 0x374   :  { %v4011_v4 = vmax.f32 %v4009_v12, %v4010_v59  ;;  %v11599_v28 = vmax.f32 %v4035_v38, %v4036_v37  ;;  %v4753_v11 = vpack.c.bf16 %v3997_v16, %v3997_v16  ;;  %v4756_v52 = vpack.c.bf16 %v4018_v56, %v4018_v56 }
 0x375   :  { %v11601_v29 = vmax.f32 %v4030_v39, %v4031_v33  ;;  %v4754_v17 = vpack.c.bf16 %v4004_v23, %v4004_v23  ;;  %v4757_v7 = vpack.c.bf16 %v4025_v50, %v4025_v50  ;;  %v11603_v24 = vunpack.c.l.b16 %v4752_v46  ;;  %v11648_v50 = vpop.f32.mrb[40].mxu0 }
 0x376   :  { %14020 = vst [vmem:[#allocation30_spill] sm:$0xff] %v11599_v28  ;;  %v4755_v60 = vpack.c.bf16 %v4011_v4, %v4011_v4  ;;  %v11606_v32 = vunpack.c.l.b16 %v4753_v11  ;;  %v11608_v14 = vunpack.c.l.b16 %v4756_v52  ;;  %v14027_v56 = vcombine.low %v11545_v25, %v11556_v53 }
 0x377   :  { %14021 = vst [vmem:[#allocation36_spill] sm:$0xff] %v11601_v29  ;;  %14022 = vst [vmem:[#allocation20_spill] sm:$0xff] %v11603_v24  ;;  %v11612_v38 = vunpack.c.l.b16 %v4754_v17  ;;  %v11614_v30 = vunpack.c.l.b16 %v4757_v7  ;;  %v14029_v42 = vcombine.high %v11545_v25, %v11556_v53  ;;  %v1852_v18 = vadd.f32 %v11563_v13, %v10799_v41  ;;  %v11641_v25 = vpop.f32.mrb[26].mxu1 }
 0x378   :  { %14023 = vst [vmem:[#allocation23_spill] sm:$0xff] %v11606_v32  ;;  %14024 = vst [vmem:[#allocation29_spill] sm:$0xff] %v11608_v14  ;;  %v2161_v15 = vrot.slane %v14027_v56, %v10804_v54  ;;  %v11622_v1 = vunpack.c.l.b16 %v4755_v60  ;;  %v11632_v12 = vadd.f32 %v11567_v26, %v10796_v40  ;;  %v9461_v16 = vadd.f32 %v11225_v6, %v11180_v8  ;;  %v11646_v23 = vpop.f32.mrb[27].mxu1 }
 0x379   :  { %14025 = vst [vmem:[#allocation31_spill] sm:$0xff] %v11612_v38  ;;  %14026 = vst [vmem:[#allocation21_spill] sm:$0xff] %v11614_v30  ;;  %v2168_v63 = vrot.slane %v14029_v42, %v10804_v54  ;;  %v9462_v59 = vadd.f32 %v11301_v47, %v11292_v51  ;;  %v2171_v37 = vcombine.low %v11559_v2, %v1852_v18  ;;  %v11653_v51 = vpop.f32.mrb[41].mxu0 }
 0x37a   :  { %14028 = vst [vmem:[#allocation32_spill] sm:$0xff] %v11622_v1  ;;  %v2169_v19 = vcombine.high %v2161_v15, %v2161_v15  ;;  %v2773_v39 = vrot.slane %v2161_v15, %v10804_v54  ;;  %v2172_v26 = vcombine.high %v11559_v2, %v1852_v18  ;;  %14030 = vst [vmem:[#allocation41_spill] sm:$0xff] %v11646_v23 }
 0x37b   :  { %v2170_v53 = vcombine.high %v2168_v63, %v2168_v63  ;;  %v2789_v13 = vrot.slane %v2168_v63, %v10804_v54  ;;  %v1854_v6 = vadd.f32 %v9461_v16, %v10799_v41 }
 0x37c   :  { %v2774_v33 = vcombine.high %v2773_v39, %v2773_v39  ;;  %v2781_v46 = vrot.slane %v2169_v19, %v10804_v54  ;;  %v4040_v8 = vsel %vm3311_vm5, %v2773_v39, -inf }
 0x37d   :  { %v2790_v47 = vcombine.high %v2789_v13, %v2789_v13  ;;  %v2797_v4 = vrot.slane %v2170_v53, %v10804_v54  ;;  %v4041_v11 = vrot.slane %v4040_v8, 4  ;;  %v4068_v52 = vsel %vm3311_vm5, %v2789_v13, -inf }
 0x37e   :  { %v2782_v2 = vcombine.high %v2781_v46, %v2781_v46  ;;  %v4047_v17 = vsel %vm3311_vm5, %v2774_v33, -inf  ;;  %v4054_v7 = vsel %vm3311_vm5, %v2781_v46, -inf  ;;  %v4069_v60 = vrot.slane %v4068_v52, 4 }
 0x37f   :  { %v2798_v56 = vcombine.high %v2797_v4, %v2797_v4  ;;  %v4042_v15 = vmax.f32 %v4040_v8, %v4041_v11  ;;  %v4048_v42 = vrot.slane %v4047_v17, 4  ;;  %v4055_v63 = vrot.slane %v4054_v7, 4  ;;  %v11665_v8 = vpop.f32.mrb[42].mxu0 }
 0x380   :  { %v4061_v18 = vsel %vm3311_vm5, %v2782_v2, -inf  ;;  %v4070_v19 = vmax.f32 %v4068_v52, %v4069_v60  ;;  %v4075_v39 = vsel %vm3311_vm5, %v2790_v47, -inf  ;;  %v4082_v16 = vsel %vm3311_vm5, %v2797_v4, -inf }
 0x381   :  { %v4043_v53 = vrot.slane %v4042_v15, 2  ;;  %v4049_v22 = vmax.f32 %v4047_v17, %v4048_v42  ;;  %v4056_v13 = vmax.f32 %v4054_v7, %v4055_v63  ;;  %v4062_v35 = vrot.slane %v4061_v18, 4 }
 0x382   :  { %v4071_v14 = vrot.slane %v4070_v19, 2  ;;  %v4076_v33 = vrot.slane %v4075_v39, 4  ;;  %v4083_v38 = vrot.slane %v4082_v16, 4  ;;  %v11663_v46 = vsel %vm3311_vm5, %v2798_v56, -inf }
 0x383   :  { %14031 = vst [vmem:[#allocation27_spill] sm:$0xff] %v11663_v46  ;;  %v4044_v11 = vmax.f32 %v4042_v15, %v4043_v53  ;;  %v4050_v24 = vrot.slane %v4049_v22, 2  ;;  %v4057_v2 = vrot.slane %v4056_v13, 2  ;;  %v11667_v52 = vmax.f32 %v4061_v18, %v4062_v35 }
 0x384   :  { %v11669_v47 = vmax.f32 %v4070_v19, %v4071_v14  ;;  %v11671_v4 = vmax.f32 %v4075_v39, %v4076_v33  ;;  %v11673_v17 = vmax.f32 %v4082_v16, %v4083_v38  ;;  %v2179_v35 = vrot.slane %v2171_v37, %v10804_v54 }
 0x385   :  { %14032 = vst [vmem:[#allocation25_spill] sm:$0xff] %v11667_v52  ;;  %v4045_v60 = vrot.slane %v4044_v11, 1  ;;  %v11676_v42 = vmax.f32 %v4049_v22, %v4050_v24  ;;  %v11678_v56 = vmax.f32 %v4056_v13, %v4057_v2  ;;  %v2186_v14 = vrot.slane %v2172_v26, %v10804_v54 }
 0x386   :  { %14033 = vst [vmem:[#allocation26_spill] sm:$0xff] %v11669_v47  ;;  %14034 = vst [vmem:[#allocation28_spill] sm:$0xff] %v11671_v4  ;;  %v2189_v18 = vcombine.low %v11632_v12, %v1854_v6  ;;  %v2190_v39 = vcombine.high %v11632_v12, %v1854_v6  ;;  %v11690_v24 = vadd.f32 %v9462_v59, %v10796_v40 }
 0x387   :  { %14035 = vst [vmem:[#allocation39_spill] sm:$0xff] %v11673_v17  ;;  %14036 = vst [vmem:[#allocation37_spill] sm:$0xff] %v11676_v42  ;;  %v11685_v19 = vmax.f32 %v4044_v11, %v4045_v60  ;;  %v2187_v22 = vcombine.high %v2179_v35, %v2179_v35  ;;  %v2188_v16 = vcombine.high %v2186_v14, %v2186_v14 }
 0x388   :  { %14037 = vst [vmem:[#allocation38_spill] sm:$0xff] %v11678_v56  ;;  %v2805_v53 = vrot.slane %v2179_v35, %v10804_v54  ;;  %v2821_v13 = vrot.slane %v2186_v14, %v10804_v54  ;;  %v11697_v26 = vrot.slane %v2189_v18, %v10804_v54  ;;  %v11700_v33 = vrot.slane %v2190_v39, %v10804_v54 }
 0x389   :  { %14038 = vst [vmem:[#allocation42_spill] sm:$0xff] %v11685_v19  ;;  %v2813_v59 = vrot.slane %v2187_v22, %v10804_v54  ;;  %v2829_v2 = vrot.slane %v2188_v16, %v10804_v54 }
 0x38a   :  { %v2806_v6 = vcombine.high %v2805_v53, %v2805_v53  ;;  %v2822_v11 = vcombine.high %v2821_v13, %v2821_v13  ;;  %v4096_v60 = vsel %vm3311_vm5, %v2805_v53, -inf  ;;  %v4124_v35 = vsel %vm3311_vm5, %v2821_v13, -inf }
 0x38b   :  { %v2814_v39 = vcombine.high %v2813_v59, %v2813_v59  ;;  %v2830_v37 = vcombine.high %v2829_v2, %v2829_v2  ;;  %v4097_v7 = vrot.slane %v4096_v60, 4  ;;  %v4110_v22 = vsel %vm3311_vm5, %v2813_v59, -inf }
 0x38c   :  { %v4103_v15 = vsel %vm3311_vm5, %v2806_v6, -inf  ;;  %v4125_v38 = vrot.slane %v4124_v35, 4  ;;  %v4131_v16 = vsel %vm3311_vm5, %v2822_v11, -inf  ;;  %v4111_v12 = vrot.slane %v4110_v22, 4 }
 0x38d   :  { %v4104_v63 = vrot.slane %v4103_v15, 4  ;;  %v4098_v53 = vmax.f32 %v4096_v60, %v4097_v7  ;;  %v4117_v13 = vsel %vm3311_vm5, %v2814_v39, -inf  ;;  %v4132_v19 = vrot.slane %v4131_v16, 4 }
 0x38e   :  { %v4118_v29 = vrot.slane %v4117_v13, 4  ;;  %v4126_v17 = vmax.f32 %v4124_v35, %v4125_v38  ;;  %v4138_v18 = vsel %vm3311_vm5, %v2829_v2, -inf  ;;  %v4112_v56 = vmax.f32 %v4110_v22, %v4111_v12 }
 0x38f   :  { %v4105_v14 = vmax.f32 %v4103_v15, %v4104_v63  ;;  %v4099_v47 = vrot.slane %v4098_v53, 2  ;;  %v4133_v30 = vmax.f32 %v4131_v16, %v4132_v19  ;;  %v4139_v6 = vrot.slane %v4138_v18, 4 }
 0x390   :  { %v4119_v32 = vmax.f32 %v4117_v13, %v4118_v29  ;;  %v4127_v59 = vrot.slane %v4126_v17, 2  ;;  %v4145_v46 = vsel %vm3311_vm5, %v2830_v37, -inf  ;;  %v4113_v7 = vrot.slane %v4112_v56, 2 }
 0x391   :  { %v4106_v1 = vrot.slane %v4105_v14, 2  ;;  %v4100_v11 = vmax.f32 %v4098_v53, %v4099_v47  ;;  %v4134_v60 = vrot.slane %v4133_v30, 2  ;;  %v4140_v4 = vmax.f32 %v4138_v18, %v4139_v6 }
 0x392   :  { %v4120_v52 = vrot.slane %v4119_v32, 2  ;;  %v4128_v63 = vmax.f32 %v4126_v17, %v4127_v59  ;;  %v4146_v15 = vrot.slane %v4145_v46, 4  ;;  %v4114_v35 = vmax.f32 %v4112_v56, %v4113_v7 }
 0x393   :  { %v4107_v39 = vmax.f32 %v4105_v14, %v4106_v1  ;;  %v4101_v38 = vrot.slane %v4100_v11, 1  ;;  %v4135_v2 = vmax.f32 %v4133_v30, %v4134_v60  ;;  %v4141_v42 = vrot.slane %v4140_v4, 2 }
 0x394   :  { %v4121_v19 = vmax.f32 %v4119_v32, %v4120_v52  ;;  %v4129_v22 = vrot.slane %v4128_v63, 1  ;;  %v4147_v16 = vmax.f32 %v4145_v46, %v4146_v15  ;;  %v4115_v13 = vrot.slane %v4114_v35, 1 }
 0x395   :  { %v4108_v12 = vrot.slane %v4107_v39, 1  ;;  %v4102_v29 = vmax.f32 %v4100_v11, %v4101_v38  ;;  %v4136_v28 = vrot.slane %v4135_v2, 1  ;;  %v4142_v37 = vmax.f32 %v4140_v4, %v4141_v42 }
 0x396   :  { %v4122_v53 = vrot.slane %v4121_v19, 1  ;;  %v4130_v23 = vmax.f32 %v4128_v63, %v4129_v22  ;;  %v4148_v18 = vrot.slane %v4147_v16, 2  ;;  %v4116_v1 = vmax.f32 %v4114_v35, %v4115_v13 }
 0x397   :  { %v4109_v47 = vmax.f32 %v4107_v39, %v4108_v12  ;;  %v4137_v14 = vmax.f32 %v4135_v2, %v4136_v28  ;;  %v4143_v17 = vrot.slane %v4142_v37, 1  ;;  %v4768_v6 = vpack.c.bf16 %v4102_v29, %v4102_v29 }
 0x398   :  { %v4123_v59 = vmax.f32 %v4121_v19, %v4122_v53  ;;  %v11717_v56 = vmax.f32 %v4147_v16, %v4148_v18  ;;  %v4772_v7 = vpack.c.bf16 %v4130_v23, %v4130_v23  ;;  %v4770_v46 = vpack.c.bf16 %v4116_v1, %v4116_v1 }
 0x399   :  { %v4769_v30 = vpack.c.bf16 %v4109_v47, %v4109_v47  ;;  %v11719_v32 = vmax.f32 %v4142_v37, %v4143_v17  ;;  %v4773_v52 = vpack.c.bf16 %v4137_v14, %v4137_v14  ;;  %v11721_v11 = vunpack.c.l.b16 %v4768_v6 }
 0x39a   :  { %14039 = vst [vmem:[#allocation40_spill] sm:$0xff] %v11717_v56  ;;  %v4771_v42 = vpack.c.bf16 %v4123_v59, %v4123_v59  ;;  %v11726_v39 = vunpack.c.l.b16 %v4772_v7  ;;  %v11730_v63 = vunpack.c.l.b16 %v4770_v46  ;;  %v2837_v23 = vrot.slane %v11697_v26, %v10804_v54 }
 0x39b   :  { %14040 = vst [vmem:[#allocation43_spill] sm:$0xff] %v11719_v32  ;;  %14041 = vst [vmem:[#allocation100_spill] sm:$0xff] %v11721_v11  ;;  %v11724_v60 = vunpack.c.l.b16 %v4769_v30  ;;  %v11732_v15 = vunpack.c.l.b16 %v4773_v52  ;;  %v14047_v35 = vcombine.high %v11697_v26, %v11697_v26  ;;  %v2853_v12 = vrot.slane %v11700_v33, %v10804_v54  ;;  %v14073_v32 = vld [vmem:[#allocation59_spill] sm:$0xff] }
 0x39c   :  { %14043 = vst [vmem:[#allocation102_spill] sm:$0xff] %v11726_v39  ;;  %14044 = vst [vmem:[#allocation103_spill] sm:$0xff] %v11730_v63  ;;  %v11736_v38 = vunpack.c.l.b16 %v4771_v42  ;;  %v14048_v19 = vcombine.high %v11700_v33, %v11700_v33  ;;  %v2838_v16 = vcombine.high %v2837_v23, %v2837_v23  ;;  %v4152_v29 = vsel %vm3311_vm5, %v2837_v23, -inf  ;;  %v14067_v63 = vld [vmem:[#allocation71_spill] sm:$0xff] }
 0x39d   :  { %14042 = vst [vmem:[#allocation101_spill] sm:$0xff] %v11724_v60  ;;  %14045 = vst [vmem:[#allocation104_spill] sm:$0xff] %v11732_v15  ;;  %v2845_v2 = vrot.slane %v14047_v35, %v10804_v54  ;;  %v14049_v13 = vrot.slane %v11121_v9, 1  ;;  %v3632_v47 = vrot.slane %v11124_v31, 1  ;;  %v2854_v26 = vcombine.high %v2853_v12, %v2853_v12 }
 0x39e   :  { %14046 = vst [vmem:[#allocation105_spill] sm:$0xff] %v11736_v38  ;;  %v2861_v22 = vrot.slane %v14048_v19, %v10804_v54  ;;  %v4153_v1 = vrot.slane %v4152_v29, 4  ;;  %v4159_v14 = vsel %vm3311_vm5, %v2838_v16, -inf  ;;  %v4180_v33 = vsel %vm3311_vm5, %v2853_v12, -inf }
 0x39f   :  { %v3619_v37 = vmax.f32 %v11121_v9, %v14049_v13  ;;  %v2846_v53 = vcombine.high %v2845_v2, %v2845_v2  ;;  %v4166_v17 = vsel %vm3311_vm5, %v2845_v2, -inf  ;;  %v4160_v30 = vrot.slane %v4159_v14, 4 }
 0x3a0   :  { %v2862_v18 = vcombine.high %v2861_v22, %v2861_v22  ;;  %v4194_v6 = vsel %vm3311_vm5, %v2861_v22, -inf  ;;  %v4154_v59 = vmax.f32 %v4152_v29, %v4153_v1  ;;  %v4167_v7 = vrot.slane %v4166_v17, 4 }
 0x3a1   :  { %v4173_v46 = vsel %vm3311_vm5, %v2846_v53, -inf  ;;  %v4181_v52 = vrot.slane %v4180_v33, 4  ;;  %v4187_v42 = vsel %vm3311_vm5, %v2854_v26, -inf  ;;  %v4195_v23 = vrot.slane %v4194_v6, 4 }
 0x3a2   :  { %v4174_v9 = vrot.slane %v4173_v46, 4  ;;  %v4155_v35 = vrot.slane %v4154_v59, 2  ;;  %v4161_v19 = vmax.f32 %v4159_v14, %v4160_v30  ;;  %v4168_v13 = vmax.f32 %v4166_v17, %v4167_v7  ;;  %v14061_v14 = vld [vmem:[#allocation47_spill] sm:$0xff] }
 0x3a3   :  { %v4188_v16 = vrot.slane %v4187_v42, 4  ;;  %v4182_v2 = vmax.f32 %v4180_v33, %v4181_v52  ;;  %v11761_v12 = vmax.f32 %v4194_v6, %v4195_v23  ;;  %v11764_v22 = vsel %vm3311_vm5, %v2862_v18, -inf  ;;  %v14058_v52 = vld [vmem:[#allocation70_spill] sm:$0xff]  ;;  %v14063_v18 = vld [vmem:[#allocation56_spill] sm:$0xff] }
 0x3a4   :  { %v11759_v28 = vmax.f32 %v4173_v46, %v4174_v9  ;;  %14052 = vst [vmem:[#allocation108_spill] sm:$0xff] %v11764_v22  ;;  %v4156_v29 = vmax.f32 %v4154_v59, %v4155_v35  ;;  %v4162_v1 = vrot.slane %v4161_v19, 2  ;;  %v4169_v53 = vrot.slane %v4168_v13, 2  ;;  %v14057_v59 = vld [vmem:[#allocation53_spill] sm:$0xff] }
 0x3a5   :  { %14051 = vst [vmem:[#allocation107_spill] sm:$0xff] %v11761_v12  ;;  %v11766_v4 = vmax.f32 %v4187_v42, %v4188_v16  ;;  %v4183_v39 = vrot.slane %v4182_v2, 2  ;;  %v3633_v17 = vmax.f32 %v11124_v31, %v3632_v47  ;;  %v3644_v46 = vrot.slane %v14057_v59, 2  ;;  %v14060_v31 = vld [vmem:[#allocation69_spill] sm:$0xff] }
 0x3a6   :  { %14050 = vst [vmem:[#allocation106_spill] sm:$0xff] %v11759_v28  ;;  %v4157_v30 = vrot.slane %v4156_v29, 1  ;;  %v11771_v7 = vmax.f32 %v4161_v19, %v4162_v1  ;;  %v11773_v33 = vmax.f32 %v4168_v13, %v4169_v53  ;;  %v3730_v9 = vrot.slane %v11232_v57, 1  ;;  %v14075_v12 = vld [vmem:[#allocation73_spill] sm:$0xff] }
 0x3a7   :  { %14053 = vst [vmem:[#allocation109_spill] sm:$0xff] %v11766_v4  ;;  %v11776_v6 = vmax.f32 %v4182_v2, %v4183_v39  ;;  %v3744_v42 = vrot.slane %v14058_v52, 1  ;;  %v3756_v47 = vrot.slane %v14060_v31, 2  ;;  %v4699_v19 = vpack.c.bf16 %v3619_v37, %v3619_v37 }
 0x3a8   :  { %14054 = vst [vmem:[#allocation110_spill] sm:$0xff] %v11771_v7  ;;  %14055 = vst [vmem:[#allocation111_spill] sm:$0xff] %v11773_v33  ;;  %v11781_v23 = vmax.f32 %v4156_v29, %v4157_v30  ;;  %v3645_v13 = vmax.f32 %v14057_v59, %v3644_v46  ;;  %v3731_v16 = vmax.f32 %v11232_v57, %v3730_v9 }
 0x3a9   :  { %14056 = vst [vmem:[#allocation112_spill] sm:$0xff] %v11776_v6  ;;  %v3745_v39 = vmax.f32 %v14058_v52, %v3744_v42  ;;  %v4701_v2 = vpack.c.bf16 %v3633_v17, %v3633_v17  ;;  %v3757_v53 = vmax.f32 %v14060_v31, %v3756_v47  ;;  %v14062_v29 = vpack.c.bf16 %v14061_v14, %v14061_v14  ;;  %v14065_v17 = vld [vmem:[#allocation63_spill] sm:$0xff]  ;;  %v11803_v14 = vpop.f32.mrb[43].mxu0 }
 0x3aa   :  { %14059 = vst [vmem:[#allocation53_spill] sm:$0xff] %v11781_v23  ;;  %v14064_v26 = vpack.c.bf16 %v14063_v18, %v14063_v18  ;;  %v3646_v35 = vrot.slane %v3645_v13, 1  ;;  %v4715_v59 = vpack.c.bf16 %v3731_v16, %v3731_v16  ;;  %v5115_v57 = vunpack.c.l.b16 %v4699_v19  ;;  %14069 = vst [vmem:[#allocation70_spill] sm:$0xff] %v11803_v14  ;;  %v14071_v23 = vld [vmem:[#allocation49_spill] sm:$0xff] }
 0x3ab   :  { %v5111_v30 = vunpack.c.l.b16 %v14062_v29  ;;  %v4717_v46 = vpack.c.bf16 %v3745_v39, %v3745_v39  ;;  %v3758_v9 = vrot.slane %v3757_v53, 1  ;;  %v5117_v52 = vunpack.c.l.b16 %v4701_v2  ;;  %v14072_v39 = vld [vmem:[#allocation50_spill] sm:$0xff] }
 0x3ac   :  { %v5113_v37 = vunpack.c.l.b16 %v14064_v26  ;;  %v14066_v42 = vpack.c.bf16 %v14065_v17, %v14065_v17  ;;  %v14068_v31 = vpack.c.bf16 %v14067_v63, %v14067_v63  ;;  %v3647_v29 = vmax.f32 %v3645_v13, %v3646_v35  ;;  %v14070_v26 = vld [vmem:[#allocation45_spill] sm:$0xff]  ;;  %v14074_v17 = vld [vmem:[#allocation64_spill] sm:$0xff]  ;;  %v14076_v13 = vld [vmem:[#allocation62_spill] sm:$0xff] }
 0x3ad   :  { %v5131_v11 = vunpack.c.l.b16 %v4715_v59  ;;  %v5133_v18 = vunpack.c.l.b16 %v4717_v46  ;;  %v5306_v16 = vsel %vm5264_vm6, %v14071_v23, %v14070_v26  ;;  %v3759_v19 = vmax.f32 %v3757_v53, %v3758_v9  ;;  %v14077_v46 = vld [vmem:[#allocation54_spill] sm:$0xff] }
 0x3ae   :  { %v5127_v1 = vunpack.c.l.b16 %v14066_v42  ;;  %v5129_v47 = vunpack.c.l.b16 %v14068_v31  ;;  %v5307_v2 = vsel %vm5266_vm7, %v14072_v39, %v5306_v16  ;;  %v5320_v42 = vsel %vm5264_vm6, %v14074_v17, %v14073_v32 }
 0x3af   :  { %v9463_v63 = vadd.f32 %v11394_v21, %v14075_v12  ;;  %v4703_v31 = vpack.c.bf16 %v3647_v29, %v3647_v29  ;;  %v5308_v35 = vsel %vm5268_vm8, %v5111_v30, %v5307_v2  ;;  %v5321_v59 = vsel %vm5266_vm7, %v14076_v13, %v5320_v42  ;;  %v14079_v30 = vld [vmem:[#allocation55_spill] sm:$0xff]  ;;  %v14081_v42 = vld [vmem:[#allocation52_spill] sm:$0xff] }
 0x3b0   :  { %v14078_v6 = vrot.slane %v14077_v46, 1  ;;  %v4719_v53 = vpack.c.bf16 %v3759_v19, %v3759_v19  ;;  %v5309_v9 = vsel %vm5270_vm9, %v5113_v37, %v5308_v35  ;;  %v5322_v26 = vsel %vm5268_vm8, %v5127_v1, %v5321_v59  ;;  %v14083_v13 = vld [vmem:[#allocation67_spill] sm:$0xff]  ;;  %v14085_v59 = vld [vmem:[#allocation68_spill] sm:$0xff] }
 0x3b1   :  { %v1856_v32 = vadd.f32 %v9463_v63, %v10799_v41  ;;  %v5119_v16 = vunpack.c.l.b16 %v4703_v31  ;;  %v5310_v21 = vsel %vm5272_vm10, %v5115_v57, %v5309_v9  ;;  %v5323_v12 = vsel %vm5270_vm9, %v5129_v47, %v5322_v26  ;;  %v14088_v26 = vld [vmem:[#allocation66_spill] sm:$0xff] }
 0x3b2   :  { %v11821_v23 = vmax.f32 %v14077_v46, %v14078_v6  ;;  %v14080_v29 = vrot.slane %v14079_v30, 1  ;;  %v5135_v2 = vunpack.c.l.b16 %v4719_v53  ;;  %v5311_v6 = vsel %vm5274_vm11, %v5117_v52, %v5310_v21 }
 0x3b3   :  { %v5324_v19 = vsel %vm5272_vm10, %v5131_v11, %v5323_v12  ;;  %v2207_v37 = vcombine.low %v11690_v24, %v1856_v32  ;;  %v5312_v1 = vsel %vm5276_vm12, %v5119_v16, %v5311_v6  ;;  %v2208_v57 = vcombine.high %v11690_v24, %v1856_v32 }
 0x3b4   :  { %v11831_v39 = vmax.f32 %v14079_v30, %v14080_v29  ;;  %v5325_v17 = vsel %vm5274_vm11, %v5133_v18, %v5324_v19  ;;  %v14082_v47 = vrot.slane %v14081_v42, 2  ;;  %v14084_v52 = vrot.slane %v14083_v13, 1 }
 0x3b5   :  { %v5326_v31 = vsel %vm5276_vm12, %v5135_v2, %v5325_v17  ;;  %v2215_v35 = vrot.slane %v2207_v37, %v10804_v54  ;;  %v14086_v46 = vrot.slane %v14085_v59, 1  ;;  %v2222_v24 = vrot.slane %v2208_v57, %v10804_v54 }
 0x3b6   :  { %v3638_v63 = vmax.f32 %v14081_v42, %v14082_v47  ;;  %v11847_v11 = vmax.f32 %v14083_v13, %v14084_v52  ;;  %v11854_v18 = vpack.c.b16 %v5326_v31, %v5312_v1  ;;  %v14089_v32 = vrot.slane %v14088_v26, 2 }
 0x3b7   :  { %v11852_v53 = vmax.f32 %v14085_v59, %v14086_v46  ;;  %v2223_v21 = vcombine.high %v2215_v35, %v2215_v35  ;;  %v2869_v12 = vrot.slane %v2215_v35, %v10804_v54  ;;  %v2224_v2 = vcombine.high %v2222_v24, %v2222_v24 }
 0x3b8   :  { %14087 = vst [vmem:[#allocation69_spill] sm:$0xff] %v11854_v18  ;;  %v3639_v9 = vrot.slane %v3638_v63, 1  ;;  %v11860_v16 = vmax.f32 %v14088_v26, %v14089_v32  ;;  %5599 = vmatprep.mubr.bf16.mxu1 %v11854_v18  ;;  %v2885_v6 = vrot.slane %v2222_v24, %v10804_v54 }
 0x3b9   :  { %v2870_v1 = vcombine.high %v2869_v12, %v2869_v12  ;;  %v2877_v17 = vrot.slane %v2223_v21, %v10804_v54  ;;  %v4208_v57 = vsel %vm3311_vm5, %v2869_v12, -inf  ;;  %v2893_v31 = vrot.slane %v2224_v2, %v10804_v54 }
 0x3ba   :  { %v11869_v19 = vmax.f32 %v3638_v63, %v3639_v9  ;;  %v2886_v47 = vcombine.high %v2885_v6, %v2885_v6  ;;  %v4209_v35 = vrot.slane %v4208_v57, 4  ;;  %v4236_v13 = vsel %vm3311_vm5, %v2885_v6, -inf }
 0x3bb   :  { %v2878_v52 = vcombine.high %v2877_v17, %v2877_v17  ;;  %v4215_v63 = vsel %vm3311_vm5, %v2870_v1, -inf  ;;  %v4222_v59 = vsel %vm3311_vm5, %v2877_v17, -inf  ;;  %v4237_v46 = vrot.slane %v4236_v13, 4 }
 0x3bc   :  { %v2894_v24 = vcombine.high %v2893_v31, %v2893_v31  ;;  %v4210_v9 = vmax.f32 %v4208_v57, %v4209_v35  ;;  %v4216_v26 = vrot.slane %v4215_v63, 4  ;;  %v4223_v32 = vrot.slane %v4222_v59, 4 }
 0x3bd   :  { %v4229_v21 = vsel %vm3311_vm5, %v2878_v52, -inf  ;;  %v4238_v12 = vmax.f32 %v4236_v13, %v4237_v46  ;;  %v4243_v42 = vsel %vm3311_vm5, %v2886_v47, -inf  ;;  %v4250_v2 = vsel %vm3311_vm5, %v2893_v31, -inf }
 0x3be   :  { %v4211_v29 = vrot.slane %v4210_v9, 2  ;;  %v4217_v30 = vmax.f32 %v4215_v63, %v4216_v26  ;;  %v4224_v6 = vmax.f32 %v4222_v59, %v4223_v32  ;;  %v4230_v37 = vrot.slane %v4229_v21, 4 }
 0x3bf   :  { %v4239_v18 = vrot.slane %v4238_v12, 2  ;;  %v4244_v1 = vrot.slane %v4243_v42, 4  ;;  %v4251_v33 = vrot.slane %v4250_v2, 4  ;;  %v4257_v17 = vsel %vm3311_vm5, %v2894_v24, -inf }
 0x3c0   :  { %v4212_v15 = vmax.f32 %v4210_v9, %v4211_v29  ;;  %v4218_v57 = vrot.slane %v4217_v30, 2  ;;  %v4225_v35 = vrot.slane %v4224_v6, 2  ;;  %v4231_v38 = vmax.f32 %v4229_v21, %v4230_v37 }
 0x3c1   :  { %v4240_v60 = vmax.f32 %v4238_v12, %v4239_v18  ;;  %v4245_v52 = vmax.f32 %v4243_v42, %v4244_v1  ;;  %v4252_v13 = vmax.f32 %v4250_v2, %v4251_v33  ;;  %v4258_v46 = vrot.slane %v4257_v17, 4  ;;  %v11884_v12 = vpop.f32.mrb[28].mxu1 }
 0x3c2   :  { %v4213_v47 = vrot.slane %v4212_v15, 1  ;;  %v4219_v22 = vmax.f32 %v4217_v30, %v4218_v57  ;;  %v4226_v31 = vmax.f32 %v4224_v6, %v4225_v35  ;;  %v4232_v4 = vrot.slane %v4231_v38, 2  ;;  %v11886_v30 = vpop.f32.mrb[44].mxu0 }
 0x3c3   :  { %v4241_v63 = vrot.slane %v4240_v60, 1  ;;  %v4246_v59 = vrot.slane %v4245_v52, 2  ;;  %v4253_v26 = vrot.slane %v4252_v13, 2  ;;  %v4259_v32 = vmax.f32 %v4257_v17, %v4258_v46  ;;  %v11890_v17 = vpop.f32.mrb[29].mxu1 }
 0x3c4   :  { %v4214_v28 = vmax.f32 %v4212_v15, %v4213_v47  ;;  %v4220_v7 = vrot.slane %v4219_v22, 1  ;;  %v4227_v56 = vrot.slane %v4226_v31, 1  ;;  %v4233_v24 = vmax.f32 %v4231_v38, %v4232_v4  ;;  %v11892_v4 = vpop.f32.mrb[45].mxu0 }
 0x3c5   :  { %v4242_v29 = vmax.f32 %v4240_v60, %v4241_v63  ;;  %v4247_v9 = vmax.f32 %v4245_v52, %v4246_v59  ;;  %v4254_v14 = vmax.f32 %v4252_v13, %v4253_v26  ;;  %v4260_v37 = vrot.slane %v4259_v32, 2 }
 0x3c6   :  { %v4221_v18 = vmax.f32 %v4219_v22, %v4220_v7  ;;  %v4228_v42 = vmax.f32 %v4226_v31, %v4227_v56  ;;  %v4234_v33 = vrot.slane %v4233_v24, 1  ;;  %v4784_v21 = vpack.c.bf16 %v4214_v28, %v4214_v28  ;;  %v11896_v56 = vpop.f32.mrb[30].mxu1 }
 0x3c7   :  { %v4248_v2 = vrot.slane %v4247_v9, 1  ;;  %v4255_v6 = vrot.slane %v4254_v14, 1  ;;  %v11888_v1 = vmax.f32 %v4259_v32, %v4260_v37  ;;  %v4788_v15 = vpack.c.bf16 %v4242_v29, %v4242_v29  ;;  %v11903_v13 = vpop.f32.mrb[31].mxu1 }
 0x3c8   :  { %v4235_v60 = vmax.f32 %v4233_v24, %v4234_v33  ;;  %v4785_v38 = vpack.c.bf16 %v4221_v18, %v4221_v18  ;;  %v4786_v57 = vpack.c.bf16 %v4228_v42, %v4228_v42  ;;  %v11894_v22 = vunpack.c.l.b16 %v4784_v21 }
 0x3c9   :  { %v4249_v28 = vmax.f32 %v4247_v9, %v4248_v2  ;;  %v11898_v7 = vmax.f32 %v4254_v14, %v4255_v6  ;;  %v11901_v52 = vunpack.c.l.b16 %v4788_v15  ;;  %v14094_v63 = vrot.slane %v11860_v16, 1  ;;  %v14099_v15 = vld [vmem:[#allocation44_spill] sm:$0xff] }
 0x3ca   :  { %14090 = vst [vmem:[#allocation47_spill] sm:$0xff] %v11894_v22  ;;  %v4787_v46 = vpack.c.bf16 %v4235_v60, %v4235_v60  ;;  %v11905_v47 = vunpack.c.l.b16 %v4785_v38  ;;  %v11907_v31 = vunpack.c.l.b16 %v4786_v57  ;;  %v4702_v32 = vpack.c.bf16 %v11869_v19, %v11869_v19  ;;  %v14100_v60 = vld [vmem:[#allocation46_spill] sm:$0xff] }
 0x3cb   :  { %14091 = vst [vmem:[#allocation56_spill] sm:$0xff] %v11898_v7  ;;  %14092 = vst [vmem:[#allocation63_spill] sm:$0xff] %v11901_v52  ;;  %v3752_v59 = vmax.f32 %v11860_v16, %v14094_v63  ;;  %v4789_v26 = vpack.c.bf16 %v4249_v28, %v4249_v28  ;;  %v4716_v24 = vpack.c.bf16 %v11852_v53, %v11852_v53  ;;  %v14101_v57 = vld [vmem:[#allocation58_spill] sm:$0xff]  ;;  %v14104_v63 = vld [vmem:[#allocation48_spill] sm:$0xff] }
 0x3cc   :  { %14093 = vst [vmem:[#allocation71_spill] sm:$0xff] %v11907_v31  ;;  %v11918_v29 = vunpack.c.l.b16 %v4787_v46  ;;  %v14095_v37 = vpack.c.bf16 %v11821_v23, %v11821_v23  ;;  %v14096_v16 = vpack.c.bf16 %v11831_v39, %v11831_v39  ;;  %v5118_v21 = vunpack.c.l.b16 %v4702_v32  ;;  %v14102_v23 = vld [vmem:[#allocation61_spill] sm:$0xff]  ;;  %v14103_v46 = vld [vmem:[#allocation74_spill] sm:$0xff]  ;;  %v14106_v32 = vld [vmem:[#allocation75_spill] sm:$0xff] }
 0x3cd   :  { %v4718_v9 = vpack.c.bf16 %v3752_v59, %v3752_v59  ;;  %v11926_v33 = vunpack.c.l.b16 %v4789_v26  ;;  %v14098_v19 = vpack.c.bf16 %v11847_v11, %v11847_v11  ;;  %v5132_v6 = vunpack.c.l.b16 %v4716_v24  ;;  %v14105_v26 = vld [vmem:[#allocation60_spill] sm:$0xff] }
 0x3ce   :  { %v5114_v18 = vunpack.c.l.b16 %v14095_v37  ;;  %v5116_v42 = vunpack.c.l.b16 %v14096_v16  ;;  %v5299_v38 = vsel %vm5264_vm6, %v14100_v60, %v14099_v15  ;;  %v5313_v28 = vsel %vm5264_vm6, %v14102_v23, %v14101_v57  ;;  %v14107_v37 = vld [vmem:[#allocation51_spill] sm:$0xff]  ;;  %v14110_v23 = vld [vmem:[#allocation72_spill] sm:$0xff] }
 0x3cf   :  { %14097 = vst [vmem:[#allocation45_spill] sm:$0xff] %v11926_v33  ;;  %v5130_v2 = vunpack.c.l.b16 %v14098_v19  ;;  %v5134_v53 = vunpack.c.l.b16 %v4718_v9  ;;  %v9464_v39 = vadd.f32 %v11482_v3, %v14103_v46  ;;  %v5300_v59 = vsel %vm5266_vm7, %v14104_v63, %v5299_v38  ;;  %v14108_v19 = vld [vmem:[#allocation65_spill] sm:$0xff] }
 0x3d0   :  { %v5314_v11 = vsel %vm5266_vm7, %v14105_v26, %v5313_v28  ;;  %v9465_v24 = vadd.f32 %v11489_v5, %v14106_v32  ;;  %v9466_v9 = vadd.f32 %v11581_v58, %v11571_v49  ;;  %v5301_v16 = vsel %vm5268_vm8, %v14107_v37, %v5300_v59  ;;  %v14109_v38 = vld [vmem:[#allocation57_spill] sm:$0xff] }
 0x3d1   :  { %v5315_v15 = vsel %vm5268_vm8, %v14108_v19, %v5314_v11  ;;  %v1857_v3 = vadd.f32 %v9464_v39, %v10796_v40  ;;  %v9467_v60 = vadd.f32 %v11586_v43, %v11579_v36  ;;  %v5302_v57 = vsel %vm5270_vm9, %v14109_v38, %v5301_v16 }
 0x3d2   :  { %v5316_v5 = vsel %vm5270_vm9, %v14110_v23, %v5315_v15  ;;  %v1858_v28 = vadd.f32 %v9465_v24, %v10799_v41  ;;  %v1859_v49 = vadd.f32 %v9466_v9, %v10796_v40  ;;  %v5303_v58 = vsel %vm5272_vm10, %v5114_v18, %v5302_v57 }
 0x3d3   :  { %v5317_v46 = vsel %vm5272_vm10, %v5130_v2, %v5316_v5  ;;  %v1860_v63 = vadd.f32 %v9467_v60, %v10799_v41  ;;  %v9468_v39 = vadd.f32 %v11594_v44, %v11584_v48  ;;  %v5304_v36 = vsel %vm5274_vm11, %v5116_v42, %v5303_v58 }
 0x3d4   :  { %v5318_v43 = vsel %vm5274_vm11, %v5132_v6, %v5317_v46  ;;  %v2225_v59 = vcombine.low %v1857_v3, %v1858_v28  ;;  %v2226_v26 = vcombine.high %v1857_v3, %v1858_v28  ;;  %v5305_v11 = vsel %vm5276_vm12, %v5118_v21, %v5304_v36 }
 0x3d5   :  { %v5319_v32 = vsel %vm5276_vm12, %v5134_v53, %v5318_v43  ;;  %v2243_v24 = vcombine.low %v1859_v49, %v1860_v63  ;;  %v2244_v9 = vcombine.high %v1859_v49, %v1860_v63  ;;  %v11974_v48 = vadd.f32 %v9468_v39, %v10796_v40 }
 0x3d6   :  { %v11969_v18 = vpack.c.b16 %v5319_v32, %v5305_v11  ;;  %v2233_v2 = vrot.slane %v2225_v59, %v10804_v54  ;;  %v2240_v37 = vrot.slane %v2226_v26, %v10804_v54  ;;  %v11980_v21 = vadd.f32 %v11596_v27, %v11590_v62  ;;  %v11993_v27 = vpop.f32.mrb[46].mxu0 }
 0x3d7   :  { %v2251_v44 = vrot.slane %v2243_v24, %v10804_v54  ;;  %v2258_v42 = vrot.slane %v2244_v9, %v10804_v54  ;;  %v11984_v6 = vadd.f32 %v11648_v50, %v11620_v61  ;;  %v11997_v5 = vpop.f32.mrb[47].mxu0 }
 0x3d8   :  { %14111 = vst [vmem:[#allocation49_spill] sm:$0xff] %v11969_v18  ;;  %5600 = vmatmul.mubr.bf16.gmra.mrb[36].mxu1 %v11969_v18  ;;  %v2241_v53 = vcombine.high %v2233_v2, %v2233_v2  ;;  %v2242_v16 = vcombine.high %v2240_v37, %v2240_v37  ;;  %v2901_v19 = vrot.slane %v2233_v2, %v10804_v54 }
 0x3d9   :  { %v2917_v15 = vrot.slane %v2240_v37, %v10804_v54  ;;  %v2259_v3 = vcombine.high %v2251_v44, %v2251_v44  ;;  %v2260_v60 = vcombine.high %v2258_v42, %v2258_v42  ;;  %v2933_v38 = vrot.slane %v2251_v44, %v10804_v54 }
 0x3da   :  { %v11991_v57 = vrot.slane %v2258_v42, %v10804_v54  ;;  %v2902_v62 = vcombine.high %v2901_v19, %v2901_v19  ;;  %v2909_v61 = vrot.slane %v2241_v53, %v10804_v54  ;;  %v2925_v23 = vrot.slane %v2242_v16, %v10804_v54 }
 0x3db   :  { %v2918_v50 = vcombine.high %v2917_v15, %v2917_v15  ;;  %v4264_v28 = vsel %vm3311_vm5, %v2901_v19, -inf  ;;  %v4292_v49 = vsel %vm3311_vm5, %v2917_v15, -inf  ;;  %v2934_v58 = vcombine.high %v2933_v38, %v2933_v38 }
 0x3dc   :  { %v2941_v46 = vrot.slane %v2259_v3, %v10804_v54  ;;  %v2910_v63 = vcombine.high %v2909_v61, %v2909_v61  ;;  %v2926_v39 = vcombine.high %v2925_v23, %v2925_v23  ;;  %v4265_v36 = vrot.slane %v4264_v28, 4 }
 0x3dd   :  { %v4271_v43 = vsel %vm3311_vm5, %v2902_v62, -inf  ;;  %v4278_v26 = vsel %vm3311_vm5, %v2909_v61, -inf  ;;  %v4293_v11 = vrot.slane %v4292_v49, 4  ;;  %v4299_v32 = vsel %vm3311_vm5, %v2918_v50, -inf }
 0x3de   :  { %v4272_v59 = vrot.slane %v4271_v43, 4  ;;  %v4266_v24 = vmax.f32 %v4264_v28, %v4265_v36  ;;  %v4279_v9 = vrot.slane %v4278_v26, 4  ;;  %v4285_v2 = vsel %vm3311_vm5, %v2910_v63, -inf }
 0x3df   :  { %v4300_v37 = vrot.slane %v4299_v32, 4  ;;  %v4286_v42 = vrot.slane %v4285_v2, 4  ;;  %v4294_v53 = vmax.f32 %v4292_v49, %v4293_v11  ;;  %v4306_v16 = vsel %vm3311_vm5, %v2925_v23, -inf  ;;  %v9759_v23 = vld [vmem:[#allocation6 + $0x80] sm:$0xff]  }
 0x3e0   :  { %v4273_v44 = vmax.f32 %v4271_v43, %v4272_v59  ;;  %v4267_v19 = vrot.slane %v4266_v24, 2  ;;  %v4280_v15 = vmax.f32 %v4278_v26, %v4279_v9  ;;  %v4307_v62 = vrot.slane %v4306_v16, 4 }
 0x3e1   :  { %v12007_v3 = vmax.f32 %v4299_v32, %v4300_v37  ;;  %v12009_v61 = vmax.f32 %v4285_v2, %v4286_v42  ;;  %v4295_v35 = vrot.slane %v4294_v53, 2  ;;  %v12012_v50 = vsel %vm3311_vm5, %v2926_v39, -inf }
 0x3e2   :  { %v4274_v14 = vrot.slane %v4273_v44, 2  ;;  %v4268_v28 = vmax.f32 %v4266_v24, %v4267_v19  ;;  %v4281_v63 = vrot.slane %v4280_v15, 2  ;;  %v12015_v43 = vmax.f32 %v4306_v16, %v4307_v62 }
 0x3e3   :  { %v12020_v59 = vmax.f32 %v4294_v53, %v4295_v35  ;;  %v2942_v9 = vcombine.high %v2941_v46, %v2941_v46  ;;  %v2950_v39 = vcombine.high %v11991_v57, %v11991_v57  ;;  %v2957_v2 = vrot.slane %v2260_v60, %v10804_v54 }
 0x3e4   :  { %14112 = vst [vmem:[#allocation50_spill] sm:$0xff] %v12015_v43  ;;  %v12017_v49 = vmax.f32 %v4273_v44, %v4274_v14  ;;  %v4269_v11 = vrot.slane %v4268_v28, 1  ;;  %v12023_v32 = vmax.f32 %v4280_v15, %v4281_v63  ;;  %v4320_v14 = vsel %vm3311_vm5, %v2933_v38, -inf }
 0x3e5   :  { %14113 = vst [vmem:[#allocation59_spill] sm:$0xff] %v12020_v59  ;;  %v4327_v37 = vsel %vm3311_vm5, %v2934_v58, -inf  ;;  %v4321_v35 = vrot.slane %v4320_v14, 4  ;;  %v4334_v53 = vsel %vm3311_vm5, %v2941_v46, -inf  ;;  %v2958_v16 = vcombine.high %v2957_v2, %v2957_v2  ;;  %v9758_v58 = vld [vmem:[#allocation6 + $0xc0] sm:$0xff]  }
 0x3e6   :  { %14114 = vst [vmem:[#allocation64_spill] sm:$0xff] %v12023_v32  ;;  %v12031_v44 = vmax.f32 %v4268_v28, %v4269_v11  ;;  %v4328_v42 = vrot.slane %v4327_v37, 4  ;;  %v4335_v19 = vrot.slane %v4334_v53, 4  ;;  %v4341_v15 = vsel %vm3311_vm5, %v2942_v9, -inf  ;;  %9283 = vmatprep.subr.bf16.mxu1 %v9758_v58 }
 0x3e7   :  { %v4348_v62 = vsel %vm3311_vm5, %v11991_v57, -inf  ;;  %v4322_v63 = vmax.f32 %v4320_v14, %v4321_v35  ;;  %v4342_v26 = vrot.slane %v4341_v15, 4  ;;  %v4355_v36 = vsel %vm3311_vm5, %v2950_v39, -inf  ;;  %9284 = vmatpush3.bf16.msra.mxu1 %v9759_v23 }
 0x3e8   :  { %14115 = vst [vmem:[#allocation73_spill] sm:$0xff] %v12031_v44  ;;  %v4329_v38 = vmax.f32 %v4327_v37, %v4328_v42  ;;  %v4336_v28 = vmax.f32 %v4334_v53, %v4335_v19  ;;  %v4349_v11 = vrot.slane %v4348_v62, 4  ;;  %v4362_v46 = vsel %vm3311_vm5, %v2957_v2, -inf }
 0x3e9   :  { %v4323_v24 = vrot.slane %v4322_v63, 2  ;;  %v4343_v9 = vmax.f32 %v4341_v15, %v4342_v26  ;;  %v4356_v52 = vrot.slane %v4355_v36, 4  ;;  %v4363_v22 = vrot.slane %v4362_v46, 4 }
 0x3ea   :  { %v4330_v18 = vrot.slane %v4329_v38, 2  ;;  %v4337_v57 = vrot.slane %v4336_v28, 2  ;;  %v4350_v31 = vmax.f32 %v4348_v62, %v4349_v11  ;;  %v4369_v14 = vsel %vm3311_vm5, %v2958_v16, -inf }
 0x3eb   :  { %v4324_v37 = vmax.f32 %v4322_v63, %v4323_v24  ;;  %v4344_v42 = vrot.slane %v4343_v9, 2  ;;  %v4357_v53 = vmax.f32 %v4355_v36, %v4356_v52  ;;  %v4364_v60 = vmax.f32 %v4362_v46, %v4363_v22 }
 0x3ec   :  { %v4331_v35 = vmax.f32 %v4329_v38, %v4330_v18  ;;  %v4338_v19 = vmax.f32 %v4336_v28, %v4337_v57  ;;  %v4351_v39 = vrot.slane %v4350_v31, 2  ;;  %v4370_v2 = vrot.slane %v4369_v14, 4 }
 0x3ed   :  { %v4325_v44 = vrot.slane %v4324_v37, 1  ;;  %v4345_v43 = vmax.f32 %v4343_v9, %v4344_v42  ;;  %v4358_v26 = vrot.slane %v4357_v53, 2  ;;  %v4365_v59 = vrot.slane %v4364_v60, 2 }
 0x3ee   :  { %v4332_v7 = vrot.slane %v4331_v35, 1  ;;  %v4339_v15 = vrot.slane %v4338_v19, 1  ;;  %v4352_v58 = vmax.f32 %v4350_v31, %v4351_v39  ;;  %v4371_v62 = vmax.f32 %v4369_v14, %v4370_v2 }
 0x3ef   :  { %v4326_v11 = vmax.f32 %v4324_v37, %v4325_v44  ;;  %v4346_v16 = vrot.slane %v4345_v43, 1  ;;  %v4359_v23 = vmax.f32 %v4357_v53, %v4358_v26  ;;  %v4366_v63 = vmax.f32 %v4364_v60, %v4365_v59 }
 0x3f0   :  { %v4333_v32 = vmax.f32 %v4331_v35, %v4332_v7  ;;  %v4340_v24 = vmax.f32 %v4338_v19, %v4339_v15  ;;  %v4353_v18 = vrot.slane %v4352_v58, 1  ;;  %v4372_v52 = vrot.slane %v4371_v62, 2 }
 0x3f1   :  { %v4347_v36 = vmax.f32 %v4345_v43, %v4346_v16  ;;  %v4360_v38 = vrot.slane %v4359_v23, 1  ;;  %v4800_v22 = vpack.c.bf16 %v4326_v11, %v4326_v11  ;;  %v4367_v57 = vrot.slane %v4366_v63, 1 }
 0x3f2   :  { %v4801_v28 = vpack.c.bf16 %v4333_v32, %v4333_v32  ;;  %v4354_v46 = vmax.f32 %v4352_v58, %v4353_v18  ;;  %v12042_v9 = vmax.f32 %v4371_v62, %v4372_v52  ;;  %v4802_v42 = vpack.c.bf16 %v4340_v24, %v4340_v24 }
 0x3f3   :  { %v4361_v31 = vmax.f32 %v4359_v23, %v4360_v38  ;;  %v4803_v39 = vpack.c.bf16 %v4347_v36, %v4347_v36  ;;  %v12044_v14 = vunpack.c.l.b16 %v4800_v22  ;;  %v12048_v44 = vmax.f32 %v4366_v63, %v4367_v57  ;;  %v14126_v63 = vld [vmem:[#allocation83_spill] sm:$0xff] }
 0x3f4   :  { %v12046_v7 = vunpack.c.l.b16 %v4801_v28  ;;  %v4804_v60 = vpack.c.bf16 %v4354_v46, %v4354_v46  ;;  %v12051_v43 = vunpack.c.l.b16 %v4802_v42  ;;  %v1862_v35 = vadd.f32 %v11980_v21, %v10799_v41 }
 0x3f5   :  { %14116 = vst [vmem:[#allocation62_spill] sm:$0xff] %v12044_v14  ;;  %14117 = vst [vmem:[#allocation54_spill] sm:$0xff] %v12048_v44  ;;  %v4805_v37 = vpack.c.bf16 %v4361_v31, %v4361_v31  ;;  %v12053_v32 = vunpack.c.l.b16 %v4803_v39  ;;  %v1863_v53 = vadd.f32 %v11984_v6, %v10796_v40  ;;  %v9471_v26 = vadd.f32 %v11653_v51, %v11634_v45 }
 0x3f6   :  { %14118 = vst [vmem:[#allocation55_spill] sm:$0xff] %v12051_v43  ;;  %v12061_v2 = vunpack.c.l.b16 %v4804_v60  ;;  %v9472_v15 = vadd.f32 %v11665_v8, %v11641_v25  ;;  %v2261_v62 = vcombine.low %v11974_v48, %v1862_v35  ;;  %v2262_v21 = vcombine.high %v11974_v48, %v1862_v35 }
 0x3f7   :  { %14119 = vst [vmem:[#allocation52_spill] sm:$0xff] %v12053_v32  ;;  %v12067_v58 = vunpack.c.l.b16 %v4805_v37  ;;  %v14122_v11 = vrot.slane %v11303_v20, 1  ;;  %v1864_v16 = vadd.f32 %v9471_v26, %v10799_v41  ;;  %v14123_v45 = vrot.slane %v11361_v55, 1 }
 0x3f8   :  { %14120 = vst [vmem:[#allocation67_spill] sm:$0xff] %v12061_v2  ;;  %v12078_v23 = vadd.f32 %v9472_v15, %v10796_v40  ;;  %v14124_v51 = vrot.slane %v11350_v10, 2  ;;  %v2269_v48 = vrot.slane %v2261_v62, %v10804_v54  ;;  %v2276_v24 = vrot.slane %v2262_v21, %v10804_v54 }
 0x3f9   :  { %14121 = vst [vmem:[#allocation68_spill] sm:$0xff] %v12067_v58  ;;  %v12074_v6 = vmax.f32 %v11303_v20, %v14122_v11  ;;  %v12083_v25 = vmax.f32 %v11361_v55, %v14123_v45  ;;  %v14125_v20 = vrot.slane %v11352_v0, 2  ;;  %v14127_v52 = vrot.slane %v14126_v63, 4 }
 0x3fa   :  { %v3841_v8 = vmax.f32 %v11350_v10, %v14124_v51  ;;  %v2279_v55 = vcombine.low %v1863_v53, %v1864_v16  ;;  %v2280_v38 = vcombine.high %v1863_v53, %v1864_v16  ;;  %v14128_v28 = vrot.slane %v11397_v34, 1 }
 0x3fb   :  { %v12093_v18 = vmax.f32 %v11352_v0, %v14125_v20  ;;  %v12098_v36 = vmax.f32 %v14126_v63, %v14127_v52  ;;  %v2277_v46 = vcombine.high %v2269_v48, %v2269_v48  ;;  %v2278_v57 = vcombine.high %v2276_v24, %v2276_v24 }
 0x3fc   :  { %v3842_v22 = vrot.slane %v3841_v8, 1  ;;  %v12103_v10 = vmax.f32 %v11397_v34, %v14128_v28  ;;  %v2965_v42 = vrot.slane %v2269_v48, %v10804_v54  ;;  %v2981_v0 = vrot.slane %v2276_v24, %v10804_v54 }
 0x3fd   :  { %v2287_v31 = vrot.slane %v2279_v55, %v10804_v54  ;;  %v2294_v39 = vrot.slane %v2280_v38, %v10804_v54  ;;  %v3856_v37 = vrot.slane %v12093_v18, 1  ;;  %v2973_v53 = vrot.slane %v2277_v46, %v10804_v54 }
 0x3fe   :  { %v12109_v60 = vmax.f32 %v3841_v8, %v3842_v22  ;;  %v2966_v35 = vcombine.high %v2965_v42, %v2965_v42  ;;  %v2982_v26 = vcombine.high %v2981_v0, %v2981_v0  ;;  %v2989_v34 = vrot.slane %v2278_v57, %v10804_v54 }
 0x3ff   :  { %v4376_v15 = vsel %vm3311_vm5, %v2965_v42, -inf  ;;  %v4404_v62 = vsel %vm3311_vm5, %v2981_v0, -inf  ;;  %v2295_v21 = vcombine.high %v2287_v31, %v2287_v31  ;;  %v2296_v11 = vcombine.high %v2294_v39, %v2294_v39 }
 0x400   :  { %v2974_v16 = vcombine.high %v2973_v53, %v2973_v53  ;;  %v2990_v45 = vcombine.high %v2989_v34, %v2989_v34  ;;  %v4377_v51 = vrot.slane %v4376_v15, 4  ;;  %v4383_v8 = vsel %vm3311_vm5, %v2966_v35, -inf }
 0x401   :  { %v4384_v48 = vrot.slane %v4383_v8, 4  ;;  %v4390_v24 = vsel %vm3311_vm5, %v2973_v53, -inf  ;;  %v4405_v20 = vrot.slane %v4404_v62, 4  ;;  %v4411_v63 = vsel %vm3311_vm5, %v2982_v26, -inf }
 0x402   :  { %v4378_v52 = vmax.f32 %v4376_v15, %v4377_v51  ;;  %v4391_v55 = vrot.slane %v4390_v24, 4  ;;  %v4397_v38 = vsel %vm3311_vm5, %v2974_v16, -inf  ;;  %v4412_v22 = vrot.slane %v4411_v63, 4  ;;  %v9760_v15 = vld [vmem:[#allocation6 + $0xc8] sm:$0xff]   ;;  %v9762_v51 = vld [vmem:[#allocation6 + $0xd0] sm:$0xff]  }
 0x403   :  { %v4385_v28 = vmax.f32 %v4383_v8, %v4384_v48  ;;  %v4398_v46 = vrot.slane %v4397_v38, 4  ;;  %v4406_v57 = vmax.f32 %v4404_v62, %v4405_v20  ;;  %v4418_v42 = vsel %vm3311_vm5, %v2989_v34, -inf  ;;  %v9761_v16 = vld [vmem:[#allocation6 + $0x88] sm:$0xff]   ;;  %9285 = vmatprep.subr.bf16.mxu1 %v9760_v15 }
 0x404   :  { %v4379_v0 = vrot.slane %v4378_v52, 2  ;;  %v4392_v19 = vmax.f32 %v4390_v24, %v4391_v55  ;;  %v12121_v59 = vmax.f32 %v4411_v63, %v4412_v22  ;;  %v4419_v35 = vrot.slane %v4418_v42, 4  ;;  %9286 = vmatpush3.bf16.msra.mxu1 %v9761_v16 }
 0x405   :  { %v4386_v2 = vrot.slane %v4385_v28, 2  ;;  %v12123_v53 = vmax.f32 %v4397_v38, %v4398_v46  ;;  %v4407_v43 = vrot.slane %v4406_v57, 2  ;;  %v12126_v26 = vsel %vm3311_vm5, %v2990_v45, -inf  ;;  %v9763_v46 = vld [vmem:[#allocation6 + $0x90] sm:$0xff]   ;;  %9287 = vmatprep.subr.bf16.mxu1 %v9762_v51 }
 0x406   :  { %v4380_v8 = vmax.f32 %v4378_v52, %v4379_v0  ;;  %v4393_v48 = vrot.slane %v4392_v19, 2  ;;  %v12129_v34 = vmax.f32 %v4418_v42, %v4419_v35  ;;  %v2997_v22 = vrot.slane %v2287_v31, %v10804_v54 }
 0x407   :  { %v12131_v24 = vmax.f32 %v4385_v28, %v4386_v2  ;;  %v12134_v63 = vmax.f32 %v4406_v57, %v4407_v43  ;;  %v3005_v52 = vrot.slane %v2295_v21, %v10804_v54  ;;  %v3013_v2 = vrot.slane %v2294_v39, %v10804_v54  ;;  %v9764_v57 = vld [vmem:[#allocation6 + $0xd8] sm:$0xff]  }
 0x408   :  { %14129 = vst [vmem:[#allocation66_spill] sm:$0xff] %v12129_v34  ;;  %v4381_v45 = vrot.slane %v4380_v8, 1  ;;  %v12137_v38 = vmax.f32 %v4392_v19, %v4393_v48  ;;  %v3021_v28 = vrot.slane %v2296_v11, %v10804_v54  ;;  %v12145_v43 = vmax.f32 %v12093_v18, %v3856_v37  ;;  %9288 = vmatpush3.bf16.msra.mxu1 %v9763_v46 }
 0x409   :  { %14130 = vst [vmem:[#allocation44_spill] sm:$0xff] %v12134_v63  ;;  %v2998_v19 = vcombine.high %v2997_v22, %v2997_v22  ;;  %v3006_v35 = vcombine.high %v3005_v52, %v3005_v52  ;;  %v4432_v31 = vsel %vm3311_vm5, %v2997_v22, -inf  ;;  %v3014_v21 = vcombine.high %v3013_v2, %v3013_v2  ;;  %9289 = vmatprep.subr.bf16.mxu1 %v9764_v57 }
 0x40a   :  { %14131 = vst [vmem:[#allocation46_spill] sm:$0xff] %v12137_v38  ;;  %v12147_v0 = vmax.f32 %v4380_v8, %v4381_v45  ;;  %v3022_v15 = vcombine.high %v3021_v28, %v3021_v28  ;;  %v4433_v16 = vrot.slane %v4432_v31, 4  ;;  %v4446_v48 = vsel %vm3311_vm5, %v3005_v52, -inf }
 0x40b   :  { %v4439_v11 = vsel %vm3311_vm5, %v2998_v19, -inf  ;;  %v4447_v18 = vrot.slane %v4446_v48, 4  ;;  %v4453_v37 = vsel %vm3311_vm5, %v3006_v35, -inf  ;;  %v4460_v55 = vsel %vm3311_vm5, %v3013_v2, -inf }
 0x40c   :  { %14132 = vst [vmem:[#allocation58_spill] sm:$0xff] %v12147_v0  ;;  %v4434_v51 = vmax.f32 %v4432_v31, %v4433_v16  ;;  %v4440_v8 = vrot.slane %v4439_v11, 4  ;;  %v4454_v45 = vrot.slane %v4453_v37, 4  ;;  %v4461_v62 = vrot.slane %v4460_v55, 4 }
 0x40d   :  { %v4448_v22 = vmax.f32 %v4446_v48, %v4447_v18  ;;  %v4467_v20 = vsel %vm3311_vm5, %v3014_v21, -inf  ;;  %v4474_v52 = vsel %vm3311_vm5, %v3021_v28, -inf  ;;  %v4481_v46 = vsel %vm3311_vm5, %v3022_v15, -inf }
 0x40e   :  { %v4435_v42 = vrot.slane %v4434_v51, 2  ;;  %v4441_v39 = vmax.f32 %v4439_v11, %v4440_v8  ;;  %v4455_v14 = vmax.f32 %v4453_v37, %v4454_v45  ;;  %v4468_v19 = vrot.slane %v4467_v20, 4 }
 0x40f   :  { %v4449_v0 = vrot.slane %v4448_v22, 2  ;;  %v4462_v44 = vmax.f32 %v4460_v55, %v4461_v62  ;;  %v4475_v35 = vrot.slane %v4474_v52, 4  ;;  %v4482_v63 = vrot.slane %v4481_v46, 4 }
 0x410   :  { %v4436_v31 = vmax.f32 %v4434_v51, %v4435_v42  ;;  %v4442_v16 = vrot.slane %v4441_v39, 2  ;;  %v4456_v34 = vrot.slane %v4455_v14, 2  ;;  %v4469_v2 = vmax.f32 %v4467_v20, %v4468_v19  ;;  %v9765_v42 = vld [vmem:[#allocation6 + $0x98] sm:$0xff]  }
 0x411   :  { %v4450_v57 = vmax.f32 %v4448_v22, %v4449_v0  ;;  %v4463_v48 = vrot.slane %v4462_v44, 2  ;;  %v4476_v18 = vmax.f32 %v4474_v52, %v4475_v35  ;;  %v4483_v45 = vmax.f32 %v4481_v46, %v4482_v63  ;;  %9290 = vmatpush3.bf16.msra.mxu1 %v9765_v42 }
 0x412   :  { %v4437_v21 = vrot.slane %v4436_v31, 1  ;;  %v4443_v38 = vmax.f32 %v4441_v39, %v4442_v16  ;;  %v4457_v28 = vmax.f32 %v4455_v14, %v4456_v34  ;;  %v4470_v58 = vrot.slane %v4469_v2, 2 }
 0x413   :  { %v4451_v11 = vrot.slane %v4450_v57, 1  ;;  %v4464_v37 = vmax.f32 %v4462_v44, %v4463_v48  ;;  %v4477_v8 = vrot.slane %v4476_v18, 2  ;;  %v4484_v0 = vrot.slane %v4483_v45, 2 }
 0x414   :  { %v4438_v62 = vmax.f32 %v4436_v31, %v4437_v21  ;;  %v4444_v55 = vrot.slane %v4443_v38, 1  ;;  %v4458_v33 = vrot.slane %v4457_v28, 1  ;;  %v4471_v15 = vmax.f32 %v4469_v2, %v4470_v58 }
 0x415   :  { %v4452_v51 = vmax.f32 %v4450_v57, %v4451_v11  ;;  %v4465_v32 = vrot.slane %v4464_v37, 1  ;;  %v4478_v20 = vmax.f32 %v4476_v18, %v4477_v8  ;;  %v12159_v39 = vmax.f32 %v4483_v45, %v4484_v0  ;;  %v14137_v11 = vld [vmem:[#allocation98_spill] sm:$0xff]  ;;  %v14139_v45 = vld [vmem:[#allocation35_spill] sm:$0xff] }
 0x416   :  { %v4445_v22 = vmax.f32 %v4443_v38, %v4444_v55  ;;  %v4459_v52 = vmax.f32 %v4457_v28, %v4458_v33  ;;  %v4472_v19 = vrot.slane %v4471_v15, 1  ;;  %v4816_v35 = vpack.c.bf16 %v4438_v62, %v4438_v62 }
 0x417   :  { %v4466_v14 = vmax.f32 %v4464_v37, %v4465_v32  ;;  %v4479_v34 = vrot.slane %v4478_v20, 1  ;;  %v4818_v44 = vpack.c.bf16 %v4452_v51, %v4452_v51  ;;  %v3868_v18 = vrot.slane %v12098_v36, 2  ;;  %v14141_v51 = vld [vmem:[#allocation96_spill] sm:$0xff] }
 0x418   :  { %v4473_v63 = vmax.f32 %v4471_v15, %v4472_v19  ;;  %v4817_v46 = vpack.c.bf16 %v4445_v22, %v4445_v22  ;;  %v4819_v31 = vpack.c.bf16 %v4459_v52, %v4459_v52  ;;  %v12161_v16 = vunpack.c.l.b16 %v4816_v35  ;;  %v14143_v22 = vld [vmem:[#allocation34_spill] sm:$0xff] }
 0x419   :  { %v12163_v58 = vmax.f32 %v4478_v20, %v4479_v34  ;;  %v4820_v57 = vpack.c.bf16 %v4466_v14, %v4466_v14  ;;  %v12166_v38 = vunpack.c.l.b16 %v4818_v44  ;;  %v14138_v37 = vrot.slane %v14137_v11, 1 }
 0x41a   :  { %14133 = vst [vmem:[#allocation61_spill] sm:$0xff] %v12161_v16  ;;  %v4821_v33 = vpack.c.bf16 %v4473_v63, %v4473_v63  ;;  %v12168_v48 = vunpack.c.l.b16 %v4817_v46  ;;  %v12170_v32 = vunpack.c.l.b16 %v4819_v31  ;;  %v14140_v62 = vrot.slane %v14139_v45, 2 }
 0x41b   :  { %14134 = vst [vmem:[#allocation74_spill] sm:$0xff] %v12163_v58  ;;  %14135 = vst [vmem:[#allocation48_spill] sm:$0xff] %v12166_v38  ;;  %v12175_v28 = vunpack.c.l.b16 %v4820_v57  ;;  %v3941_v8 = vmax.f32 %v14137_v11, %v14138_v37  ;;  %v3869_v42 = vmax.f32 %v12098_v36, %v3868_v18  ;;  %v14142_v20 = vrot.slane %v14141_v51, 2  ;;  %v9766_v37 = vld [vmem:[#allocation6 + $0xe0] sm:$0xff]  }
 0x41c   :  { %v3953_v55 = vmax.f32 %v14139_v45, %v14140_v62  ;;  %v12183_v15 = vunpack.c.l.b16 %v4821_v33  ;;  %v14144_v52 = vrot.slane %v14143_v22, 4  ;;  %v4727_v14 = vpack.c.bf16 %v12074_v6, %v12074_v6  ;;  %v9767_v6 = vld [vmem:[#allocation6 + $0xa0] sm:$0xff]   ;;  %v9768_v45 = vld [vmem:[#allocation6 + $0xe8] sm:$0xff]   ;;  %9291 = vmatprep.subr.bf16.mxu1 %v9766_v37  ;;  %v14152_v37 = vld [vmem:[#allocation94_spill] sm:$0xff] }
 0x41d   :  { %14136 = vst [vmem:[#allocation60_spill] sm:$0xff] %v12175_v28  ;;  %v3967_v0 = vmax.f32 %v14141_v51, %v14142_v20  ;;  %v4729_v34 = vpack.c.bf16 %v12083_v25, %v12083_v25  ;;  %v4731_v44 = vpack.c.bf16 %v12109_v60, %v12109_v60  ;;  %v3870_v63 = vrot.slane %v3869_v42, 1  ;;  %9292 = vmatpush3.bf16.msra.mxu1 %v9767_v6  ;;  %v14146_v28 = vld [vmem:[#allocation82_spill] sm:$0xff] }
 0x41e   :  { %v3979_v19 = vmax.f32 %v14143_v22, %v14144_v52  ;;  %v3954_v35 = vrot.slane %v3953_v55, 1  ;;  %v4733_v31 = vpack.c.bf16 %v12145_v43, %v12145_v43  ;;  %v4743_v33 = vpack.c.bf16 %v12103_v10, %v12103_v10  ;;  %v9769_v10 = vld [vmem:[#allocation6 + $0xa8] sm:$0xff]   ;;  %9293 = vmatprep.subr.bf16.mxu1 %v9768_v45 }
 0x41f   :  { %v3968_v36 = vrot.slane %v3967_v0, 1  ;;  %v4745_v18 = vpack.c.bf16 %v3941_v8, %v3941_v8  ;;  %v5143_v11 = vunpack.c.l.b16 %v4727_v14  ;;  %v3871_v62 = vmax.f32 %v3869_v42, %v3870_v63  ;;  %v14145_v14 = vld [vmem:[#allocation78_spill] sm:$0xff]  ;;  %v14147_v42 = vld [vmem:[#allocation91_spill] sm:$0xff] }
 0x420   :  { %v3980_v46 = vrot.slane %v3979_v19, 2  ;;  %v3955_v57 = vmax.f32 %v3953_v55, %v3954_v35  ;;  %v5145_v20 = vunpack.c.l.b16 %v4729_v34  ;;  %v5147_v22 = vunpack.c.l.b16 %v4731_v44  ;;  %v14149_v34 = vld [vmem:[#allocation41_spill] sm:$0xff]  ;;  %v14150_v44 = vld [vmem:[#allocation70_spill] sm:$0xff] }
 0x421   :  { %v3969_v25 = vmax.f32 %v3967_v0, %v3968_v36  ;;  %v5149_v52 = vunpack.c.l.b16 %v4733_v31  ;;  %v5159_v21 = vunpack.c.l.b16 %v4743_v33  ;;  %v4735_v43 = vpack.c.bf16 %v3871_v62, %v3871_v62  ;;  %v14148_v0 = vld [vmem:[#allocation93_spill] sm:$0xff]  ;;  %v14153_v62 = vld [vmem:[#allocation84_spill] sm:$0xff]  ;;  %9294 = vmatpush3.bf16.msra.mxu1 %v9769_v10 }
 0x422   :  { %v3981_v51 = vmax.f32 %v3979_v19, %v3980_v46  ;;  %v4747_v60 = vpack.c.bf16 %v3955_v57, %v3955_v57  ;;  %v5161_v35 = vunpack.c.l.b16 %v4745_v18  ;;  %v5334_v38 = vsel %vm5264_vm6, %v14146_v28, %v14145_v14  ;;  %v14151_v57 = vld [vmem:[#allocation81_spill] sm:$0xff] }
 0x423   :  { %v4749_v55 = vpack.c.bf16 %v3969_v25, %v3969_v25  ;;  %v5348_v19 = vsel %vm5264_vm6, %v14148_v0, %v14147_v42  ;;  %v9473_v63 = vadd.f32 %v14150_v44, %v14149_v34  ;;  %v5151_v46 = vunpack.c.l.b16 %v4735_v43  ;;  %v14155_v44 = vld [vmem:[#allocation86_spill] sm:$0xff] }
 0x424   :  { %v3982_v2 = vrot.slane %v3981_v51, 1  ;;  %v5163_v8 = vunpack.c.l.b16 %v4747_v60  ;;  %v5335_v33 = vsel %vm5266_vm7, %v14151_v57, %v5334_v38  ;;  %v5349_v6 = vsel %vm5266_vm7, %v14152_v37, %v5348_v19 }
 0x425   :  { %v5165_v31 = vunpack.c.l.b16 %v4749_v55  ;;  %v5336_v18 = vsel %vm5268_vm8, %v5143_v11, %v5335_v33  ;;  %v1866_v28 = vadd.f32 %v9473_v63, %v10799_v41  ;;  %v3835_v25 = vrot.slane %v14153_v62, 1  ;;  %v14156_v63 = vld [vmem:[#allocation99_spill] sm:$0xff] }
 0x426   :  { %v3983_v36 = vmax.f32 %v3981_v51, %v3982_v2  ;;  %v5337_v14 = vsel %vm5270_vm9, %v5145_v20, %v5336_v18  ;;  %v5350_v45 = vsel %vm5268_vm8, %v5159_v21, %v5349_v6  ;;  %v14154_v2 = vld [vmem:[#allocation85_spill] sm:$0xff]  ;;  %v14158_v6 = vld [vmem:[#allocation95_spill] sm:$0xff] }
 0x427   :  { %v3849_v51 = vrot.slane %v14154_v2, 1  ;;  %v5338_v43 = vsel %vm5272_vm10, %v5147_v22, %v5337_v14  ;;  %v5351_v38 = vsel %vm5270_vm9, %v5161_v35, %v5350_v45  ;;  %v2297_v11 = vcombine.low %v12078_v23, %v1866_v28 }
 0x428   :  { %v4751_v60 = vpack.c.bf16 %v3983_v36, %v3983_v36  ;;  %v2298_v55 = vcombine.high %v12078_v23, %v1866_v28  ;;  %v5339_v0 = vsel %vm5274_vm11, %v5149_v52, %v5338_v43  ;;  %v5352_v19 = vsel %vm5272_vm10, %v5163_v8, %v5351_v38 }
 0x429   :  { %v12227_v20 = vmax.f32 %v14153_v62, %v3835_v25  ;;  %v5340_v21 = vsel %vm5276_vm12, %v5151_v46, %v5339_v0  ;;  %v5353_v10 = vsel %vm5274_vm11, %v5165_v31, %v5352_v19  ;;  %v2305_v22 = vrot.slane %v2297_v11, %v10804_v54 }
 0x42a   :  { %v5167_v42 = vunpack.c.l.b16 %v4751_v60  ;;  %v2312_v35 = vrot.slane %v2298_v55, %v10804_v54  ;;  %v12235_v23 = vmax.f32 %v14154_v2, %v3849_v51  ;;  %v3861_v52 = vrot.slane %v14155_v44, 2 }
 0x42b   :  { %v3947_v8 = vrot.slane %v14156_v63, 1  ;;  %v2313_v57 = vcombine.high %v2305_v22, %v2305_v22  ;;  %v3029_v46 = vrot.slane %v2305_v22, %v10804_v54  ;;  %v3961_v28 = vrot.slane %v14158_v6, 1 }
 0x42c   :  { %v5354_v34 = vsel %vm5276_vm12, %v5167_v42, %v5353_v10  ;;  %v2314_v33 = vcombine.high %v2312_v35, %v2312_v35  ;;  %v3045_v31 = vrot.slane %v2312_v35, %v10804_v54  ;;  %v3862_v18 = vmax.f32 %v14155_v44, %v3861_v52 }
 0x42d   :  { %v12239_v36 = vpack.c.b16 %v5354_v34, %v5340_v21  ;;  %v12245_v37 = vmax.f32 %v14156_v63, %v3947_v8  ;;  %v3030_v62 = vcombine.high %v3029_v46, %v3029_v46  ;;  %v3037_v25 = vrot.slane %v2313_v57, %v10804_v54 }
 0x42e   :  { %v3053_v60 = vrot.slane %v2314_v33, %v10804_v54  ;;  %v4488_v14 = vsel %vm3311_vm5, %v3029_v46, -inf  ;;  %v3046_v45 = vcombine.high %v3045_v31, %v3045_v31  ;;  %v4516_v51 = vsel %vm3311_vm5, %v3045_v31, -inf }
 0x42f   :  { %14157 = vst [vmem:[#allocation75_spill] sm:$0xff] %v12239_v36  ;;  %5607 = vmatprep.mubr.bf16.mxu1 %v12239_v36  ;;  %v4489_v2 = vrot.slane %v4488_v14, 4  ;;  %v3863_v43 = vrot.slane %v3862_v18, 1  ;;  %v3038_v38 = vcombine.high %v3037_v25, %v3037_v25  ;;  %v4495_v55 = vsel %vm3311_vm5, %v3030_v62, -inf }
 0x430   :  { %v3054_v11 = vcombine.high %v3053_v60, %v3053_v60  ;;  %v4502_v42 = vsel %vm3311_vm5, %v3037_v25, -inf  ;;  %v4496_v19 = vrot.slane %v4495_v55, 4  ;;  %v4517_v10 = vrot.slane %v4516_v51, 4 }
 0x431   :  { %v4490_v0 = vmax.f32 %v4488_v14, %v4489_v2  ;;  %v4503_v21 = vrot.slane %v4502_v42, 4  ;;  %v4509_v22 = vsel %vm3311_vm5, %v3038_v38, -inf  ;;  %v4523_v35 = vsel %vm3311_vm5, %v3046_v45, -inf }
 0x432   :  { %v4530_v34 = vsel %vm3311_vm5, %v3053_v60, -inf  ;;  %v12259_v44 = vsel %vm3311_vm5, %v3054_v11, -inf  ;;  %v4497_v63 = vmax.f32 %v4495_v55, %v4496_v19  ;;  %v4510_v57 = vrot.slane %v4509_v22, 4 }
 0x433   :  { %v4491_v52 = vrot.slane %v4490_v0, 2  ;;  %v4504_v8 = vmax.f32 %v4502_v42, %v4503_v21  ;;  %v4518_v33 = vmax.f32 %v4516_v51, %v4517_v10  ;;  %v4524_v46 = vrot.slane %v4523_v35, 4  ;;  %v14160_v10 = vld [vmem:[#allocation97_spill] sm:$0xff] }
 0x434   :  { %v4531_v31 = vrot.slane %v4530_v34, 4  ;;  %v4498_v14 = vrot.slane %v4497_v63, 2  ;;  %v12262_v38 = vmax.f32 %v4509_v22, %v4510_v57  ;;  %v3864_v11 = vmax.f32 %v3862_v18, %v3863_v43  ;;  %v14170_v51 = vld [vmem:[#allocation77_spill] sm:$0xff] }
 0x435   :  { %v4492_v25 = vmax.f32 %v4490_v0, %v4491_v52  ;;  %v4505_v2 = vrot.slane %v4504_v8, 2  ;;  %v4519_v45 = vrot.slane %v4518_v33, 2  ;;  %v12264_v36 = vmax.f32 %v4523_v35, %v4524_v46  ;;  %v14164_v46 = vld [vmem:[#allocation87_spill] sm:$0xff] }
 0x436   :  { %v12266_v60 = vmax.f32 %v4530_v34, %v4531_v31  ;;  %v12268_v55 = vmax.f32 %v4497_v63, %v4498_v14  ;;  %v3962_v21 = vmax.f32 %v14158_v6, %v3961_v28  ;;  %v3973_v22 = vrot.slane %v14160_v10, 2  ;;  %v9771_v14 = vld [vmem:[#allocation6 + $0xb0] sm:$0xff]   ;;  %v14172_v34 = vld [vmem:[#allocation79_spill] sm:$0xff] }
 0x437   :  { %v4493_v16 = vrot.slane %v4492_v25, 1  ;;  %v12270_v42 = vmax.f32 %v4504_v8, %v4505_v2  ;;  %v12273_v19 = vmax.f32 %v4518_v33, %v4519_v45  ;;  %v4730_v18 = vpack.c.bf16 %v12227_v20, %v12227_v20  ;;  %v14168_v6 = vld [vmem:[#allocation33_spill] sm:$0xff] }
 0x438   :  { %14159 = vst [vmem:[#allocation51_spill] sm:$0xff] %v12266_v60  ;;  %v4732_v43 = vpack.c.bf16 %v12235_v23, %v12235_v23  ;;  %v3974_v52 = vmax.f32 %v14160_v10, %v3973_v22  ;;  %v4734_v63 = vpack.c.bf16 %v3864_v11, %v3864_v11  ;;  %v4746_v8 = vpack.c.bf16 %v12245_v37, %v12245_v37  ;;  %v9770_v23 = vld [vmem:[#allocation6 + $0xf0] sm:$0xff]   ;;  %v9772_v22 = vld [vmem:[#allocation6 + $0xf8] sm:$0xff]  }
 0x439   :  { %v12278_v35 = vmax.f32 %v4492_v25, %v4493_v16  ;;  %v4748_v57 = vpack.c.bf16 %v3962_v21, %v3962_v21  ;;  %v14162_v16 = vld [vmem:[#allocation76_spill] sm:$0xff]  ;;  %v14165_v20 = vpack.c.bf16 %v14164_v46, %v14164_v46  ;;  %v5146_v25 = vunpack.c.l.b16 %v4730_v18  ;;  %v14166_v10 = vld [vmem:[#allocation89_spill] sm:$0xff]  ;;  %9295 = vmatprep.subr.bf16.mxu1 %v9770_v23 }
 0x43a   :  { %v14163_v28 = vpack.c.bf16 %v14162_v16, %v14162_v16  ;;  %v3975_v2 = vrot.slane %v3974_v52, 1  ;;  %v5148_v45 = vunpack.c.l.b16 %v4732_v43  ;;  %v5150_v11 = vunpack.c.l.b16 %v4734_v63  ;;  %v14171_v46 = vld [vmem:[#allocation80_spill] sm:$0xff]  ;;  %9296 = vmatpush3.bf16.msra.mxu1 %v9771_v14 }
 0x43b   :  { %14161 = vst [vmem:[#allocation65_spill] sm:$0xff] %v12278_v35  ;;  %v5144_v31 = vunpack.c.l.b16 %v14165_v20  ;;  %v14167_v37 = vpack.c.bf16 %v14166_v10, %v14166_v10  ;;  %v14169_v62 = vpack.c.bf16 %v14168_v6, %v14168_v6  ;;  %v5164_v0 = vunpack.c.l.b16 %v4748_v57  ;;  %v14173_v63 = vld [vmem:[#allocation88_spill] sm:$0xff]  ;;  %v14175_v57 = vld [vmem:[#allocation90_spill] sm:$0xff]  ;;  %9297 = vmatprep.subr.bf16.mxu1 %v9772_v22 }
 0x43c   :  { %v5142_v33 = vunpack.c.l.b16 %v14163_v28  ;;  %v5162_v28 = vunpack.c.l.b16 %v4746_v8  ;;  %v5327_v18 = vsel %vm5264_vm6, %v14171_v46, %v14170_v51  ;;  %v3976_v20 = vmax.f32 %v3974_v52, %v3975_v2  ;;  %v14174_v35 = vld [vmem:[#allocation92_spill] sm:$0xff] }
 0x43d   :  { %v5158_v21 = vunpack.c.l.b16 %v14167_v37  ;;  %v5160_v16 = vunpack.c.l.b16 %v14169_v62  ;;  %v5328_v43 = vsel %vm5266_vm7, %v14172_v34, %v5327_v18  ;;  %v5341_v10 = vsel %vm5264_vm6, %v14174_v35, %v14173_v63  ;;  %v9773_v62 = vld [vmem:[#allocation6 + $0xb8] sm:$0xff]  }
 0x43e   :  { %v9474_v37 = vadd.f32 %v11886_v30, %v11884_v12  ;;  %v5329_v8 = vsel %vm5268_vm8, %v5142_v33, %v5328_v43  ;;  %v5342_v6 = vsel %vm5266_vm7, %v14175_v57, %v5341_v10  ;;  %v9475_v51 = vadd.f32 %v11892_v4, %v11890_v17  ;;  %9298 = vmatpush3.bf16.msra.mxu1 %v9773_v62  ;;  %v14181_v43 = vld [vmem:[#allocation25_spill] sm:$0xff]  ;;  %v14183_v62 = vld [vmem:[#allocation28_spill] sm:$0xff] }
 0x43f   :  { %v9476_v34 = vadd.f32 %v11993_v27, %v11896_v56  ;;  %v4750_v52 = vpack.c.bf16 %v3976_v20, %v3976_v20  ;;  %v5330_v35 = vsel %vm5270_vm9, %v5144_v31, %v5329_v8  ;;  %v5343_v23 = vsel %vm5268_vm8, %v5158_v21, %v5342_v6  ;;  %v14185_v6 = vld [vmem:[#allocation27_spill] sm:$0xff] }
 0x440   :  { %v1867_v12 = vadd.f32 %v9474_v37, %v10796_v40  ;;  %v5331_v30 = vsel %vm5272_vm10, %v5146_v25, %v5330_v35  ;;  %v5344_v33 = vsel %vm5270_vm9, %v5160_v16, %v5343_v23  ;;  %v1868_v14 = vadd.f32 %v9475_v51, %v10799_v41 }
 0x441   :  { %v1869_v2 = vadd.f32 %v9476_v34, %v10796_v40  ;;  %v5166_v17 = vunpack.c.l.b16 %v4750_v52  ;;  %v5332_v4 = vsel %vm5274_vm11, %v5148_v45, %v5331_v30  ;;  %v5345_v56 = vsel %vm5272_vm10, %v5162_v28, %v5344_v33  ;;  %v14176_v40 = vld [vmem:[#allocation30_spill] sm:$0xff]  ;;  %v14178_v28 = vld [vmem:[#allocation37_spill] sm:$0xff] }
 0x442   :  { %v9477_v27 = vadd.f32 %v11997_v5, %v11903_v13  ;;  %v5333_v31 = vsel %vm5276_vm12, %v5150_v11, %v5332_v4  ;;  %v5346_v21 = vsel %vm5274_vm11, %v5164_v0, %v5345_v56  ;;  %v2315_v25 = vcombine.low %v1867_v12, %v1868_v14 }
 0x443   :  { %v2316_v22 = vcombine.high %v1867_v12, %v1868_v14  ;;  %v5347_v16 = vsel %vm5276_vm12, %v5166_v17, %v5346_v21  ;;  %v14177_v18 = vrot.slane %v14176_v40, 1  ;;  %v14179_v20 = vrot.slane %v14178_v28, 1 }
 0x444   :  { %v1870_v46 = vadd.f32 %v9477_v27, %v10799_v41  ;;  %v12344_v5 = vpack.c.b16 %v5347_v16, %v5333_v31  ;;  %v2323_v0 = vrot.slane %v2315_v25, %v10804_v54  ;;  %v14182_v63 = vrot.slane %v14181_v43, 2 }
 0x445   :  { %v12337_v45 = vmax.f32 %v14176_v40, %v14177_v18  ;;  %v12342_v13 = vmax.f32 %v14178_v28, %v14179_v20  ;;  %v2330_v11 = vrot.slane %v2316_v22, %v10804_v54  ;;  %v14184_v8 = vrot.slane %v14183_v62, 2 }
 0x446   :  { %14180 = vst [vmem:[#allocation57_spill] sm:$0xff] %v12344_v5  ;;  %v12351_v41 = vmax.f32 %v14181_v43, %v14182_v63  ;;  %v2333_v10 = vcombine.low %v1869_v2, %v1870_v46  ;;  %v2334_v37 = vcombine.high %v1869_v2, %v1870_v46  ;;  %v14186_v51 = vrot.slane %v14185_v6, 4  ;;  %5608 = vmatmul.mubr.bf16.gmra.mrb[40].mxu1 %v12344_v5 }
 0x447   :  { %v12356_v57 = vmax.f32 %v14183_v62, %v14184_v8  ;;  %v2331_v52 = vcombine.high %v2323_v0, %v2323_v0  ;;  %v2332_v35 = vcombine.high %v2330_v11, %v2330_v11  ;;  %v3061_v23 = vrot.slane %v2323_v0, %v10804_v54 }
 0x448   :  { %v12361_v34 = vmax.f32 %v14185_v6, %v14186_v51  ;;  %v3077_v12 = vrot.slane %v2330_v11, %v10804_v54  ;;  %v12367_v30 = vrot.slane %v2333_v10, %v10804_v54  ;;  %v12370_v33 = vrot.slane %v2334_v37, %v10804_v54 }
 0x449   :  { %v3062_v17 = vcombine.high %v3061_v23, %v3061_v23  ;;  %v3069_v4 = vrot.slane %v2331_v52, %v10804_v54  ;;  %v3085_v27 = vrot.slane %v2332_v35, %v10804_v54  ;;  %v4544_v31 = vsel %vm3311_vm5, %v3061_v23, -inf }
 0x44a   :  { %v3078_v56 = vcombine.high %v3077_v12, %v3077_v12  ;;  %v4572_v21 = vsel %vm3311_vm5, %v3077_v12, -inf  ;;  %v4545_v40 = vrot.slane %v4544_v31, 4 }
 0x44b   :  { %v3070_v16 = vcombine.high %v3069_v4, %v3069_v4  ;;  %v3086_v46 = vcombine.high %v3085_v27, %v3085_v27  ;;  %v4551_v18 = vsel %vm3311_vm5, %v3062_v17, -inf  ;;  %v4558_v20 = vsel %vm3311_vm5, %v3069_v4, -inf }
 0x44c   :  { %v4552_v28 = vrot.slane %v4551_v18, 4  ;;  %v4573_v0 = vrot.slane %v4572_v21, 4  ;;  %v4579_v11 = vsel %vm3311_vm5, %v3078_v56, -inf  ;;  %v4546_v43 = vmax.f32 %v4544_v31, %v4545_v40 }
 0x44d   :  { %v4559_v63 = vrot.slane %v4558_v20, 4  ;;  %v4565_v10 = vsel %vm3311_vm5, %v3070_v16, -inf  ;;  %v4580_v37 = vrot.slane %v4579_v11, 4  ;;  %v4586_v51 = vsel %vm3311_vm5, %v3085_v27, -inf }
 0x44e   :  { %v4553_v62 = vmax.f32 %v4551_v18, %v4552_v28  ;;  %v4566_v8 = vrot.slane %v4565_v10, 4  ;;  %v4574_v6 = vmax.f32 %v4572_v21, %v4573_v0  ;;  %v4547_v52 = vrot.slane %v4546_v43, 2 }
 0x44f   :  { %v4560_v35 = vmax.f32 %v4558_v20, %v4559_v63  ;;  %v4581_v23 = vmax.f32 %v4579_v11, %v4580_v37  ;;  %v4587_v12 = vrot.slane %v4586_v51, 4  ;;  %v4593_v14 = vsel %vm3311_vm5, %v3086_v46, -inf }
 0x450   :  { %v4554_v17 = vrot.slane %v4553_v62, 2  ;;  %v4567_v2 = vmax.f32 %v4565_v10, %v4566_v8  ;;  %v4575_v4 = vrot.slane %v4574_v6, 2  ;;  %v4548_v56 = vmax.f32 %v4546_v43, %v4547_v52 }
 0x451   :  { %v4561_v31 = vrot.slane %v4560_v35, 2  ;;  %v4582_v40 = vrot.slane %v4581_v23, 2  ;;  %v4588_v22 = vmax.f32 %v4586_v51, %v4587_v12  ;;  %v4594_v28 = vrot.slane %v4593_v14, 4 }
 0x452   :  { %v4555_v16 = vmax.f32 %v4553_v62, %v4554_v17  ;;  %v4568_v25 = vrot.slane %v4567_v2, 2  ;;  %v4576_v18 = vmax.f32 %v4574_v6, %v4575_v4  ;;  %v4549_v21 = vrot.slane %v4548_v56, 1 }
 0x453   :  { %v4562_v0 = vmax.f32 %v4560_v35, %v4561_v31  ;;  %v4583_v27 = vmax.f32 %v4581_v23, %v4582_v40  ;;  %v4589_v5 = vrot.slane %v4588_v22, 2  ;;  %v4595_v37 = vmax.f32 %v4593_v14, %v4594_v28 }
 0x454   :  { %v4556_v20 = vrot.slane %v4555_v16, 1  ;;  %v4569_v11 = vmax.f32 %v4567_v2, %v4568_v25  ;;  %v4577_v63 = vrot.slane %v4576_v18, 1  ;;  %v4550_v10 = vmax.f32 %v4548_v56, %v4549_v21 }
 0x455   :  { %v4563_v8 = vrot.slane %v4562_v0, 1  ;;  %v4584_v58 = vrot.slane %v4583_v27, 1  ;;  %v4590_v46 = vmax.f32 %v4588_v22, %v4589_v5  ;;  %v4596_v51 = vrot.slane %v4595_v37, 2 }
 0x456   :  { %v4557_v43 = vmax.f32 %v4555_v16, %v4556_v20  ;;  %v4570_v52 = vrot.slane %v4569_v11, 1  ;;  %v4578_v60 = vmax.f32 %v4576_v18, %v4577_v63  ;;  %v4832_v17 = vpack.c.bf16 %v4550_v10, %v4550_v10 }
 0x457   :  { %v4564_v62 = vmax.f32 %v4562_v0, %v4563_v8  ;;  %v4585_v12 = vmax.f32 %v4583_v27, %v4584_v58  ;;  %v4591_v6 = vrot.slane %v4590_v46, 1  ;;  %v12388_v35 = vmax.f32 %v4595_v37, %v4596_v51 }
 0x458   :  { %v4571_v4 = vmax.f32 %v4569_v11, %v4570_v52  ;;  %v4833_v23 = vpack.c.bf16 %v4557_v43, %v4557_v43  ;;  %v4836_v31 = vpack.c.bf16 %v4578_v60, %v4578_v60  ;;  %v12392_v56 = vunpack.c.l.b16 %v4832_v17 }
 0x459   :  { %v12390_v2 = vmax.f32 %v4590_v46, %v4591_v6  ;;  %v4834_v14 = vpack.c.bf16 %v4564_v62, %v4564_v62  ;;  %v4837_v25 = vpack.c.bf16 %v4585_v12, %v4585_v12  ;;  %v3093_v60 = vrot.slane %v12367_v30, %v10804_v54 }
 0x45a   :  { %14188 = vst [vmem:[#allocation83_spill] sm:$0xff] %v12392_v56  ;;  %v4835_v22 = vpack.c.bf16 %v4571_v4, %v4571_v4  ;;  %v12395_v40 = vunpack.c.l.b16 %v4833_v23  ;;  %v12397_v16 = vunpack.c.l.b16 %v4836_v31  ;;  %v14191_v0 = vcombine.high %v12367_v30, %v12367_v30 }
 0x45b   :  { %14187 = vst [vmem:[#allocation72_spill] sm:$0xff] %v12390_v2  ;;  %v12401_v18 = vunpack.c.l.b16 %v4834_v14  ;;  %v12403_v28 = vunpack.c.l.b16 %v4837_v25  ;;  %v3109_v20 = vrot.slane %v12370_v33, %v10804_v54  ;;  %v14192_v11 = vcombine.high %v12370_v33, %v12370_v33 }
 0x45c   :  { %14189 = vst [vmem:[#allocation98_spill] sm:$0xff] %v12397_v16  ;;  %v12407_v21 = vunpack.c.l.b16 %v4835_v22  ;;  %v3101_v27 = vrot.slane %v14191_v0, %v10804_v54  ;;  %v3094_v37 = vcombine.high %v3093_v60, %v3093_v60  ;;  %v4600_v10 = vsel %vm3311_vm5, %v3093_v60, -inf }
 0x45d   :  { %14190 = vst [vmem:[#allocation35_spill] sm:$0xff] %v12401_v18  ;;  %v3117_v63 = vrot.slane %v14192_v11, %v10804_v54  ;;  %v14193_v8 = vrot.slane %v12351_v41, 1  ;;  %v14194_v43 = vrot.slane %v12356_v57, 1  ;;  %v3110_v51 = vcombine.high %v3109_v20, %v3109_v20 }
 0x45e   :  { %v3102_v52 = vcombine.high %v3101_v27, %v3101_v27  ;;  %v4601_v12 = vrot.slane %v4600_v10, 4  ;;  %v4607_v33 = vsel %vm3311_vm5, %v3094_v37, -inf  ;;  %v4614_v6 = vsel %vm3311_vm5, %v3101_v27, -inf }
 0x45f   :  { %v12423_v46 = vmax.f32 %v12351_v41, %v14193_v8  ;;  %v12428_v30 = vmax.f32 %v12356_v57, %v14194_v43  ;;  %v3118_v62 = vcombine.high %v3117_v63, %v3117_v63  ;;  %v4628_v17 = vsel %vm3311_vm5, %v3109_v20, -inf }
 0x460   :  { %v4642_v4 = vsel %vm3311_vm5, %v3117_v63, -inf  ;;  %v4602_v23 = vmax.f32 %v4600_v10, %v4601_v12  ;;  %v4608_v41 = vrot.slane %v4607_v33, 4  ;;  %v4615_v31 = vrot.slane %v4614_v6, 4 }
 0x461   :  { %v4621_v14 = vsel %vm3311_vm5, %v3102_v52, -inf  ;;  %v4629_v57 = vrot.slane %v4628_v17, 4  ;;  %v4635_v22 = vsel %vm3311_vm5, %v3110_v51, -inf  ;;  %v4643_v60 = vrot.slane %v4642_v4, 4 }
 0x462   :  { %v4622_v25 = vrot.slane %v4621_v14, 4  ;;  %v4603_v0 = vrot.slane %v4602_v23, 2  ;;  %v4609_v11 = vmax.f32 %v4607_v33, %v4608_v41  ;;  %v4616_v8 = vmax.f32 %v4614_v6, %v4615_v31  ;;  %v14204_v33 = vld [vmem:[#allocation108_spill] sm:$0xff] }
 0x463   :  { %v4636_v37 = vrot.slane %v4635_v22, 4  ;;  %v4630_v27 = vmax.f32 %v4628_v17, %v4629_v57  ;;  %v12438_v20 = vmax.f32 %v4642_v4, %v4643_v60  ;;  %v12441_v63 = vsel %vm3311_vm5, %v3118_v62, -inf }
 0x464   :  { %v12436_v43 = vmax.f32 %v4621_v14, %v4622_v25  ;;  %v4604_v10 = vmax.f32 %v4602_v23, %v4603_v0  ;;  %v4610_v12 = vrot.slane %v4609_v11, 2  ;;  %v4617_v52 = vrot.slane %v4616_v8, 2  ;;  %v14195_v14 = vld [vmem:[#allocation40_spill] sm:$0xff] }
 0x465   :  { %v12443_v58 = vmax.f32 %v4635_v22, %v4636_v37  ;;  %v4631_v5 = vrot.slane %v4630_v27, 2  ;;  %v4092_v6 = vrot.slane %v12361_v34, 2  ;;  %v14196_v25 = vrot.slane %v14195_v14, 1  ;;  %v14197_v22 = vld [vmem:[#allocation110_spill] sm:$0xff] }
 0x466   :  { %v4605_v41 = vrot.slane %v4604_v10, 1  ;;  %v12448_v31 = vmax.f32 %v4609_v11, %v4610_v12  ;;  %v12450_v17 = vmax.f32 %v4616_v8, %v4617_v52  ;;  %v14198_v60 = vrot.slane %v14197_v22, 1  ;;  %v14200_v8 = vld [vmem:[#allocation106_spill] sm:$0xff] }
 0x467   :  { %v12453_v4 = vmax.f32 %v4630_v27, %v4631_v5  ;;  %v4093_v23 = vmax.f32 %v12361_v34, %v4092_v6  ;;  %v4151_v57 = vmax.f32 %v14195_v14, %v14196_v25  ;;  %v14201_v12 = vrot.slane %v14200_v8, 2  ;;  %v14202_v5 = vld [vmem:[#allocation109_spill] sm:$0xff] }
 0x468   :  { %v4165_v0 = vmax.f32 %v14197_v22, %v14198_v60  ;;  %v12462_v37 = vmax.f32 %v4604_v10, %v4605_v41  ;;  %v14203_v27 = vrot.slane %v14202_v5, 2  ;;  %v14205_v62 = vrot.slane %v14204_v33, 4 }
 0x469   :  { %v4177_v52 = vmax.f32 %v14200_v8, %v14201_v12  ;;  %v4094_v6 = vrot.slane %v4093_v23, 1  ;;  %v4759_v25 = vpack.c.bf16 %v12337_v45, %v12337_v45  ;;  %v4761_v10 = vpack.c.bf16 %v12342_v13, %v12342_v13 }
 0x46a   :  { %14199 = vst [vmem:[#allocation96_spill] sm:$0xff] %v12462_v37  ;;  %v4191_v34 = vmax.f32 %v14202_v5, %v14203_v27  ;;  %v4203_v14 = vmax.f32 %v14204_v33, %v14205_v62  ;;  %v4763_v8 = vpack.c.bf16 %v12423_v46, %v12423_v46  ;;  %v4765_v27 = vpack.c.bf16 %v12428_v30, %v12428_v30  ;;  %v12484_v62 = vpop.f32.mrb[32].mxu1 }
 0x46b   :  { %v4178_v22 = vrot.slane %v4177_v52, 1  ;;  %v4095_v12 = vmax.f32 %v4093_v23, %v4094_v6  ;;  %v4775_v33 = vpack.c.bf16 %v4151_v57, %v4151_v57  ;;  %14206 = vst [vmem:[#allocation34_spill] sm:$0xff] %v12484_v62  ;;  %v4777_v11 = vpack.c.bf16 %v4165_v0, %v4165_v0  ;;  %v12486_v54 = vpop.f32.mrb[33].mxu1  ;;  %v14210_v0 = vld [vmem:[#allocation32_spill] sm:$0xff] }
 0x46c   :  { %v4192_v60 = vrot.slane %v4191_v34, 1  ;;  %v4204_v5 = vrot.slane %v4203_v14, 2  ;;  %v5175_v13 = vunpack.c.l.b16 %v4759_v25  ;;  %v5177_v18 = vunpack.c.l.b16 %v4761_v10  ;;  %v12488_v37 = vpop.f32.mrb[34].mxu1 }
 0x46d   :  { %v4179_v45 = vmax.f32 %v4177_v52, %v4178_v22  ;;  %v4767_v16 = vpack.c.bf16 %v4095_v12, %v4095_v12  ;;  %v5179_v56 = vunpack.c.l.b16 %v4763_v8  ;;  %14207 = vst [vmem:[#allocation78_spill] sm:$0xff] %v12488_v37  ;;  %v5181_v6 = vunpack.c.l.b16 %v4765_v27  ;;  %v12490_v30 = vpop.f32.mrb[35].mxu1  ;;  %v14212_v8 = vld [vmem:[#allocation101_spill] sm:$0xff] }
 0x46e   :  { %v4193_v51 = vmax.f32 %v4191_v34, %v4192_v60  ;;  %v4205_v41 = vmax.f32 %v4203_v14, %v4204_v5  ;;  %v5191_v2 = vunpack.c.l.b16 %v4775_v33  ;;  %14208 = vst [vmem:[#allocation82_spill] sm:$0xff] %v12490_v30  ;;  %v5193_v52 = vunpack.c.l.b16 %v4777_v11  ;;  %v14209_v34 = vld [vmem:[#allocation23_spill] sm:$0xff]  ;;  %v14211_v60 = vld [vmem:[#allocation21_spill] sm:$0xff]  ;;  %v14214_v33 = vld [vmem:[#allocation104_spill] sm:$0xff] }
 0x46f   :  { %v4779_v46 = vpack.c.bf16 %v4179_v45, %v4179_v45  ;;  %v5183_v62 = vunpack.c.l.b16 %v4767_v16  ;;  %v5362_v25 = vsel %vm5264_vm6, %v14210_v0, %v14209_v34  ;;  %v14213_v12 = vld [vmem:[#allocation105_spill] sm:$0xff]  ;;  %v14215_v11 = vld [vmem:[#allocation38_spill] sm:$0xff]  ;;  %v14217_v0 = vld [vmem:[#allocation39_spill] sm:$0xff] }
 0x470   :  { %v4781_v23 = vpack.c.bf16 %v4193_v51, %v4193_v51  ;;  %v4206_v57 = vrot.slane %v4205_v41, 1  ;;  %v5363_v10 = vsel %vm5266_vm7, %v14211_v60, %v5362_v25  ;;  %v5376_v51 = vsel %vm5264_vm6, %v14213_v12, %v14212_v8 }
 0x471   :  { %v5195_v22 = vunpack.c.l.b16 %v4779_v46  ;;  %v5364_v27 = vsel %vm5268_vm8, %v5175_v13, %v5363_v10  ;;  %v5377_v16 = vsel %vm5266_vm7, %v14214_v33, %v5376_v51  ;;  %v4059_v45 = vrot.slane %v14215_v11, 1  ;;  %v14220_v33 = vld [vmem:[#allocation107_spill] sm:$0xff] }
 0x472   :  { %v5197_v14 = vunpack.c.l.b16 %v4781_v23  ;;  %v4207_v5 = vmax.f32 %v4205_v41, %v4206_v57  ;;  %v5365_v30 = vsel %vm5270_vm9, %v5177_v18, %v5364_v27  ;;  %v5378_v46 = vsel %vm5268_vm8, %v5191_v2, %v5377_v16  ;;  %v14216_v23 = vld [vmem:[#allocation26_spill] sm:$0xff] }
 0x473   :  { %v4073_v34 = vrot.slane %v14216_v23, 1  ;;  %v4085_v25 = vrot.slane %v14217_v0, 2  ;;  %v5366_v37 = vsel %vm5272_vm10, %v5179_v56, %v5365_v30  ;;  %v5379_v41 = vsel %vm5270_vm9, %v5193_v52, %v5378_v46  ;;  %v14219_v30 = vld [vmem:[#allocation112_spill] sm:$0xff] }
 0x474   :  { %v4783_v60 = vpack.c.bf16 %v4207_v5, %v4207_v5  ;;  %v4060_v13 = vmax.f32 %v14215_v11, %v4059_v45  ;;  %v5367_v57 = vsel %vm5274_vm11, %v5181_v6, %v5366_v37  ;;  %v5380_v10 = vsel %vm5272_vm10, %v5195_v22, %v5379_v41  ;;  %v14218_v5 = vld [vmem:[#allocation111_spill] sm:$0xff]  ;;  %v14221_v45 = vld [vmem:[#allocation36_spill] sm:$0xff] }
 0x475   :  { %v4074_v8 = vmax.f32 %v14216_v23, %v4073_v34  ;;  %v4086_v18 = vmax.f32 %v14217_v0, %v4085_v25  ;;  %v5368_v12 = vsel %vm5276_vm12, %v5183_v62, %v5367_v57  ;;  %v5381_v51 = vsel %vm5274_vm11, %v5197_v14, %v5380_v10 }
 0x476   :  { %v5199_v2 = vunpack.c.l.b16 %v4783_v60  ;;  %v4171_v27 = vrot.slane %v14218_v5, 1  ;;  %v4185_v52 = vrot.slane %v14219_v30, 1  ;;  %v4197_v16 = vrot.slane %v14220_v33, 2  ;;  %v14223_v60 = vld [vmem:[#allocation42_spill] sm:$0xff] }
 0x477   :  { %v4087_v56 = vrot.slane %v4086_v18, 1  ;;  %v4762_v11 = vpack.c.bf16 %v4060_v13, %v4060_v13  ;;  %v4764_v22 = vpack.c.bf16 %v4074_v8, %v4074_v8  ;;  %v14222_v46 = vpack.c.bf16 %v14221_v45, %v14221_v45 }
 0x478   :  { %v5382_v37 = vsel %vm5276_vm12, %v5199_v2, %v5381_v51  ;;  %v4172_v6 = vmax.f32 %v14218_v5, %v4171_v27  ;;  %v4186_v34 = vmax.f32 %v14219_v30, %v4185_v52  ;;  %v4198_v0 = vmax.f32 %v14220_v33, %v4197_v16  ;;  %v14225_v5 = vld [vmem:[#allocation43_spill] sm:$0xff]  ;;  %v14227_v27 = vld [vmem:[#allocation53_spill] sm:$0xff]  ;;  %v14229_v33 = vld [vmem:[#allocation20_spill] sm:$0xff] }
 0x479   :  { %v5174_v23 = vunpack.c.l.b16 %v14222_v46  ;;  %v12525_v62 = vpack.c.b16 %v5382_v37, %v5368_v12  ;;  %v4088_v14 = vmax.f32 %v4086_v18, %v4087_v56  ;;  %v14224_v41 = vpack.c.bf16 %v14223_v60, %v14223_v60  ;;  %v14230_v16 = vld [vmem:[#allocation31_spill] sm:$0xff] }
 0x47a   :  { %v4778_v25 = vpack.c.bf16 %v4172_v6, %v4172_v6  ;;  %v5178_v57 = vunpack.c.l.b16 %v4762_v11  ;;  %v5180_v10 = vunpack.c.l.b16 %v4764_v22  ;;  %v4199_v8 = vrot.slane %v4198_v0, 1  ;;  %v14231_v11 = vld [vmem:[#allocation100_spill] sm:$0xff]  ;;  %v14232_v6 = vld [vmem:[#allocation103_spill] sm:$0xff] }
 0x47b   :  { %v5176_v13 = vunpack.c.l.b16 %v14224_v41  ;;  %5615 = vmatprep.mubr.bf16.mxu1 %v12525_v62  ;;  %v4766_v2 = vpack.c.bf16 %v4088_v14, %v4088_v14  ;;  %v4780_v51 = vpack.c.bf16 %v4186_v34, %v4186_v34  ;;  %v14226_v12 = vpack.c.bf16 %v14225_v5, %v14225_v5  ;;  %v14233_v34 = vld [vmem:[#allocation29_spill] sm:$0xff]  ;;  %v14234_v5 = vld [vmem:[#allocation102_spill] sm:$0xff] }
 0x47c   :  { %v14228_v56 = vpack.c.bf16 %v14227_v27, %v14227_v27  ;;  %v5194_v52 = vunpack.c.l.b16 %v4778_v25  ;;  %v5355_v37 = vsel %vm5264_vm6, %v14230_v16, %v14229_v33  ;;  %v5369_v22 = vsel %vm5264_vm6, %v14232_v6, %v14231_v11 }
 0x47d   :  { %v5190_v18 = vunpack.c.l.b16 %v14226_v12  ;;  %v4200_v45 = vmax.f32 %v4198_v0, %v4199_v8  ;;  %v5182_v46 = vunpack.c.l.b16 %v4766_v2  ;;  %v5196_v14 = vunpack.c.l.b16 %v4780_v51 }
 0x47e   :  { %v5192_v30 = vunpack.c.l.b16 %v14228_v56  ;;  %v5356_v60 = vsel %vm5266_vm7, %v14233_v34, %v5355_v37  ;;  %v5370_v12 = vsel %vm5266_vm7, %v14234_v5, %v5369_v22  ;;  %v14235_v25 = vrot.slane %v11888_v1, 1 }
 0x47f   :  { %v5357_v41 = vsel %vm5268_vm8, %v5174_v23, %v5356_v60  ;;  %v14236_v56 = vrot.slane %v12017_v49, 1  ;;  %v4782_v16 = vpack.c.bf16 %v4200_v45, %v4200_v45  ;;  %v5371_v8 = vsel %vm5268_vm8, %v5190_v18, %v5370_v12 }
 0x480   :  { %v4263_v27 = vmax.f32 %v11888_v1, %v14235_v25  ;;  %v5358_v0 = vsel %vm5270_vm9, %v5176_v13, %v5357_v41  ;;  %v14237_v2 = vrot.slane %v12009_v61, 2  ;;  %v5372_v37 = vsel %vm5270_vm9, %v5192_v30, %v5371_v8 }
 0x481   :  { %v4277_v33 = vmax.f32 %v12017_v49, %v14236_v56  ;;  %v5359_v51 = vsel %vm5272_vm10, %v5178_v57, %v5358_v0  ;;  %v14238_v11 = vrot.slane %v12007_v3, 2  ;;  %v14239_v6 = vrot.slane %v12012_v50, 4 }
 0x482   :  { %v4289_v23 = vmax.f32 %v12009_v61, %v14237_v2  ;;  %v5198_v22 = vunpack.c.l.b16 %v4782_v16  ;;  %v5360_v13 = vsel %vm5274_vm11, %v5180_v10, %v5359_v51  ;;  %v5373_v18 = vsel %vm5272_vm10, %v5194_v52, %v5372_v37 }
 0x483   :  { %v4303_v1 = vmax.f32 %v12007_v3, %v14238_v11  ;;  %v4315_v49 = vmax.f32 %v12012_v50, %v14239_v6  ;;  %v5361_v61 = vsel %vm5276_vm12, %v5182_v46, %v5360_v13  ;;  %v5374_v57 = vsel %vm5274_vm11, %v5196_v14, %v5373_v18 }
 0x484   :  { %v4290_v45 = vrot.slane %v4289_v23, 1  ;;  %v5375_v60 = vsel %vm5276_vm12, %v5198_v22, %v5374_v57  ;;  %v14240_v3 = vrot.slane %v12042_v9, 1  ;;  %v14241_v50 = vrot.slane %v12131_v24, 1 }
 0x485   :  { %v4304_v34 = vrot.slane %v4303_v1, 1  ;;  %v4316_v30 = vrot.slane %v4315_v49, 2  ;;  %v12580_v12 = vpack.c.b16 %v5375_v60, %v5361_v61  ;;  %v14242_v46 = vrot.slane %v12123_v53, 2 }
 0x486   :  { %v4291_v41 = vmax.f32 %v4289_v23, %v4290_v45  ;;  %v4375_v5 = vmax.f32 %v12042_v9, %v14240_v3  ;;  %v4389_v10 = vmax.f32 %v12131_v24, %v14241_v50  ;;  %v14243_v56 = vrot.slane %v12121_v59, 2  ;;  %v14245_v3 = vld [vmem:[#allocation52_spill] sm:$0xff] }
 0x487   :  { %v4305_v52 = vmax.f32 %v4303_v1, %v4304_v34  ;;  %v4317_v25 = vmax.f32 %v4315_v49, %v4316_v30  ;;  %v4401_v14 = vmax.f32 %v12123_v53, %v14242_v46  ;;  %v14244_v0 = vrot.slane %v12126_v26, 4  ;;  %5616 = vmatmul.mubr.bf16.gmra.mrb[44].mxu1 %v12580_v12  ;;  %v14247_v46 = vld [vmem:[#allocation68_spill] sm:$0xff] }
 0x488   :  { %v4415_v16 = vmax.f32 %v12121_v59, %v14243_v56  ;;  %v4791_v8 = vpack.c.bf16 %v4263_v27, %v4263_v27  ;;  %v4793_v2 = vpack.c.bf16 %v4277_v33, %v4277_v33  ;;  %v4795_v51 = vpack.c.bf16 %v4291_v41, %v4291_v41 }
 0x489   :  { %v4427_v9 = vmax.f32 %v12126_v26, %v14244_v0  ;;  %v4318_v24 = vrot.slane %v4317_v25, 1  ;;  %v4402_v23 = vrot.slane %v4401_v14, 1  ;;  %v4797_v37 = vpack.c.bf16 %v4305_v52, %v4305_v52  ;;  %v14246_v52 = vld [vmem:[#allocation45_spill] sm:$0xff] }
 0x48a   :  { %v4416_v11 = vrot.slane %v4415_v16, 1  ;;  %v4807_v6 = vpack.c.bf16 %v4375_v5, %v4375_v5  ;;  %v4809_v53 = vpack.c.bf16 %v4389_v10, %v4389_v10  ;;  %v5207_v13 = vunpack.c.l.b16 %v4791_v8  ;;  %v14248_v8 = vld [vmem:[#allocation64_spill] sm:$0xff] }
 0x48b   :  { %v4428_v1 = vrot.slane %v4427_v9, 2  ;;  %v4319_v49 = vmax.f32 %v4317_v25, %v4318_v24  ;;  %v4403_v22 = vmax.f32 %v4401_v14, %v4402_v23  ;;  %v5209_v59 = vunpack.c.l.b16 %v4793_v2  ;;  %v14249_v2 = vld [vmem:[#allocation59_spill] sm:$0xff] }
 0x48c   :  { %v4417_v18 = vmax.f32 %v4415_v16, %v4416_v11  ;;  %v5211_v61 = vunpack.c.l.b16 %v4795_v51  ;;  %v5213_v26 = vunpack.c.l.b16 %v4797_v37  ;;  %v5223_v57 = vunpack.c.l.b16 %v4807_v6  ;;  %v14250_v11 = vld [vmem:[#allocation50_spill] sm:$0xff] }
 0x48d   :  { %v4429_v45 = vmax.f32 %v4427_v9, %v4428_v1  ;;  %v4799_v27 = vpack.c.bf16 %v4319_v49, %v4319_v49  ;;  %v4811_v33 = vpack.c.bf16 %v4403_v22, %v4403_v22  ;;  %v5225_v34 = vunpack.c.l.b16 %v4809_v53 }
 0x48e   :  { %v4813_v60 = vpack.c.bf16 %v4417_v18, %v4417_v18  ;;  %v5390_v41 = vsel %vm5264_vm6, %v11918_v29, %v11905_v47  ;;  %v5404_v5 = vsel %vm5264_vm6, %v14245_v3, %v12046_v7  ;;  %v4283_v7 = vrot.slane %v14248_v8, 1 }
 0x48f   :  { %v4430_v30 = vrot.slane %v4429_v45, 1  ;;  %v5215_v50 = vunpack.c.l.b16 %v4799_v27  ;;  %v5227_v10 = vunpack.c.l.b16 %v4811_v33  ;;  %v5391_v25 = vsel %vm5266_vm7, %v14246_v52, %v5390_v41 }
 0x490   :  { %v5405_v14 = vsel %vm5266_vm7, %v14247_v46, %v5404_v5  ;;  %v5229_v16 = vunpack.c.l.b16 %v4813_v60  ;;  %v5392_v0 = vsel %vm5268_vm8, %v5207_v13, %v5391_v25  ;;  %v4297_v24 = vrot.slane %v14249_v2, 1  ;;  %v14254_v5 = vld [vmem:[#allocation56_spill] sm:$0xff] }
 0x491   :  { %v4431_v56 = vmax.f32 %v4429_v45, %v4430_v30  ;;  %v5406_v9 = vsel %vm5268_vm8, %v5223_v57, %v5405_v14  ;;  %v5393_v47 = vsel %vm5270_vm9, %v5209_v59, %v5392_v0  ;;  %v4309_v1 = vrot.slane %v14250_v11, 2  ;;  %v14251_v45 = vld [vmem:[#allocation46_spill] sm:$0xff]  ;;  %v14256_v14 = vld [vmem:[#allocation73_spill] sm:$0xff] }
 0x492   :  { %v5407_v29 = vsel %vm5270_vm9, %v5225_v34, %v5406_v9  ;;  %v5394_v51 = vsel %vm5272_vm10, %v5211_v61, %v5393_v47  ;;  %v4284_v49 = vmax.f32 %v14248_v8, %v4283_v7  ;;  %v4298_v22 = vmax.f32 %v14249_v2, %v4297_v24  ;;  %v14252_v61 = vld [vmem:[#allocation44_spill] sm:$0xff]  ;;  %v14253_v57 = vld [vmem:[#allocation66_spill] sm:$0xff] }
 0x493   :  { %v4815_v23 = vpack.c.bf16 %v4431_v56, %v4431_v56  ;;  %v5408_v37 = vsel %vm5272_vm10, %v5227_v10, %v5407_v29  ;;  %v5395_v6 = vsel %vm5274_vm11, %v5213_v26, %v5394_v51  ;;  %v4310_v18 = vmax.f32 %v14250_v11, %v4309_v1  ;;  %v14258_v2 = vld [vmem:[#allocation54_spill] sm:$0xff] }
 0x494   :  { %v5409_v53 = vsel %vm5274_vm11, %v5229_v16, %v5408_v37  ;;  %v5396_v59 = vsel %vm5276_vm12, %v5215_v50, %v5395_v6  ;;  %v4395_v27 = vrot.slane %v14251_v45, 1  ;;  %v4409_v33 = vrot.slane %v14252_v61, 1  ;;  %v14260_v51 = vld [vmem:[#allocation58_spill] sm:$0xff] }
 0x495   :  { %v5231_v13 = vunpack.c.l.b16 %v4815_v23  ;;  %v4421_v34 = vrot.slane %v14253_v57, 2  ;;  %v4794_v30 = vpack.c.bf16 %v4284_v49, %v4284_v49  ;;  %v4796_v60 = vpack.c.bf16 %v4298_v22, %v4298_v22  ;;  %v14263_v49 = vld [vmem:[#allocation71_spill] sm:$0xff] }
 0x496   :  { %v4311_v41 = vrot.slane %v4310_v18, 1  ;;  %v4396_v3 = vmax.f32 %v14251_v45, %v4395_v27  ;;  %v14255_v10 = vpack.c.bf16 %v14254_v5, %v14254_v5  ;;  %v4410_v25 = vmax.f32 %v14252_v61, %v4409_v33  ;;  %v14266_v61 = vld [vmem:[#allocation63_spill] sm:$0xff] }
 0x497   :  { %v5410_v26 = vsel %vm5276_vm12, %v5231_v13, %v5409_v53  ;;  %v4422_v46 = vmax.f32 %v14253_v57, %v4421_v34  ;;  %v14257_v56 = vpack.c.bf16 %v14256_v14, %v14256_v14  ;;  %v5210_v47 = vunpack.c.l.b16 %v4794_v30  ;;  %v14262_v53 = vld [vmem:[#allocation47_spill] sm:$0xff]  ;;  %v14264_v13 = vld [vmem:[#allocation62_spill] sm:$0xff] }
 0x498   :  { %v5206_v52 = vunpack.c.l.b16 %v14255_v10  ;;  %v12625_v50 = vpack.c.b16 %v5410_v26, %v5396_v59  ;;  %v4312_v0 = vmax.f32 %v4310_v18, %v4311_v41  ;;  %v4810_v9 = vpack.c.bf16 %v4396_v3, %v4396_v3  ;;  %v14265_v59 = vld [vmem:[#allocation55_spill] sm:$0xff] }
 0x499   :  { %v5208_v16 = vunpack.c.l.b16 %v14257_v56  ;;  %v5212_v29 = vunpack.c.l.b16 %v4796_v60  ;;  %v4423_v8 = vrot.slane %v4422_v46, 1  ;;  %v4812_v7 = vpack.c.bf16 %v4410_v25, %v4410_v25  ;;  %v14267_v57 = vld [vmem:[#allocation67_spill] sm:$0xff] }
 0x49a   :  { %5623 = vmatprep.mubr.bf16.mxu1 %v12625_v50  ;;  %v14259_v24 = vpack.c.bf16 %v14258_v2, %v14258_v2  ;;  %v14261_v37 = vpack.c.bf16 %v14260_v51, %v14260_v51  ;;  %v4798_v1 = vpack.c.bf16 %v4312_v0, %v4312_v0  ;;  %v5226_v6 = vunpack.c.l.b16 %v4810_v9 }
 0x49b   :  { %v5383_v22 = vsel %vm5264_vm6, %v14263_v49, %v14262_v53  ;;  %v5397_v18 = vsel %vm5264_vm6, %v14265_v59, %v14264_v13  ;;  %v4424_v45 = vmax.f32 %v4422_v46, %v4423_v8  ;;  %v5228_v27 = vunpack.c.l.b16 %v4812_v7 }
 0x49c   :  { %v5222_v23 = vunpack.c.l.b16 %v14259_v24  ;;  %v5224_v11 = vunpack.c.l.b16 %v14261_v37  ;;  %v5384_v33 = vsel %vm5266_vm7, %v14266_v61, %v5383_v22  ;;  %v5398_v34 = vsel %vm5266_vm7, %v14267_v57, %v5397_v18 }
 0x49d   :  { %v5214_v30 = vunpack.c.l.b16 %v4798_v1  ;;  %v5385_v60 = vsel %vm5268_vm8, %v5206_v52, %v5384_v33  ;;  %v14268_v41 = vrot.slane %v12159_v39, 1  ;;  %v4814_v5 = vpack.c.bf16 %v4424_v45, %v4424_v45 }
 0x49e   :  { %v5399_v26 = vsel %vm5268_vm8, %v5222_v23, %v5398_v34  ;;  %v5386_v10 = vsel %vm5270_vm9, %v5208_v16, %v5385_v60  ;;  %v14269_v46 = vrot.slane %v12268_v55, 1  ;;  %v14270_v52 = vrot.slane %v12262_v38, 2 }
 0x49f   :  { %v4487_v3 = vmax.f32 %v12159_v39, %v14268_v41  ;;  %v5400_v25 = vsel %vm5270_vm9, %v5224_v11, %v5399_v26  ;;  %v5387_v56 = vsel %vm5272_vm10, %v5210_v47, %v5386_v10  ;;  %v14271_v8 = vrot.slane %v12264_v36, 2 }
 0x4a0   :  { %v4501_v14 = vmax.f32 %v12268_v55, %v14269_v46  ;;  %v5401_v0 = vsel %vm5272_vm10, %v5226_v6, %v5400_v25  ;;  %v4513_v9 = vmax.f32 %v12262_v38, %v14270_v52  ;;  %v5230_v7 = vunpack.c.l.b16 %v4814_v5 }
 0x4a1   :  { %v4527_v39 = vmax.f32 %v12264_v36, %v14271_v8  ;;  %v5388_v16 = vsel %vm5274_vm11, %v5212_v29, %v5387_v56  ;;  %v5402_v2 = vsel %vm5274_vm11, %v5228_v27, %v5401_v0  ;;  %v14272_v24 = vrot.slane %v12259_v44, 4 }
 0x4a2   :  { %v5389_v47 = vsel %vm5276_vm12, %v5214_v30, %v5388_v16  ;;  %v4514_v23 = vrot.slane %v4513_v9, 1  ;;  %v14273_v37 = vrot.slane %v12388_v35, 1  ;;  %v5403_v11 = vsel %vm5276_vm12, %v5230_v7, %v5402_v2 }
 0x4a3   :  { %v4539_v55 = vmax.f32 %v12259_v44, %v14272_v24  ;;  %v4528_v51 = vrot.slane %v4527_v39, 1  ;;  %v14274_v1 = vrot.slane %v12448_v31, 1  ;;  %v14275_v6 = vrot.slane %v12436_v43, 2 }
 0x4a4   :  { %v4599_v38 = vmax.f32 %v12388_v35, %v14273_v37  ;;  %v12683_v44 = vpack.c.b16 %v5403_v11, %v5389_v47  ;;  %v4515_v49 = vmax.f32 %v4513_v9, %v4514_v23  ;;  %v14276_v13 = vrot.slane %v12443_v58, 2  ;;  %v9776_v35 = vld [vmem:[#allocation8 + $0x4] ss:$8 sps:$4 sm:$0xff]  }
 0x4a5   :  { %v4540_v36 = vrot.slane %v4539_v55, 2  ;;  %v4613_v29 = vmax.f32 %v12448_v31, %v14274_v1  ;;  %v4625_v53 = vmax.f32 %v12436_v43, %v14275_v6  ;;  %v4529_v22 = vmax.f32 %v4527_v39, %v4528_v51  ;;  %6538 = vmatprep.subr.bf16.mxu1 %v9776_v35  ;;  %v14278_v1 = vld [vmem:[#allocation51_spill] sm:$0xff] }
 0x4a6   :  { %v4639_v59 = vmax.f32 %v12443_v58, %v14276_v13  ;;  %v14277_v27 = vrot.slane %v12441_v63, 4  ;;  %v4823_v31 = vpack.c.bf16 %v4487_v3, %v4487_v3  ;;  %5624 = vmatmul.mubr.bf16.gmra.mrb[48].mxu1 %v12683_v44  ;;  %v4825_v43 = vpack.c.bf16 %v4501_v14, %v4501_v14 }
 0x4a7   :  { %v4541_v18 = vmax.f32 %v4539_v55, %v4540_v36  ;;  %v4626_v45 = vrot.slane %v4625_v53, 1  ;;  %v4827_v57 = vpack.c.bf16 %v4515_v49, %v4515_v49  ;;  %v4829_v34 = vpack.c.bf16 %v4529_v22, %v4529_v22 }
 0x4a8   :  { %v4651_v61 = vmax.f32 %v12441_v63, %v14277_v27  ;;  %v4640_v33 = vrot.slane %v4639_v59, 1  ;;  %v4839_v41 = vpack.c.bf16 %v4599_v38, %v4599_v38  ;;  %v4841_v5 = vpack.c.bf16 %v4613_v29, %v4613_v29 }
 0x4a9   :  { %v4542_v30 = vrot.slane %v4541_v18, 1  ;;  %v4627_v60 = vmax.f32 %v4625_v53, %v4626_v45  ;;  %v5239_v10 = vunpack.c.l.b16 %v4823_v31  ;;  %v5241_v25 = vunpack.c.l.b16 %v4825_v43 }
 0x4aa   :  { %v4652_v26 = vrot.slane %v4651_v61, 2  ;;  %v4641_v58 = vmax.f32 %v4639_v59, %v4640_v33  ;;  %v5243_v63 = vunpack.c.l.b16 %v4827_v57  ;;  %v5245_v52 = vunpack.c.l.b16 %v4829_v34  ;;  %v14279_v57 = vld [vmem:[#allocation74_spill] sm:$0xff] }
 0x4ab   :  { %v4543_v46 = vmax.f32 %v4541_v18, %v4542_v30  ;;  %v4843_v0 = vpack.c.bf16 %v4627_v60, %v4627_v60  ;;  %v5255_v9 = vunpack.c.l.b16 %v4839_v41  ;;  %v5257_v8 = vunpack.c.l.b16 %v4841_v5  ;;  %v9253_v35 = vpop.f32.mrb[36].mxu1 }
 0x4ac   :  { %v4653_v56 = vmax.f32 %v4651_v61, %v4652_v26  ;;  %v4845_v3 = vpack.c.bf16 %v4641_v58, %v4641_v58  ;;  %v5418_v16 = vsel %vm5264_vm6, %v12170_v32, %v12168_v48  ;;  %v5432_v55 = vsel %vm5264_vm6, %v12407_v21, %v12395_v40  ;;  %v9254_v31 = vpop.f32.mrb[37].mxu1 }
 0x4ad   :  { %v4831_v39 = vpack.c.bf16 %v4543_v46, %v4543_v46  ;;  %v5259_v7 = vunpack.c.l.b16 %v4843_v0  ;;  %v5419_v24 = vsel %vm5266_vm7, %v12183_v15, %v5418_v16  ;;  %v4507_v47 = vrot.slane %v12270_v42, 1  ;;  %v9256_v60 = vpop.f32.mrb[38].mxu1 }
 0x4ae   :  { %v4654_v14 = vrot.slane %v4653_v56, 1  ;;  %v5261_v2 = vunpack.c.l.b16 %v4845_v3  ;;  %v5420_v37 = vsel %vm5268_vm8, %v5239_v10, %v5419_v24  ;;  %v5433_v38 = vsel %vm5266_vm7, %v12403_v28, %v5432_v55  ;;  %v9257_v5 = vpop.f32.mrb[39].mxu1  ;;  %v14288_v24 = vld [vmem:[#allocation48_spill] sm:$0xff] }
 0x4af   :  { %v5247_v51 = vunpack.c.l.b16 %v4831_v39  ;;  %v5421_v11 = vsel %vm5270_vm9, %v5241_v25, %v5420_v37  ;;  %v5434_v48 = vsel %vm5268_vm8, %v5255_v9, %v5433_v38  ;;  %v4508_v32 = vmax.f32 %v12270_v42, %v4507_v47  ;;  %v14281_v25 = vld [vmem:[#allocation65_spill] sm:$0xff]  ;;  %v14283_v9 = vld [vmem:[#allocation72_spill] sm:$0xff]  ;;  %v14289_v47 = vld [vmem:[#allocation83_spill] sm:$0xff] }
 0x4b0   :  { %v4655_v23 = vmax.f32 %v4653_v56, %v4654_v14  ;;  %v4521_v15 = vrot.slane %v12273_v19, 1  ;;  %v5422_v40 = vsel %vm5272_vm10, %v5243_v63, %v5421_v11  ;;  %v5435_v21 = vsel %vm5270_vm9, %v5257_v8, %v5434_v48  ;;  %v14285_v39 = vld [vmem:[#allocation96_spill] sm:$0xff] }
 0x4b1   :  { %v4533_v29 = vrot.slane %v14278_v1, 2  ;;  %v5423_v6 = vsel %vm5274_vm11, %v5245_v52, %v5422_v40  ;;  %v5436_v53 = vsel %vm5272_vm10, %v5259_v7, %v5435_v21  ;;  %v4619_v49 = vrot.slane %v12450_v17, 1  ;;  %v14291_v11 = vld [vmem:[#allocation60_spill] sm:$0xff] }
 0x4b2   :  { %v4847_v36 = vpack.c.bf16 %v4655_v23, %v4655_v23  ;;  %v4522_v28 = vmax.f32 %v12273_v19, %v4521_v15  ;;  %v5424_v42 = vsel %vm5276_vm12, %v5247_v51, %v5423_v6  ;;  %v5437_v13 = vsel %vm5274_vm11, %v5261_v2, %v5436_v53  ;;  %v14287_v2 = vld [vmem:[#allocation61_spill] sm:$0xff]  ;;  %v14290_v23 = vld [vmem:[#allocation35_spill] sm:$0xff] }
 0x4b3   :  { %v4534_v59 = vmax.f32 %v14278_v1, %v4533_v29  ;;  %v4620_v18 = vmax.f32 %v12450_v17, %v4619_v49  ;;  %v4633_v45 = vrot.slane %v12453_v4, 1  ;;  %v4645_v27 = vrot.slane %v12438_v20, 2  ;;  %v14293_v1 = vld [vmem:[#allocation34_spill] sm:$0xff] }
 0x4b4   :  { %v5263_v22 = vunpack.c.l.b16 %v4847_v36  ;;  %v4826_v61 = vpack.c.bf16 %v4508_v32, %v4508_v32  ;;  %v4828_v43 = vpack.c.bf16 %v4522_v28, %v4522_v28  ;;  %v14280_v34 = vpack.c.bf16 %v14279_v57, %v14279_v57  ;;  %v14292_v32 = vld [vmem:[#allocation98_spill] sm:$0xff] }
 0x4b5   :  { %v4535_v33 = vrot.slane %v4534_v59, 1  ;;  %v4634_v41 = vmax.f32 %v12453_v4, %v4633_v45  ;;  %v4646_v17 = vmax.f32 %v12438_v20, %v4645_v27  ;;  %v4842_v58 = vpack.c.bf16 %v4620_v18, %v4620_v18  ;;  %v14294_v49 = vld [vmem:[#allocation78_spill] sm:$0xff] }
 0x4b6   :  { %v5438_v19 = vsel %vm5276_vm12, %v5263_v22, %v5437_v13  ;;  %v5238_v30 = vunpack.c.l.b16 %v14280_v34  ;;  %v14282_v46 = vpack.c.bf16 %v14281_v25, %v14281_v25  ;;  %v5242_v0 = vunpack.c.l.b16 %v4826_v61  ;;  %v14295_v22 = vld [vmem:[#allocation82_spill] sm:$0xff]  ;;  %v9774_v34 = vld [vmem:[#allocation8] ss:$8 sps:$4 sm:$0xff]  }
 0x4b7   :  { %v5450_v26 = vpack.c.b16 %v5438_v19, %v5424_v42  ;;  %v4536_v10 = vmax.f32 %v4534_v59, %v4535_v33  ;;  %v5244_v63 = vunpack.c.l.b16 %v4828_v43  ;;  %v4647_v3 = vrot.slane %v4646_v17, 1  ;;  %v14296_v57 = vld [vmem:[#allocation22_spill] sm:$0xff] }
 0x4b8   :  { %v5240_v56 = vunpack.c.l.b16 %v14282_v46  ;;  %v4844_v52 = vpack.c.bf16 %v4634_v41, %v4634_v41  ;;  %v14284_v8 = vpack.c.bf16 %v14283_v9, %v14283_v9  ;;  %v14286_v4 = vpack.c.bf16 %v14285_v39, %v14285_v39  ;;  %v14301_v41 = vld [vmem:[#allocation57_spill] sm:$0xff]  ;;  %v9785_v25 = vld [vmem:[#allocation8 + $0x34] ss:$8 sps:$4 sm:$0xff]  }
 0x4b9   :  { %5631 = vmatprep.mubr.bf16.mxu1 %v5450_v26  ;;  %v4830_v7 = vpack.c.bf16 %v4536_v10, %v4536_v10  ;;  %v5258_v16 = vunpack.c.l.b16 %v4842_v58  ;;  %v5411_v55 = vsel %vm5264_vm6, %v14288_v24, %v14287_v2  ;;  %v5425_v51 = vsel %vm5264_vm6, %v14290_v23, %v14289_v47  ;;  %v9779_v58 = vld [vmem:[#allocation8 + $0x14] ss:$8 sps:$4 sm:$0xff]   ;;  %v9780_v10 = vld [vmem:[#allocation8 + $0x20] ss:$8 sps:$4 sm:$0xff]   ;;  %v9783_v46 = vld [vmem:[#allocation8 + $0x30] ss:$8 sps:$4 sm:$0xff]  }
 0x4ba   :  { %v5254_v14 = vunpack.c.l.b16 %v14284_v8  ;;  %v5256_v20 = vunpack.c.l.b16 %v14286_v4  ;;  %v4648_v37 = vmax.f32 %v4646_v17, %v4647_v3  ;;  %v5260_v38 = vunpack.c.l.b16 %v4844_v52  ;;  %v9777_v17 = vld [vmem:[#allocation8 + $0x10] ss:$8 sps:$4 sm:$0xff]   ;;  %v9797_v3 = vld [vmem:[#allocation8 + $0x74] ss:$8 sps:$4 sm:$0xff]   ;;  %v9798_v52 = vld [vmem:[#allocation8 + $0x80] ss:$8 sps:$4 sm:$0xff]  }
 0x4bb   :  { %v5412_v48 = vsel %vm5266_vm7, %v14291_v11, %v5411_v55  ;;  %v5426_v15 = vsel %vm5266_vm7, %v14292_v32, %v5425_v51  ;;  %v5246_v36 = vunpack.c.l.b16 %v4830_v7  ;;  %v12750_v29 = vadd.f32 %v12486_v54, %v14293_v1  ;;  %v9801_v9 = vld [vmem:[#allocation8 + $0x90] ss:$8 sps:$4 sm:$0xff]   ;;  %v9803_v8 = vld [vmem:[#allocation8 + $0x94] ss:$8 sps:$4 sm:$0xff]   ;;  %v9804_v39 = vld [vmem:[#allocation8 + $0xa0] ss:$8 sps:$4 sm:$0xff]  }
 0x4bc   :  { %v5413_v40 = vsel %vm5268_vm8, %v5238_v30, %v5412_v48  ;;  %v5427_v21 = vsel %vm5268_vm8, %v5254_v14, %v5426_v15  ;;  %v4846_v6 = vpack.c.bf16 %v4648_v37, %v4648_v37  ;;  %v12756_v42 = vadd.f32 %v14295_v22, %v14294_v49  ;;  %v14297_v30 = vld [vmem:[#allocation24_spill] sm:$0xff]  ;;  %v9807_v55 = vld [vmem:[#allocation8 + $0xb0] ss:$8 sps:$4 sm:$0xff]   ;;  %v9809_v47 = vld [vmem:[#allocation8 + $0xb4] ss:$8 sps:$4 sm:$0xff]  }
 0x4bd   :  { %v5414_v53 = vsel %vm5270_vm9, %v5240_v56, %v5413_v40  ;;  %v5428_v28 = vsel %vm5270_vm9, %v5256_v20, %v5427_v21  ;;  %v12760_v18 = vadd.f32 %v9254_v31, %v9253_v35  ;;  %v12762_v45 = vadd.f32 %v9257_v5, %v9256_v60  ;;  %v14298_v35 = vld [vmem:[#allocation69_spill] sm:$0xff]  ;;  %v14300_v60 = vld [vmem:[#allocation75_spill] sm:$0xff] }
 0x4be   :  { %v5415_v13 = vsel %vm5272_vm10, %v5242_v0, %v5414_v53  ;;  %v5429_v59 = vsel %vm5272_vm10, %v5258_v16, %v5428_v28  ;;  %v5262_v27 = vunpack.c.l.b16 %v4846_v6  ;;  %v14299_v31 = vld [vmem:[#allocation49_spill] sm:$0xff]  ;;  %v9821_v15 = vld [vmem:[#allocation8 + $0xf4] ss:$8 sps:$4 sm:$0xff]  }
 0x4bf   :  { %v5416_v54 = vsel %vm5274_vm11, %v5244_v63, %v5415_v13  ;;  %v5430_v61 = vsel %vm5274_vm11, %v5260_v38, %v5429_v59  ;;  %v9782_v5 = vld [vmem:[#allocation8 + $0x24] ss:$8 sps:$4 sm:$0xff]   ;;  %v9792_v63 = vld [vmem:[#allocation8 + $0x60] ss:$8 sps:$4 sm:$0xff]   ;;  %v9813_v37 = vld [vmem:[#allocation8 + $0xd0] ss:$8 sps:$4 sm:$0xff]  }
 0x4c0   :  { %v5417_v19 = vsel %vm5276_vm12, %v5246_v36, %v5416_v54  ;;  %v5431_v33 = vsel %vm5276_vm12, %v5262_v27, %v5430_v61  ;;  %v9788_v56 = vld [vmem:[#allocation8 + $0x44] ss:$8 sps:$4 sm:$0xff]   ;;  %v9810_v51 = vld [vmem:[#allocation8 + $0xc0] ss:$8 sps:$4 sm:$0xff]   ;;  %v9815_v38 = vld [vmem:[#allocation8 + $0xd4] ss:$8 sps:$4 sm:$0xff]  }
 0x4c1   :  { %v5449_v43 = vpack.c.b16 %v5431_v33, %v5417_v19  ;;  %v9794_v0 = vld [vmem:[#allocation8 + $0x64] ss:$8 sps:$4 sm:$0xff]   ;;  %v9816_v48 = vld [vmem:[#allocation8 + $0xe0] ss:$8 sps:$4 sm:$0xff]   ;;  %v9819_v32 = vld [vmem:[#allocation8 + $0xf0] ss:$8 sps:$4 sm:$0xff]  }
 0x4c2   :  { %v9806_v14 = vld [vmem:[#allocation8 + $0xa4] ss:$8 sps:$4 sm:$0xff]  }
 0x4c3   :  { %5632 = vmatmul.mubr.bf16.gmra.mrb[52].mxu1 %v5449_v43  ;;  %v9812_v23 = vld [vmem:[#allocation8 + $0xc4] ss:$8 sps:$4 sm:$0xff]  }
 0x4c4   :  { %5801 = vmatprep.mubr.bf16.mxu1 %v14296_v57  ;;  %v9818_v11 = vld [vmem:[#allocation8 + $0xe4] ss:$8 sps:$4 sm:$0xff]  }
 0x4c5   :  { %v9824_v36 = vld [vmem:[#allocation8 + $0x104] ss:$8 sps:$4 sm:$0xff]  }
 0x4cb   :  { %5802 = vmatmul.mubr.bf16.vlgmr.msra.gmra.mrb[56].mxu1 %v14297_v30 }
 0x4cc   :  { %5809 = vmatprep.mubr.bf16.mxu1 %v14298_v35  ;;  %6539 = vmatpush1.bf16.msra.mxu1 %v9774_v34 }
 0x4cd   :  { %6540 = vmatprep.subr.bf16.mxu1 %v9779_v58 }
 0x4d0   :  { %6541 = vmatpush1.bf16.msra.mxu1 %v9777_v17 }
 0x4d1   :  { %6542 = vmatprep.subr.bf16.mxu1 %v9782_v5 }
 0x4d3   :  { %5810 = vmatmul.mubr.bf16.gmra.mrb[60].mxu1 %v14299_v31 }
 0x4d4   :  { %5817 = vmatprep.mubr.bf16.mxu1 %v14300_v60  ;;  %6543 = vmatpush1.bf16.msra.mxu1 %v9780_v10 }
 0x4d5   :  { %6544 = vmatprep.subr.bf16.mxu1 %v9785_v25 }
 0x4d8   :  { %6545 = vmatpush1.bf16.msra.mxu1 %v9783_v46 }
 0x4d9   :  { %6546 = vmatprep.subr.bf16.mxu1 %v9788_v56 }
 0x4db   :  { %5818 = vmatmul.mubr.bf16.gmra.mrb[64].mxu1 %v14301_v41 }
 0x4dc   :  { %5825 = vmatprep.mubr.bf16.mxu1 %v12525_v62  ;;  %v9786_v62 = vld [vmem:[#allocation8 + $0x40] ss:$8 sps:$4 sm:$0xff]  }
 0x4dd   :  { %6547 = vmatpush1.bf16.msra.mxu1 %v9786_v62 }
 0x4e3   :  { %5826 = vmatmul.mubr.bf16.gmra.mrb[68].mxu1 %v12580_v12  ;;  %v9789_v12 = vld [vmem:[#allocation8 + $0x50] ss:$8 sps:$4 sm:$0xff]  }
 0x4e4   :  { %5833 = vmatprep.mubr.bf16.mxu1 %v12625_v50  ;;  %v9791_v50 = vld [vmem:[#allocation8 + $0x54] ss:$8 sps:$4 sm:$0xff]  }
 0x4e5   :  { %6548 = vmatprep.subr.bf16.mxu1 %v9791_v50 }
 0x4e6   :  { %6549 = vmatpush1.bf16.msra.mxu1 %v9789_v12 }
 0x4e7   :  { %6550 = vmatprep.subr.bf16.mxu1 %v9794_v0 }
 0x4ea   :  { %6551 = vmatpush1.bf16.msra.mxu1 %v9792_v63 }
 0x4eb   :  { %5834 = vmatmul.mubr.bf16.gmra.mrb[72].mxu1 %v12683_v44  ;;  %v9795_v44 = vld [vmem:[#allocation8 + $0x70] ss:$8 sps:$4 sm:$0xff]   ;;  %6552 = vmatprep.subr.bf16.mxu1 %v9797_v3 }
 0x4ec   :  { %5841 = vmatprep.mubr.bf16.mxu1 %v5450_v26  ;;  %v9800_v26 = vld [vmem:[#allocation8 + $0x84] ss:$8 sps:$4 sm:$0xff]  }
 0x4ee   :  { %6553 = vmatpush1.bf16.msra.mxu1 %v9795_v44 }
 0x4ef   :  { %6554 = vmatprep.subr.bf16.mxu1 %v9800_v26 }
 0x4f2   :  { %6555 = vmatpush1.bf16.msra.mxu1 %v9798_v52 }
 0x4f3   :  { %5842 = vmatmul.mubr.bf16.gmra.mrb[76].mxu1 %v5449_v43  ;;  %6556 = vmatprep.subr.bf16.mxu1 %v9803_v8 }
 0x4f6   :  { %6557 = vmatpush1.bf16.msra.mxu1 %v9801_v9 }
 0x4f7   :  { %6558 = vmatprep.subr.bf16.mxu1 %v9806_v14 }
 0x4fa   :  { %6559 = vmatpush1.bf16.msra.mxu1 %v9804_v39 }
 0x4fb   :  { %6560 = vmatprep.subr.bf16.mxu1 %v9809_v47 }
 0x4fe   :  { %6561 = vmatpush1.bf16.msra.mxu1 %v9807_v55 }
 0x4ff   :  { %6562 = vmatprep.subr.bf16.mxu1 %v9812_v23 }
 0x502   :  { %6563 = vmatpush1.bf16.msra.mxu1 %v9810_v51 }
 0x503   :  { %6564 = vmatprep.subr.bf16.mxu1 %v9815_v38 }
 0x506   :  { %6565 = vmatpush1.bf16.msra.mxu1 %v9813_v37 }
 0x507   :  { %6566 = vmatprep.subr.bf16.mxu1 %v9818_v11 }
 0x50a   :  { %6567 = vmatpush1.bf16.msra.mxu1 %v9816_v48 }
 0x50b   :  { %6568 = vmatprep.subr.bf16.mxu1 %v9821_v15 }
 0x50e   :  { %6569 = vmatpush1.bf16.msra.mxu1 %v9819_v32 }
 0x50f   :  { %6611 = vmatprep.subr.bf16.mxu1 %v9824_v36 }
 0x519   :  { %v9259_v4 = vpop.f32.mrb[40].mxu1 }
 0x51a   :  { %v9260_v20 = vpop.f32.mrb[41].mxu1 }
 0x51b   :  { %v12778_v7 = vadd.f32 %v9260_v20, %v9259_v4  ;;  %v9262_v16 = vpop.f32.mrb[42].mxu1 }
 0x51c   :  { %v9263_v2 = vpop.f32.mrb[43].mxu1 }
 0x51d   :  { %v12780_v24 = vadd.f32 %v9263_v2, %v9262_v16 }
 0x55a   :  { %v9265_v40 = vpop.f32.mrb[44].mxu1 }
 0x55b   :  { %v9266_v21 = vpop.f32.mrb[45].mxu1 }
 0x55c   :  { %v12782_v1 = vadd.f32 %v9266_v21, %v9265_v40  ;;  %v9268_v6 = vpop.f32.mrb[46].mxu1 }
 0x55d   :  { %v9269_v53 = vpop.f32.mrb[47].mxu1 }
 0x55e   :  { %v12784_v28 = vadd.f32 %v9269_v53, %v9268_v6 }
 0x579   :  { %v9271_v49 = vpop.f32.mrb[48].mxu1 }
 0x57a   :  { %v9272_v22 = vpop.f32.mrb[49].mxu1 }
 0x57b   :  { %v12786_v13 = vadd.f32 %v9272_v22, %v9271_v49  ;;  %v9274_v59 = vpop.f32.mrb[50].mxu1 }
 0x57c   :  { %v9275_v27 = vpop.f32.mrb[51].mxu1 }
 0x57d   :  { %v12788_v54 = vadd.f32 %v9275_v27, %v9274_v59 }
 0x596   :  { %v9277_v61 = vpop.f32.mrb[52].mxu1 }
 0x597   :  { %v9278_v19 = vpop.f32.mrb[53].mxu1 }
 0x598   :  { %v12790_v33 = vadd.f32 %v9278_v19, %v9277_v61  ;;  %v9280_v43 = vpop.f32.mrb[54].mxu1 }
 0x599   :  { %v9281_v57 = vpop.f32.mrb[55].mxu1 }
 0x59a   :  { %v12792_v34 = vadd.f32 %v9281_v57, %v9280_v43 }
 0x59e   :  { %v9299_v30 = vpop.f32.mrb[56].mxu1 }
 0x59f   :  { %v9300_v35 = vpop.f32.mrb[57].mxu1 }
 0x5a0   :  { %v9301_v31 = vadd.f32 %v9300_v35, %v9299_v30  ;;  %v9302_v60 = vpop.f32.mrb[58].mxu1  ;;  %v9822_v35 = vld [vmem:[#allocation8 + $0x100] ss:$8 sps:$4 sm:$0xff]  }
 0x5a1   :  { %v9303_v41 = vpop.f32.mrb[59].mxu1 }
 0x5a2   :  { %v5850_v17 = vmax.f32 %v12750_v29, %v9301_v31  ;;  %v9304_v58 = vadd.f32 %v9303_v41, %v9302_v60  ;;  %v9827_v41 = vld [vmem:[#allocation8 + $0x114] ss:$8 sps:$4 sm:$0xff]  }
 0x5a4   :  { %v5862_v5 = vmax.f32 %v5850_v17, 0.0  ;;  %v5851_v10 = vmax.f32 %v12756_v42, %v9304_v58 }
 0x5a6   :  { %v5886_v25 = vcombine.high %v5862_v5, %v5862_v5  ;;  %v5863_v46 = vmax.f32 %v5851_v10, 0.0  ;;  %v9305_v56 = vpop.f32.mrb[60].mxu1 }
 0x5a7   :  { %v9306_v62 = vpop.f32.mrb[61].mxu1 }
 0x5a8   :  { %v5898_v12 = vcombine.low %v5862_v5, %v5886_v25  ;;  %v9307_v50 = vadd.f32 %v9306_v62, %v9305_v56  ;;  %v9308_v0 = vpop.f32.mrb[62].mxu1  ;;  %v5947_v63 = vrot.slane %v5863_v46, 2  ;;  %v6010_v3 = vcombine.low %v5886_v25, %v5863_v46 }
 0x5a9   :  { %v9309_v44 = vpop.f32.mrb[63].mxu1  ;;  %v5915_v26 = vrot.slane %v5863_v46, 1  ;;  %v5887_v14 = vcombine.high %v5863_v46, %v5863_v46  ;;  %v5979_v4 = vrot.slane %v5863_v46, 3 }
 0x5aa   :  { %v5946_v52 = vrot.slane %v5898_v12, 2  ;;  %v5852_v9 = vmax.f32 %v12760_v18, %v9307_v50  ;;  %v9310_v8 = vadd.f32 %v9309_v44, %v9308_v0  ;;  %v5914_v29 = vrot.slane %v5898_v12, 1  ;;  %v9825_v44 = vld [vmem:[#allocation8 + $0x110] ss:$8 sps:$4 sm:$0xff]  }
 0x5ab   :  { %v5978_v39 = vrot.slane %v5898_v12, 3 }
 0x5ac   :  { %v5864_v42 = vmax.f32 %v5852_v9, 0.0  ;;  %v5853_v20 = vmax.f32 %v12762_v45, %v9310_v8  ;;  %v5916_v16 = vsel %vm209_vm1, %v5914_v29, %v5915_v26  ;;  %v12800_v2 = vsel %vm362_vm0, %v5946_v52, %v5947_v63  ;;  %v9830_v8 = vld [vmem:[#allocation8 + $0x124] ss:$8 sps:$4 sm:$0xff]  }
 0x5ad   :  { %v12803_v55 = vsel %vm1093_vm3, %v5978_v39, %v5979_v4 }
 0x5ae   :  { %v5888_v47 = vcombine.high %v5864_v42, %v5864_v42  ;;  %v5899_v23 = vcombine.low %v5887_v14, %v5864_v42  ;;  %v5865_v51 = vmax.f32 %v5853_v20, 0.0  ;;  %v9311_v18 = vpop.f32.mrb[64].mxu1 }
 0x5af   :  { %v9312_v37 = vpop.f32.mrb[65].mxu1 }
 0x5b0   :  { %v5949_v38 = vrot.slane %v5899_v23, 2  ;;  %v5950_v11 = vrot.slane %v5888_v47, 2  ;;  %v6011_v48 = vcombine.low %v5864_v42, %v5888_v47  ;;  %v12805_v32 = vcombine.high %v5865_v51, %v5865_v51  ;;  %v9314_v15 = vpop.f32.mrb[66].mxu1 }
 0x5b1   :  { %v9313_v45 = vadd.f32 %v9312_v37, %v9311_v18  ;;  %v9315_v36 = vpop.f32.mrb[67].mxu1  ;;  %v5917_v40 = vrot.slane %v5899_v23, 1  ;;  %v5918_v21 = vrot.slane %v5888_v47, 1  ;;  %v6026_v6 = vpack.c.bf16 %v5899_v23, %v5898_v12 }
 0x5b2   :  { %v12807_v53 = vpack.c.bf16 %v6011_v48, %v6010_v3  ;;  %v12810_v49 = vcombine.low %v5865_v51, %v12805_v32  ;;  %v9316_v22 = vadd.f32 %v9315_v36, %v9314_v15  ;;  %v5981_v59 = vrot.slane %v5899_v23, 3 }
 0x5b3   :  { %v5854_v27 = vmax.f32 %v12778_v7, %v9313_v45  ;;  %v5919_v61 = vsel %vm209_vm1, %v5917_v40, %v5918_v21  ;;  %v5982_v19 = vrot.slane %v5888_v47, 3  ;;  %v12815_v43 = vsel %vm362_vm0, %v5949_v38, %v5950_v11  ;;  %v9828_v11 = vld [vmem:[#allocation8 + $0x120] ss:$8 sps:$4 sm:$0xff]   ;;  %v9833_v45 = vld [vmem:[#allocation8 + $0x134] ss:$8 sps:$4 sm:$0xff]  }
 0x5b4   :  { %v5855_v57 = vmax.f32 %v12780_v24, %v9316_v22  ;;  %v6027_v30 = vpack.c.bf16 %v5919_v61, %v5916_v16  ;;  %v6028_v31 = vpack.c.bf16 %v12815_v43, %v12800_v2  ;;  %v5920_v17 = vrot.slane %v12810_v49, 1  ;;  %v9879_v2 = vld [vmem:[#allocation8 + $0x230] ss:$8 sps:$4 sm:$0xff]   ;;  %v9884_v43 = vld [vmem:[#allocation8 + $0x244] ss:$8 sps:$4 sm:$0xff]  }
 0x5b5   :  { %v5866_v60 = vmax.f32 %v5854_v27, 0.0  ;;  %v12822_v58 = vsel %vm1093_vm3, %v5981_v59, %v5982_v19  ;;  %v5984_v24 = vrot.slane %v12810_v49, 3  ;;  %v5952_v25 = vrot.slane %v12810_v49, 2 }
 0x5b6   :  { %v5867_v7 = vmax.f32 %v5855_v57, 0.0  ;;  %6570 = vmatprep.mubr.bf16.mxu1 %v6027_v30  ;;  %v9317_v5 = vpop.f32.mrb[68].mxu1  ;;  %v6029_v10 = vpack.c.bf16 %v12822_v58, %v12803_v55  ;;  %v9831_v57 = vld [vmem:[#allocation8 + $0x130] ss:$8 sps:$4 sm:$0xff]   ;;  %v9869_v55 = vld [vmem:[#allocation8 + $0x1f4] ss:$8 sps:$4 sm:$0xff]  }
 0x5b7   :  { %v5890_v46 = vcombine.high %v5866_v60, %v5866_v60  ;;  %6571 = vmatmul.mubr.bf16.vlgmr.msra.gmra.mrb[80].mxu1 %v6026_v6  ;;  %v9318_v56 = vpop.f32.mrb[69].mxu1  ;;  %v5921_v62 = vrot.slane %v5866_v60, 1  ;;  %v5985_v12 = vrot.slane %v5866_v60, 3  ;;  %v5953_v50 = vrot.slane %v5866_v60, 2  ;;  %v9867_v58 = vld [vmem:[#allocation8 + $0x1f0] ss:$8 sps:$4 sm:$0xff]  }
 0x5b8   :  { %v5891_v0 = vcombine.high %v5867_v7, %v5867_v7  ;;  %6612 = vmatpush1.bf16.msra.mxu1 %v9822_v35  ;;  %v9319_v63 = vadd.f32 %v9318_v56, %v9317_v5  ;;  %v9320_v3 = vpop.f32.mrb[70].mxu1  ;;  %v6012_v26 = vcombine.low %v12805_v32, %v5866_v60  ;;  %v9836_v35 = vld [vmem:[#allocation8 + $0x144] ss:$8 sps:$4 sm:$0xff]  }
 0x5b9   :  { %v5901_v52 = vcombine.low %v5890_v46, %v5867_v7  ;;  %v9321_v9 = vpop.f32.mrb[71].mxu1  ;;  %6613 = vmatprep.subr.bf16.mxu1 %v9827_v41  ;;  %v5922_v29 = vsel %vm209_vm1, %v5920_v17, %v5921_v62  ;;  %v12831_v14 = vsel %vm1093_vm3, %v5984_v24, %v5985_v12  ;;  %v12834_v39 = vsel %vm362_vm0, %v5952_v25, %v5953_v50 }
 0x5ba   :  { %v5856_v4 = vmax.f32 %v12782_v1, %v9319_v63  ;;  %v9322_v42 = vadd.f32 %v9321_v9, %v9320_v3  ;;  %v5924_v20 = vrot.slane %v5891_v0, 1  ;;  %v5988_v16 = vrot.slane %v5891_v0, 3  ;;  %v9834_v63 = vld [vmem:[#allocation8 + $0x140] ss:$8 sps:$4 sm:$0xff]  }
 0x5bb   :  { %v5923_v47 = vrot.slane %v5901_v52, 1  ;;  %v6031_v23 = vpack.c.bf16 %v5901_v52, %v12810_v49  ;;  %v5987_v51 = vrot.slane %v5901_v52, 3  ;;  %v5955_v18 = vrot.slane %v5901_v52, 2 }
 0x5bc   :  { %v5868_v37 = vmax.f32 %v5856_v4, 0.0  ;;  %v5857_v38 = vmax.f32 %v12784_v28, %v9322_v42  ;;  %6614 = vmatpush1.bf16.msra.mxu1 %v9825_v44  ;;  %v5956_v48 = vrot.slane %v5891_v0, 2  ;;  %v6013_v32 = vcombine.low %v5867_v7, %v5891_v0  ;;  %v9839_v44 = vld [vmem:[#allocation8 + $0x154] ss:$8 sps:$4 sm:$0xff]  }
 0x5bd   :  { %6615 = vmatprep.subr.bf16.mxu1 %v9830_v8  ;;  %v5925_v15 = vsel %vm209_vm1, %v5923_v47, %v5924_v20  ;;  %v12841_v1 = vsel %vm1093_vm3, %v5987_v51, %v5988_v16  ;;  %v9837_v16 = vld [vmem:[#allocation8 + $0x150] ss:$8 sps:$4 sm:$0xff]  }
 0x5be   :  { %v12843_v36 = vcombine.high %v5868_v37, %v5868_v37  ;;  %v12845_v40 = vmax.f32 %v5857_v38, 0.0  ;;  %v9323_v21 = vpop.f32.mrb[72].mxu1  ;;  %v6032_v6 = vpack.c.bf16 %v5925_v15, %v5922_v29  ;;  %v6034_v28 = vpack.c.bf16 %v12841_v1, %v12831_v14  ;;  %v9887_v14 = vld [vmem:[#allocation8 + $0x254] ss:$8 sps:$4 sm:$0xff]   ;;  %v9890_v1 = vld [vmem:[#allocation8 + $0x264] ss:$8 sps:$4 sm:$0xff]  }
 0x5bf   :  { %v9324_v49 = vpop.f32.mrb[73].mxu1  ;;  %v12850_v22 = vsel %vm362_vm0, %v5955_v18, %v5956_v48  ;;  %v12852_v59 = vpack.c.bf16 %v6013_v32, %v6012_v26  ;;  %v9842_v18 = vld [vmem:[#allocation8 + $0x164] ss:$8 sps:$4 sm:$0xff]  }
 0x5c0   :  { %v12855_v27 = vcombine.low %v5868_v37, %v12843_v36  ;;  %6616 = vmatpush1.bf16.msra.mxu1 %v9828_v11  ;;  %v9325_v61 = vadd.f32 %v9324_v49, %v9323_v21  ;;  %6580 = vmatprep.mubr.bf16.mxu1 %v6032_v6  ;;  %v9326_v19 = vpop.f32.mrb[74].mxu1  ;;  %v5927_v60 = vrot.slane %v12845_v40, 1  ;;  %v6033_v41 = vpack.c.bf16 %v12850_v22, %v12834_v39  ;;  %v9885_v39 = vld [vmem:[#allocation8 + $0x250] ss:$8 sps:$4 sm:$0xff]   ;;  %v9893_v22 = vld [vmem:[#allocation8 + $0x274] ss:$8 sps:$4 sm:$0xff]  }
 0x5c1   :  { %6581 = vmatmul.mubr.bf16.gmra.mrb[84].mxu1 %v6031_v23  ;;  %v9327_v30 = vpop.f32.mrb[75].mxu1  ;;  %6617 = vmatprep.subr.bf16.mxu1 %v9833_v45  ;;  %v5991_v17 = vrot.slane %v12845_v40, 3  ;;  %v6014_v7 = vcombine.low %v12843_v36, %v12845_v40  ;;  %v5893_v56 = vcombine.high %v12845_v40, %v12845_v40  ;;  %v5959_v12 = vrot.slane %v12845_v40, 2 }
 0x5c2   :  { %v5858_v5 = vmax.f32 %v12786_v13, %v9325_v61  ;;  %v9328_v24 = vadd.f32 %v9327_v30, %v9326_v19  ;;  %v5926_v25 = vrot.slane %v12855_v27, 1  ;;  %v5990_v46 = vrot.slane %v12855_v27, 3 }
 0x5c3   :  { %v5958_v62 = vrot.slane %v12855_v27, 2 }
 0x5c4   :  { %v5870_v50 = vmax.f32 %v5858_v5, 0.0  ;;  %v5859_v0 = vmax.f32 %v12788_v54, %v9328_v24  ;;  %6618 = vmatpush1.bf16.msra.mxu1 %v9831_v57  ;;  %v5928_v3 = vsel %vm209_vm1, %v5926_v25, %v5927_v60  ;;  %v12873_v13 = vsel %vm1093_vm3, %v5990_v46, %v5991_v17 }
 0x5c5   :  { %6619 = vmatprep.subr.bf16.mxu1 %v9836_v35  ;;  %v12876_v26 = vsel %vm362_vm0, %v5958_v62, %v5959_v12 }
 0x5c6   :  { %v5894_v52 = vcombine.high %v5870_v50, %v5870_v50  ;;  %v5903_v9 = vcombine.low %v5893_v56, %v5870_v50  ;;  %v5871_v8 = vmax.f32 %v5859_v0, 0.0  ;;  %v9329_v29 = vpop.f32.mrb[76].mxu1 }
 0x5c7   :  { %v9330_v4 = vpop.f32.mrb[77].mxu1 }
 0x5c8   :  { %v12878_v42 = vcombine.high %v5871_v8, %v5871_v8  ;;  %6620 = vmatpush1.bf16.msra.mxu1 %v9834_v63  ;;  %v9331_v54 = vadd.f32 %v9330_v4, %v9329_v29  ;;  %v9332_v20 = vpop.f32.mrb[78].mxu1  ;;  %v5929_v47 = vrot.slane %v5903_v9, 1  ;;  %v5930_v23 = vrot.slane %v5894_v52, 1  ;;  %v9843_v63 = vld [vmem:[#allocation8 + $0x170] ss:$8 sps:$4 sm:$0xff]  }
 0x5c9   :  { %v9333_v51 = vpop.f32.mrb[79].mxu1  ;;  %6621 = vmatprep.subr.bf16.mxu1 %v9839_v44  ;;  %v6036_v37 = vpack.c.bf16 %v5903_v9, %v12855_v27  ;;  %v5993_v38 = vrot.slane %v5903_v9, 3  ;;  %v5994_v11 = vrot.slane %v5894_v52, 3  ;;  %v5961_v48 = vrot.slane %v5903_v9, 2  ;;  %v9840_v27 = vld [vmem:[#allocation8 + $0x160] ss:$8 sps:$4 sm:$0xff]  }
 0x5ca   :  { %v5904_v32 = vcombine.low %v5871_v8, %v12878_v42  ;;  %v5860_v15 = vmax.f32 %v12790_v33, %v9331_v54  ;;  %v9334_v45 = vadd.f32 %v9333_v51, %v9332_v20  ;;  %v5931_v36 = vsel %vm209_vm1, %v5929_v47, %v5930_v23  ;;  %v9845_v33 = vld [vmem:[#allocation8 + $0x174] ss:$8 sps:$4 sm:$0xff]   ;;  %v9846_v47 = vld [vmem:[#allocation8 + $0x180] ss:$8 sps:$4 sm:$0xff]  }
 0x5cb   :  { %v6037_v40 = vpack.c.bf16 %v5931_v36, %v5928_v3  ;;  %v12885_v21 = vsel %vm1093_vm3, %v5993_v38, %v5994_v11  ;;  %v5962_v6 = vrot.slane %v5894_v52, 2  ;;  %v6015_v49 = vcombine.low %v5870_v50, %v5894_v52  ;;  %v9852_v36 = vld [vmem:[#allocation8 + $0x1a0] ss:$8 sps:$4 sm:$0xff]  }
 0x5cc   :  { %v5872_v61 = vmax.f32 %v5860_v15, 0.0  ;;  %v5861_v19 = vmax.f32 %v12792_v34, %v9334_v45  ;;  %6622 = vmatpush1.bf16.msra.mxu1 %v9837_v16  ;;  %v6039_v57 = vpack.c.bf16 %v12885_v21, %v12873_v13  ;;  %v5932_v30 = vrot.slane %v5904_v32, 1  ;;  %v9849_v15 = vld [vmem:[#allocation8 + $0x190] ss:$8 sps:$4 sm:$0xff]   ;;  %v9854_v45 = vld [vmem:[#allocation8 + $0x1a4] ss:$8 sps:$4 sm:$0xff]  }
 0x5cd   :  { %6590 = vmatprep.mubr.bf16.mxu1 %v6037_v40  ;;  %6623 = vmatprep.subr.bf16.mxu1 %v9842_v18  ;;  %v12891_v35 = vsel %vm362_vm0, %v5961_v48, %v5962_v6  ;;  %v5996_v60 = vrot.slane %v5904_v32, 3  ;;  %v12893_v17 = vpack.c.bf16 %v6015_v49, %v6014_v7  ;;  %v5964_v56 = vrot.slane %v5904_v32, 2  ;;  %v9848_v7 = vld [vmem:[#allocation8 + $0x184] ss:$8 sps:$4 sm:$0xff]   ;;  %v9851_v18 = vld [vmem:[#allocation8 + $0x194] ss:$8 sps:$4 sm:$0xff]  }
 0x5ce   :  { %v5873_v5 = vmax.f32 %v5861_v19, 0.0  ;;  %v5896_v24 = vcombine.high %v5872_v61, %v5872_v61  ;;  %6591 = vmatmul.mubr.bf16.gmra.mrb[88].mxu1 %v6036_v37  ;;  %v5933_v25 = vrot.slane %v5872_v61, 1  ;;  %v6038_v34 = vpack.c.bf16 %v12891_v35, %v12876_v26  ;;  %v9857_v40 = vld [vmem:[#allocation8 + $0x1b4] ss:$8 sps:$4 sm:$0xff]   ;;  %v9855_v6 = vld [vmem:[#allocation8 + $0x1b0] ss:$8 sps:$4 sm:$0xff]  }
 0x5cf   :  { %v5997_v46 = vrot.slane %v5872_v61, 3  ;;  %v5965_v62 = vrot.slane %v5872_v61, 2  ;;  %v6016_v12 = vcombine.low %v12878_v42, %v5872_v61  ;;  %v9860_v49 = vld [vmem:[#allocation8 + $0x1c4] ss:$8 sps:$4 sm:$0xff]   ;;  %v9858_v61 = vld [vmem:[#allocation8 + $0x1c0] ss:$8 sps:$4 sm:$0xff]  }
 0x5d0   :  { %v5897_v50 = vcombine.high %v5873_v5, %v5873_v5  ;;  %v5905_v0 = vcombine.low %v5896_v24, %v5873_v5  ;;  %6624 = vmatpush1.bf16.msra.mxu1 %v9840_v27  ;;  %v5934_v3 = vsel %vm209_vm1, %v5932_v30, %v5933_v25  ;;  %v9863_v19 = vld [vmem:[#allocation8 + $0x1d4] ss:$8 sps:$4 sm:$0xff]   ;;  %v9861_v27 = vld [vmem:[#allocation8 + $0x1d0] ss:$8 sps:$4 sm:$0xff]   ;;  %v9864_v30 = vld [vmem:[#allocation8 + $0x1e0] ss:$8 sps:$4 sm:$0xff]  }
 0x5d1   :  { %6625 = vmatprep.subr.bf16.mxu1 %v9845_v33  ;;  %v12900_v44 = vsel %vm1093_vm3, %v5996_v60, %v5997_v46  ;;  %v12903_v52 = vsel %vm362_vm0, %v5964_v56, %v5965_v62  ;;  %v9866_v33 = vld [vmem:[#allocation8 + $0x1e4] ss:$8 sps:$4 sm:$0xff]   ;;  %v9870_v60 = vld [vmem:[#allocation8 + $0x200] ss:$8 sps:$4 sm:$0xff]   ;;  %v9873_v24 = vld [vmem:[#allocation8 + $0x210] ss:$8 sps:$4 sm:$0xff]  }
 0x5d2   :  { %v5935_v9 = vrot.slane %v5905_v0, 1  ;;  %v5936_v8 = vrot.slane %v5897_v50, 1  ;;  %v6041_v29 = vpack.c.bf16 %v5905_v0, %v5904_v32  ;;  %v5999_v4 = vrot.slane %v5905_v0, 3  ;;  %v9878_v25 = vld [vmem:[#allocation8 + $0x224] ss:$8 sps:$4 sm:$0xff]  }
 0x5d3   :  { %v6000_v54 = vrot.slane %v5897_v50, 3  ;;  %v5967_v42 = vrot.slane %v5905_v0, 2  ;;  %v5968_v20 = vrot.slane %v5897_v50, 2  ;;  %v6017_v16 = vcombine.low %v5873_v5, %v5897_v50  ;;  %v9875_v5 = vld [vmem:[#allocation8 + $0x214] ss:$8 sps:$4 sm:$0xff]   ;;  %v9897_v21 = vld [vmem:[%s13754_s6 + $0x8] sm:$0xff]  }
 0x5d4   :  { %6626 = vmatpush1.bf16.msra.mxu1 %v9843_v63  ;;  %v5937_v23 = vsel %vm209_vm1, %v5935_v9, %v5936_v8  ;;  %v9876_v46 = vld [vmem:[#allocation8 + $0x220] ss:$8 sps:$4 sm:$0xff]   ;;  %v9881_v56 = vld [vmem:[#allocation8 + $0x234] ss:$8 sps:$4 sm:$0xff]   ;;  %v14302_v13 = vmov 0  }
 0x5d5   :  { %6627 = vmatprep.subr.bf16.mxu1 %v9848_v7  ;;  %v6042_v51 = vpack.c.bf16 %v5937_v23, %v5934_v3  ;;  %v6001_v37 = vsel %vm1093_vm3, %v5999_v4, %v6000_v54  ;;  %v12908_v38 = vsel %vm362_vm0, %v5967_v42, %v5968_v20  ;;  %v12910_v11 = vpack.c.bf16 %v6017_v16, %v6016_v12  ;;  %v9894_v26 = vld [vmem:[%s13754_s6 + $0x40] sm:$0xff]   ;;  %v14304_v12 = vld [vmem:[#allocation18_spill] sm:$0xff] }
 0x5d6   :  { %v6044_v48 = vpack.c.bf16 %v6001_v37, %v12900_v44  ;;  %v6043_v32 = vpack.c.bf16 %v12908_v38, %v12903_v52  ;;  %v6126_v35 = vld [vmem:[%s13753_s5] sm:$0x3] }
 0x5d7   :  { %6600 = vmatprep.mubr.bf16.mxu1 %v6042_v51  ;;  %v12969_v50 = vrot.slane %v6126_v35, %v14304_v12  ;;  %v14305_v54 = vld [vmem:[#allocation19_spill] sm:$0xff] }
 0x5d8   :  { %6628 = vmatpush1.bf16.msra.mxu1 %v9846_v47 }
 0x5d9   :  { %6601 = vmatmul.mubr.bf16.gmra.mrb[92].mxu1 %v6041_v29  ;;  %6629 = vmatprep.subr.bf16.mxu1 %v9851_v18 }
 0x5da   :  { %6643 = vmatprep.mubr.bf16.mxu1 %v6029_v10  ;;  %v9872_v10 = vld [vmem:[#allocation8 + $0x204] ss:$8 sps:$4 sm:$0xff]  }
 0x5dc   :  { %6630 = vmatpush1.bf16.msra.mxu1 %v9849_v15 }
 0x5dd   :  { %6631 = vmatprep.subr.bf16.mxu1 %v9854_v45 }
 0x5e0   :  { %6632 = vmatpush1.bf16.msra.mxu1 %v9852_v36 }
 0x5e1   :  { %6633 = vmatprep.subr.bf16.mxu1 %v9857_v40 }
 0x5e4   :  { %6634 = vmatpush1.bf16.msra.mxu1 %v9855_v6 }
 0x5e5   :  { %6635 = vmatprep.subr.bf16.mxu1 %v9860_v49 }
 0x5e8   :  { %6636 = vmatpush1.bf16.msra.mxu1 %v9858_v61 }
 0x5e9   :  { %6637 = vmatprep.subr.bf16.mxu1 %v9863_v19 }
 0x5ec   :  { %6638 = vmatpush1.bf16.msra.mxu1 %v9861_v27 }
 0x5ed   :  { %6639 = vmatprep.subr.bf16.mxu1 %v9866_v33 }
 0x5f0   :  { %6640 = vmatpush1.bf16.msra.mxu1 %v9864_v30 }
 0x5f1   :  { %6641 = vmatprep.subr.bf16.mxu1 %v9869_v55 }
 0x5f4   :  { %6642 = vmatpush1.bf16.msra.mxu1 %v9867_v58 }
 0x5f5   :  { %6684 = vmatprep.subr.bf16.mxu1 %v9872_v10 }
 0x5f7   :  { %6644 = vmatmul.mubr.bf16.vlgmr.msra.gmra.mrb[80].mxu1 %v6028_v31  ;;  %v9882_v31 = vld [vmem:[#allocation8 + $0x240] ss:$8 sps:$4 sm:$0xff]  }
 0x5f8   :  { %6653 = vmatprep.mubr.bf16.mxu1 %v6034_v28  ;;  %6685 = vmatpush1.bf16.msra.mxu1 %v9870_v60  ;;  %v9888_v28 = vld [vmem:[#allocation8 + $0x260] ss:$8 sps:$4 sm:$0xff]  }
 0x5f9   :  { %6686 = vmatprep.subr.bf16.mxu1 %v9875_v5 }
 0x5fc   :  { %6687 = vmatpush1.bf16.msra.mxu1 %v9873_v24 }
 0x5fd   :  { %6688 = vmatprep.subr.bf16.mxu1 %v9878_v25 }
 0x5ff   :  { %6654 = vmatmul.mubr.bf16.gmra.mrb[84].mxu1 %v6033_v41  ;;  %v9891_v41 = vld [vmem:[#allocation8 + $0x270] ss:$8 sps:$4 sm:$0xff]  }
 0x600   :  { %6663 = vmatprep.mubr.bf16.mxu1 %v6039_v57  ;;  %6689 = vmatpush1.bf16.msra.mxu1 %v9876_v46  ;;  %v9898_v57 = vld [vmem:[%s13754_s6 + $0x50] sm:$0xff]  }
 0x601   :  { %6690 = vmatprep.subr.bf16.mxu1 %v9881_v56 }
 0x604   :  { %6691 = vmatpush1.bf16.msra.mxu1 %v9879_v2 }
 0x605   :  { %6692 = vmatprep.subr.bf16.mxu1 %v9884_v43 }
 0x607   :  { %6664 = vmatmul.mubr.bf16.gmra.mrb[88].mxu1 %v6038_v34  ;;  %v14303_v34 = vld [vmem:[#allocation17_spill] sm:$0xff] }
 0x608   :  { %6673 = vmatprep.mubr.bf16.mxu1 %v6044_v48  ;;  %6693 = vmatpush1.bf16.msra.mxu1 %v9882_v31  ;;  %v12966_v62 = vrot.slane %v6126_v35, %v14303_v34 }
 0x609   :  { %6694 = vmatprep.subr.bf16.mxu1 %v9887_v14 }
 0x60c   :  { %6695 = vmatpush1.bf16.msra.mxu1 %v9885_v39  ;;  %v9900_v39 = vld [vmem:[%s13754_s6 + $0x58] sm:$0xff]  }
 0x60d   :  { %6696 = vmatprep.subr.bf16.mxu1 %v9890_v1 }
 0x60f   :  { %6674 = vmatmul.mubr.bf16.gmra.mrb[92].mxu1 %v6043_v32 }
 0x610   :  { %6697 = vmatpush1.bf16.msra.mxu1 %v9888_v28  ;;  %6716 = vmatprep.mubr.bf16.mxu1 %v14302_v13 }
 0x611   :  { %6698 = vmatprep.subr.bf16.mxu1 %v9893_v22 }
 0x614   :  { %6699 = vmatpush1.bf16.msra.mxu1 %v9891_v41 }
 0x615   :  { %9335 = vmatprep.subr.bf16.mxu1 %v9894_v26  ;;  %v9901_v26 = vld [vmem:[%s13754_s6 + $0x18] sm:$0xff]  }
 0x617   :  { %6717 = vmatmul.mubr.bf16.vlgmr.msra.gmra.mrb[80].mxu1 %v12807_v53  ;;  %v9895_v53 = vld [vmem:[%s13754_s6] sm:$0xff]  }
 0x618   :  { %6726 = vmatprep.mubr.bf16.mxu1 %v14302_v13  ;;  %9336 = vmatpush3.bf16.msra.mxu1 %v9895_v53 }
 0x61f   :  { %6727 = vmatmul.mubr.bf16.gmra.mrb[84].mxu1 %v12852_v59  ;;  %v9896_v59 = vld [vmem:[%s13754_s6 + $0x48] sm:$0xff]  }
 0x620   :  { %6736 = vmatprep.mubr.bf16.mxu1 %v14302_v13  ;;  %9337 = vmatprep.subr.bf16.mxu1 %v9896_v59 }
 0x621   :  { %9338 = vmatpush3.bf16.msra.mxu1 %v9897_v21 }
 0x622   :  { %9339 = vmatprep.subr.bf16.mxu1 %v9898_v57 }
 0x627   :  { %6737 = vmatmul.mubr.bf16.gmra.mrb[88].mxu1 %v12893_v17  ;;  %v9899_v17 = vld [vmem:[%s13754_s6 + $0x10] sm:$0xff]  }
 0x628   :  { %6746 = vmatprep.mubr.bf16.mxu1 %v14302_v13  ;;  %9340 = vmatpush3.bf16.msra.mxu1 %v9899_v17 }
 0x629   :  { %9341 = vmatprep.subr.bf16.mxu1 %v9900_v39 }
 0x62c   :  { %9342 = vmatpush3.bf16.msra.mxu1 %v9901_v26 }
 0x62f   :  { %6747 = vmatmul.mubr.bf16.gmra.mrb[92].mxu1 %v12910_v11 }
 0x6ea   :  { %v6718_v0 = vpop.f32.mrb[80].mxu1 }
 0x6eb   :  { %v9478_v63 = vadd.f32 %v6718_v0, %v12966_v62  ;;  %v6720_v3 = vpop.f32.mrb[81].mxu1 }
 0x6ec   :  { %v9479_v7 = vadd.f32 %v6720_v3, %v12969_v50  ;;  %v6722_v44 = vpop.f32.mrb[82].mxu1 }
 0x6ed   :  { %v9480_v52 = vadd.f32 %v6722_v44, %v12966_v62  ;;  %v6724_v9 = vpop.f32.mrb[83].mxu1 }
 0x6ee   :  { %v6773_v8 = vcombine.low %v9478_v63, %v9479_v7  ;;  %v6774_v29 = vcombine.high %v9478_v63, %v9479_v7  ;;  %v9481_v4 = vadd.f32 %v6724_v9, %v12969_v50 }
 0x6f0   :  { %v6781_v42 = vrot.slane %v6773_v8, %v14305_v54  ;;  %v6788_v20 = vrot.slane %v6774_v29, %v14305_v54  ;;  %v6791_v16 = vcombine.low %v9480_v52, %v9481_v4  ;;  %v6792_v47 = vcombine.high %v9480_v52, %v9481_v4  ;;  %v9902_v4 = vld [vmem:[%s13754_s6 + $0x60] sm:$0xff]  }
 0x6f1   :  { %9343 = vmatprep.subr.bf16.mxu1 %v9902_v4 }
 0x6f2   :  { %v6789_v23 = vcombine.high %v6781_v42, %v6781_v42  ;;  %v6790_v51 = vcombine.high %v6788_v20, %v6788_v20  ;;  %v6923_v18 = vrot.slane %v6781_v42, %v14305_v54  ;;  %v6939_v37 = vrot.slane %v6788_v20, %v14305_v54  ;;  %v12979_v38 = vpop.f32.mrb[84].mxu1 }
 0x6f3   :  { %v12981_v11 = vpop.f32.mrb[85].mxu1  ;;  %v12990_v49 = vrot.slane %v6791_v16, %v14305_v54  ;;  %v12993_v61 = vrot.slane %v6792_v47, %v14305_v54 }
 0x6f4   :  { %v6924_v48 = vcombine.high %v6923_v18, %v6923_v18  ;;  %v6931_v32 = vrot.slane %v6789_v23, %v14305_v54  ;;  %v6940_v15 = vcombine.high %v6939_v37, %v6939_v37  ;;  %v6947_v45 = vrot.slane %v6790_v51, %v14305_v54  ;;  %v12985_v36 = vpop.f32.mrb[86].mxu1  ;;  %v9903_v23 = vld [vmem:[%s13754_s6 + $0x20] sm:$0xff]  }
 0x6f5   :  { %v7237_v40 = vsel %vm3311_vm5, %v6923_v18, -inf  ;;  %v7265_v6 = vsel %vm3311_vm5, %v6939_v37, -inf  ;;  %v12995_v19 = vpop.f32.mrb[87].mxu1  ;;  %9344 = vmatpush3.bf16.msra.mxu1 %v9903_v23 }
 0x6f6   :  { %v6932_v27 = vcombine.high %v6931_v32, %v6931_v32  ;;  %v6948_v33 = vcombine.high %v6947_v45, %v6947_v45  ;;  %v7238_v30 = vrot.slane %v7237_v40, 4  ;;  %v7244_v55 = vsel %vm3311_vm5, %v6924_v48, -inf }
 0x6f7   :  { %v7245_v58 = vrot.slane %v7244_v55, 4  ;;  %v7251_v10 = vsel %vm3311_vm5, %v6931_v32, -inf  ;;  %v7266_v60 = vrot.slane %v7265_v6, 4  ;;  %v7272_v5 = vsel %vm3311_vm5, %v6940_v15, -inf }
 0x6f8   :  { %v7239_v24 = vmax.f32 %v7237_v40, %v7238_v30  ;;  %v7252_v25 = vrot.slane %v7251_v10, 4  ;;  %v7258_v46 = vsel %vm3311_vm5, %v6932_v27, -inf  ;;  %v7273_v56 = vrot.slane %v7272_v5, 4 }
 0x6f9   :  { %v7246_v2 = vmax.f32 %v7244_v55, %v7245_v58  ;;  %v7259_v43 = vrot.slane %v7258_v46, 4  ;;  %v7267_v31 = vmax.f32 %v7265_v6, %v7266_v60  ;;  %v7279_v14 = vsel %vm3311_vm5, %v6947_v45, -inf  ;;  %v9904_v55 = vld [vmem:[%s13754_s6 + $0x68] sm:$0xff]  }
 0x6fa   :  { %v7240_v1 = vrot.slane %v7239_v24, 2  ;;  %v7253_v28 = vmax.f32 %v7251_v10, %v7252_v25  ;;  %v7274_v22 = vmax.f32 %v7272_v5, %v7273_v56  ;;  %v7280_v41 = vrot.slane %v7279_v14, 4  ;;  %v13005_v13 = vpop.f32.mrb[88].mxu1  ;;  %9345 = vmatprep.subr.bf16.mxu1 %v9904_v55 }
 0x6fb   :  { %v7247_v53 = vrot.slane %v7246_v2, 2  ;;  %v7260_v59 = vmax.f32 %v7258_v46, %v7259_v43  ;;  %v7268_v21 = vrot.slane %v7267_v31, 2  ;;  %v7286_v57 = vsel %vm3311_vm5, %v6948_v33, -inf  ;;  %v13011_v35 = vpop.f32.mrb[89].mxu1 }
 0x6fc   :  { %v7241_v17 = vmax.f32 %v7239_v24, %v7240_v1  ;;  %v7254_v0 = vrot.slane %v7253_v28, 2  ;;  %v7275_v63 = vrot.slane %v7274_v22, 2  ;;  %v7281_v3 = vmax.f32 %v7279_v14, %v7280_v41  ;;  %v13013_v7 = vpop.f32.mrb[90].mxu1  ;;  %v9905_v24 = vld [vmem:[%s13754_s6 + $0x28] sm:$0xff]  }
 0x6fd   :  { %v7248_v44 = vmax.f32 %v7246_v2, %v7247_v53  ;;  %v7261_v52 = vrot.slane %v7260_v59, 2  ;;  %v7269_v9 = vmax.f32 %v7267_v31, %v7268_v21  ;;  %v7287_v8 = vrot.slane %v7286_v57, 4  ;;  %v13015_v29 = vpop.f32.mrb[91].mxu1  ;;  %9346 = vmatpush3.bf16.msra.mxu1 %v9905_v24  ;;  %v9906_v53 = vld [vmem:[%s13754_s6 + $0x70] sm:$0xff]  }
 0x6fe   :  { %v7242_v42 = vrot.slane %v7241_v17, 1  ;;  %v7255_v20 = vmax.f32 %v7253_v28, %v7254_v0  ;;  %v7276_v16 = vmax.f32 %v7274_v22, %v7275_v63  ;;  %v7282_v47 = vrot.slane %v7281_v3, 2  ;;  %v9907_v0 = vld [vmem:[%s13754_s6 + $0x30] sm:$0xff]   ;;  %9347 = vmatprep.subr.bf16.mxu1 %v9906_v53 }
 0x6ff   :  { %v7249_v51 = vrot.slane %v7248_v44, 1  ;;  %v7262_v18 = vmax.f32 %v7260_v59, %v7261_v52  ;;  %v7270_v37 = vrot.slane %v7269_v9, 1  ;;  %v7288_v48 = vmax.f32 %v7286_v57, %v7287_v8 }
 0x700   :  { %v7243_v32 = vmax.f32 %v7241_v17, %v7242_v42  ;;  %v7256_v15 = vrot.slane %v7255_v20, 1  ;;  %v7277_v45 = vrot.slane %v7276_v16, 1  ;;  %v7283_v40 = vmax.f32 %v7281_v3, %v7282_v47  ;;  %v9908_v47 = vld [vmem:[%s13754_s6 + $0x78] sm:$0xff]  }
 0x701   :  { %v13023_v6 = vmax.f32 %v7248_v44, %v7249_v51  ;;  %v7263_v27 = vrot.slane %v7262_v18, 1  ;;  %v7271_v33 = vmax.f32 %v7269_v9, %v7270_v37  ;;  %v7289_v30 = vrot.slane %v7288_v48, 2  ;;  %9348 = vmatpush3.bf16.msra.mxu1 %v9907_v0  ;;  %v9909_v37 = vld [vmem:[%s13754_s6 + $0x38] sm:$0xff]  }
 0x702   :  { %v7257_v58 = vmax.f32 %v7255_v20, %v7256_v15  ;;  %v7284_v10 = vrot.slane %v7283_v40, 1  ;;  %v7685_v60 = vpack.c.bf16 %v7243_v32, %v7243_v32  ;;  %v13028_v5 = vpop.f32.mrb[92].mxu1  ;;  %v13033_v25 = vmax.f32 %v7276_v16, %v7277_v45  ;;  %9349 = vmatprep.subr.bf16.mxu1 %v9908_v47 }
 0x703   :  { %v7689_v46 = vpack.c.bf16 %v7271_v33, %v7271_v33  ;;  %v6807_v56 = vcombine.high %v12990_v49, %v12990_v49  ;;  %v13037_v2 = vpop.f32.mrb[93].mxu1  ;;  %v7290_v31 = vmax.f32 %v7288_v48, %v7289_v30  ;;  %v7264_v1 = vmax.f32 %v7262_v18, %v7263_v27 }
 0x704   :  { %v7285_v43 = vmax.f32 %v7283_v40, %v7284_v10  ;;  %v7687_v14 = vpack.c.bf16 %v7257_v58, %v7257_v58  ;;  %v13039_v39 = vpop.f32.mrb[94].mxu1  ;;  %v7686_v28 = vpack.c.bf16 %v13023_v6, %v13023_v6  ;;  %v6808_v22 = vcombine.high %v12993_v61, %v12993_v61 }
 0x705   :  { %v13047_v41 = vadd.f32 %v12979_v38, %v12966_v62  ;;  %v13049_v26 = vpop.f32.mrb[95].mxu1  ;;  %v7845_v21 = vunpack.c.l.b16 %v7685_v60  ;;  %v6955_v17 = vrot.slane %v12990_v49, %v14305_v54  ;;  %v7690_v38 = vpack.c.bf16 %v13033_v25, %v13033_v25  ;;  %9350 = vmatpush3.bf16.msra.mxu1 %v9909_v37 }
 0x706   :  { %v7691_v59 = vpack.c.bf16 %v7285_v43, %v7285_v43  ;;  %v7847_v57 = vunpack.c.l.b16 %v7687_v14  ;;  %v7849_v63 = vunpack.c.l.b16 %v7689_v46  ;;  %v6963_v3 = vrot.slane %v6807_v56, %v14305_v54 }
 0x707   :  { %v6971_v44 = vrot.slane %v12993_v61, %v14305_v54  ;;  %v7291_v52 = vrot.slane %v7290_v31, 1  ;;  %v6956_v4 = vcombine.high %v6955_v17, %v6955_v17  ;;  %v7688_v49 = vpack.c.bf16 %v7264_v1, %v7264_v1 }
 0x708   :  { %v7851_v9 = vunpack.c.l.b16 %v7691_v59  ;;  %v7909_v8 = vsel %vm5264_vm6, %v7847_v57, %v7845_v21  ;;  %v6964_v20 = vcombine.high %v6963_v3, %v6963_v3  ;;  %v6979_v61 = vrot.slane %v6808_v22, %v14305_v54 }
 0x709   :  { %v7910_v42 = vsel %vm5266_vm7, %v7849_v63, %v7909_v8  ;;  %v6972_v16 = vcombine.high %v6971_v44, %v6971_v44  ;;  %v7293_v51 = vsel %vm3311_vm5, %v6955_v17, -inf  ;;  %v7300_v18 = vsel %vm3311_vm5, %v6956_v4, -inf }
 0x70a   :  { %v13070_v23 = vsel %vm5268_vm8, %v7851_v9, %v7910_v42  ;;  %v7294_v48 = vrot.slane %v7293_v51, 4  ;;  %v7301_v32 = vrot.slane %v7300_v18, 4  ;;  %v7307_v15 = vsel %vm3311_vm5, %v6963_v3, -inf }
 0x70b   :  { %v7314_v45 = vsel %vm3311_vm5, %v6964_v20, -inf  ;;  %v7308_v40 = vrot.slane %v7307_v15, 4  ;;  %v7321_v27 = vsel %vm3311_vm5, %v6971_v44, -inf  ;;  %v7328_v33 = vsel %vm3311_vm5, %v6972_v16, -inf }
 0x70c   :  { %v7315_v6 = vrot.slane %v7314_v45, 4  ;;  %v13082_v30 = vmax.f32 %v7290_v31, %v7291_v52  ;;  %v7295_v55 = vmax.f32 %v7293_v51, %v7294_v48  ;;  %v7302_v58 = vmax.f32 %v7300_v18, %v7301_v32 }
 0x70d   :  { %v7322_v10 = vrot.slane %v7321_v27, 4  ;;  %v6980_v60 = vcombine.high %v6979_v61, %v6979_v61  ;;  %v7309_v24 = vmax.f32 %v7307_v15, %v7308_v40  ;;  %v7329_v25 = vrot.slane %v7328_v33, 4 }
 0x70e   :  { %v7335_v46 = vsel %vm3311_vm5, %v6979_v61, -inf  ;;  %v7296_v56 = vrot.slane %v7295_v55, 2  ;;  %v7303_v43 = vrot.slane %v7302_v58, 2  ;;  %v7316_v14 = vmax.f32 %v7314_v45, %v7315_v6 }
 0x70f   :  { %v7323_v1 = vmax.f32 %v7321_v27, %v7322_v10  ;;  %v13085_v22 = vunpack.c.l.b16 %v7686_v28  ;;  %v13087_v53 = vunpack.c.l.b16 %v7690_v38  ;;  %v7310_v59 = vrot.slane %v7309_v24, 2 }
 0x710   :  { %v7336_v21 = vrot.slane %v7335_v46, 4  ;;  %v13091_v57 = vunpack.c.l.b16 %v7688_v49  ;;  %v7297_v17 = vmax.f32 %v7295_v55, %v7296_v56  ;;  %v7330_v3 = vmax.f32 %v7328_v33, %v7329_v25 }
 0x711   :  { %v7324_v0 = vrot.slane %v7323_v1, 2  ;;  %v7311_v63 = vmax.f32 %v7309_v24, %v7310_v59  ;;  %v7342_v52 = vsel %vm3311_vm5, %v6980_v60, -inf  ;;  %v7304_v8 = vmax.f32 %v7302_v58, %v7303_v43 }
 0x712   :  { %v7337_v44 = vmax.f32 %v7335_v46, %v7336_v21  ;;  %v7298_v9 = vrot.slane %v7297_v17, 1  ;;  %v7317_v28 = vrot.slane %v7316_v14, 2  ;;  %v9483_v20 = vadd.f32 %v12981_v11, %v12969_v50 }
 0x713   :  { %v7325_v4 = vmax.f32 %v7323_v1, %v7324_v0  ;;  %v7312_v38 = vrot.slane %v7311_v63, 1  ;;  %v13098_v49 = vadd.f32 %v12985_v36, %v12966_v62  ;;  %v7343_v61 = vrot.slane %v7342_v52, 4  ;;  %v9910_v0 = vld [vmem:[%s13754_s6 + $0xc0] sm:$0xff]  }
 0x714   :  { %v7338_v42 = vrot.slane %v7337_v44, 2  ;;  %v7299_v16 = vmax.f32 %v7297_v17, %v7298_v9  ;;  %v13102_v51 = vadd.f32 %v12995_v19, %v12969_v50  ;;  %v7331_v18 = vrot.slane %v7330_v3, 2  ;;  %9363 = vmatprep.subr.bf16.mxu1 %v9910_v0 }
 0x715   :  { %v7326_v47 = vrot.slane %v7325_v4, 1  ;;  %v6809_v48 = vcombine.low %v13047_v41, %v9483_v20  ;;  %v6810_v32 = vcombine.high %v13047_v41, %v9483_v20  ;;  %v7305_v15 = vrot.slane %v7304_v8, 1 }
 0x716   :  { %v7339_v37 = vmax.f32 %v7337_v44, %v7338_v42  ;;  %v13106_v45 = vmax.f32 %v7311_v63, %v7312_v38  ;;  %v7693_v11 = vpack.c.bf16 %v7299_v16, %v7299_v16  ;;  %v6827_v36 = vcombine.low %v13098_v49, %v13102_v51 }
 0x717   :  { %v13110_v40 = vmax.f32 %v7325_v4, %v7326_v47  ;;  %v6817_v27 = vrot.slane %v6809_v48, %v14305_v54  ;;  %v6824_v19 = vrot.slane %v6810_v32, %v14305_v54  ;;  %v13114_v33 = vmax.f32 %v7316_v14, %v7317_v28 }
 0x718   :  { %v7340_v6 = vrot.slane %v7339_v37, 1  ;;  %v13116_v55 = vmax.f32 %v7342_v52, %v7343_v61  ;;  %v7853_v58 = vunpack.c.l.b16 %v7693_v11  ;;  %v6828_v41 = vcombine.high %v13098_v49, %v13102_v51 }
 0x719   :  { %v13120_v10 = vmax.f32 %v7330_v3, %v7331_v18  ;;  %v6825_v24 = vcombine.high %v6817_v27, %v6817_v27  ;;  %v6826_v25 = vcombine.high %v6824_v19, %v6824_v19  ;;  %v13124_v46 = vmax.f32 %v7304_v8, %v7305_v15 }
 0x71a   :  { %v13122_v60 = vmax.f32 %v7339_v37, %v7340_v6  ;;  %v13128_v56 = vsel %vm5270_vm9, %v7853_v58, %v13070_v23  ;;  %v6987_v43 = vrot.slane %v6817_v27, %v14305_v54  ;;  %v7003_v14 = vrot.slane %v6824_v19, %v14305_v54 }
 0x71b   :  { %v7695_v1 = vpack.c.bf16 %v13106_v45, %v13106_v45  ;;  %v7697_v59 = vpack.c.bf16 %v13110_v40, %v13110_v40  ;;  %v6995_v21 = vrot.slane %v6825_v24, %v14305_v54  ;;  %v7011_v17 = vrot.slane %v6826_v25, %v14305_v54 }
 0x71c   :  { %v6988_v23 = vcombine.high %v6987_v43, %v6987_v43  ;;  %v7004_v63 = vcombine.high %v7003_v14, %v7003_v14  ;;  %v7349_v3 = vsel %vm3311_vm5, %v6987_v43, -inf  ;;  %v7377_v44 = vsel %vm3311_vm5, %v7003_v14, -inf }
 0x71d   :  { %v7699_v52 = vpack.c.bf16 %v13122_v60, %v13122_v60  ;;  %v6996_v9 = vcombine.high %v6995_v21, %v6995_v21  ;;  %v7012_v8 = vcombine.high %v7011_v17, %v7011_v17  ;;  %v7350_v28 = vrot.slane %v7349_v3, 4 }
 0x71e   :  { %v7356_v4 = vsel %vm3311_vm5, %v6988_v23, -inf  ;;  %v7363_v38 = vsel %vm3311_vm5, %v6995_v21, -inf  ;;  %v7378_v42 = vrot.slane %v7377_v44, 4  ;;  %v7384_v20 = vsel %vm3311_vm5, %v7004_v63, -inf }
 0x71f   :  { %v7351_v16 = vmax.f32 %v7349_v3, %v7350_v28  ;;  %v7357_v47 = vrot.slane %v7356_v4, 4  ;;  %v7364_v61 = vrot.slane %v7363_v38, 4  ;;  %v7370_v18 = vsel %vm3311_vm5, %v6996_v9, -inf }
 0x720   :  { %v7371_v37 = vrot.slane %v7370_v18, 4  ;;  %v7379_v48 = vmax.f32 %v7377_v44, %v7378_v42  ;;  %v7385_v32 = vrot.slane %v7384_v20, 4  ;;  %v7391_v15 = vsel %vm3311_vm5, %v7011_v17, -inf }
 0x721   :  { %v7352_v11 = vrot.slane %v7351_v16, 2  ;;  %v7358_v6 = vmax.f32 %v7356_v4, %v7357_v47  ;;  %v7365_v27 = vmax.f32 %v7363_v38, %v7364_v61  ;;  %v7392_v19 = vrot.slane %v7391_v15, 4 }
 0x722   :  { %v7372_v58 = vmax.f32 %v7370_v18, %v7371_v37  ;;  %v7380_v60 = vrot.slane %v7379_v48, 2  ;;  %v7386_v24 = vmax.f32 %v7384_v20, %v7385_v32  ;;  %v7398_v25 = vsel %vm3311_vm5, %v7012_v8, -inf }
 0x723   :  { %v7353_v43 = vmax.f32 %v7351_v16, %v7352_v11  ;;  %v7359_v14 = vrot.slane %v7358_v6, 2  ;;  %v7366_v21 = vrot.slane %v7365_v27, 2  ;;  %v7393_v0 = vmax.f32 %v7391_v15, %v7392_v19 }
 0x724   :  { %v7373_v23 = vrot.slane %v7372_v58, 2  ;;  %v7381_v63 = vmax.f32 %v7379_v48, %v7380_v60  ;;  %v7387_v3 = vrot.slane %v7386_v24, 2  ;;  %v7399_v44 = vrot.slane %v7398_v25, 4 }
 0x725   :  { %v7354_v9 = vrot.slane %v7353_v43, 1  ;;  %v7360_v28 = vmax.f32 %v7358_v6, %v7359_v14  ;;  %v7367_v17 = vmax.f32 %v7365_v27, %v7366_v21  ;;  %v7394_v42 = vrot.slane %v7393_v0, 2 }
 0x726   :  { %v7374_v4 = vmax.f32 %v7372_v58, %v7373_v23  ;;  %v7382_v38 = vrot.slane %v7381_v63, 1  ;;  %v7388_v47 = vmax.f32 %v7386_v24, %v7387_v3  ;;  %v7400_v61 = vmax.f32 %v7398_v25, %v7399_v44 }
 0x727   :  { %v7355_v18 = vmax.f32 %v7353_v43, %v7354_v9  ;;  %v7361_v20 = vrot.slane %v7360_v28, 1  ;;  %v7368_v37 = vrot.slane %v7367_v17, 1  ;;  %v7395_v8 = vmax.f32 %v7393_v0, %v7394_v42 }
 0x728   :  { %v7375_v16 = vrot.slane %v7374_v4, 1  ;;  %v7383_v32 = vmax.f32 %v7381_v63, %v7382_v38  ;;  %v7389_v11 = vrot.slane %v7388_v47, 1  ;;  %v7401_v15 = vrot.slane %v7400_v61, 2 }
 0x729   :  { %v7369_v19 = vmax.f32 %v7367_v17, %v7368_v37  ;;  %v7396_v48 = vrot.slane %v7395_v8, 1  ;;  %v7701_v60 = vpack.c.bf16 %v7355_v18, %v7355_v18  ;;  %v6835_v6 = vrot.slane %v6827_v36, %v14305_v54 }
 0x72a   :  { %v7362_v27 = vmax.f32 %v7360_v28, %v7361_v20  ;;  %v7402_v58 = vmax.f32 %v7400_v61, %v7401_v15  ;;  %v7705_v24 = vpack.c.bf16 %v7383_v32, %v7383_v32  ;;  %v6842_v25 = vrot.slane %v6828_v41, %v14305_v54 }
 0x72b   :  { %v13164_v14 = vunpack.c.l.b16 %v7695_v1  ;;  %v7397_v21 = vmax.f32 %v7395_v8, %v7396_v48  ;;  %v7703_v0 = vpack.c.bf16 %v7369_v19, %v7369_v19  ;;  %v13169_v36 = vunpack.c.l.b16 %v7697_v59 }
 0x72c   :  { %v13171_v23 = vunpack.c.l.b16 %v7699_v52  ;;  %v7376_v63 = vmax.f32 %v7374_v4, %v7375_v16  ;;  %v7390_v49 = vmax.f32 %v7388_v47, %v7389_v11  ;;  %v7861_v41 = vunpack.c.l.b16 %v7701_v60 }
 0x72d   :  { %v7707_v51 = vpack.c.bf16 %v7397_v21, %v7397_v21  ;;  %v7863_v3 = vunpack.c.l.b16 %v7703_v0  ;;  %v6843_v44 = vcombine.high %v6835_v6, %v6835_v6  ;;  %v7403_v9 = vrot.slane %v7402_v58, 1 }
 0x72e   :  { %14306 = vst [vmem:[#allocation91_spill] sm:$0xff] %v13171_v23  ;;  %v7702_v28 = vpack.c.bf16 %v7362_v27, %v7362_v27  ;;  %v7865_v45 = vunpack.c.l.b16 %v7705_v24  ;;  %v6844_v1 = vcombine.high %v6842_v25, %v6842_v25  ;;  %v7019_v38 = vrot.slane %v6835_v6, %v14305_v54 }
 0x72f   :  { %v7867_v17 = vunpack.c.l.b16 %v7707_v51  ;;  %v7923_v42 = vsel %vm5264_vm6, %v7863_v3, %v7861_v41  ;;  %v7027_v40 = vrot.slane %v6843_v44, %v14305_v54  ;;  %v7704_v59 = vpack.c.bf16 %v7376_v63, %v7376_v63 }
 0x730   :  { %v7924_v52 = vsel %vm5266_vm7, %v7865_v45, %v7923_v42  ;;  %v7035_v4 = vrot.slane %v6842_v25, %v14305_v54  ;;  %v7043_v47 = vrot.slane %v6844_v1, %v14305_v54  ;;  %v7020_v18 = vcombine.high %v7019_v38, %v7019_v38 }
 0x731   :  { %v13180_v61 = vsel %vm5268_vm8, %v7867_v17, %v7924_v52  ;;  %v7028_v20 = vcombine.high %v7027_v40, %v7027_v40  ;;  %v7405_v37 = vsel %vm3311_vm5, %v7019_v38, -inf  ;;  %v7419_v11 = vsel %vm3311_vm5, %v7027_v40, -inf }
 0x732   :  { %v7036_v8 = vcombine.high %v7035_v4, %v7035_v4  ;;  %v7044_v16 = vcombine.high %v7043_v47, %v7043_v47  ;;  %v7406_v32 = vrot.slane %v7405_v37, 4  ;;  %v7412_v15 = vsel %vm3311_vm5, %v7020_v18, -inf }
 0x733   :  { %v7420_v19 = vrot.slane %v7419_v11, 4  ;;  %v7426_v48 = vsel %vm3311_vm5, %v7028_v20, -inf  ;;  %v7433_v60 = vsel %vm3311_vm5, %v7035_v4, -inf  ;;  %v7413_v27 = vrot.slane %v7412_v15, 4 }
 0x734   :  { %v7407_v6 = vmax.f32 %v7405_v37, %v7406_v32  ;;  %v7427_v24 = vrot.slane %v7426_v48, 4  ;;  %v7434_v25 = vrot.slane %v7433_v60, 4  ;;  %v7706_v21 = vpack.c.bf16 %v7390_v49, %v7390_v49 }
 0x735   :  { %v13187_v0 = vunpack.c.l.b16 %v7702_v28  ;;  %v7421_v63 = vmax.f32 %v7419_v11, %v7420_v19  ;;  %v7447_v51 = vsel %vm3311_vm5, %v7043_v47, -inf  ;;  %v7414_v3 = vmax.f32 %v7412_v15, %v7413_v27 }
 0x736   :  { %v7408_v41 = vrot.slane %v7407_v6, 2  ;;  %v7435_v44 = vmax.f32 %v7433_v60, %v7434_v25  ;;  %v7440_v45 = vsel %vm3311_vm5, %v7036_v8, -inf  ;;  %v13191_v1 = vmax.f32 %v7402_v58, %v7403_v9 }
 0x737   :  { %v7422_v17 = vrot.slane %v7421_v63, 2  ;;  %v7448_v42 = vrot.slane %v7447_v51, 4  ;;  %v7454_v38 = vsel %vm3311_vm5, %v7044_v16, -inf  ;;  %v7415_v52 = vrot.slane %v7414_v3, 2 }
 0x738   :  { %v7409_v40 = vmax.f32 %v7407_v6, %v7408_v41  ;;  %v7428_v4 = vmax.f32 %v7426_v48, %v7427_v24  ;;  %v7436_v49 = vrot.slane %v7435_v44, 2  ;;  %v13194_v28 = vunpack.c.l.b16 %v7704_v59 }
 0x739   :  { %v7423_v18 = vmax.f32 %v7421_v63, %v7422_v17  ;;  %v7441_v20 = vrot.slane %v7440_v45, 4  ;;  %v7449_v47 = vmax.f32 %v7447_v51, %v7448_v42  ;;  %v7416_v32 = vmax.f32 %v7414_v3, %v7415_v52 }
 0x73a   :  { %v7410_v37 = vrot.slane %v7409_v40, 1  ;;  %v7437_v11 = vmax.f32 %v7435_v44, %v7436_v49  ;;  %v7455_v15 = vrot.slane %v7454_v38, 4  ;;  %v13196_v8 = vunpack.c.l.b16 %v7706_v21 }
 0x73b   :  { %v7424_v58 = vrot.slane %v7423_v18, 1  ;;  %v7450_v9 = vrot.slane %v7449_v47, 2  ;;  %v9486_v16 = vadd.f32 %v13005_v13, %v12966_v62  ;;  %v7429_v60 = vrot.slane %v7428_v4, 2 }
 0x73c   :  { %v7411_v19 = vmax.f32 %v7409_v40, %v7410_v37  ;;  %v7438_v48 = vrot.slane %v7437_v11, 1  ;;  %v9487_v59 = vadd.f32 %v13011_v35, %v12969_v50  ;;  %v13204_v27 = vmax.f32 %v7440_v45, %v7441_v20 }
 0x73d   :  { %v7451_v24 = vmax.f32 %v7449_v47, %v7450_v9  ;;  %v13208_v25 = vadd.f32 %v13013_v7, %v12966_v62  ;;  %v7417_v21 = vrot.slane %v7416_v32, 1  ;;  %v13210_v63 = vmax.f32 %v7454_v38, %v7455_v15 }
 0x73e   :  { %v7709_v13 = vpack.c.bf16 %v7411_v19, %v7411_v19  ;;  %v6845_v51 = vcombine.low %v9486_v16, %v9487_v59  ;;  %v13212_v41 = vmax.f32 %v7423_v18, %v7424_v58  ;;  %v6846_v44 = vcombine.high %v9486_v16, %v9487_v59 }
 0x73f   :  { %v7452_v3 = vrot.slane %v7451_v24, 1  ;;  %v13216_v35 = vadd.f32 %v13015_v29, %v12969_v50  ;;  %v13218_v45 = vmax.f32 %v7428_v4, %v7429_v60  ;;  %v13220_v17 = vmax.f32 %v7437_v11, %v7438_v48 }
 0x740   :  { %v7869_v42 = vunpack.c.l.b16 %v7709_v13  ;;  %v6853_v7 = vrot.slane %v6845_v51, %v14305_v54  ;;  %v6860_v52 = vrot.slane %v6846_v44, %v14305_v54  ;;  %v13229_v18 = vmax.f32 %v7416_v32, %v7417_v21 }
 0x741   :  { %v13224_v40 = vmax.f32 %v7451_v24, %v7452_v3 }
 0x742   :  { %v13233_v29 = vsel %vm5270_vm9, %v7869_v42, %v13180_v61  ;;  %v6861_v4 = vcombine.high %v6853_v7, %v6853_v7  ;;  %v7051_v20 = vrot.slane %v6853_v7, %v14305_v54  ;;  %v6862_v37 = vcombine.high %v6860_v52, %v6860_v52 }
 0x743   :  { %14307 = vst [vmem:[#allocation93_spill] sm:$0xff] %v13233_v29  ;;  %v7067_v11 = vrot.slane %v6860_v52, %v14305_v54 }
 0x744   :  { %v7052_v58 = vcombine.high %v7051_v20, %v7051_v20  ;;  %v7059_v9 = vrot.slane %v6861_v4, %v14305_v54  ;;  %v7461_v61 = vsel %vm3311_vm5, %v7051_v20, -inf  ;;  %v7075_v60 = vrot.slane %v6862_v37, %v14305_v54 }
 0x745   :  { %v7068_v19 = vcombine.high %v7067_v11, %v7067_v11  ;;  %v7462_v48 = vrot.slane %v7461_v61, 4  ;;  %v7489_v13 = vsel %vm3311_vm5, %v7067_v11, -inf }
 0x746   :  { %v7060_v59 = vcombine.high %v7059_v9, %v7059_v9  ;;  %v7468_v24 = vsel %vm3311_vm5, %v7052_v58, -inf  ;;  %v7475_v21 = vsel %vm3311_vm5, %v7059_v9, -inf  ;;  %v7076_v51 = vcombine.high %v7075_v60, %v7075_v60 }
 0x747   :  { %v7463_v3 = vmax.f32 %v7461_v61, %v7462_v48  ;;  %v7469_v44 = vrot.slane %v7468_v24, 4  ;;  %v7476_v42 = vrot.slane %v7475_v21, 4  ;;  %v7490_v52 = vrot.slane %v7489_v13, 4 }
 0x748   :  { %v7482_v7 = vsel %vm3311_vm5, %v7060_v59, -inf  ;;  %v7496_v4 = vsel %vm3311_vm5, %v7068_v19, -inf  ;;  %v7503_v20 = vsel %vm3311_vm5, %v7075_v60, -inf  ;;  %v7510_v11 = vsel %vm3311_vm5, %v7076_v51, -inf }
 0x749   :  { %v7464_v37 = vrot.slane %v7463_v3, 2  ;;  %v7470_v6 = vmax.f32 %v7468_v24, %v7469_v44  ;;  %v7477_v43 = vmax.f32 %v7475_v21, %v7476_v42  ;;  %v7483_v31 = vrot.slane %v7482_v7, 4 }
 0x74a   :  { %v7491_v58 = vmax.f32 %v7489_v13, %v7490_v52  ;;  %v7497_v15 = vrot.slane %v7496_v4, 4  ;;  %v7504_v9 = vrot.slane %v7503_v20, 4  ;;  %v7511_v38 = vrot.slane %v7510_v11, 4 }
 0x74b   :  { %v7465_v16 = vmax.f32 %v7463_v3, %v7464_v37  ;;  %v7471_v61 = vrot.slane %v7470_v6, 2  ;;  %v7478_v48 = vrot.slane %v7477_v43, 2  ;;  %v7484_v32 = vmax.f32 %v7482_v7, %v7483_v31 }
 0x74c   :  { %v7492_v47 = vrot.slane %v7491_v58, 2  ;;  %v7498_v59 = vmax.f32 %v7496_v4, %v7497_v15  ;;  %v7505_v49 = vmax.f32 %v7503_v20, %v7504_v9  ;;  %v7512_v13 = vmax.f32 %v7510_v11, %v7511_v38 }
 0x74d   :  { %v7466_v19 = vrot.slane %v7465_v16, 1  ;;  %v7472_v12 = vmax.f32 %v7470_v6, %v7471_v61  ;;  %v7479_v60 = vmax.f32 %v7477_v43, %v7478_v48  ;;  %v7485_v34 = vrot.slane %v7484_v32, 2 }
 0x74e   :  { %v7493_v24 = vmax.f32 %v7491_v58, %v7492_v47  ;;  %v7499_v21 = vrot.slane %v7498_v59, 2  ;;  %v7506_v44 = vrot.slane %v7505_v49, 2  ;;  %v7513_v31 = vrot.slane %v7512_v13, 2 }
 0x74f   :  { %v7467_v42 = vmax.f32 %v7465_v16, %v7466_v19  ;;  %v7473_v52 = vrot.slane %v7472_v12, 1  ;;  %v7480_v29 = vrot.slane %v7479_v60, 1  ;;  %v7486_v51 = vmax.f32 %v7484_v32, %v7485_v34 }
 0x750   :  { %v7494_v3 = vrot.slane %v7493_v24, 1  ;;  %v7500_v37 = vmax.f32 %v7498_v59, %v7499_v21  ;;  %v7507_v23 = vmax.f32 %v7505_v49, %v7506_v44  ;;  %v7514_v47 = vmax.f32 %v7512_v13, %v7513_v31 }
 0x751   :  { %v7474_v7 = vmax.f32 %v7472_v12, %v7473_v52  ;;  %v7481_v15 = vmax.f32 %v7479_v60, %v7480_v29  ;;  %v7487_v4 = vrot.slane %v7486_v51, 1  ;;  %v7717_v20 = vpack.c.bf16 %v7467_v42, %v7467_v42 }
 0x752   :  { %v13255_v9 = vmax.f32 %v7493_v24, %v7494_v3  ;;  %v7501_v43 = vrot.slane %v7500_v37, 1  ;;  %v7508_v6 = vrot.slane %v7507_v23, 1  ;;  %v14308_v58 = vrot.slane %v13204_v27, 2 }
 0x753   :  { %v7488_v16 = vmax.f32 %v7486_v51, %v7487_v4  ;;  %v7718_v34 = vpack.c.bf16 %v7474_v7, %v7474_v7  ;;  %v14309_v49 = vcombine.low %v13208_v25, %v13216_v35  ;;  %v7515_v11 = vrot.slane %v7514_v47, 1 }
 0x754   :  { %v13260_v38 = vmax.f32 %v13204_v27, %v14308_v58  ;;  %v13268_v32 = vmax.f32 %v7500_v37, %v7501_v43  ;;  %v7719_v61 = vpack.c.bf16 %v7481_v15, %v7481_v15  ;;  %v14310_v48 = vpack.c.bf16 %v13212_v41, %v13212_v41 }
 0x755   :  { %v6871_v12 = vrot.slane %v14309_v49, %v14305_v54  ;;  %v14311_v27 = vpack.c.bf16 %v13220_v17, %v13220_v17  ;;  %v14312_v60 = vpack.c.bf16 %v13224_v40, %v13224_v40  ;;  %v14313_v21 = vcombine.high %v13208_v25, %v13216_v35 }
 0x756   :  { %v13273_v59 = vunpack.c.l.b16 %v14310_v48  ;;  %v7509_v13 = vmax.f32 %v7507_v23, %v7508_v6  ;;  %v7720_v42 = vpack.c.bf16 %v7488_v16, %v7488_v16  ;;  %v7721_v41 = vpack.c.bf16 %v13255_v9, %v13255_v9 }
 0x757   :  { %v13278_v19 = vunpack.c.l.b16 %v14311_v27  ;;  %v13283_v24 = vunpack.c.l.b16 %v14312_v60  ;;  %v6878_v44 = vrot.slane %v14313_v21, %v14305_v54  ;;  %v13291_v52 = vunpack.c.l.b16 %v7717_v20 }
 0x758   :  { %v13293_v17 = vunpack.c.l.b16 %v7718_v34  ;;  %v6879_v51 = vcombine.high %v6871_v12, %v6871_v12  ;;  %v7083_v40 = vrot.slane %v6871_v12, %v14305_v54  ;;  %v13296_v37 = vmax.f32 %v7514_v47, %v7515_v11 }
 0x759   :  { %14314 = vst [vmem:[#allocation41_spill] sm:$0xff] %v13291_v52  ;;  %v6880_v3 = vcombine.high %v6878_v44, %v6878_v44  ;;  %v7722_v31 = vpack.c.bf16 %v13268_v32, %v13268_v32  ;;  %v13300_v25 = vunpack.c.l.b16 %v7719_v61  ;;  %v7099_v23 = vrot.slane %v6878_v44, %v14305_v54 }
 0x75a   :  { %14315 = vst [vmem:[#allocation70_spill] sm:$0xff] %v13293_v17  ;;  %v7084_v35 = vcombine.high %v7083_v40, %v7083_v40  ;;  %v7091_v7 = vrot.slane %v6879_v51, %v14305_v54  ;;  %v7517_v4 = vsel %vm3311_vm5, %v7083_v40, -inf  ;;  %v7723_v20 = vpack.c.bf16 %v7509_v13, %v7509_v13 }
 0x75b   :  { %14316 = vst [vmem:[#allocation81_spill] sm:$0xff] %v13300_v25  ;;  %v7107_v15 = vrot.slane %v6880_v3, %v14305_v54  ;;  %v7100_v9 = vcombine.high %v7099_v23, %v7099_v23  ;;  %v7518_v43 = vrot.slane %v7517_v4, 4  ;;  %v7545_v6 = vsel %vm3311_vm5, %v7099_v23, -inf }
 0x75c   :  { %v7092_v47 = vcombine.high %v7091_v7, %v7091_v7  ;;  %v7524_v16 = vsel %vm3311_vm5, %v7084_v35, -inf  ;;  %v7531_v34 = vsel %vm3311_vm5, %v7091_v7, -inf  ;;  %v7546_v11 = vrot.slane %v7545_v6, 4 }
 0x75d   :  { %v7108_v58 = vcombine.high %v7107_v15, %v7107_v15  ;;  %v7519_v49 = vmax.f32 %v7517_v4, %v7518_v43  ;;  %v7525_v12 = vrot.slane %v7524_v16, 4  ;;  %v7532_v32 = vrot.slane %v7531_v34, 4 }
 0x75e   :  { %v7538_v61 = vsel %vm3311_vm5, %v7092_v47, -inf  ;;  %v7552_v48 = vsel %vm3311_vm5, %v7100_v9, -inf  ;;  %v7559_v27 = vsel %vm3311_vm5, %v7107_v15, -inf  ;;  %v7547_v3 = vmax.f32 %v7545_v6, %v7546_v11 }
 0x75f   :  { %v7566_v60 = vsel %vm3311_vm5, %v7108_v58, -inf  ;;  %v7520_v21 = vrot.slane %v7519_v49, 2  ;;  %v7526_v44 = vmax.f32 %v7524_v16, %v7525_v12  ;;  %v7533_v13 = vmax.f32 %v7531_v34, %v7532_v32 }
 0x760   :  { %v7539_v51 = vrot.slane %v7538_v61, 4  ;;  %v7553_v40 = vrot.slane %v7552_v48, 4  ;;  %v7560_v23 = vrot.slane %v7559_v27, 4  ;;  %v9490_v35 = vadd.f32 %v13028_v5, %v12966_v62 }
 0x761   :  { %v7521_v7 = vmax.f32 %v7519_v49, %v7520_v21  ;;  %v7527_v4 = vrot.slane %v7526_v44, 2  ;;  %v7534_v43 = vrot.slane %v7533_v13, 2  ;;  %v7548_v29 = vrot.slane %v7547_v3, 2 }
 0x762   :  { %v7540_v47 = vmax.f32 %v7538_v61, %v7539_v51  ;;  %v7554_v9 = vmax.f32 %v7552_v48, %v7553_v40  ;;  %v13315_v25 = vmax.f32 %v7559_v27, %v7560_v23  ;;  %v7567_v15 = vrot.slane %v7566_v60, 4 }
 0x763   :  { %v13317_v58 = vunpack.c.l.b16 %v7720_v42  ;;  %v13319_v16 = vunpack.c.l.b16 %v7721_v41  ;;  %v7522_v34 = vrot.slane %v7521_v7, 1  ;;  %v7528_v6 = vmax.f32 %v7526_v44, %v7527_v4 }
 0x764   :  { %14317 = vst [vmem:[#allocation94_spill] sm:$0xff] %v13315_v25  ;;  %v13323_v32 = vmax.f32 %v7533_v13, %v7534_v43  ;;  %v7541_v5 = vrot.slane %v7540_v47, 2  ;;  %v9491_v49 = vadd.f32 %v13037_v2, %v12969_v50  ;;  %v13327_v11 = vunpack.c.l.b16 %v7722_v31 }
 0x765   :  { %14318 = vst [vmem:[#allocation84_spill] sm:$0xff] %v13317_v58  ;;  %14319 = vst [vmem:[#allocation85_spill] sm:$0xff] %v13319_v16  ;;  %v13329_v61 = vunpack.c.l.b16 %v7723_v20  ;;  %v13331_v48 = vmax.f32 %v7547_v3, %v7548_v29  ;;  %v7555_v42 = vrot.slane %v7554_v9, 2  ;;  %v13334_v27 = vmax.f32 %v7566_v60, %v7567_v15 }
 0x766   :  { %14320 = vst [vmem:[#allocation86_spill] sm:$0xff] %v13323_v32  ;;  %14321 = vst [vmem:[#allocation99_spill] sm:$0xff] %v13327_v11  ;;  %v6881_v21 = vcombine.low %v9490_v35, %v9491_v49  ;;  %v6882_v44 = vcombine.high %v9490_v35, %v9491_v49  ;;  %v13336_v51 = vmax.f32 %v7521_v7, %v7522_v34  ;;  %v7529_v13 = vrot.slane %v7528_v6, 1 }
 0x767   :  { %14322 = vst [vmem:[#allocation95_spill] sm:$0xff] %v13329_v61  ;;  %14323 = vst [vmem:[#allocation97_spill] sm:$0xff] %v13331_v48  ;;  %v9492_v40 = vadd.f32 %v13039_v39, %v12966_v62  ;;  %v9493_v2 = vadd.f32 %v13049_v26, %v12969_v50  ;;  %v13343_v29 = vmax.f32 %v7540_v47, %v7541_v5 }
 0x768   :  { %v6889_v20 = vrot.slane %v6881_v21, %v14305_v54  ;;  %v6896_v60 = vrot.slane %v6882_v44, %v14305_v54  ;;  %v13348_v23 = vmax.f32 %v7554_v9, %v7555_v42  ;;  %v13352_v39 = vmax.f32 %v7528_v6, %v7529_v13 }
 0x769   :  { %v6899_v35 = vcombine.low %v9492_v40, %v9493_v2  ;;  %v6900_v7 = vcombine.high %v9492_v40, %v9493_v2 }
 0x76a   :  { %v6897_v4 = vcombine.high %v6889_v20, %v6889_v20  ;;  %v6898_v43 = vcombine.high %v6896_v60, %v6896_v60  ;;  %v7115_v62 = vrot.slane %v6889_v20, %v14305_v54  ;;  %v7131_v50 = vrot.slane %v6896_v60, %v14305_v54 }
 0x76b   :  { %v13363_v6 = vrot.slane %v6899_v35, %v14305_v54  ;;  %v13366_v44 = vrot.slane %v6900_v7, %v14305_v54 }
 0x76c   :  { %v7116_v34 = vcombine.high %v7115_v62, %v7115_v62  ;;  %v7123_v9 = vrot.slane %v6897_v4, %v14305_v54  ;;  %v7132_v5 = vcombine.high %v7131_v50, %v7131_v50  ;;  %v7139_v49 = vrot.slane %v6898_v43, %v14305_v54 }
 0x76d   :  { %v7573_v42 = vsel %vm3311_vm5, %v7115_v62, -inf  ;;  %v7601_v21 = vsel %vm3311_vm5, %v7131_v50, -inf }
 0x76e   :  { %v7124_v13 = vcombine.high %v7123_v9, %v7123_v9  ;;  %v7140_v40 = vcombine.high %v7139_v49, %v7139_v49  ;;  %v7574_v2 = vrot.slane %v7573_v42, 4  ;;  %v7580_v20 = vsel %vm3311_vm5, %v7116_v34, -inf }
 0x76f   :  { %v7581_v60 = vrot.slane %v7580_v20, 4  ;;  %v7587_v4 = vsel %vm3311_vm5, %v7123_v9, -inf  ;;  %v7602_v41 = vrot.slane %v7601_v21, 4  ;;  %v7608_v43 = vsel %vm3311_vm5, %v7132_v5, -inf }
 0x770   :  { %v7575_v62 = vmax.f32 %v7573_v42, %v7574_v2  ;;  %v7588_v3 = vrot.slane %v7587_v4, 4  ;;  %v7594_v50 = vsel %vm3311_vm5, %v7124_v13, -inf  ;;  %v7609_v35 = vrot.slane %v7608_v43, 4 }
 0x771   :  { %v7582_v31 = vmax.f32 %v7580_v20, %v7581_v60  ;;  %v7595_v12 = vrot.slane %v7594_v50, 4  ;;  %v7603_v7 = vmax.f32 %v7601_v21, %v7602_v41  ;;  %v7615_v15 = vsel %vm3311_vm5, %v7139_v49, -inf }
 0x772   :  { %v7576_v47 = vrot.slane %v7575_v62, 2  ;;  %v7589_v26 = vmax.f32 %v7587_v4, %v7588_v3  ;;  %v7610_v61 = vmax.f32 %v7608_v43, %v7609_v35  ;;  %v7616_v34 = vrot.slane %v7615_v15, 4 }
 0x773   :  { %v7583_v16 = vrot.slane %v7582_v31, 2  ;;  %v7596_v52 = vmax.f32 %v7594_v50, %v7595_v12  ;;  %v7604_v9 = vrot.slane %v7603_v7, 2  ;;  %v7622_v25 = vsel %vm3311_vm5, %v7140_v40, -inf }
 0x774   :  { %v7577_v5 = vmax.f32 %v7575_v62, %v7576_v47  ;;  %v7590_v42 = vrot.slane %v7589_v26, 2  ;;  %v7611_v2 = vrot.slane %v7610_v61, 2  ;;  %v7617_v48 = vmax.f32 %v7615_v15, %v7616_v34 }
 0x775   :  { %v7584_v13 = vmax.f32 %v7582_v31, %v7583_v16  ;;  %v7597_v32 = vrot.slane %v7596_v52, 2  ;;  %v7605_v20 = vmax.f32 %v7603_v7, %v7604_v9  ;;  %v7623_v60 = vrot.slane %v7622_v25, 4 }
 0x776   :  { %v7578_v41 = vrot.slane %v7577_v5, 1  ;;  %v7591_v21 = vmax.f32 %v7589_v26, %v7590_v42  ;;  %v7612_v49 = vmax.f32 %v7610_v61, %v7611_v2  ;;  %v7618_v11 = vrot.slane %v7617_v48, 2 }
 0x777   :  { %v7585_v3 = vrot.slane %v7584_v13, 1  ;;  %v7598_v4 = vmax.f32 %v7596_v52, %v7597_v32  ;;  %v7606_v43 = vrot.slane %v7605_v20, 1  ;;  %v7624_v35 = vmax.f32 %v7622_v25, %v7623_v60 }
 0x778   :  { %v7579_v12 = vmax.f32 %v7577_v5, %v7578_v41  ;;  %v7592_v50 = vrot.slane %v7591_v21, 1  ;;  %v7613_v58 = vrot.slane %v7612_v49, 1  ;;  %v7619_v40 = vmax.f32 %v7617_v48, %v7618_v11 }
 0x779   :  { %v7586_v47 = vmax.f32 %v7584_v13, %v7585_v3  ;;  %v7599_v62 = vrot.slane %v7598_v4, 1  ;;  %v13374_v17 = vmax.f32 %v7605_v20, %v7606_v43  ;;  %v7625_v16 = vrot.slane %v7624_v35, 2 }
 0x77a   :  { %v13376_v31 = vmax.f32 %v7591_v21, %v7592_v50  ;;  %v7614_v15 = vmax.f32 %v7612_v49, %v7613_v58  ;;  %v7620_v7 = vrot.slane %v7619_v40, 1  ;;  %v7733_v26 = vpack.c.bf16 %v7579_v12, %v7579_v12 }
 0x77b   :  { %14324 = vst [vmem:[#allocation76_spill] sm:$0xff] %v13374_v17  ;;  %v7600_v61 = vmax.f32 %v7598_v4, %v7599_v62  ;;  %v7626_v34 = vmax.f32 %v7624_v35, %v7625_v16  ;;  %v7734_v9 = vpack.c.bf16 %v7586_v47, %v7586_v47  ;;  %v6915_v52 = vcombine.high %v13363_v6, %v13363_v6 }
 0x77c   :  { %v14325_v32 = vpack.c.bf16 %v13336_v51, %v13336_v51  ;;  %v7738_v48 = vpack.c.bf16 %v7614_v15, %v7614_v15  ;;  %v6916_v58 = vcombine.high %v13366_v44, %v13366_v44  ;;  %v14327_v2 = vrot.slane %v13114_v33, 1 }
 0x77d   :  { %v7627_v5 = vrot.slane %v7626_v34, 1  ;;  %v14328_v20 = vrot.slane %v13120_v10, 1  ;;  %v13401_v51 = vmax.f32 %v7619_v40, %v7620_v7  ;;  %v13405_v21 = vunpack.c.l.b16 %v7733_v26 }
 0x77e   :  { %v13385_v11 = vunpack.c.l.b16 %v14325_v32  ;;  %v13394_v13 = vmax.f32 %v13114_v33, %v14327_v2  ;;  %v7147_v49 = vrot.slane %v13363_v6, %v14305_v54  ;;  %v7736_v3 = vpack.c.bf16 %v7600_v61, %v7600_v61 }
 0x77f   :  { %v13399_v60 = vmax.f32 %v13120_v10, %v14328_v20  ;;  %14329 = vst [vmem:[#allocation89_spill] sm:$0xff] %v13405_v21  ;;  %v13409_v4 = vunpack.c.l.b16 %v7734_v9  ;;  %v7155_v33 = vrot.slane %v6915_v52, %v14305_v54  ;;  %v7163_v43 = vrot.slane %v13366_v44, %v14305_v54 }
 0x780   :  { %14326 = vst [vmem:[#allocation87_spill] sm:$0xff] %v13385_v11  ;;  %v13414_v10 = vunpack.c.l.b16 %v7738_v48  ;;  %v7148_v35 = vcombine.high %v7147_v49, %v7147_v49  ;;  %v7171_v12 = vrot.slane %v6916_v58, %v14305_v54  ;;  %v7629_v50 = vsel %vm3311_vm5, %v7147_v49, -inf }
 0x781   :  { %v13418_v40 = vmax.f32 %v7626_v34, %v7627_v5  ;;  %v7156_v47 = vcombine.high %v7155_v33, %v7155_v33  ;;  %v7164_v62 = vcombine.high %v7163_v43, %v7163_v43  ;;  %v7630_v6 = vrot.slane %v7629_v50, 4 }
 0x782   :  { %v7172_v16 = vcombine.high %v7171_v12, %v7171_v12  ;;  %v7636_v15 = vsel %vm3311_vm5, %v7148_v35, -inf  ;;  %v7643_v7 = vsel %vm3311_vm5, %v7155_v33, -inf  ;;  %v7657_v26 = vsel %vm3311_vm5, %v7163_v43, -inf }
 0x783   :  { %v7631_v44 = vmax.f32 %v7629_v50, %v7630_v6  ;;  %v7637_v61 = vrot.slane %v7636_v15, 4  ;;  %v7644_v9 = vrot.slane %v7643_v7, 4  ;;  %v7650_v52 = vsel %vm3311_vm5, %v7156_v47, -inf }
 0x784   :  { %v7651_v54 = vrot.slane %v7650_v52, 4  ;;  %v7658_v32 = vrot.slane %v7657_v26, 4  ;;  %v7664_v34 = vsel %vm3311_vm5, %v7164_v62, -inf  ;;  %v7671_v48 = vsel %vm3311_vm5, %v7171_v12, -inf }
 0x785   :  { %v7632_v58 = vrot.slane %v7631_v44, 2  ;;  %v7638_v5 = vmax.f32 %v7636_v15, %v7637_v61  ;;  %v7645_v2 = vmax.f32 %v7643_v7, %v7644_v9  ;;  %v7665_v20 = vrot.slane %v7664_v34, 4 }
 0x786   :  { %v7652_v49 = vmax.f32 %v7650_v52, %v7651_v54  ;;  %v7659_v35 = vmax.f32 %v7657_v26, %v7658_v32  ;;  %v7672_v33 = vrot.slane %v7671_v48, 4  ;;  %v7678_v43 = vsel %vm3311_vm5, %v7172_v16, -inf }
 0x787   :  { %v7633_v50 = vmax.f32 %v7631_v44, %v7632_v58  ;;  %v7639_v6 = vrot.slane %v7638_v5, 2  ;;  %v7646_v42 = vrot.slane %v7645_v2, 2  ;;  %v7666_v41 = vmax.f32 %v7664_v34, %v7665_v20 }
 0x788   :  { %v7653_v47 = vrot.slane %v7652_v49, 2  ;;  %v7660_v25 = vrot.slane %v7659_v35, 2  ;;  %v13427_v11 = vmax.f32 %v7671_v48, %v7672_v33  ;;  %v7679_v62 = vrot.slane %v7678_v43, 4 }
 0x789   :  { %v7634_v21 = vrot.slane %v7633_v50, 1  ;;  %v7640_v12 = vmax.f32 %v7638_v5, %v7639_v6  ;;  %v13429_v17 = vmax.f32 %v7645_v2, %v7646_v42  ;;  %v7667_v15 = vrot.slane %v7666_v41, 2 }
 0x78a   :  { %v7740_v7 = vpack.c.bf16 %v13418_v40, %v13418_v40  ;;  %v13433_v26 = vunpack.c.l.b16 %v7736_v3  ;;  %v13435_v16 = vmax.f32 %v7652_v49, %v7653_v47  ;;  %v13437_v44 = vmax.f32 %v7659_v35, %v7660_v25 }
 0x78b   :  { %v13439_v61 = vmax.f32 %v7633_v50, %v7634_v21  ;;  %v7641_v9 = vrot.slane %v7640_v12, 1  ;;  %v7674_v52 = vrot.slane %v13427_v11, 2  ;;  %v13442_v54 = vmax.f32 %v7678_v43, %v7679_v62 }
 0x78c   :  { %v7648_v42 = vrot.slane %v13429_v17, 1  ;;  %v7345_v32 = vrot.slane %v13116_v55, 2  ;;  %v7431_v34 = vrot.slane %v13218_v45, 1  ;;  %v7445_v3 = vrot.slane %v13260_v38, 1 }
 0x78d   :  { %v13448_v48 = vmax.f32 %v7640_v12, %v7641_v9  ;;  %v13450_v58 = vmax.f32 %v7666_v41, %v7667_v15  ;;  %v7457_v25 = vrot.slane %v13210_v63, 2  ;;  %v7696_v21 = vpack.c.bf16 %v13394_v13, %v13394_v13 }
 0x78e   :  { %v7346_v5 = vmax.f32 %v13116_v55, %v7345_v32  ;;  %v7432_v2 = vmax.f32 %v13218_v45, %v7431_v34  ;;  %v7446_v20 = vmax.f32 %v13260_v38, %v7445_v3  ;;  %v7698_v49 = vpack.c.bf16 %v13399_v60, %v13399_v60 }
 0x78f   :  { %v7662_v35 = vrot.slane %v13437_v44, 1  ;;  %v7742_v41 = vpack.c.bf16 %v13448_v48, %v13448_v48  ;;  %v7458_v33 = vmax.f32 %v13210_v63, %v7457_v25  ;;  %v14330_v43 = vpack.c.bf16 %v13082_v30, %v13082_v30 }
 0x790   :  { %v7347_v50 = vrot.slane %v7346_v5, 1  ;;  %v7712_v55 = vpack.c.bf16 %v7432_v2, %v7432_v2  ;;  %v7714_v6 = vpack.c.bf16 %v7446_v20, %v7446_v20  ;;  %v14331_v45 = vpack.c.bf16 %v13124_v46, %v13124_v46 }
 0x791   :  { %v7852_v13 = vunpack.c.l.b16 %v14330_v43  ;;  %v7459_v47 = vrot.slane %v7458_v33, 1  ;;  %v7856_v60 = vunpack.c.l.b16 %v7696_v21  ;;  %v7858_v62 = vunpack.c.l.b16 %v7698_v49 }
 0x792   :  { %v7854_v38 = vunpack.c.l.b16 %v14331_v45  ;;  %v14332_v12 = vpack.c.bf16 %v13191_v1, %v13191_v1  ;;  %v7348_v9 = vmax.f32 %v7346_v5, %v7347_v50  ;;  %v14333_v63 = vpack.c.bf16 %v13229_v18, %v13229_v18 }
 0x793   :  { %v7872_v32 = vunpack.c.l.b16 %v7712_v55  ;;  %v7874_v34 = vunpack.c.l.b16 %v7714_v6  ;;  %v7460_v3 = vmax.f32 %v7458_v33, %v7459_v47  ;;  %v7916_v46 = vsel %vm5264_vm6, %v13091_v57, %v13085_v22 }
 0x794   :  { %v7868_v15 = vunpack.c.l.b16 %v14332_v12  ;;  %v7870_v30 = vunpack.c.l.b16 %v14333_v63  ;;  %v7930_v25 = vsel %vm5264_vm6, %v13194_v28, %v13187_v0  ;;  %v7913_v1 = vsel %vm5272_vm10, %v13164_v14, %v13128_v56  ;;  %v14334_v0 = vld [vmem:[#allocation91_spill] sm:$0xff] }
 0x795   :  { %v7700_v21 = vpack.c.bf16 %v7348_v9, %v7348_v9  ;;  %v7917_v18 = vsel %vm5266_vm7, %v13087_v53, %v7916_v46  ;;  %v7931_v5 = vsel %vm5266_vm7, %v13196_v8, %v7930_v25  ;;  %v7914_v2 = vsel %vm5274_vm11, %v13169_v36, %v7913_v1  ;;  %v14335_v53 = vld [vmem:[#allocation93_spill] sm:$0xff] }
 0x796   :  { %v7716_v20 = vpack.c.bf16 %v7460_v3, %v7460_v3  ;;  %v7918_v22 = vsel %vm5268_vm8, %v7852_v13, %v7917_v18  ;;  %v7932_v57 = vsel %vm5268_vm8, %v7868_v15, %v7931_v5  ;;  %v7915_v28 = vsel %vm5276_vm12, %v14334_v0, %v7914_v2  ;;  %v9912_v9 = vld [vmem:[%s13754_s6 + $0xc8] sm:$0xff]  }
 0x797   :  { %v7860_v49 = vunpack.c.l.b16 %v7700_v21  ;;  %v7919_v56 = vsel %vm5270_vm9, %v7854_v38, %v7918_v22  ;;  %v7933_v14 = vsel %vm5270_vm9, %v7870_v30, %v7932_v57  ;;  %v7927_v8 = vsel %vm5272_vm10, %v13273_v59, %v14335_v53  ;;  %v14338_v22 = vld [vmem:[#allocation70_spill] sm:$0xff]  ;;  %v14339_v57 = vld [vmem:[#allocation84_spill] sm:$0xff] }
 0x798   :  { %v7876_v33 = vunpack.c.l.b16 %v7716_v20  ;;  %v7920_v36 = vsel %vm5272_vm10, %v7856_v60, %v7919_v56  ;;  %v7934_v43 = vsel %vm5272_vm10, %v7872_v32, %v7933_v14  ;;  %v7928_v13 = vsel %vm5274_vm11, %v13278_v19, %v7927_v8  ;;  %v9911_v19 = vld [vmem:[%s13754_s6 + $0x80] sm:$0xff]  }
 0x799   :  { %v7921_v50 = vsel %vm5274_vm11, %v7858_v62, %v7920_v36  ;;  %v7935_v55 = vsel %vm5274_vm11, %v7874_v34, %v7934_v43  ;;  %v7929_v6 = vsel %vm5276_vm12, %v13283_v24, %v7928_v13  ;;  %v7543_v45 = vrot.slane %v13343_v29, 1  ;;  %v14340_v56 = vld [vmem:[#allocation99_spill] sm:$0xff]  ;;  %v9915_v36 = vld [vmem:[%s13754_s6 + $0x90] sm:$0xff]  }
 0x79a   :  { %v7922_v38 = vsel %vm5276_vm12, %v7860_v49, %v7921_v50  ;;  %v7936_v59 = vsel %vm5276_vm12, %v7876_v33, %v7935_v55  ;;  %v13511_v47 = vpack.c.b16 %v7929_v6, %v7915_v28  ;;  %v7557_v60 = vrot.slane %v13348_v23, 1  ;;  %v14341_v55 = vld [vmem:[#allocation86_spill] sm:$0xff] }
 0x79b   :  { %v13514_v12 = vpack.c.b16 %v7936_v59, %v7922_v38  ;;  %v7544_v62 = vmax.f32 %v13343_v29, %v7543_v45  ;;  %v7569_v24 = vrot.slane %v13334_v27, 2  ;;  %v7655_v15 = vrot.slane %v13435_v16, 1  ;;  %v14343_v59 = vld [vmem:[#allocation97_spill] sm:$0xff] }
 0x79c   :  { %v7558_v63 = vmax.f32 %v13348_v23, %v7557_v60  ;;  %v7669_v30 = vrot.slane %v13450_v58, 1  ;;  %v7681_v32 = vrot.slane %v13442_v54, 2  ;;  %v14336_v34 = vpack.c.bf16 %v13296_v37, %v13296_v37 }
 0x79d   :  { %8101 = vmatprep.mubr.bf16.mxu1 %v13514_v12  ;;  %v7570_v29 = vmax.f32 %v13334_v27, %v7569_v24  ;;  %v7656_v46 = vmax.f32 %v13435_v16, %v7655_v15  ;;  %v7728_v25 = vpack.c.bf16 %v7544_v62, %v7544_v62  ;;  %v14337_v1 = vpack.c.bf16 %v13352_v39, %v13352_v39  ;;  %v9913_v27 = vld [vmem:[%s13754_s6 + $0x88] sm:$0xff]  }
 0x79e   :  { %v7884_v3 = vunpack.c.l.b16 %v14336_v34  ;;  %8102 = vmatmul.mubr.bf16.vlgmr.msra.gmra.mrb[96].mxu1 %v13511_v47  ;;  %v7670_v23 = vmax.f32 %v13450_v58, %v7669_v30  ;;  %v7682_v18 = vmax.f32 %v13442_v54, %v7681_v32  ;;  %v7730_v5 = vpack.c.bf16 %v7558_v63, %v7558_v63  ;;  %v9914_v54 = vld [vmem:[%s13754_s6 + $0xd0] sm:$0xff]  }
 0x79f   :  { %v7886_v21 = vunpack.c.l.b16 %v14337_v1  ;;  %v7900_v37 = vunpack.c.l.b16 %v7740_v7  ;;  %9364 = vmatpush3.bf16.msra.mxu1 %v9911_v19  ;;  %v7571_v16 = vrot.slane %v7570_v29, 1  ;;  %v7744_v2 = vpack.c.bf16 %v7656_v46, %v7656_v46 }
 0x7a0   :  { %v7888_v39 = vunpack.c.l.b16 %v7728_v25  ;;  %v7902_v20 = vunpack.c.l.b16 %v7742_v41  ;;  %9365 = vmatprep.subr.bf16.mxu1 %v9912_v9  ;;  %v7683_v58 = vrot.slane %v7682_v18, 1  ;;  %v7746_v40 = vpack.c.bf16 %v7670_v23, %v7670_v23  ;;  %v14345_v9 = vld [vmem:[#allocation94_spill] sm:$0xff] }
 0x7a1   :  { %v7890_v7 = vunpack.c.l.b16 %v7730_v5  ;;  %v7944_v0 = vsel %vm5264_vm6, %v14339_v57, %v14338_v22  ;;  %v7572_v28 = vmax.f32 %v7570_v29, %v7571_v16  ;;  %v7904_v49 = vunpack.c.l.b16 %v7744_v2  ;;  %v9917_v25 = vld [vmem:[%s13754_s6 + $0x98] sm:$0xff]   ;;  %v14352_v22 = vld [vmem:[#allocation85_spill] sm:$0xff] }
 0x7a2   :  { %v7945_v14 = vsel %vm5266_vm7, %v14340_v56, %v7944_v0  ;;  %v7958_v48 = vsel %vm5264_vm6, %v13433_v26, %v13409_v4  ;;  %v7684_v41 = vmax.f32 %v7682_v18, %v7683_v58  ;;  %v7906_v53 = vunpack.c.l.b16 %v7746_v40  ;;  %v9916_v26 = vld [vmem:[%s13754_s6 + $0xd8] sm:$0xff]   ;;  %v9919_v0 = vld [vmem:[%s13754_s6 + $0xa0] sm:$0xff]  }
 0x7a3   :  { %v7946_v8 = vsel %vm5268_vm8, %v7884_v3, %v7945_v14  ;;  %v7959_v33 = vsel %vm5266_vm7, %v13414_v10, %v7958_v48  ;;  %9366 = vmatpush3.bf16.msra.mxu1 %v9913_v27  ;;  %v7732_v43 = vpack.c.bf16 %v7572_v28, %v7572_v28  ;;  %v14342_v6 = vrot.slane %v14341_v55, 1  ;;  %v14353_v56 = vld [vmem:[#allocation95_spill] sm:$0xff]  ;;  %v14354_v48 = vld [vmem:[#allocation89_spill] sm:$0xff] }
 0x7a4   :  { %v7947_v13 = vsel %vm5270_vm9, %v7886_v21, %v7946_v8  ;;  %v7960_v50 = vsel %vm5268_vm8, %v7900_v37, %v7959_v33  ;;  %9367 = vmatprep.subr.bf16.mxu1 %v9914_v54  ;;  %v7748_v10 = vpack.c.bf16 %v7684_v41, %v7684_v41  ;;  %v14344_v60 = vrot.slane %v14343_v59, 1 }
 0x7a5   :  { %v7537_v4 = vmax.f32 %v14341_v55, %v14342_v6  ;;  %v7948_v45 = vsel %vm5272_vm10, %v7888_v39, %v7947_v13  ;;  %v7961_v38 = vsel %vm5270_vm9, %v7902_v20, %v7960_v50  ;;  %v7892_v62 = vunpack.c.l.b16 %v7732_v43  ;;  %v14350_v20 = vld [vmem:[#allocation41_spill] sm:$0xff] }
 0x7a6   :  { %v7551_v19 = vmax.f32 %v14343_v59, %v14344_v60  ;;  %v7949_v24 = vsel %vm5274_vm11, %v7890_v7, %v7948_v45  ;;  %v7962_v15 = vsel %vm5272_vm10, %v7904_v49, %v7961_v38  ;;  %v14346_v63 = vrot.slane %v14345_v9, 2  ;;  %v9921_v38 = vld [vmem:[%s13754_s6 + $0xa8] sm:$0xff]  }
 0x7a7   :  { %v7908_v32 = vunpack.c.l.b16 %v7748_v10  ;;  %v7963_v34 = vsel %vm5274_vm11, %v7906_v53, %v7962_v15  ;;  %v7649_v3 = vmax.f32 %v13429_v17, %v7648_v42  ;;  %v7663_v29 = vmax.f32 %v13437_v44, %v7662_v35  ;;  %9368 = vmatpush3.bf16.msra.mxu1 %v9915_v36  ;;  %v9918_v35 = vld [vmem:[%s13754_s6 + $0xe0] sm:$0xff]   ;;  %v9920_v53 = vld [vmem:[%s13754_s6 + $0xe8] sm:$0xff]  }
 0x7a8   :  { %v7563_v30 = vmax.f32 %v14345_v9, %v14346_v63  ;;  %v7739_v46 = vpack.c.bf16 %v13401_v51, %v13401_v51  ;;  %v7950_v1 = vsel %vm5276_vm12, %v7892_v62, %v7949_v24  ;;  %v7675_v23 = vmax.f32 %v13427_v11, %v7674_v52  ;;  %9369 = vmatprep.subr.bf16.mxu1 %v9916_v26  ;;  %v14348_v11 = vld [vmem:[#allocation76_spill] sm:$0xff]  ;;  %v14355_v36 = vld [vmem:[#allocation87_spill] sm:$0xff]  ;;  %v9922_v62 = vld [vmem:[%s13754_s6 + $0xf0] sm:$0xff]  }
 0x7a9   :  { %v14347_v17 = vpack.c.bf16 %v13376_v31, %v13376_v31  ;;  %v7741_v44 = vpack.c.bf16 %v13439_v61, %v13439_v61  ;;  %v7964_v51 = vsel %vm5276_vm12, %v7908_v32, %v7963_v34  ;;  %v7727_v18 = vpack.c.bf16 %v7537_v4, %v7537_v4  ;;  %v14351_v61 = vld [vmem:[#allocation81_spill] sm:$0xff]  ;;  %v9925_v32 = vld [vmem:[%s13754_s6 + $0xb8] sm:$0xff]   ;;  %v9926_v34 = vld [vmem:[#allocation9 + $0x40] sm:$0xff]  }
 0x7aa   :  { %v7564_v21 = vrot.slane %v7563_v30, 1  ;;  %v7968_v5 = vpack.c.b16 %v7964_v51, %v7950_v1  ;;  %v7676_v27 = vrot.slane %v7675_v23, 1  ;;  %v7729_v16 = vpack.c.bf16 %v7551_v19, %v7551_v19  ;;  %v9923_v63 = vld [vmem:[%s13754_s6 + $0xb0] sm:$0xff]   ;;  %v9932_v1 = vld [vmem:[#allocation9 + $0x58] sm:$0xff]  }
 0x7ab   :  { %v7895_v42 = vunpack.c.l.b16 %v14347_v17  ;;  %v14349_v52 = vpack.c.bf16 %v14348_v11, %v14348_v11  ;;  %v7743_v2 = vpack.c.bf16 %v7649_v3, %v7649_v3  ;;  %v7745_v39 = vpack.c.bf16 %v7663_v29, %v7663_v29  ;;  %9370 = vmatpush3.bf16.msra.mxu1 %v9917_v25  ;;  %v9927_v3 = vld [vmem:[#allocation9] sm:$0xff]   ;;  %v9928_v29 = vld [vmem:[#allocation9 + $0x48] sm:$0xff]   ;;  %v9931_v25 = vld [vmem:[#allocation9 + $0x10] sm:$0xff]  }
 0x7ac   :  { %v7565_v37 = vmax.f32 %v7563_v30, %v7564_v21  ;;  %v7937_v54 = vsel %vm5264_vm6, %v14351_v61, %v14350_v20  ;;  %v7899_v58 = vunpack.c.l.b16 %v7739_v46  ;;  %8109 = vmatprep.mubr.bf16.mxu1 %v7968_v5  ;;  %v7677_v40 = vmax.f32 %v7675_v23, %v7676_v27  ;;  %9371 = vmatprep.subr.bf16.mxu1 %v9918_v35  ;;  %v9924_v30 = vld [vmem:[%s13754_s6 + $0xf8] sm:$0xff]   ;;  %v9929_v46 = vld [vmem:[#allocation9 + $0x8] sm:$0xff]   ;;  %v9934_v23 = vld [vmem:[#allocation9 + $0x60] sm:$0xff]  }
 0x7ad   :  { %v7897_v31 = vunpack.c.l.b16 %v14349_v52  ;;  %v7938_v57 = vsel %vm5266_vm7, %v14352_v22, %v7937_v54  ;;  %v7901_v28 = vunpack.c.l.b16 %v7741_v44  ;;  %v7887_v49 = vunpack.c.l.b16 %v7727_v18  ;;  %v9933_v21 = vld [vmem:[#allocation9 + $0x18] sm:$0xff]   ;;  %v9936_v17 = vld [vmem:[#allocation9 + $0x68] sm:$0xff]   ;;  %v9938_v44 = vld [vmem:[#allocation9 + $0x70] sm:$0xff]  }
 0x7ae   :  { %v7731_v7 = vpack.c.bf16 %v7565_v37, %v7565_v37  ;;  %v7939_v14 = vsel %vm5268_vm8, %v14353_v56, %v7938_v57  ;;  %v7951_v41 = vsel %vm5264_vm6, %v7895_v42, %v14354_v48  ;;  %v7747_v8 = vpack.c.bf16 %v7677_v40, %v7677_v40  ;;  %v9937_v42 = vld [vmem:[#allocation9 + $0x28] sm:$0xff]   ;;  %v9939_v51 = vld [vmem:[#allocation9 + $0x30] sm:$0xff]   ;;  %v9940_v35 = vld [vmem:[#allocation9 + $0x78] sm:$0xff]  }
 0x7af   :  { %v7889_v33 = vunpack.c.l.b16 %v7729_v16  ;;  %v7940_v43 = vsel %vm5270_vm9, %v14355_v36, %v7939_v14  ;;  %v7952_v13 = vsel %vm5266_vm7, %v7897_v31, %v7951_v41  ;;  %v7903_v55 = vunpack.c.l.b16 %v7743_v2  ;;  %9372 = vmatpush3.bf16.msra.mxu1 %v9919_v0  ;;  %v9941_v18 = vld [vmem:[#allocation9 + $0x38] sm:$0xff]   ;;  %v14356_v56 = vld [vmem:[#allocation16_spill] sm:$0xff]  ;;  %v14357_v36 = vld [vmem:[#allocation17_spill] sm:$0xff] }
 0x7b0   :  { %v7891_v50 = vunpack.c.l.b16 %v7731_v7  ;;  %v7941_v6 = vsel %vm5272_vm10, %v7887_v49, %v7940_v43  ;;  %v7953_v4 = vsel %vm5268_vm8, %v7899_v58, %v7952_v13  ;;  %v7905_v26 = vunpack.c.l.b16 %v7745_v39  ;;  %9373 = vmatprep.subr.bf16.mxu1 %v9920_v53  ;;  %v14358_v13 = vld [vmem:[#allocation18_spill] sm:$0xff] }
 0x7b1   :  { %v7942_v10 = vsel %vm5274_vm11, %v7889_v33, %v7941_v6  ;;  %v7954_v45 = vsel %vm5270_vm9, %v7901_v28, %v7953_v4  ;;  %v7907_v59 = vunpack.c.l.b16 %v7747_v8  ;;  %v13656_v14 = vsub.s32 2, %v14356_v56 }
 0x7b2   :  { %v7943_v60 = vsel %vm5276_vm12, %v7891_v50, %v7942_v10  ;;  %v7955_v19 = vsel %vm5272_vm10, %v7903_v55, %v7954_v45  ;;  %v13659_v53 = vsub.s32 3, %v14356_v56 }
 0x7b3   :  { %v7956_v24 = vsel %vm5274_vm11, %v7905_v26, %v7955_v19  ;;  %9374 = vmatpush3.bf16.msra.mxu1 %v9921_v38 }
 0x7b4   :  { %v7957_v15 = vsel %vm5276_vm12, %v7907_v59, %v7956_v24  ;;  %9375 = vmatprep.subr.bf16.mxu1 %v9922_v62 }
 0x7b5   :  { %v7967_v9 = vpack.c.b16 %v7957_v15, %v7943_v60 }
 0x7b7   :  { %8110 = vmatmul.mubr.bf16.gmra.mrb[100].mxu1 %v7967_v9 }
 0x7b8   :  { %8279 = vmatprep.mubr.bf16.mxu1 %v13514_v12  ;;  %9376 = vmatpush3.bf16.msra.mxu1 %v9923_v63  ;;  %v9930_v12 = vld [vmem:[#allocation9 + $0x50] sm:$0xff]  }
 0x7b9   :  { %9377 = vmatprep.subr.bf16.mxu1 %v9924_v30 }
 0x7bc   :  { %9378 = vmatpush3.bf16.msra.mxu1 %v9925_v32 }
 0x7bd   :  { %9391 = vmatprep.subr.bf16.mxu1 %v9926_v34 }
 0x7bf   :  { %8280 = vmatmul.mubr.bf16.vlgmr.msra.gmra.mrb[104].mxu1 %v13511_v47  ;;  %v9935_v47 = vld [vmem:[#allocation9 + $0x20] sm:$0xff]  }
 0x7c0   :  { %8287 = vmatprep.mubr.bf16.mxu1 %v7968_v5  ;;  %9392 = vmatpush3.bf16.msra.mxu1 %v9927_v3  ;;  %v9942_v5 = vld [vmem:[#allocation9 + $0xc0] sm:$0xff]  }
 0x7c1   :  { %9393 = vmatprep.subr.bf16.mxu1 %v9928_v29 }
 0x7c4   :  { %9394 = vmatpush3.bf16.msra.mxu1 %v9929_v46 }
 0x7c5   :  { %9395 = vmatprep.subr.bf16.mxu1 %v9930_v12 }
 0x7c7   :  { %8288 = vmatmul.mubr.bf16.gmra.mrb[108].mxu1 %v7967_v9 }
 0x7c8   :  { %9396 = vmatpush3.bf16.msra.mxu1 %v9931_v25 }
 0x7c9   :  { %9397 = vmatprep.subr.bf16.mxu1 %v9932_v1 }
 0x7cc   :  { %9398 = vmatpush3.bf16.msra.mxu1 %v9933_v21 }
 0x7cd   :  { %9399 = vmatprep.subr.bf16.mxu1 %v9934_v23 }
 0x7d0   :  { %9400 = vmatpush3.bf16.msra.mxu1 %v9935_v47 }
 0x7d1   :  { %9401 = vmatprep.subr.bf16.mxu1 %v9936_v17 }
 0x7d4   :  { %9402 = vmatpush3.bf16.msra.mxu1 %v9937_v42 }
 0x7d5   :  { %9403 = vmatprep.subr.bf16.mxu1 %v9938_v44 }
 0x7d8   :  { %9404 = vmatpush3.bf16.msra.mxu1 %v9939_v51 }
 0x7d9   :  { %9405 = vmatprep.subr.bf16.mxu1 %v9940_v35 }
 0x7dc   :  { %9406 = vmatpush3.bf16.msra.mxu1 %v9941_v18 }
 0x7dd   :  { %9413 = vmatprep.subr.bf16.mxu1 %v9942_v5 }
 0x871   :  { %v9351_v37 = vpop.f32.mrb[96].mxu1 }
 0x872   :  { %v9352_v27 = vpop.f32.mrb[97].mxu1 }
 0x873   :  { %v9353_v16 = vadd.f32 %v9352_v27, %v9351_v37  ;;  %v9354_v11 = vpop.f32.mrb[98].mxu1 }
 0x874   :  { %v9355_v52 = vpop.f32.mrb[99].mxu1 }
 0x875   :  { %v9356_v31 = vadd.f32 %v9355_v52, %v9354_v11 }
 0x88a   :  { %v9357_v2 = vpop.f32.mrb[100].mxu1 }
 0x88b   :  { %v9358_v39 = vpop.f32.mrb[101].mxu1 }
 0x88c   :  { %v9359_v20 = vadd.f32 %v9358_v39, %v9357_v2  ;;  %v9360_v61 = vpop.f32.mrb[102].mxu1 }
 0x88d   :  { %v9361_v54 = vpop.f32.mrb[103].mxu1 }
 0x88e   :  { %v9362_v58 = vadd.f32 %v9361_v54, %v9360_v61 }
 0x892   :  { %v9379_v40 = vpop.f32.mrb[104].mxu1 }
 0x893   :  { %v9380_v7 = vpop.f32.mrb[105].mxu1 }
 0x894   :  { %v9381_v22 = vadd.f32 %v9380_v7, %v9379_v40  ;;  %v9382_v57 = vpop.f32.mrb[106].mxu1 }
 0x895   :  { %v9383_v0 = vpop.f32.mrb[107].mxu1 }
 0x896   :  { %v8296_v28 = vmax.f32 %v9353_v16, %v9381_v22  ;;  %v9384_v49 = vadd.f32 %v9383_v0, %v9382_v57 }
 0x898   :  { %v8300_v48 = vmax.f32 %v8296_v28, 0.0  ;;  %v8297_v41 = vmax.f32 %v9356_v31, %v9384_v49 }
 0x89a   :  { %v8308_v8 = vcombine.high %v8300_v48, %v8300_v48  ;;  %v9385_v33 = vpop.f32.mrb[108].mxu1  ;;  %v8315_v43 = vrot.slane %v8300_v48, %v14357_v36  ;;  %v8355_v50 = vrot.slane %v8300_v48, %v14358_v13  ;;  %v8395_v55 = vrot.slane %v8300_v48, %v13656_v14 }
 0x89b   :  { %v13664_v6 = vmax.f32 %v8297_v41, 0.0  ;;  %v9386_v4 = vpop.f32.mrb[109].mxu1  ;;  %v8435_v60 = vrot.slane %v8300_v48, %v13659_v53 }
 0x89c   :  { %v8319_v26 = vrot.slane %v8308_v8, %v14357_v36  ;;  %v8399_v10 = vrot.slane %v8308_v8, %v13656_v14  ;;  %v9387_v45 = vadd.f32 %v9386_v4, %v9385_v33  ;;  %v9388_v38 = vpop.f32.mrb[110].mxu1  ;;  %v8359_v59 = vrot.slane %v8308_v8, %v14358_v13  ;;  %v9943_v4 = vld [vmem:[#allocation9 + $0x80] sm:$0xff]  }
 0x89d   :  { %v8309_v19 = vcombine.high %v13664_v6, %v13664_v6  ;;  %v8323_v62 = vrot.slane %v13664_v6, %v14357_v36  ;;  %v8363_v24 = vrot.slane %v13664_v6, %v14358_v13  ;;  %v9389_v15 = vpop.f32.mrb[111].mxu1  ;;  %v8403_v30 = vrot.slane %v13664_v6, %v13656_v14 }
 0x89e   :  { %v8344_v9 = vsel %vm5264_vm6, %v8319_v26, %v8315_v43  ;;  %v8424_v63 = vsel %vm5264_vm6, %v8399_v10, %v8395_v55  ;;  %v8298_v32 = vmax.f32 %v9359_v20, %v9387_v45  ;;  %v9390_v29 = vadd.f32 %v9389_v15, %v9388_v38  ;;  %v9944_v45 = vld [vmem:[#allocation9 + $0xc8] sm:$0xff]  }
 0x89f   :  { %v8327_v34 = vrot.slane %v8309_v19, %v14357_v36  ;;  %v8345_v3 = vsel %vm5266_vm7, %v8323_v62, %v8344_v9  ;;  %v8367_v46 = vrot.slane %v8309_v19, %v14358_v13  ;;  %v8443_v12 = vrot.slane %v13664_v6, %v13659_v53  ;;  %v9945_v15 = vld [vmem:[#allocation9 + $0x88] sm:$0xff]  }
 0x8a0   :  { %v8302_v25 = vmax.f32 %v8298_v32, 0.0  ;;  %v8384_v1 = vsel %vm5264_vm6, %v8359_v59, %v8355_v50  ;;  %v8439_v21 = vrot.slane %v8308_v8, %v13659_v53  ;;  %v8299_v23 = vmax.f32 %v9362_v58, %v9390_v29  ;;  %v9948_v32 = vld [vmem:[#allocation9 + $0xd8] sm:$0xff]   ;;  %v9951_v29 = vld [vmem:[#allocation9 + $0xa0] sm:$0xff]  }
 0x8a1   :  { %v8385_v47 = vsel %vm5266_vm7, %v8363_v24, %v8384_v1  ;;  %v8346_v17 = vsel %vm5268_vm8, %v8327_v34, %v8345_v3  ;;  %v8447_v42 = vrot.slane %v8309_v19, %v13659_v53  ;;  %v8407_v18 = vrot.slane %v8309_v19, %v13656_v14  ;;  %v9949_v34 = vld [vmem:[#allocation9 + $0x98] sm:$0xff]   ;;  %v9950_v3 = vld [vmem:[#allocation9 + $0xe0] sm:$0xff]   ;;  %v9955_v1 = vld [vmem:[#allocation9 + $0xb0] sm:$0xff]  }
 0x8a2   :  { %v8310_v44 = vcombine.high %v8302_v25, %v8302_v25  ;;  %v8331_v51 = vrot.slane %v8302_v25, %v14357_v36  ;;  %v8371_v35 = vrot.slane %v8302_v25, %v14358_v13  ;;  %v8303_v5 = vmax.f32 %v8299_v23, 0.0  ;;  %v9957_v23 = vld [vmem:[#allocation9 + $0xb8] sm:$0xff]  }
 0x8a3   :  { %v8386_v37 = vsel %vm5268_vm8, %v8367_v46, %v8385_v47  ;;  %v8451_v27 = vrot.slane %v8302_v25, %v13659_v53  ;;  %v8464_v16 = vsel %vm5264_vm6, %v8439_v21, %v8435_v60  ;;  %v8411_v56 = vrot.slane %v8302_v25, %v13656_v14  ;;  %v9952_v46 = vld [vmem:[#allocation9 + $0xe8] sm:$0xff]   ;;  %v9954_v25 = vld [vmem:[#allocation9 + $0xf0] sm:$0xff]   ;;  %v9956_v21 = vld [vmem:[#allocation9 + $0xf8] sm:$0xff]  }
 0x8a4   :  { %v8375_v11 = vrot.slane %v8310_v44, %v14358_v13  ;;  %v8387_v52 = vsel %vm5270_vm9, %v8371_v35, %v8386_v37  ;;  %v8335_v31 = vrot.slane %v8310_v44, %v14357_v36  ;;  %v8347_v2 = vsel %vm5270_vm9, %v8331_v51, %v8346_v17  ;;  %v9198_v37 = vld [vmem:[%s13756_s8] ss:$0 sm:$0xff]  ;;  %s10100_s8 = smov [#allocation11]  }
 0x8a5   :  { %v8311_v39 = vcombine.high %v8303_v5, %v8303_v5  ;;  %v8339_v20 = vrot.slane %v8303_v5, %v14357_v36  ;;  %v8379_v61 = vrot.slane %v8303_v5, %v14358_v13  ;;  %v8455_v54 = vrot.slane %v8310_v44, %v13659_v53  ;;  %s8914_s22 = sshll.u32 %s10100_s8, 4  ;;  %s8915_s22 = int_to_ptr.vmem [resolvable:$true] %s8914_s22 }
 0x8a6   :  { %v8388_v58 = vsel %vm5272_vm10, %v8375_v11, %v8387_v52  ;;  %v8348_v40 = vsel %vm5272_vm10, %v8335_v31, %v8347_v2  ;;  %v8459_v7 = vrot.slane %v8303_v5, %v13659_v53  ;;  %v8465_v22 = vsel %vm5266_vm7, %v8443_v12, %v8464_v16  ;;  %v9953_v12 = vld [vmem:[#allocation9 + $0xa8] sm:$0xff]   ;;  %s10062_s23 = scalar_lea.vmem %s8915_s22, 32  ;;  %p10063_p5 = scmp.lt.s32.totalorder %s8915_s22, %s8915_s22 }
 0x8a7   :  { %v8383_v57 = vrot.slane %v8311_v39, %v14358_v13  ;;  %v8389_v0 = vsel %vm5274_vm11, %v8379_v61, %v8388_v58  ;;  %v8343_v28 = vrot.slane %v8311_v39, %v14357_v36  ;;  %v8349_v49 = vsel %vm5274_vm11, %v8339_v20, %v8348_v40  ;;  %v8820_v61 = vld [vmem:[%s13757_s9] sm:$0x1]  ;;  %s10058_s9 = scalar_lea.vmem %s8915_s22, 16 }
 0x8a8   :  { %v8463_v48 = vrot.slane %v8311_v39, %v13659_v53  ;;  %v8466_v41 = vsel %vm5268_vm8, %v8447_v42, %v8465_v22  ;;  %v8415_v8 = vrot.slane %v8310_v44, %v13656_v14  ;;  %v8419_v50 = vrot.slane %v8303_v5, %v13656_v14  ;;  %v8821_v42 = vld [vmem:[#allocation2] sm:$0x1]  ;;  %p10059_p4 = scmp.ne.s32.totalorder %s8915_s22, %s10058_s9  ;;  %p10064_p6 = scmp.lt.s32.totalorder %s10062_s23, %s10058_s9 }
 0x8a9   :  { %v8390_v33 = vsel %vm5276_vm12, %v8383_v57, %v8389_v0  ;;  %v8350_v43 = vsel %vm5276_vm12, %v8343_v28, %v8349_v49  ;;  %v8467_v13 = vsel %vm5270_vm9, %v8451_v27, %v8466_v41  ;;  %v8425_v10 = vsel %vm5266_vm7, %v8403_v30, %v8424_v63  ;;  %v9946_v63 = vld [vmem:[#allocation9 + $0xd0] sm:$0xff]   ;;  %8824 = vperm.xlu0 %9699, %v8821_v42  }
 0x8aa   :  { %v8473_v55 = vpack.c.bf16 %v8390_v33, %v8390_v33  ;;  %v8472_v6 = vpack.c.bf16 %v8350_v43, %v8350_v43  ;;  %v8468_v26 = vsel %vm5272_vm10, %v8455_v54, %v8467_v13  ;;  %v8423_v38 = vrot.slane %v8311_v39, %v13656_v14  ;;  %v9947_v30 = vld [vmem:[#allocation9 + $0x90] sm:$0xff]   ;;  %p10065_p7 = por %p10064_p6, %p10063_p5 }
 0x8ab   :  { %v8469_v53 = vsel %vm5274_vm11, %v8459_v7, %v8468_v26  ;;  %v8426_v59 = vsel %vm5268_vm8, %v8407_v18, %v8425_v10  ;;  %v10098_v17 = vmov 0.0  }
 0x8ac   :  { %8771 = vmatprep.mubr.bf16.mxu1 %v8473_v55  ;;  %v8470_v60 = vsel %vm5276_vm12, %v8463_v48, %v8469_v53  ;;  %v8427_v19 = vsel %vm5270_vm9, %v8411_v56, %v8426_v59  ;;  %p10066_p8 = pnand %p10065_p7, %p10059_p4 }
 0x8ad   :  { %8772 = vmatmul.mubr.bf16.vlgmr.msra.gmra.mrb[112].mxu1 %v8472_v6  ;;  %v8475_v62 = vpack.c.bf16 %v8470_v60, %v8470_v60  ;;  %v8428_v24 = vsel %vm5272_vm10, %v8415_v8, %v8427_v19 }
 0x8ae   :  { %9414 = vmatpush3.bf16.msra.mxu1 %v9943_v4  ;;  %v8429_v9 = vsel %vm5274_vm11, %v8419_v50, %v8428_v24 }
 0x8af   :  { %8811 = vmatprep.mubr.bf16.mxu1 %v8475_v62  ;;  %9415 = vmatprep.subr.bf16.mxu1 %v9944_v45  ;;  %v8430_v14 = vsel %vm5276_vm12, %v8423_v38, %v8429_v9 }
 0x8b0   :  { %v8474_v47 = vpack.c.bf16 %v8430_v14, %v8430_v14 }
 0x8b2   :  { %9416 = vmatpush3.bf16.msra.mxu1 %v9945_v15 }
 0x8b3   :  { %9417 = vmatprep.subr.bf16.mxu1 %v9946_v63 }
 0x8b6   :  { %9418 = vmatpush3.bf16.msra.mxu1 %v9947_v30 }
 0x8b7   :  { %9419 = vmatprep.subr.bf16.mxu1 %v9948_v32 }
 0x8ba   :  { %9420 = vmatpush3.bf16.msra.mxu1 %v9949_v34 }
 0x8bb   :  { %9421 = vmatprep.subr.bf16.mxu1 %v9950_v3 }
 0x8be   :  { %9422 = vmatpush3.bf16.msra.mxu1 %v9951_v29 }
 0x8bf   :  { %9423 = vmatprep.subr.bf16.mxu1 %v9952_v46 }
 0x8c2   :  { %9424 = vmatpush3.bf16.msra.mxu1 %v9953_v12 }
 0x8c3   :  { %9425 = vmatprep.subr.bf16.mxu1 %v9954_v25 }
 0x8c6   :  { %9426 = vmatpush3.bf16.msra.mxu1 %v9955_v1 }
 0x8c7   :  { %9427 = vmatprep.subr.bf16.mxu1 %v9956_v21 }
 0x8ca   :  { %9428 = vmatpush3.bf16.msra.mxu1 %v9957_v23 }
 0x8cb   :  { %9437 = vmatprep.subr.mxu1 %v10098_v17 }
 0x8cd   :  { %8812 = vmatmul.mubr.bf16.vlgmr.msra.gmra.mrb[116].mxu1 %v8474_v47 }
 0x8ce   :  { %9439 = vmatprep.mubr.msk.f32.mxu1 %vm10099_vm13, %v10098_v17 }
 0x928   :  { %v8825_v54 = vpop.permute.xlu0 %8824 }
 0x929   :  { %v8830_v58 = vrot.slane %v8825_v54, %v14357_v36 }
 0x980   :  { %v9407_v44 = vpop.f32.mrb[112].mxu1 }
 0x981   :  { %v9408_v51 = vpop.f32.mrb[113].mxu1 }
 0x982   :  { %v9409_v35 = vadd.f32 %v9408_v51, %v9407_v44  ;;  %v9410_v18 = vpop.f32.mrb[114].mxu1 }
 0x983   :  { %v9411_v5 = vpop.f32.mrb[115].mxu1 }
 0x984   :  { %v8774_v11 = vadd.f32 %v9409_v35, %v9198_v37 }
 0x9a0   :  { %v9429_v27 = vpop.f32.mrb[116].mxu1 }
 0x9a1   :  { %v9430_v16 = vpop.f32.mrb[117].mxu1 }
 0x9a2   :  { %v9431_v52 = vadd.f32 %v9430_v16, %v9429_v27  ;;  %v9432_v31 = vpop.f32.mrb[118].mxu1 }
 0x9a3   :  { %v9433_v2 = vpop.f32.mrb[119].mxu1 }
 0x9a4   :  { %v8814_v39 = vadd.f32 %v9431_v52, %v8774_v11 }
 0x9a6   :  { %v8819_v20 = vmax.f32 %v8814_v39, 0.0 }
 0x9a8   :  { %9438 = vmatpush3.xpose.msra.mxu1 %v8819_v20 }
 0x9ab   :  { %9440 = vmatmul.mubr.f32.vlgmr.msra.gmra.mrb[120].mxu1 %v8820_v61 }
 0xa7e   :  { %v8897_v40 = vpop.f32.mrb[120].mxu1 }
 0xa7f   :  { %v8898_v7 = vadd.f32 %v8897_v40, %v8830_v58  ;;  %v9441_v22 = vpop.f32.mrb[121].mxu1 }
 0xa81   :  { %v8901_v57 = vsub.f32 0.0, %v8898_v7 }
 0xa83   :  { %v8902_v0 = vmul.f32 1.442695, %v8901_v57 }
 0xa85   :  { %9966 = vpow2.f32 %v8902_v0 }
 0xa8f   :  { %v9967_v28 = vpop.eup %9966 }
 0xa90   :  { %v8904_v49 = vadd.f32 1.0, %v9967_v28 }
 0xa92   :  { %9968 = vrcp.f32 %v8904_v49 }
 0xa9c   :  { %v9969_v56 = vpop.eup %9968 }
 0xa9d   :  { %8907 = vst.msk [vmem:[#allocation11] sm:$0x1] %vm8906_vm14, %v9969_v56 }
 0xa9e   :  { %10069 = shalt.err (!%p10066_p8)
}
 0xa9f   :  { %s10070_s26 = scalar_lea.hbm %s13759_s11, 16 }
 0xaa0   :  { %p10071_p9 = scmp.ne.s32.totalorder %s13759_s11, %s10070_s26  ;;  %p10074_p10 = scmp.lt.u32.totalorder %s10070_s26, %s13759_s11 }
 0xaa2   :  { %p10076_p11 = pnand %p10074_p10, %p10071_p9 }
 0xaa4   :  { %10079 = shalt.err (!%p10076_p11)
}
 0xaa5   :  { %8917 = dma.vmem_to_hbm [thread:$0]  %s8915_s22, 16, %s13759_s11, [#allocation5]  }
 0xaa6   :  { %10086 = dma.done.wait [#allocation5], 16  }
 0xaa7   :  { %10087 = vsyncadd [#allocation5], 4294967280 }
 0xaa8   :  { %8921 = vsyncpa [#allocation4], 1 }
 0xaa9   :  { %8922 = vsyncpa [#allocation7], 1 }
 0xaaa   :  { %8923 = vsyncpa [#allocation10], 1 }
 0xaab   :  { %8924 = vsyncpa [#allocation5], 1 }

</bundles_post_ra>
